<compile_context>
chip_gen: v6e
topology: v6e:2x2x1
jax: 0.10.0
libtpu: 0.0.40
codegen_flags: <defaults>
</compile_context>

<pallas_src>
import math

import jax
import jax.numpy as jnp
from jax.experimental import pallas as pl
from jax.experimental.pallas import tpu as pltpu


# ----------------------------- model config (small, synthetic) ---------------
BATCH = 2
SEQ_LEN = 30            # mirrors tokenizer max_length=30 in the PyTorch module
SEQ_PAD = 32            # padded to a sublane multiple; pad keys are masked
HIDDEN = 128
NUM_HEADS = 4
HEAD_DIM = HIDDEN // NUM_HEADS
INTERMEDIATE = 256
NUM_LAYERS = 2
VOCAB = 128             # synthetic vocab, lane-friendly
PAD_ID = 1              # XLM-R padding_idx
MAX_POS = 64            # synthetic position table size (>= SEQ_LEN + pad_id + 1)
LN_EPS = 1e-5
NEG_INF = -1e9


# ----------------------------- in-kernel helpers ------------------------------
def _layernorm(v, gamma, beta, eps=LN_EPS):
    mu = jnp.mean(v, axis=-1, keepdims=True)
    var = jnp.mean((v - mu) ** 2, axis=-1, keepdims=True)
    return (v - mu) * jax.lax.rsqrt(var + eps) * gamma + beta


def _gelu(v):
    # TODO(synk): HF XLM-R uses exact erf-GELU; tanh approximation used here for
    # guaranteed Mosaic lowering of the transcendental.
    c = math.sqrt(2.0 / math.pi)
    return 0.5 * v * (1.0 + jnp.tanh(c * (v + 0.044715 * v * v * v)))


# ----------------------------- fused Pallas kernel ----------------------------
def fused_encoder_kernel(ids_ref, pos_ref, bias_ref,
                         wemb_ref, pemb_ref, temb_ref, eg_ref, eb_ref,
                         wq_ref, bq_ref, wk_ref, bk_ref, wv_ref, bv_ref,
                         wo_ref, bo_ref, g1_ref, b1g_ref,
                         w1_ref, bi1_ref, w2_ref, bi2_ref, g2_ref, b2g_ref,
                         o_ref):
    """Embedding lookup + LayerNorm + NUM_LAYERS post-LN encoder layers.

    All rows of the (flattened, padded) batch are processed at once:
      N = BATCH * SEQ_PAD rows, HIDDEN lanes.
    """
    N = ids_ref.shape[0]

    # --- embedding lookups as one-hot MXU matmuls (VOCAB / MAX_POS are tiny) ---
    word_oh = (ids_ref[...] ==
               jax.lax.broadcasted_iota(jnp.int32, (N, VOCAB), 1)).astype(jnp.bfloat16)
    pos_oh = (pos_ref[...] ==
              jax.lax.broadcasted_iota(jnp.int32, (N, MAX_POS), 1)).astype(jnp.bfloat16)
    emb = (jnp.dot(word_oh, wemb_ref[...], preferred_element_type=jnp.float32)
           + jnp.dot(pos_oh, pemb_ref[...], preferred_element_type=jnp.float32)
           + temb_ref[...])                                    # token_type_ids == 0
    x = _layernorm(emb, eg_ref[...], eb_ref[...])              # (N, H) f32

    bias = bias_ref[...]                                       # (N, N) additive mask
    scale = 1.0 / math.sqrt(HEAD_DIM)

    for l in range(NUM_LAYERS):                                # static unroll (tiny)
        xb = x.astype(jnp.bfloat16)
        attn = jnp.zeros((N, HIDDEN), jnp.float32)

        for h in range(NUM_HEADS):                             # static unroll over heads
            # per-head weights pre-split outside the kernel: no lane slicing here
            qh = jnp.dot(xb, wq_ref[l, h], preferred_element_type=jnp.float32) + bq_ref[l, h]
            kh = jnp.dot(xb, wk_ref[l, h], preferred_element_type=jnp.float32) + bk_ref[l, h]
            vh = jnp.dot(xb, wv_ref[l, h], preferred_element_type=jnp.float32) + bv_ref[l, h]

            s = jnp.dot(qh, kh.T, preferred_element_type=jnp.float32) * scale + bias
            s = s - jnp.max(s, axis=-1, keepdims=True)
            p = jnp.exp(s)
            p = p * pl.reciprocal(jnp.sum(p, axis=-1, keepdims=True), approx=True)

            ctx = jnp.dot(p, vh, preferred_element_type=jnp.float32)     # (N, HD)
            # accumulate head contribution; output stays 128-lane dense, no concat
            attn = attn + jnp.dot(ctx.astype(jnp.bfloat16), wo_ref[l, h],
                                  preferred_element_type=jnp.float32)

        attn = attn + bo_ref[l]
        h1 = _layernorm(x + attn, g1_ref[l], b1g_ref[l])       # post-LN #1

        inter = jnp.dot(h1.astype(jnp.bfloat16), w1_ref[l],
                        preferred_element_type=jnp.float32) + bi1_ref[l]
        inter = _gelu(inter)
        ffn = jnp.dot(inter.astype(jnp.bfloat16), w2_ref[l],
                      preferred_element_type=jnp.float32) + bi2_ref[l]
        x = _layernorm(h1 + ffn, g2_ref[l], b2g_ref[l])        # post-LN #2

    o_ref[...] = x


# ----------------------------- pallas_call wrapper ----------------------------
def _full_spec(shape):
    """BlockSpec for an array loaded whole (grid-invariant)."""
    nd = len(shape)
    return pl.BlockSpec(shape, lambda i, _nd=nd: (0,) * _nd)


@jax.jit
def xlmr_word_embedder_forward(params, input_ids, attention_mask):
    """Returns (token_embeddings (B,S,H) f32, attention_mask (B,S) i32)."""
    B, S = input_ids.shape
    pad = SEQ_PAD - S

    ids_p = jnp.pad(input_ids, ((0, 0), (0, pad)), constant_values=PAD_ID)
    mask_p = jnp.pad(attention_mask, ((0, 0), (0, pad)), constant_values=0)

    # XLM-R position ids (tiny int ops; stays in XLA glue)
    not_pad = (ids_p != PAD_ID).astype(jnp.int32)
    position_ids = jnp.cumsum(not_pad, axis=1) * not_pad + PAD_ID

    N = B * SEQ_PAD
    ids_flat = ids_p.reshape(N, 1).astype(jnp.int32)
    pos_flat = position_ids.reshape(N, 1).astype(jnp.int32)

    # block-diagonal (per-batch-element) + key-padding additive attention bias
    batch_id = jnp.repeat(jnp.arange(B, dtype=jnp.int32), SEQ_PAD)        # (N,)
    allowed = (batch_id[:, None] == batch_id[None, :]) & (mask_p.reshape(N) == 1)[None, :]
    attn_bias = jnp.where(allowed, 0.0, NEG_INF).astype(jnp.float32)      # (N, N)

    args = (ids_flat, pos_flat, attn_bias,
            params["word_emb"], params["pos_emb"], params["type_emb"],
            params["emb_ln_g"], params["emb_ln_b"],
            params["wq"], params["bq"], params["wk"], params["bk"],
            params["wv"], params["bv"], params["wo"], params["bo"],
            params["ln1_g"], params["ln1_b"],
            params["w1"], params["b1"], params["w2"], params["b2"],
            params["ln2_g"], params["ln2_b"])

    out = pl.pallas_call(
        fused_encoder_kernel,
        out_shape=jax.ShapeDtypeStruct((N, HIDDEN), jnp.float32),
        grid_spec=pltpu.PrefetchScalarGridSpec(
            num_scalar_prefetch=0,
            # single launch, everything resident in VMEM (< 1 MiB total)
            # TODO(synk): on v7x the 2nd TensorCore idles; a 2-way parallel batch
            # axis would use it at the cost of un-flattening the batch.
            grid=(1,),
            in_specs=[_full_spec(a.shape) for a in args],
            out_specs=pl.BlockSpec((N, HIDDEN), lambda i: (0, 0)),
        ),
        compiler_params=pltpu.CompilerParams(dimension_semantics=("arbitrary",)),
    )(*args)

    token_embeddings = out.reshape(B, SEQ_PAD, HIDDEN)[:, :S, :]
    return token_embeddings, attention_mask


# ----------------------------- parameter construction -------------------------
def init_params(key):
    # TODO(synk): a real XLM-R checkpoint would be reshaped/transposed into this
    # per-head-stacked (L, NH, H, HD) layout; synthetic random init used here.
    def normal_bf16(k, shape, scale=0.02):
        return (scale * jax.random.normal(k, shape, dtype=jnp.float32)).astype(jnp.bfloat16)

    L, NH, H, HD, I = NUM_LAYERS, NUM_HEADS, HIDDEN, HEAD_DIM, INTERMEDIATE
    keys = jax.random.split(key, 9)
    return {
        # MXU-side weights in bf16 (halved DMA bytes; f32 accumulation in-kernel)
        "word_emb": normal_bf16(keys[0], (VOCAB, H)),
        "pos_emb": normal_bf16(keys[1], (MAX_POS, H)),
        "wq": normal_bf16(keys[2], (L, NH, H, HD)),
        "wk": normal_bf16(keys[3], (L, NH, H, HD)),
        "wv": normal_bf16(keys[4], (L, NH, H, HD)),
        "wo": normal_bf16(keys[5], (L, NH, HD, H)),
        "w1": normal_bf16(keys[6], (L, H, I)),
        "w2": normal_bf16(keys[7], (L, I, H)),
        # elementwise-side params stay f32 (v5e has no bf16 VPU/EUP)
        "type_emb": (0.02 * jax.random.normal(keys[8], (1, H))).astype(jnp.float32),
        "emb_ln_g": jnp.ones((1, H), jnp.float32),
        "emb_ln_b": jnp.zeros((1, H), jnp.float32),
        "bq": jnp.zeros((L, NH, 1, HD), jnp.float32),
        "bk": jnp.zeros((L, NH, 1, HD), jnp.float32),
        "bv": jnp.zeros((L, NH, 1, HD), jnp.float32),
        "bo": jnp.zeros((L, 1, H), jnp.float32),
        "ln1_g": jnp.ones((L, 1, H), jnp.float32),
        "ln1_b": jnp.zeros((L, 1, H), jnp.float32),
        "b1": jnp.zeros((L, 1, I), jnp.float32),
        "b2": jnp.zeros((L, 1, H), jnp.float32),
        "ln2_g": jnp.ones((L, 1, H), jnp.float32),
        "ln2_b": jnp.zeros((L, 1, H), jnp.float32),
    }


# ----------------------------- main --------------------------------------------
if __name__ == "__main__":
    key = jax.random.PRNGKey(0)
    pkey, tkey = jax.random.split(key)
    params = init_params(pkey)

    # TODO(synk): XLMRobertaTokenizer (string processing) has no Pallas/JAX
    # equivalent; synthesize deterministic token ids + attention mask instead.
    content = jax.random.randint(tkey, (BATCH, SEQ_LEN), 3, VOCAB, dtype=jnp.int32)
    input_ids = content.at[:, 0].set(0)            # <s>
    input_ids = input_ids.at[0, 20:].set(PAD_ID)   # pad the tail of sample 0
    input_ids = input_ids.at[0, 19].set(2)         # </s>
    input_ids = input_ids.at[1, -1].set(2)         # </s>
    attention_mask = (input_ids != PAD_ID).astype(jnp.int32)

    token_embeddings, out_mask = xlmr_word_embedder_forward(
        params, input_ids, attention_mask)
    jax.block_until_ready((token_embeddings, out_mask))

    assert token_embeddings.shape == (BATCH, SEQ_LEN, HIDDEN)
    assert out_mask.shape == (BATCH, SEQ_LEN)
    assert bool(jnp.all(jnp.isfinite(token_embeddings)))
    print("KERNEL_OK")
</pallas_src>

<mosaic_0001>
module attributes {stable_mosaic.version = 11 : i64} {
  func.func @fused_encoder_kernel(%arg0: i32, %arg1: memref<64x1xi32, #tpu.memory_space<vmem>>, %arg2: memref<64x1xi32, #tpu.memory_space<vmem>>, %arg3: memref<64x64xf32, #tpu.memory_space<vmem>>, %arg4: memref<128x128xbf16, #tpu.memory_space<vmem>>, %arg5: memref<64x128xbf16, #tpu.memory_space<vmem>>, %arg6: memref<1x128xf32, #tpu.memory_space<vmem>>, %arg7: memref<1x128xf32, #tpu.memory_space<vmem>>, %arg8: memref<1x128xf32, #tpu.memory_space<vmem>>, %arg9: memref<2x4x128x32xbf16, #tpu.memory_space<vmem>>, %arg10: memref<2x4x1x32xf32, #tpu.memory_space<vmem>>, %arg11: memref<2x4x128x32xbf16, #tpu.memory_space<vmem>>, %arg12: memref<2x4x1x32xf32, #tpu.memory_space<vmem>>, %arg13: memref<2x4x128x32xbf16, #tpu.memory_space<vmem>>, %arg14: memref<2x4x1x32xf32, #tpu.memory_space<vmem>>, %arg15: memref<2x4x32x128xbf16, #tpu.memory_space<vmem>>, %arg16: memref<2x1x128xf32, #tpu.memory_space<vmem>>, %arg17: memref<2x1x128xf32, #tpu.memory_space<vmem>>, %arg18: memref<2x1x128xf32, #tpu.memory_space<vmem>>, %arg19: memref<2x128x256xbf16, #tpu.memory_space<vmem>>, %arg20: memref<2x1x256xf32, #tpu.memory_space<vmem>>, %arg21: memref<2x256x128xbf16, #tpu.memory_space<vmem>>, %arg22: memref<2x1x128xf32, #tpu.memory_space<vmem>>, %arg23: memref<2x1x128xf32, #tpu.memory_space<vmem>>, %arg24: memref<2x1x128xf32, #tpu.memory_space<vmem>>, %arg25: memref<64x128xf32, #tpu.memory_space<vmem>>) attributes {dimension_semantics = [#tpu.dimension_semantics<arbitrary>], iteration_bounds = array<i64: 1>, scalar_prefetch = 0 : i64, scratch_operands = 0 : i64, tpu.core_type = #tpu.core_type<tc>, window_params = [{pipeline_mode = #tpu.pipeline_mode<synchronous>, transform_indices = @transform_0, window_bounds = array<i64: 64, 1>}, {pipeline_mode = #tpu.pipeline_mode<synchronous>, transform_indices = @transform_1, window_bounds = array<i64: 64, 1>}, {pipeline_mode = #tpu.pipeline_mode<synchronous>, transform_indices = @transform_2, window_bounds = array<i64: 64, 64>}, {pipeline_mode = #tpu.pipeline_mode<synchronous>, transform_indices = @transform_3, window_bounds = array<i64: 128, 128>}, {pipeline_mode = #tpu.pipeline_mode<synchronous>, transform_indices = @transform_4, window_bounds = array<i64: 64, 128>}, {pipeline_mode = #tpu.pipeline_mode<synchronous>, transform_indices = @transform_5, window_bounds = array<i64: 1, 128>}, {pipeline_mode = #tpu.pipeline_mode<synchronous>, transform_indices = @transform_6, window_bounds = array<i64: 1, 128>}, {pipeline_mode = #tpu.pipeline_mode<synchronous>, transform_indices = @transform_7, window_bounds = array<i64: 1, 128>}, {pipeline_mode = #tpu.pipeline_mode<synchronous>, transform_indices = @transform_8, window_bounds = array<i64: 2, 4, 128, 32>}, {pipeline_mode = #tpu.pipeline_mode<synchronous>, transform_indices = @transform_9, window_bounds = array<i64: 2, 4, 1, 32>}, {pipeline_mode = #tpu.pipeline_mode<synchronous>, transform_indices = @transform_10, window_bounds = array<i64: 2, 4, 128, 32>}, {pipeline_mode = #tpu.pipeline_mode<synchronous>, transform_indices = @transform_11, window_bounds = array<i64: 2, 4, 1, 32>}, {pipeline_mode = #tpu.pipeline_mode<synchronous>, transform_indices = @transform_12, window_bounds = array<i64: 2, 4, 128, 32>}, {pipeline_mode = #tpu.pipeline_mode<synchronous>, transform_indices = @transform_13, window_bounds = array<i64: 2, 4, 1, 32>}, {pipeline_mode = #tpu.pipeline_mode<synchronous>, transform_indices = @transform_14, window_bounds = array<i64: 2, 4, 32, 128>}, {pipeline_mode = #tpu.pipeline_mode<synchronous>, transform_indices = @transform_15, window_bounds = array<i64: 2, 1, 128>}, {pipeline_mode = #tpu.pipeline_mode<synchronous>, transform_indices = @transform_16, window_bounds = array<i64: 2, 1, 128>}, {pipeline_mode = #tpu.pipeline_mode<synchronous>, transform_indices = @transform_17, window_bounds = array<i64: 2, 1, 128>}, {pipeline_mode = #tpu.pipeline_mode<synchronous>, transform_indices = @transform_18, window_bounds = array<i64: 2, 128, 256>}, {pipeline_mode = #tpu.pipeline_mode<synchronous>, transform_indices = @transform_19, window_bounds = array<i64: 2, 1, 256>}, {pipeline_mode = #tpu.pipeline_mode<synchronous>, transform_indices = @transform_20, window_bounds = array<i64: 2, 256, 128>}, {pipeline_mode = #tpu.pipeline_mode<synchronous>, transform_indices = @transform_21, window_bounds = array<i64: 2, 1, 128>}, {pipeline_mode = #tpu.pipeline_mode<synchronous>, transform_indices = @transform_22, window_bounds = array<i64: 2, 1, 128>}, {pipeline_mode = #tpu.pipeline_mode<synchronous>, transform_indices = @transform_23, window_bounds = array<i64: 2, 1, 128>}, {pipeline_mode = #tpu.pipeline_mode<synchronous>, transform_indices = @transform_24, window_bounds = array<i64: 64, 128>}]} {
    %c0 = arith.constant 0 : index
    %c0_0 = arith.constant 0 : index
    %0 = vector.load %arg1[%c0, %c0_0] : memref<64x1xi32, #tpu.memory_space<vmem>>, vector<64x1xi32>
    %1 = tpu.iota {dimensions = array<i32: 1>} : vector<64x128xi32>
    %2 = vector.broadcast %0 : vector<64x1xi32> to vector<64x128xi32>
    %3 = arith.cmpi eq, %2, %1 : vector<64x128xi32>
    %4 = arith.extui %3 : vector<64x128xi1> to vector<64x128xi32>
    %5 = arith.sitofp %4 : vector<64x128xi32> to vector<64x128xf32>
    %6 = arith.truncf %5 : vector<64x128xf32> to vector<64x128xbf16>
    %c0_1 = arith.constant 0 : index
    %c0_2 = arith.constant 0 : index
    %7 = vector.load %arg2[%c0_1, %c0_2] : memref<64x1xi32, #tpu.memory_space<vmem>>, vector<64x1xi32>
    %8 = tpu.iota {dimensions = array<i32: 1>} : vector<64x64xi32>
    %9 = vector.broadcast %7 : vector<64x1xi32> to vector<64x64xi32>
    %10 = arith.cmpi eq, %9, %8 : vector<64x64xi32>
    %11 = arith.extui %10 : vector<64x64xi1> to vector<64x64xi32>
    %12 = arith.sitofp %11 : vector<64x64xi32> to vector<64x64xf32>
    %13 = arith.truncf %12 : vector<64x64xf32> to vector<64x64xbf16>
    %c0_3 = arith.constant 0 : index
    %c0_4 = arith.constant 0 : index
    %14 = vector.load %arg4[%c0_3, %c0_4] : memref<128x128xbf16, #tpu.memory_space<vmem>>, vector<128x128xbf16>
    %cst = arith.constant dense<0.000000e+00> : vector<64x128xf32>
    %15 = tpu.matmul %6, %14, %cst {dimension_numbers = #tpu.dot_dimension_numbers<[1], [0], [0], [1], [0, 0, 1, 1], [], []>} : vector<64x128xbf16>, vector<128x128xbf16>, vector<64x128xf32> -> vector<64x128xf32>
    %c0_5 = arith.constant 0 : index
    %c0_6 = arith.constant 0 : index
    %16 = vector.load %arg5[%c0_5, %c0_6] : memref<64x128xbf16, #tpu.memory_space<vmem>>, vector<64x128xbf16>
    %cst_7 = arith.constant dense<0.000000e+00> : vector<64x128xf32>
    %17 = tpu.matmul %13, %16, %cst_7 {dimension_numbers = #tpu.dot_dimension_numbers<[1], [0], [0], [1], [0, 0, 1, 1], [], []>} : vector<64x64xbf16>, vector<64x128xbf16>, vector<64x128xf32> -> vector<64x128xf32>
    %18 = arith.addf %15, %17 : vector<64x128xf32>
    %c0_8 = arith.constant 0 : index
    %c0_9 = arith.constant 0 : index
    %19 = vector.load %arg6[%c0_8, %c0_9] : memref<1x128xf32, #tpu.memory_space<vmem>>, vector<1x128xf32>
    %20 = vector.broadcast %19 : vector<1x128xf32> to vector<64x128xf32>
    %21 = arith.addf %18, %20 : vector<64x128xf32>
    %c0_10 = arith.constant 0 : index
    %c0_11 = arith.constant 0 : index
    %22 = vector.load %arg7[%c0_10, %c0_11] : memref<1x128xf32, #tpu.memory_space<vmem>>, vector<1x128xf32>
    %c0_12 = arith.constant 0 : index
    %c0_13 = arith.constant 0 : index
    %23 = vector.load %arg8[%c0_12, %c0_13] : memref<1x128xf32, #tpu.memory_space<vmem>>, vector<1x128xf32>
    %cst_14 = arith.constant dense<0.000000e+00> : vector<64xf32>
    %24 = vector.multi_reduction <add>, %21, %cst_14 [1] : vector<64x128xf32> to vector<64xf32>
    %25 = vector.shape_cast %24 : vector<64xf32> to vector<64x1xf32>
    %cst_15 = arith.constant 1.280000e+02 : f32
    %26 = vector.broadcast %cst_15 : f32 to vector<64x1xf32>
    %27 = arith.divf %25, %26 : vector<64x1xf32>
    %28 = vector.broadcast %27 : vector<64x1xf32> to vector<64x128xf32>
    %29 = arith.subf %21, %28 : vector<64x128xf32>
    %30 = arith.mulf %29, %29 : vector<64x128xf32>
    %cst_16 = arith.constant dense<0.000000e+00> : vector<64xf32>
    %31 = vector.multi_reduction <add>, %30, %cst_16 [1] : vector<64x128xf32> to vector<64xf32>
    %32 = vector.shape_cast %31 : vector<64xf32> to vector<64x1xf32>
    %cst_17 = arith.constant 1.280000e+02 : f32
    %33 = vector.broadcast %cst_17 : f32 to vector<64x1xf32>
    %34 = arith.divf %32, %33 : vector<64x1xf32>
    %35 = vector.broadcast %27 : vector<64x1xf32> to vector<64x128xf32>
    %36 = arith.subf %21, %35 : vector<64x128xf32>
    %cst_18 = arith.constant 9.99999974E-6 : f32
    %37 = vector.broadcast %cst_18 : f32 to vector<64x1xf32>
    %38 = arith.addf %34, %37 : vector<64x1xf32>
    %39 = math.rsqrt %38 : vector<64x1xf32>
    %40 = vector.broadcast %39 : vector<64x1xf32> to vector<64x128xf32>
    %41 = arith.mulf %36, %40 : vector<64x128xf32>
    %42 = vector.broadcast %22 : vector<1x128xf32> to vector<64x128xf32>
    %43 = arith.mulf %41, %42 : vector<64x128xf32>
    %44 = vector.broadcast %23 : vector<1x128xf32> to vector<64x128xf32>
    %45 = arith.addf %43, %44 : vector<64x128xf32>
    %c0_19 = arith.constant 0 : index
    %c0_20 = arith.constant 0 : index
    %46 = vector.load %arg3[%c0_19, %c0_20] : memref<64x64xf32, #tpu.memory_space<vmem>>, vector<64x64xf32>
    %47 = arith.truncf %45 : vector<64x128xf32> to vector<64x128xbf16>
    %cst_21 = arith.constant 0.000000e+00 : f32
    %48 = vector.broadcast %cst_21 : f32 to vector<64x128xf32>
    %c0_22 = arith.constant 0 : index
    %c0_23 = arith.constant 0 : index
    %c0_24 = arith.constant 0 : index
    %c0_25 = arith.constant 0 : index
    %49 = vector.load %arg9[%c0_22, %c0_23, %c0_24, %c0_25] : memref<2x4x128x32xbf16, #tpu.memory_space<vmem>>, vector<1x1x128x32xbf16>
    %50 = vector.shape_cast %49 : vector<1x1x128x32xbf16> to vector<128x32xbf16>
    %cst_26 = arith.constant dense<0.000000e+00> : vector<64x32xf32>
    %51 = tpu.matmul %47, %50, %cst_26 {dimension_numbers = #tpu.dot_dimension_numbers<[1], [0], [0], [1], [0, 0, 1, 1], [], []>} : vector<64x128xbf16>, vector<128x32xbf16>, vector<64x32xf32> -> vector<64x32xf32>
    %c0_27 = arith.constant 0 : index
    %c0_28 = arith.constant 0 : index
    %c0_29 = arith.constant 0 : index
    %c0_30 = arith.constant 0 : index
    %52 = vector.load %arg10[%c0_27, %c0_28, %c0_29, %c0_30] : memref<2x4x1x32xf32, #tpu.memory_space<vmem>>, vector<1x1x1x32xf32>
    %53 = vector.shape_cast %52 : vector<1x1x1x32xf32> to vector<1x32xf32>
    %54 = vector.broadcast %53 : vector<1x32xf32> to vector<64x32xf32>
    %55 = arith.addf %51, %54 : vector<64x32xf32>
    %c0_31 = arith.constant 0 : index
    %c0_32 = arith.constant 0 : index
    %c0_33 = arith.constant 0 : index
    %c0_34 = arith.constant 0 : index
    %56 = vector.load %arg11[%c0_31, %c0_32, %c0_33, %c0_34] : memref<2x4x128x32xbf16, #tpu.memory_space<vmem>>, vector<1x1x128x32xbf16>
    %57 = vector.shape_cast %56 : vector<1x1x128x32xbf16> to vector<128x32xbf16>
    %cst_35 = arith.constant dense<0.000000e+00> : vector<64x32xf32>
    %58 = tpu.matmul %47, %57, %cst_35 {dimension_numbers = #tpu.dot_dimension_numbers<[1], [0], [0], [1], [0, 0, 1, 1], [], []>} : vector<64x128xbf16>, vector<128x32xbf16>, vector<64x32xf32> -> vector<64x32xf32>
    %c0_36 = arith.constant 0 : index
    %c0_37 = arith.constant 0 : index
    %c0_38 = arith.constant 0 : index
    %c0_39 = arith.constant 0 : index
    %59 = vector.load %arg12[%c0_36, %c0_37, %c0_38, %c0_39] : memref<2x4x1x32xf32, #tpu.memory_space<vmem>>, vector<1x1x1x32xf32>
    %60 = vector.shape_cast %59 : vector<1x1x1x32xf32> to vector<1x32xf32>
    %61 = vector.broadcast %60 : vector<1x32xf32> to vector<64x32xf32>
    %62 = arith.addf %58, %61 : vector<64x32xf32>
    %c0_40 = arith.constant 0 : index
    %c0_41 = arith.constant 0 : index
    %c0_42 = arith.constant 0 : index
    %c0_43 = arith.constant 0 : index
    %63 = vector.load %arg13[%c0_40, %c0_41, %c0_42, %c0_43] : memref<2x4x128x32xbf16, #tpu.memory_space<vmem>>, vector<1x1x128x32xbf16>
    %64 = vector.shape_cast %63 : vector<1x1x128x32xbf16> to vector<128x32xbf16>
    %cst_44 = arith.constant dense<0.000000e+00> : vector<64x32xf32>
    %65 = tpu.matmul %47, %64, %cst_44 {dimension_numbers = #tpu.dot_dimension_numbers<[1], [0], [0], [1], [0, 0, 1, 1], [], []>} : vector<64x128xbf16>, vector<128x32xbf16>, vector<64x32xf32> -> vector<64x32xf32>
    %c0_45 = arith.constant 0 : index
    %c0_46 = arith.constant 0 : index
    %c0_47 = arith.constant 0 : index
    %c0_48 = arith.constant 0 : index
    %66 = vector.load %arg14[%c0_45, %c0_46, %c0_47, %c0_48] : memref<2x4x1x32xf32, #tpu.memory_space<vmem>>, vector<1x1x1x32xf32>
    %67 = vector.shape_cast %66 : vector<1x1x1x32xf32> to vector<1x32xf32>
    %68 = vector.broadcast %67 : vector<1x32xf32> to vector<64x32xf32>
    %69 = arith.addf %65, %68 : vector<64x32xf32>
    %70 = tpu.transpose %62, [1, 0] : vector<64x32xf32> -> vector<32x64xf32>
    %cst_49 = arith.constant dense<0.000000e+00> : vector<64x64xf32>
    %71 = tpu.matmul %55, %70, %cst_49 {dimension_numbers = #tpu.dot_dimension_numbers<[1], [0], [0], [1], [0, 0, 1, 1], [], []>} : vector<64x32xf32>, vector<32x64xf32>, vector<64x64xf32> -> vector<64x64xf32>
    %cst_50 = arith.constant 0.176776692 : f32
    %72 = vector.broadcast %cst_50 : f32 to vector<64x64xf32>
    %73 = arith.mulf %71, %72 : vector<64x64xf32>
    %74 = arith.addf %73, %46 : vector<64x64xf32>
    %cst_51 = arith.constant dense<0xFF800000> : vector<64xf32>
    %75 = vector.multi_reduction <maximumf>, %74, %cst_51 [1] : vector<64x64xf32> to vector<64xf32>
    %76 = vector.shape_cast %75 : vector<64xf32> to vector<64x1xf32>
    %77 = vector.broadcast %76 : vector<64x1xf32> to vector<64x64xf32>
    %78 = arith.subf %74, %77 : vector<64x64xf32>
    %79 = math.exp %78 : vector<64x64xf32>
    %cst_52 = arith.constant dense<0.000000e+00> : vector<64xf32>
    %80 = vector.multi_reduction <add>, %79, %cst_52 [1] : vector<64x64xf32> to vector<64xf32>
    %81 = vector.shape_cast %80 : vector<64xf32> to vector<64x1xf32>
    %82 = tpu.reciprocal %81 {approx = true} : vector<64x1xf32> -> vector<64x1xf32>
    %83 = vector.broadcast %82 : vector<64x1xf32> to vector<64x64xf32>
    %84 = arith.mulf %79, %83 : vector<64x64xf32>
    %cst_53 = arith.constant dense<0.000000e+00> : vector<64x32xf32>
    %85 = tpu.matmul %84, %69, %cst_53 {dimension_numbers = #tpu.dot_dimension_numbers<[1], [0], [0], [1], [0, 0, 1, 1], [], []>} : vector<64x64xf32>, vector<64x32xf32>, vector<64x32xf32> -> vector<64x32xf32>
    %86 = arith.truncf %85 : vector<64x32xf32> to vector<64x32xbf16>
    %c0_54 = arith.constant 0 : index
    %c0_55 = arith.constant 0 : index
    %c0_56 = arith.constant 0 : index
    %c0_57 = arith.constant 0 : index
    %87 = vector.load %arg15[%c0_54, %c0_55, %c0_56, %c0_57] : memref<2x4x32x128xbf16, #tpu.memory_space<vmem>>, vector<1x1x32x128xbf16>
    %88 = vector.shape_cast %87 : vector<1x1x32x128xbf16> to vector<32x128xbf16>
    %cst_58 = arith.constant dense<0.000000e+00> : vector<64x128xf32>
    %89 = tpu.matmul %86, %88, %cst_58 {dimension_numbers = #tpu.dot_dimension_numbers<[1], [0], [0], [1], [0, 0, 1, 1], [], []>} : vector<64x32xbf16>, vector<32x128xbf16>, vector<64x128xf32> -> vector<64x128xf32>
    %90 = arith.addf %48, %89 : vector<64x128xf32>
    %c0_59 = arith.constant 0 : index
    %c1 = arith.constant 1 : index
    %c0_60 = arith.constant 0 : index
    %c0_61 = arith.constant 0 : index
    %91 = vector.load %arg9[%c0_59, %c1, %c0_60, %c0_61] : memref<2x4x128x32xbf16, #tpu.memory_space<vmem>>, vector<1x1x128x32xbf16>
    %92 = vector.shape_cast %91 : vector<1x1x128x32xbf16> to vector<128x32xbf16>
    %cst_62 = arith.constant dense<0.000000e+00> : vector<64x32xf32>
    %93 = tpu.matmul %47, %92, %cst_62 {dimension_numbers = #tpu.dot_dimension_numbers<[1], [0], [0], [1], [0, 0, 1, 1], [], []>} : vector<64x128xbf16>, vector<128x32xbf16>, vector<64x32xf32> -> vector<64x32xf32>
    %c0_63 = arith.constant 0 : index
    %c1_64 = arith.constant 1 : index
    %c0_65 = arith.constant 0 : index
    %c0_66 = arith.constant 0 : index
    %94 = vector.load %arg10[%c0_63, %c1_64, %c0_65, %c0_66] : memref<2x4x1x32xf32, #tpu.memory_space<vmem>>, vector<1x1x1x32xf32>
    %95 = vector.shape_cast %94 : vector<1x1x1x32xf32> to vector<1x32xf32>
    %96 = vector.broadcast %95 : vector<1x32xf32> to vector<64x32xf32>
    %97 = arith.addf %93, %96 : vector<64x32xf32>
    %c0_67 = arith.constant 0 : index
    %c1_68 = arith.constant 1 : index
    %c0_69 = arith.constant 0 : index
    %c0_70 = arith.constant 0 : index
    %98 = vector.load %arg11[%c0_67, %c1_68, %c0_69, %c0_70] : memref<2x4x128x32xbf16, #tpu.memory_space<vmem>>, vector<1x1x128x32xbf16>
    %99 = vector.shape_cast %98 : vector<1x1x128x32xbf16> to vector<128x32xbf16>
    %cst_71 = arith.constant dense<0.000000e+00> : vector<64x32xf32>
    %100 = tpu.matmul %47, %99, %cst_71 {dimension_numbers = #tpu.dot_dimension_numbers<[1], [0], [0], [1], [0, 0, 1, 1], [], []>} : vector<64x128xbf16>, vector<128x32xbf16>, vector<64x32xf32> -> vector<64x32xf32>
    %c0_72 = arith.constant 0 : index
    %c1_73 = arith.constant 1 : index
    %c0_74 = arith.constant 0 : index
    %c0_75 = arith.constant 0 : index
    %101 = vector.load %arg12[%c0_72, %c1_73, %c0_74, %c0_75] : memref<2x4x1x32xf32, #tpu.memory_space<vmem>>, vector<1x1x1x32xf32>
    %102 = vector.shape_cast %101 : vector<1x1x1x32xf32> to vector<1x32xf32>
    %103 = vector.broadcast %102 : vector<1x32xf32> to vector<64x32xf32>
    %104 = arith.addf %100, %103 : vector<64x32xf32>
    %c0_76 = arith.constant 0 : index
    %c1_77 = arith.constant 1 : index
    %c0_78 = arith.constant 0 : index
    %c0_79 = arith.constant 0 : index
    %105 = vector.load %arg13[%c0_76, %c1_77, %c0_78, %c0_79] : memref<2x4x128x32xbf16, #tpu.memory_space<vmem>>, vector<1x1x128x32xbf16>
    %106 = vector.shape_cast %105 : vector<1x1x128x32xbf16> to vector<128x32xbf16>
    %cst_80 = arith.constant dense<0.000000e+00> : vector<64x32xf32>
    %107 = tpu.matmul %47, %106, %cst_80 {dimension_numbers = #tpu.dot_dimension_numbers<[1], [0], [0], [1], [0, 0, 1, 1], [], []>} : vector<64x128xbf16>, vector<128x32xbf16>, vector<64x32xf32> -> vector<64x32xf32>
    %c0_81 = arith.constant 0 : index
    %c1_82 = arith.constant 1 : index
    %c0_83 = arith.constant 0 : index
    %c0_84 = arith.constant 0 : index
    %108 = vector.load %arg14[%c0_81, %c1_82, %c0_83, %c0_84] : memref<2x4x1x32xf32, #tpu.memory_space<vmem>>, vector<1x1x1x32xf32>
    %109 = vector.shape_cast %108 : vector<1x1x1x32xf32> to vector<1x32xf32>
    %110 = vector.broadcast %109 : vector<1x32xf32> to vector<64x32xf32>
    %111 = arith.addf %107, %110 : vector<64x32xf32>
    %112 = tpu.transpose %104, [1, 0] : vector<64x32xf32> -> vector<32x64xf32>
    %cst_85 = arith.constant dense<0.000000e+00> : vector<64x64xf32>
    %113 = tpu.matmul %97, %112, %cst_85 {dimension_numbers = #tpu.dot_dimension_numbers<[1], [0], [0], [1], [0, 0, 1, 1], [], []>} : vector<64x32xf32>, vector<32x64xf32>, vector<64x64xf32> -> vector<64x64xf32>
    %cst_86 = arith.constant 0.176776692 : f32
    %114 = vector.broadcast %cst_86 : f32 to vector<64x64xf32>
    %115 = arith.mulf %113, %114 : vector<64x64xf32>
    %116 = arith.addf %115, %46 : vector<64x64xf32>
    %cst_87 = arith.constant dense<0xFF800000> : vector<64xf32>
    %117 = vector.multi_reduction <maximumf>, %116, %cst_87 [1] : vector<64x64xf32> to vector<64xf32>
    %118 = vector.shape_cast %117 : vector<64xf32> to vector<64x1xf32>
    %119 = vector.broadcast %118 : vector<64x1xf32> to vector<64x64xf32>
    %120 = arith.subf %116, %119 : vector<64x64xf32>
    %121 = math.exp %120 : vector<64x64xf32>
    %cst_88 = arith.constant dense<0.000000e+00> : vector<64xf32>
    %122 = vector.multi_reduction <add>, %121, %cst_88 [1] : vector<64x64xf32> to vector<64xf32>
    %123 = vector.shape_cast %122 : vector<64xf32> to vector<64x1xf32>
    %124 = tpu.reciprocal %123 {approx = true} : vector<64x1xf32> -> vector<64x1xf32>
    %125 = vector.broadcast %124 : vector<64x1xf32> to vector<64x64xf32>
    %126 = arith.mulf %121, %125 : vector<64x64xf32>
    %cst_89 = arith.constant dense<0.000000e+00> : vector<64x32xf32>
    %127 = tpu.matmul %126, %111, %cst_89 {dimension_numbers = #tpu.dot_dimension_numbers<[1], [0], [0], [1], [0, 0, 1, 1], [], []>} : vector<64x64xf32>, vector<64x32xf32>, vector<64x32xf32> -> vector<64x32xf32>
    %128 = arith.truncf %127 : vector<64x32xf32> to vector<64x32xbf16>
    %c0_90 = arith.constant 0 : index
    %c1_91 = arith.constant 1 : index
    %c0_92 = arith.constant 0 : index
    %c0_93 = arith.constant 0 : index
    %129 = vector.load %arg15[%c0_90, %c1_91, %c0_92, %c0_93] : memref<2x4x32x128xbf16, #tpu.memory_space<vmem>>, vector<1x1x32x128xbf16>
    %130 = vector.shape_cast %129 : vector<1x1x32x128xbf16> to vector<32x128xbf16>
    %cst_94 = arith.constant dense<0.000000e+00> : vector<64x128xf32>
    %131 = tpu.matmul %128, %130, %cst_94 {dimension_numbers = #tpu.dot_dimension_numbers<[1], [0], [0], [1], [0, 0, 1, 1], [], []>} : vector<64x32xbf16>, vector<32x128xbf16>, vector<64x128xf32> -> vector<64x128xf32>
    %132 = arith.addf %90, %131 : vector<64x128xf32>
    %c0_95 = arith.constant 0 : index
    %c2 = arith.constant 2 : index
    %c0_96 = arith.constant 0 : index
    %c0_97 = arith.constant 0 : index
    %133 = vector.load %arg9[%c0_95, %c2, %c0_96, %c0_97] : memref<2x4x128x32xbf16, #tpu.memory_space<vmem>>, vector<1x1x128x32xbf16>
    %134 = vector.shape_cast %133 : vector<1x1x128x32xbf16> to vector<128x32xbf16>
    %cst_98 = arith.constant dense<0.000000e+00> : vector<64x32xf32>
    %135 = tpu.matmul %47, %134, %cst_98 {dimension_numbers = #tpu.dot_dimension_numbers<[1], [0], [0], [1], [0, 0, 1, 1], [], []>} : vector<64x128xbf16>, vector<128x32xbf16>, vector<64x32xf32> -> vector<64x32xf32>
    %c0_99 = arith.constant 0 : index
    %c2_100 = arith.constant 2 : index
    %c0_101 = arith.constant 0 : index
    %c0_102 = arith.constant 0 : index
    %136 = vector.load %arg10[%c0_99, %c2_100, %c0_101, %c0_102] : memref<2x4x1x32xf32, #tpu.memory_space<vmem>>, vector<1x1x1x32xf32>
    %137 = vector.shape_cast %136 : vector<1x1x1x32xf32> to vector<1x32xf32>
    %138 = vector.broadcast %137 : vector<1x32xf32> to vector<64x32xf32>
    %139 = arith.addf %135, %138 : vector<64x32xf32>
    %c0_103 = arith.constant 0 : index
    %c2_104 = arith.constant 2 : index
    %c0_105 = arith.constant 0 : index
    %c0_106 = arith.constant 0 : index
    %140 = vector.load %arg11[%c0_103, %c2_104, %c0_105, %c0_106] : memref<2x4x128x32xbf16, #tpu.memory_space<vmem>>, vector<1x1x128x32xbf16>
    %141 = vector.shape_cast %140 : vector<1x1x128x32xbf16> to vector<128x32xbf16>
    %cst_107 = arith.constant dense<0.000000e+00> : vector<64x32xf32>
    %142 = tpu.matmul %47, %141, %cst_107 {dimension_numbers = #tpu.dot_dimension_numbers<[1], [0], [0], [1], [0, 0, 1, 1], [], []>} : vector<64x128xbf16>, vector<128x32xbf16>, vector<64x32xf32> -> vector<64x32xf32>
    %c0_108 = arith.constant 0 : index
    %c2_109 = arith.constant 2 : index
    %c0_110 = arith.constant 0 : index
    %c0_111 = arith.constant 0 : index
    %143 = vector.load %arg12[%c0_108, %c2_109, %c0_110, %c0_111] : memref<2x4x1x32xf32, #tpu.memory_space<vmem>>, vector<1x1x1x32xf32>
    %144 = vector.shape_cast %143 : vector<1x1x1x32xf32> to vector<1x32xf32>
    %145 = vector.broadcast %144 : vector<1x32xf32> to vector<64x32xf32>
    %146 = arith.addf %142, %145 : vector<64x32xf32>
    %c0_112 = arith.constant 0 : index
    %c2_113 = arith.constant 2 : index
    %c0_114 = arith.constant 0 : index
    %c0_115 = arith.constant 0 : index
    %147 = vector.load %arg13[%c0_112, %c2_113, %c0_114, %c0_115] : memref<2x4x128x32xbf16, #tpu.memory_space<vmem>>, vector<1x1x128x32xbf16>
    %148 = vector.shape_cast %147 : vector<1x1x128x32xbf16> to vector<128x32xbf16>
    %cst_116 = arith.constant dense<0.000000e+00> : vector<64x32xf32>
    %149 = tpu.matmul %47, %148, %cst_116 {dimension_numbers = #tpu.dot_dimension_numbers<[1], [0], [0], [1], [0, 0, 1, 1], [], []>} : vector<64x128xbf16>, vector<128x32xbf16>, vector<64x32xf32> -> vector<64x32xf32>
    %c0_117 = arith.constant 0 : index
    %c2_118 = arith.constant 2 : index
    %c0_119 = arith.constant 0 : index
    %c0_120 = arith.constant 0 : index
    %150 = vector.load %arg14[%c0_117, %c2_118, %c0_119, %c0_120] : memref<2x4x1x32xf32, #tpu.memory_space<vmem>>, vector<1x1x1x32xf32>
    %151 = vector.shape_cast %150 : vector<1x1x1x32xf32> to vector<1x32xf32>
    %152 = vector.broadcast %151 : vector<1x32xf32> to vector<64x32xf32>
    %153 = arith.addf %149, %152 : vector<64x32xf32>
    %154 = tpu.transpose %146, [1, 0] : vector<64x32xf32> -> vector<32x64xf32>
    %cst_121 = arith.constant dense<0.000000e+00> : vector<64x64xf32>
    %155 = tpu.matmul %139, %154, %cst_121 {dimension_numbers = #tpu.dot_dimension_numbers<[1], [0], [0], [1], [0, 0, 1, 1], [], []>} : vector<64x32xf32>, vector<32x64xf32>, vector<64x64xf32> -> vector<64x64xf32>
    %cst_122 = arith.constant 0.176776692 : f32
    %156 = vector.broadcast %cst_122 : f32 to vector<64x64xf32>
    %157 = arith.mulf %155, %156 : vector<64x64xf32>
    %158 = arith.addf %157, %46 : vector<64x64xf32>
    %cst_123 = arith.constant dense<0xFF800000> : vector<64xf32>
    %159 = vector.multi_reduction <maximumf>, %158, %cst_123 [1] : vector<64x64xf32> to vector<64xf32>
    %160 = vector.shape_cast %159 : vector<64xf32> to vector<64x1xf32>
    %161 = vector.broadcast %160 : vector<64x1xf32> to vector<64x64xf32>
    %162 = arith.subf %158, %161 : vector<64x64xf32>
    %163 = math.exp %162 : vector<64x64xf32>
    %cst_124 = arith.constant dense<0.000000e+00> : vector<64xf32>
    %164 = vector.multi_reduction <add>, %163, %cst_124 [1] : vector<64x64xf32> to vector<64xf32>
    %165 = vector.shape_cast %164 : vector<64xf32> to vector<64x1xf32>
    %166 = tpu.reciprocal %165 {approx = true} : vector<64x1xf32> -> vector<64x1xf32>
    %167 = vector.broadcast %166 : vector<64x1xf32> to vector<64x64xf32>
    %168 = arith.mulf %163, %167 : vector<64x64xf32>
    %cst_125 = arith.constant dense<0.000000e+00> : vector<64x32xf32>
    %169 = tpu.matmul %168, %153, %cst_125 {dimension_numbers = #tpu.dot_dimension_numbers<[1], [0], [0], [1], [0, 0, 1, 1], [], []>} : vector<64x64xf32>, vector<64x32xf32>, vector<64x32xf32> -> vector<64x32xf32>
    %170 = arith.truncf %169 : vector<64x32xf32> to vector<64x32xbf16>
    %c0_126 = arith.constant 0 : index
    %c2_127 = arith.constant 2 : index
    %c0_128 = arith.constant 0 : index
    %c0_129 = arith.constant 0 : index
    %171 = vector.load %arg15[%c0_126, %c2_127, %c0_128, %c0_129] : memref<2x4x32x128xbf16, #tpu.memory_space<vmem>>, vector<1x1x32x128xbf16>
    %172 = vector.shape_cast %171 : vector<1x1x32x128xbf16> to vector<32x128xbf16>
    %cst_130 = arith.constant dense<0.000000e+00> : vector<64x128xf32>
    %173 = tpu.matmul %170, %172, %cst_130 {dimension_numbers = #tpu.dot_dimension_numbers<[1], [0], [0], [1], [0, 0, 1, 1], [], []>} : vector<64x32xbf16>, vector<32x128xbf16>, vector<64x128xf32> -> vector<64x128xf32>
    %174 = arith.addf %132, %173 : vector<64x128xf32>
    %c0_131 = arith.constant 0 : index
    %c3 = arith.constant 3 : index
    %c0_132 = arith.constant 0 : index
    %c0_133 = arith.constant 0 : index
    %175 = vector.load %arg9[%c0_131, %c3, %c0_132, %c0_133] : memref<2x4x128x32xbf16, #tpu.memory_space<vmem>>, vector<1x1x128x32xbf16>
    %176 = vector.shape_cast %175 : vector<1x1x128x32xbf16> to vector<128x32xbf16>
    %cst_134 = arith.constant dense<0.000000e+00> : vector<64x32xf32>
    %177 = tpu.matmul %47, %176, %cst_134 {dimension_numbers = #tpu.dot_dimension_numbers<[1], [0], [0], [1], [0, 0, 1, 1], [], []>} : vector<64x128xbf16>, vector<128x32xbf16>, vector<64x32xf32> -> vector<64x32xf32>
    %c0_135 = arith.constant 0 : index
    %c3_136 = arith.constant 3 : index
    %c0_137 = arith.constant 0 : index
    %c0_138 = arith.constant 0 : index
    %178 = vector.load %arg10[%c0_135, %c3_136, %c0_137, %c0_138] : memref<2x4x1x32xf32, #tpu.memory_space<vmem>>, vector<1x1x1x32xf32>
    %179 = vector.shape_cast %178 : vector<1x1x1x32xf32> to vector<1x32xf32>
    %180 = vector.broadcast %179 : vector<1x32xf32> to vector<64x32xf32>
    %181 = arith.addf %177, %180 : vector<64x32xf32>
    %c0_139 = arith.constant 0 : index
    %c3_140 = arith.constant 3 : index
    %c0_141 = arith.constant 0 : index
    %c0_142 = arith.constant 0 : index
    %182 = vector.load %arg11[%c0_139, %c3_140, %c0_141, %c0_142] : memref<2x4x128x32xbf16, #tpu.memory_space<vmem>>, vector<1x1x128x32xbf16>
    %183 = vector.shape_cast %182 : vector<1x1x128x32xbf16> to vector<128x32xbf16>
    %cst_143 = arith.constant dense<0.000000e+00> : vector<64x32xf32>
    %184 = tpu.matmul %47, %183, %cst_143 {dimension_numbers = #tpu.dot_dimension_numbers<[1], [0], [0], [1], [0, 0, 1, 1], [], []>} : vector<64x128xbf16>, vector<128x32xbf16>, vector<64x32xf32> -> vector<64x32xf32>
    %c0_144 = arith.constant 0 : index
    %c3_145 = arith.constant 3 : index
    %c0_146 = arith.constant 0 : index
    %c0_147 = arith.constant 0 : index
    %185 = vector.load %arg12[%c0_144, %c3_145, %c0_146, %c0_147] : memref<2x4x1x32xf32, #tpu.memory_space<vmem>>, vector<1x1x1x32xf32>
    %186 = vector.shape_cast %185 : vector<1x1x1x32xf32> to vector<1x32xf32>
    %187 = vector.broadcast %186 : vector<1x32xf32> to vector<64x32xf32>
    %188 = arith.addf %184, %187 : vector<64x32xf32>
    %c0_148 = arith.constant 0 : index
    %c3_149 = arith.constant 3 : index
    %c0_150 = arith.constant 0 : index
    %c0_151 = arith.constant 0 : index
    %189 = vector.load %arg13[%c0_148, %c3_149, %c0_150, %c0_151] : memref<2x4x128x32xbf16, #tpu.memory_space<vmem>>, vector<1x1x128x32xbf16>
    %190 = vector.shape_cast %189 : vector<1x1x128x32xbf16> to vector<128x32xbf16>
    %cst_152 = arith.constant dense<0.000000e+00> : vector<64x32xf32>
    %191 = tpu.matmul %47, %190, %cst_152 {dimension_numbers = #tpu.dot_dimension_numbers<[1], [0], [0], [1], [0, 0, 1, 1], [], []>} : vector<64x128xbf16>, vector<128x32xbf16>, vector<64x32xf32> -> vector<64x32xf32>
    %c0_153 = arith.constant 0 : index
    %c3_154 = arith.constant 3 : index
    %c0_155 = arith.constant 0 : index
    %c0_156 = arith.constant 0 : index
    %192 = vector.load %arg14[%c0_153, %c3_154, %c0_155, %c0_156] : memref<2x4x1x32xf32, #tpu.memory_space<vmem>>, vector<1x1x1x32xf32>
    %193 = vector.shape_cast %192 : vector<1x1x1x32xf32> to vector<1x32xf32>
    %194 = vector.broadcast %193 : vector<1x32xf32> to vector<64x32xf32>
    %195 = arith.addf %191, %194 : vector<64x32xf32>
    %196 = tpu.transpose %188, [1, 0] : vector<64x32xf32> -> vector<32x64xf32>
    %cst_157 = arith.constant dense<0.000000e+00> : vector<64x64xf32>
    %197 = tpu.matmul %181, %196, %cst_157 {dimension_numbers = #tpu.dot_dimension_numbers<[1], [0], [0], [1], [0, 0, 1, 1], [], []>} : vector<64x32xf32>, vector<32x64xf32>, vector<64x64xf32> -> vector<64x64xf32>
    %cst_158 = arith.constant 0.176776692 : f32
    %198 = vector.broadcast %cst_158 : f32 to vector<64x64xf32>
    %199 = arith.mulf %197, %198 : vector<64x64xf32>
    %200 = arith.addf %199, %46 : vector<64x64xf32>
    %cst_159 = arith.constant dense<0xFF800000> : vector<64xf32>
    %201 = vector.multi_reduction <maximumf>, %200, %cst_159 [1] : vector<64x64xf32> to vector<64xf32>
    %202 = vector.shape_cast %201 : vector<64xf32> to vector<64x1xf32>
    %203 = vector.broadcast %202 : vector<64x1xf32> to vector<64x64xf32>
    %204 = arith.subf %200, %203 : vector<64x64xf32>
    %205 = math.exp %204 : vector<64x64xf32>
    %cst_160 = arith.constant dense<0.000000e+00> : vector<64xf32>
    %206 = vector.multi_reduction <add>, %205, %cst_160 [1] : vector<64x64xf32> to vector<64xf32>
    %207 = vector.shape_cast %206 : vector<64xf32> to vector<64x1xf32>
    %208 = tpu.reciprocal %207 {approx = true} : vector<64x1xf32> -> vector<64x1xf32>
    %209 = vector.broadcast %208 : vector<64x1xf32> to vector<64x64xf32>
    %210 = arith.mulf %205, %209 : vector<64x64xf32>
    %cst_161 = arith.constant dense<0.000000e+00> : vector<64x32xf32>
    %211 = tpu.matmul %210, %195, %cst_161 {dimension_numbers = #tpu.dot_dimension_numbers<[1], [0], [0], [1], [0, 0, 1, 1], [], []>} : vector<64x64xf32>, vector<64x32xf32>, vector<64x32xf32> -> vector<64x32xf32>
    %212 = arith.truncf %211 : vector<64x32xf32> to vector<64x32xbf16>
    %c0_162 = arith.constant 0 : index
    %c3_163 = arith.constant 3 : index
    %c0_164 = arith.constant 0 : index
    %c0_165 = arith.constant 0 : index
    %213 = vector.load %arg15[%c0_162, %c3_163, %c0_164, %c0_165] : memref<2x4x32x128xbf16, #tpu.memory_space<vmem>>, vector<1x1x32x128xbf16>
    %214 = vector.shape_cast %213 : vector<1x1x32x128xbf16> to vector<32x128xbf16>
    %cst_166 = arith.constant dense<0.000000e+00> : vector<64x128xf32>
    %215 = tpu.matmul %212, %214, %cst_166 {dimension_numbers = #tpu.dot_dimension_numbers<[1], [0], [0], [1], [0, 0, 1, 1], [], []>} : vector<64x32xbf16>, vector<32x128xbf16>, vector<64x128xf32> -> vector<64x128xf32>
    %216 = arith.addf %174, %215 : vector<64x128xf32>
    %c0_167 = arith.constant 0 : index
    %c0_168 = arith.constant 0 : index
    %c0_169 = arith.constant 0 : index
    %217 = vector.load %arg16[%c0_167, %c0_168, %c0_169] : memref<2x1x128xf32, #tpu.memory_space<vmem>>, vector<1x1x128xf32>
    %218 = vector.shape_cast %217 : vector<1x1x128xf32> to vector<1x128xf32>
    %219 = vector.broadcast %218 : vector<1x128xf32> to vector<64x128xf32>
    %220 = arith.addf %216, %219 : vector<64x128xf32>
    %221 = arith.addf %45, %220 : vector<64x128xf32>
    %c0_170 = arith.constant 0 : index
    %c0_171 = arith.constant 0 : index
    %c0_172 = arith.constant 0 : index
    %222 = vector.load %arg17[%c0_170, %c0_171, %c0_172] : memref<2x1x128xf32, #tpu.memory_space<vmem>>, vector<1x1x128xf32>
    %223 = vector.shape_cast %222 : vector<1x1x128xf32> to vector<1x128xf32>
    %c0_173 = arith.constant 0 : index
    %c0_174 = arith.constant 0 : index
    %c0_175 = arith.constant 0 : index
    %224 = vector.load %arg18[%c0_173, %c0_174, %c0_175] : memref<2x1x128xf32, #tpu.memory_space<vmem>>, vector<1x1x128xf32>
    %225 = vector.shape_cast %224 : vector<1x1x128xf32> to vector<1x128xf32>
    %cst_176 = arith.constant dense<0.000000e+00> : vector<64xf32>
    %226 = vector.multi_reduction <add>, %221, %cst_176 [1] : vector<64x128xf32> to vector<64xf32>
    %227 = vector.shape_cast %226 : vector<64xf32> to vector<64x1xf32>
    %cst_177 = arith.constant 1.280000e+02 : f32
    %228 = vector.broadcast %cst_177 : f32 to vector<64x1xf32>
    %229 = arith.divf %227, %228 : vector<64x1xf32>
    %230 = vector.broadcast %229 : vector<64x1xf32> to vector<64x128xf32>
    %231 = arith.subf %221, %230 : vector<64x128xf32>
    %232 = arith.mulf %231, %231 : vector<64x128xf32>
    %cst_178 = arith.constant dense<0.000000e+00> : vector<64xf32>
    %233 = vector.multi_reduction <add>, %232, %cst_178 [1] : vector<64x128xf32> to vector<64xf32>
    %234 = vector.shape_cast %233 : vector<64xf32> to vector<64x1xf32>
    %cst_179 = arith.constant 1.280000e+02 : f32
    %235 = vector.broadcast %cst_179 : f32 to vector<64x1xf32>
    %236 = arith.divf %234, %235 : vector<64x1xf32>
    %237 = vector.broadcast %229 : vector<64x1xf32> to vector<64x128xf32>
    %238 = arith.subf %221, %237 : vector<64x128xf32>
    %cst_180 = arith.constant 9.99999974E-6 : f32
    %239 = vector.broadcast %cst_180 : f32 to vector<64x1xf32>
    %240 = arith.addf %236, %239 : vector<64x1xf32>
    %241 = math.rsqrt %240 : vector<64x1xf32>
    %242 = vector.broadcast %241 : vector<64x1xf32> to vector<64x128xf32>
    %243 = arith.mulf %238, %242 : vector<64x128xf32>
    %244 = vector.broadcast %223 : vector<1x128xf32> to vector<64x128xf32>
    %245 = arith.mulf %243, %244 : vector<64x128xf32>
    %246 = vector.broadcast %225 : vector<1x128xf32> to vector<64x128xf32>
    %247 = arith.addf %245, %246 : vector<64x128xf32>
    %248 = arith.truncf %247 : vector<64x128xf32> to vector<64x128xbf16>
    %c0_181 = arith.constant 0 : index
    %c0_182 = arith.constant 0 : index
    %c0_183 = arith.constant 0 : index
    %249 = vector.load %arg19[%c0_181, %c0_182, %c0_183] : memref<2x128x256xbf16, #tpu.memory_space<vmem>>, vector<1x128x256xbf16>
    %250 = vector.shape_cast %249 : vector<1x128x256xbf16> to vector<128x256xbf16>
    %cst_184 = arith.constant dense<0.000000e+00> : vector<64x256xf32>
    %251 = tpu.matmul %248, %250, %cst_184 {dimension_numbers = #tpu.dot_dimension_numbers<[1], [0], [0], [1], [0, 0, 1, 1], [], []>} : vector<64x128xbf16>, vector<128x256xbf16>, vector<64x256xf32> -> vector<64x256xf32>
    %c0_185 = arith.constant 0 : index
    %c0_186 = arith.constant 0 : index
    %c0_187 = arith.constant 0 : index
    %252 = vector.load %arg20[%c0_185, %c0_186, %c0_187] : memref<2x1x256xf32, #tpu.memory_space<vmem>>, vector<1x1x256xf32>
    %253 = vector.shape_cast %252 : vector<1x1x256xf32> to vector<1x256xf32>
    %254 = vector.broadcast %253 : vector<1x256xf32> to vector<64x256xf32>
    %255 = arith.addf %251, %254 : vector<64x256xf32>
    %cst_188 = arith.constant 5.000000e-01 : f32
    %256 = vector.broadcast %cst_188 : f32 to vector<64x256xf32>
    %257 = arith.mulf %256, %255 : vector<64x256xf32>
    %cst_189 = arith.constant 4.471500e-02 : f32
    %258 = vector.broadcast %cst_189 : f32 to vector<64x256xf32>
    %259 = arith.mulf %258, %255 : vector<64x256xf32>
    %260 = arith.mulf %259, %255 : vector<64x256xf32>
    %261 = arith.mulf %260, %255 : vector<64x256xf32>
    %262 = arith.addf %255, %261 : vector<64x256xf32>
    %cst_190 = arith.constant 0.797884583 : f32
    %263 = vector.broadcast %cst_190 : f32 to vector<64x256xf32>
    %264 = arith.mulf %263, %262 : vector<64x256xf32>
    %265 = math.tanh %264 : vector<64x256xf32>
    %cst_191 = arith.constant 1.000000e+00 : f32
    %266 = vector.broadcast %cst_191 : f32 to vector<64x256xf32>
    %267 = arith.addf %266, %265 : vector<64x256xf32>
    %268 = arith.mulf %257, %267 : vector<64x256xf32>
    %269 = arith.truncf %268 : vector<64x256xf32> to vector<64x256xbf16>
    %c0_192 = arith.constant 0 : index
    %c0_193 = arith.constant 0 : index
    %c0_194 = arith.constant 0 : index
    %270 = vector.load %arg21[%c0_192, %c0_193, %c0_194] : memref<2x256x128xbf16, #tpu.memory_space<vmem>>, vector<1x256x128xbf16>
    %271 = vector.shape_cast %270 : vector<1x256x128xbf16> to vector<256x128xbf16>
    %cst_195 = arith.constant dense<0.000000e+00> : vector<64x128xf32>
    %272 = tpu.matmul %269, %271, %cst_195 {dimension_numbers = #tpu.dot_dimension_numbers<[1], [0], [0], [1], [0, 0, 1, 1], [], []>} : vector<64x256xbf16>, vector<256x128xbf16>, vector<64x128xf32> -> vector<64x128xf32>
    %c0_196 = arith.constant 0 : index
    %c0_197 = arith.constant 0 : index
    %c0_198 = arith.constant 0 : index
    %273 = vector.load %arg22[%c0_196, %c0_197, %c0_198] : memref<2x1x128xf32, #tpu.memory_space<vmem>>, vector<1x1x128xf32>
    %274 = vector.shape_cast %273 : vector<1x1x128xf32> to vector<1x128xf32>
    %275 = vector.broadcast %274 : vector<1x128xf32> to vector<64x128xf32>
    %276 = arith.addf %272, %275 : vector<64x128xf32>
    %277 = arith.addf %247, %276 : vector<64x128xf32>
    %c0_199 = arith.constant 0 : index
    %c0_200 = arith.constant 0 : index
    %c0_201 = arith.constant 0 : index
    %278 = vector.load %arg23[%c0_199, %c0_200, %c0_201] : memref<2x1x128xf32, #tpu.memory_space<vmem>>, vector<1x1x128xf32>
    %279 = vector.shape_cast %278 : vector<1x1x128xf32> to vector<1x128xf32>
    %c0_202 = arith.constant 0 : index
    %c0_203 = arith.constant 0 : index
    %c0_204 = arith.constant 0 : index
    %280 = vector.load %arg24[%c0_202, %c0_203, %c0_204] : memref<2x1x128xf32, #tpu.memory_space<vmem>>, vector<1x1x128xf32>
    %281 = vector.shape_cast %280 : vector<1x1x128xf32> to vector<1x128xf32>
    %cst_205 = arith.constant dense<0.000000e+00> : vector<64xf32>
    %282 = vector.multi_reduction <add>, %277, %cst_205 [1] : vector<64x128xf32> to vector<64xf32>
    %283 = vector.shape_cast %282 : vector<64xf32> to vector<64x1xf32>
    %cst_206 = arith.constant 1.280000e+02 : f32
    %284 = vector.broadcast %cst_206 : f32 to vector<64x1xf32>
    %285 = arith.divf %283, %284 : vector<64x1xf32>
    %286 = vector.broadcast %285 : vector<64x1xf32> to vector<64x128xf32>
    %287 = arith.subf %277, %286 : vector<64x128xf32>
    %288 = arith.mulf %287, %287 : vector<64x128xf32>
    %cst_207 = arith.constant dense<0.000000e+00> : vector<64xf32>
    %289 = vector.multi_reduction <add>, %288, %cst_207 [1] : vector<64x128xf32> to vector<64xf32>
    %290 = vector.shape_cast %289 : vector<64xf32> to vector<64x1xf32>
    %cst_208 = arith.constant 1.280000e+02 : f32
    %291 = vector.broadcast %cst_208 : f32 to vector<64x1xf32>
    %292 = arith.divf %290, %291 : vector<64x1xf32>
    %293 = vector.broadcast %285 : vector<64x1xf32> to vector<64x128xf32>
    %294 = arith.subf %277, %293 : vector<64x128xf32>
    %cst_209 = arith.constant 9.99999974E-6 : f32
    %295 = vector.broadcast %cst_209 : f32 to vector<64x1xf32>
    %296 = arith.addf %292, %295 : vector<64x1xf32>
    %297 = math.rsqrt %296 : vector<64x1xf32>
    %298 = vector.broadcast %297 : vector<64x1xf32> to vector<64x128xf32>
    %299 = arith.mulf %294, %298 : vector<64x128xf32>
    %300 = vector.broadcast %279 : vector<1x128xf32> to vector<64x128xf32>
    %301 = arith.mulf %299, %300 : vector<64x128xf32>
    %302 = vector.broadcast %281 : vector<1x128xf32> to vector<64x128xf32>
    %303 = arith.addf %301, %302 : vector<64x128xf32>
    %304 = arith.truncf %303 : vector<64x128xf32> to vector<64x128xbf16>
    %cst_210 = arith.constant 0.000000e+00 : f32
    %305 = vector.broadcast %cst_210 : f32 to vector<64x128xf32>
    %c1_211 = arith.constant 1 : index
    %c0_212 = arith.constant 0 : index
    %c0_213 = arith.constant 0 : index
    %c0_214 = arith.constant 0 : index
    %306 = vector.load %arg9[%c1_211, %c0_212, %c0_213, %c0_214] : memref<2x4x128x32xbf16, #tpu.memory_space<vmem>>, vector<1x1x128x32xbf16>
    %307 = vector.shape_cast %306 : vector<1x1x128x32xbf16> to vector<128x32xbf16>
    %cst_215 = arith.constant dense<0.000000e+00> : vector<64x32xf32>
    %308 = tpu.matmul %304, %307, %cst_215 {dimension_numbers = #tpu.dot_dimension_numbers<[1], [0], [0], [1], [0, 0, 1, 1], [], []>} : vector<64x128xbf16>, vector<128x32xbf16>, vector<64x32xf32> -> vector<64x32xf32>
    %c1_216 = arith.constant 1 : index
    %c0_217 = arith.constant 0 : index
    %c0_218 = arith.constant 0 : index
    %c0_219 = arith.constant 0 : index
    %309 = vector.load %arg10[%c1_216, %c0_217, %c0_218, %c0_219] : memref<2x4x1x32xf32, #tpu.memory_space<vmem>>, vector<1x1x1x32xf32>
    %310 = vector.shape_cast %309 : vector<1x1x1x32xf32> to vector<1x32xf32>
    %311 = vector.broadcast %310 : vector<1x32xf32> to vector<64x32xf32>
    %312 = arith.addf %308, %311 : vector<64x32xf32>
    %c1_220 = arith.constant 1 : index
    %c0_221 = arith.constant 0 : index
    %c0_222 = arith.constant 0 : index
    %c0_223 = arith.constant 0 : index
    %313 = vector.load %arg11[%c1_220, %c0_221, %c0_222, %c0_223] : memref<2x4x128x32xbf16, #tpu.memory_space<vmem>>, vector<1x1x128x32xbf16>
    %314 = vector.shape_cast %313 : vector<1x1x128x32xbf16> to vector<128x32xbf16>
    %cst_224 = arith.constant dense<0.000000e+00> : vector<64x32xf32>
    %315 = tpu.matmul %304, %314, %cst_224 {dimension_numbers = #tpu.dot_dimension_numbers<[1], [0], [0], [1], [0, 0, 1, 1], [], []>} : vector<64x128xbf16>, vector<128x32xbf16>, vector<64x32xf32> -> vector<64x32xf32>
    %c1_225 = arith.constant 1 : index
    %c0_226 = arith.constant 0 : index
    %c0_227 = arith.constant 0 : index
    %c0_228 = arith.constant 0 : index
    %316 = vector.load %arg12[%c1_225, %c0_226, %c0_227, %c0_228] : memref<2x4x1x32xf32, #tpu.memory_space<vmem>>, vector<1x1x1x32xf32>
    %317 = vector.shape_cast %316 : vector<1x1x1x32xf32> to vector<1x32xf32>
    %318 = vector.broadcast %317 : vector<1x32xf32> to vector<64x32xf32>
    %319 = arith.addf %315, %318 : vector<64x32xf32>
    %c1_229 = arith.constant 1 : index
    %c0_230 = arith.constant 0 : index
    %c0_231 = arith.constant 0 : index
    %c0_232 = arith.constant 0 : index
    %320 = vector.load %arg13[%c1_229, %c0_230, %c0_231, %c0_232] : memref<2x4x128x32xbf16, #tpu.memory_space<vmem>>, vector<1x1x128x32xbf16>
    %321 = vector.shape_cast %320 : vector<1x1x128x32xbf16> to vector<128x32xbf16>
    %cst_233 = arith.constant dense<0.000000e+00> : vector<64x32xf32>
    %322 = tpu.matmul %304, %321, %cst_233 {dimension_numbers = #tpu.dot_dimension_numbers<[1], [0], [0], [1], [0, 0, 1, 1], [], []>} : vector<64x128xbf16>, vector<128x32xbf16>, vector<64x32xf32> -> vector<64x32xf32>
    %c1_234 = arith.constant 1 : index
    %c0_235 = arith.constant 0 : index
    %c0_236 = arith.constant 0 : index
    %c0_237 = arith.constant 0 : index
    %323 = vector.load %arg14[%c1_234, %c0_235, %c0_236, %c0_237] : memref<2x4x1x32xf32, #tpu.memory_space<vmem>>, vector<1x1x1x32xf32>
    %324 = vector.shape_cast %323 : vector<1x1x1x32xf32> to vector<1x32xf32>
    %325 = vector.broadcast %324 : vector<1x32xf32> to vector<64x32xf32>
    %326 = arith.addf %322, %325 : vector<64x32xf32>
    %327 = tpu.transpose %319, [1, 0] : vector<64x32xf32> -> vector<32x64xf32>
    %cst_238 = arith.constant dense<0.000000e+00> : vector<64x64xf32>
    %328 = tpu.matmul %312, %327, %cst_238 {dimension_numbers = #tpu.dot_dimension_numbers<[1], [0], [0], [1], [0, 0, 1, 1], [], []>} : vector<64x32xf32>, vector<32x64xf32>, vector<64x64xf32> -> vector<64x64xf32>
    %cst_239 = arith.constant 0.176776692 : f32
    %329 = vector.broadcast %cst_239 : f32 to vector<64x64xf32>
    %330 = arith.mulf %328, %329 : vector<64x64xf32>
    %331 = arith.addf %330, %46 : vector<64x64xf32>
    %cst_240 = arith.constant dense<0xFF800000> : vector<64xf32>
    %332 = vector.multi_reduction <maximumf>, %331, %cst_240 [1] : vector<64x64xf32> to vector<64xf32>
    %333 = vector.shape_cast %332 : vector<64xf32> to vector<64x1xf32>
    %334 = vector.broadcast %333 : vector<64x1xf32> to vector<64x64xf32>
    %335 = arith.subf %331, %334 : vector<64x64xf32>
    %336 = math.exp %335 : vector<64x64xf32>
    %cst_241 = arith.constant dense<0.000000e+00> : vector<64xf32>
    %337 = vector.multi_reduction <add>, %336, %cst_241 [1] : vector<64x64xf32> to vector<64xf32>
    %338 = vector.shape_cast %337 : vector<64xf32> to vector<64x1xf32>
    %339 = tpu.reciprocal %338 {approx = true} : vector<64x1xf32> -> vector<64x1xf32>
    %340 = vector.broadcast %339 : vector<64x1xf32> to vector<64x64xf32>
    %341 = arith.mulf %336, %340 : vector<64x64xf32>
    %cst_242 = arith.constant dense<0.000000e+00> : vector<64x32xf32>
    %342 = tpu.matmul %341, %326, %cst_242 {dimension_numbers = #tpu.dot_dimension_numbers<[1], [0], [0], [1], [0, 0, 1, 1], [], []>} : vector<64x64xf32>, vector<64x32xf32>, vector<64x32xf32> -> vector<64x32xf32>
    %343 = arith.truncf %342 : vector<64x32xf32> to vector<64x32xbf16>
    %c1_243 = arith.constant 1 : index
    %c0_244 = arith.constant 0 : index
    %c0_245 = arith.constant 0 : index
    %c0_246 = arith.constant 0 : index
    %344 = vector.load %arg15[%c1_243, %c0_244, %c0_245, %c0_246] : memref<2x4x32x128xbf16, #tpu.memory_space<vmem>>, vector<1x1x32x128xbf16>
    %345 = vector.shape_cast %344 : vector<1x1x32x128xbf16> to vector<32x128xbf16>
    %cst_247 = arith.constant dense<0.000000e+00> : vector<64x128xf32>
    %346 = tpu.matmul %343, %345, %cst_247 {dimension_numbers = #tpu.dot_dimension_numbers<[1], [0], [0], [1], [0, 0, 1, 1], [], []>} : vector<64x32xbf16>, vector<32x128xbf16>, vector<64x128xf32> -> vector<64x128xf32>
    %347 = arith.addf %305, %346 : vector<64x128xf32>
    %c1_248 = arith.constant 1 : index
    %c1_249 = arith.constant 1 : index
    %c0_250 = arith.constant 0 : index
    %c0_251 = arith.constant 0 : index
    %348 = vector.load %arg9[%c1_248, %c1_249, %c0_250, %c0_251] : memref<2x4x128x32xbf16, #tpu.memory_space<vmem>>, vector<1x1x128x32xbf16>
    %349 = vector.shape_cast %348 : vector<1x1x128x32xbf16> to vector<128x32xbf16>
    %cst_252 = arith.constant dense<0.000000e+00> : vector<64x32xf32>
    %350 = tpu.matmul %304, %349, %cst_252 {dimension_numbers = #tpu.dot_dimension_numbers<[1], [0], [0], [1], [0, 0, 1, 1], [], []>} : vector<64x128xbf16>, vector<128x32xbf16>, vector<64x32xf32> -> vector<64x32xf32>
    %c1_253 = arith.constant 1 : index
    %c1_254 = arith.constant 1 : index
    %c0_255 = arith.constant 0 : index
    %c0_256 = arith.constant 0 : index
    %351 = vector.load %arg10[%c1_253, %c1_254, %c0_255, %c0_256] : memref<2x4x1x32xf32, #tpu.memory_space<vmem>>, vector<1x1x1x32xf32>
    %352 = vector.shape_cast %351 : vector<1x1x1x32xf32> to vector<1x32xf32>
    %353 = vector.broadcast %352 : vector<1x32xf32> to vector<64x32xf32>
    %354 = arith.addf %350, %353 : vector<64x32xf32>
    %c1_257 = arith.constant 1 : index
    %c1_258 = arith.constant 1 : index
    %c0_259 = arith.constant 0 : index
    %c0_260 = arith.constant 0 : index
    %355 = vector.load %arg11[%c1_257, %c1_258, %c0_259, %c0_260] : memref<2x4x128x32xbf16, #tpu.memory_space<vmem>>, vector<1x1x128x32xbf16>
    %356 = vector.shape_cast %355 : vector<1x1x128x32xbf16> to vector<128x32xbf16>
    %cst_261 = arith.constant dense<0.000000e+00> : vector<64x32xf32>
    %357 = tpu.matmul %304, %356, %cst_261 {dimension_numbers = #tpu.dot_dimension_numbers<[1], [0], [0], [1], [0, 0, 1, 1], [], []>} : vector<64x128xbf16>, vector<128x32xbf16>, vector<64x32xf32> -> vector<64x32xf32>
    %c1_262 = arith.constant 1 : index
    %c1_263 = arith.constant 1 : index
    %c0_264 = arith.constant 0 : index
    %c0_265 = arith.constant 0 : index
    %358 = vector.load %arg12[%c1_262, %c1_263, %c0_264, %c0_265] : memref<2x4x1x32xf32, #tpu.memory_space<vmem>>, vector<1x1x1x32xf32>
    %359 = vector.shape_cast %358 : vector<1x1x1x32xf32> to vector<1x32xf32>
    %360 = vector.broadcast %359 : vector<1x32xf32> to vector<64x32xf32>
    %361 = arith.addf %357, %360 : vector<64x32xf32>
    %c1_266 = arith.constant 1 : index
    %c1_267 = arith.constant 1 : index
    %c0_268 = arith.constant 0 : index
    %c0_269 = arith.constant 0 : index
    %362 = vector.load %arg13[%c1_266, %c1_267, %c0_268, %c0_269] : memref<2x4x128x32xbf16, #tpu.memory_space<vmem>>, vector<1x1x128x32xbf16>
    %363 = vector.shape_cast %362 : vector<1x1x128x32xbf16> to vector<128x32xbf16>
    %cst_270 = arith.constant dense<0.000000e+00> : vector<64x32xf32>
    %364 = tpu.matmul %304, %363, %cst_270 {dimension_numbers = #tpu.dot_dimension_numbers<[1], [0], [0], [1], [0, 0, 1, 1], [], []>} : vector<64x128xbf16>, vector<128x32xbf16>, vector<64x32xf32> -> vector<64x32xf32>
    %c1_271 = arith.constant 1 : index
    %c1_272 = arith.constant 1 : index
    %c0_273 = arith.constant 0 : index
    %c0_274 = arith.constant 0 : index
    %365 = vector.load %arg14[%c1_271, %c1_272, %c0_273, %c0_274] : memref<2x4x1x32xf32, #tpu.memory_space<vmem>>, vector<1x1x1x32xf32>
    %366 = vector.shape_cast %365 : vector<1x1x1x32xf32> to vector<1x32xf32>
    %367 = vector.broadcast %366 : vector<1x32xf32> to vector<64x32xf32>
    %368 = arith.addf %364, %367 : vector<64x32xf32>
    %369 = tpu.transpose %361, [1, 0] : vector<64x32xf32> -> vector<32x64xf32>
    %cst_275 = arith.constant dense<0.000000e+00> : vector<64x64xf32>
    %370 = tpu.matmul %354, %369, %cst_275 {dimension_numbers = #tpu.dot_dimension_numbers<[1], [0], [0], [1], [0, 0, 1, 1], [], []>} : vector<64x32xf32>, vector<32x64xf32>, vector<64x64xf32> -> vector<64x64xf32>
    %cst_276 = arith.constant 0.176776692 : f32
    %371 = vector.broadcast %cst_276 : f32 to vector<64x64xf32>
    %372 = arith.mulf %370, %371 : vector<64x64xf32>
    %373 = arith.addf %372, %46 : vector<64x64xf32>
    %cst_277 = arith.constant dense<0xFF800000> : vector<64xf32>
    %374 = vector.multi_reduction <maximumf>, %373, %cst_277 [1] : vector<64x64xf32> to vector<64xf32>
    %375 = vector.shape_cast %374 : vector<64xf32> to vector<64x1xf32>
    %376 = vector.broadcast %375 : vector<64x1xf32> to vector<64x64xf32>
    %377 = arith.subf %373, %376 : vector<64x64xf32>
    %378 = math.exp %377 : vector<64x64xf32>
    %cst_278 = arith.constant dense<0.000000e+00> : vector<64xf32>
    %379 = vector.multi_reduction <add>, %378, %cst_278 [1] : vector<64x64xf32> to vector<64xf32>
    %380 = vector.shape_cast %379 : vector<64xf32> to vector<64x1xf32>
    %381 = tpu.reciprocal %380 {approx = true} : vector<64x1xf32> -> vector<64x1xf32>
    %382 = vector.broadcast %381 : vector<64x1xf32> to vector<64x64xf32>
    %383 = arith.mulf %378, %382 : vector<64x64xf32>
    %cst_279 = arith.constant dense<0.000000e+00> : vector<64x32xf32>
    %384 = tpu.matmul %383, %368, %cst_279 {dimension_numbers = #tpu.dot_dimension_numbers<[1], [0], [0], [1], [0, 0, 1, 1], [], []>} : vector<64x64xf32>, vector<64x32xf32>, vector<64x32xf32> -> vector<64x32xf32>
    %385 = arith.truncf %384 : vector<64x32xf32> to vector<64x32xbf16>
    %c1_280 = arith.constant 1 : index
    %c1_281 = arith.constant 1 : index
    %c0_282 = arith.constant 0 : index
    %c0_283 = arith.constant 0 : index
    %386 = vector.load %arg15[%c1_280, %c1_281, %c0_282, %c0_283] : memref<2x4x32x128xbf16, #tpu.memory_space<vmem>>, vector<1x1x32x128xbf16>
    %387 = vector.shape_cast %386 : vector<1x1x32x128xbf16> to vector<32x128xbf16>
    %cst_284 = arith.constant dense<0.000000e+00> : vector<64x128xf32>
    %388 = tpu.matmul %385, %387, %cst_284 {dimension_numbers = #tpu.dot_dimension_numbers<[1], [0], [0], [1], [0, 0, 1, 1], [], []>} : vector<64x32xbf16>, vector<32x128xbf16>, vector<64x128xf32> -> vector<64x128xf32>
    %389 = arith.addf %347, %388 : vector<64x128xf32>
    %c1_285 = arith.constant 1 : index
    %c2_286 = arith.constant 2 : index
    %c0_287 = arith.constant 0 : index
    %c0_288 = arith.constant 0 : index
    %390 = vector.load %arg9[%c1_285, %c2_286, %c0_287, %c0_288] : memref<2x4x128x32xbf16, #tpu.memory_space<vmem>>, vector<1x1x128x32xbf16>
    %391 = vector.shape_cast %390 : vector<1x1x128x32xbf16> to vector<128x32xbf16>
    %cst_289 = arith.constant dense<0.000000e+00> : vector<64x32xf32>
    %392 = tpu.matmul %304, %391, %cst_289 {dimension_numbers = #tpu.dot_dimension_numbers<[1], [0], [0], [1], [0, 0, 1, 1], [], []>} : vector<64x128xbf16>, vector<128x32xbf16>, vector<64x32xf32> -> vector<64x32xf32>
    %c1_290 = arith.constant 1 : index
    %c2_291 = arith.constant 2 : index
    %c0_292 = arith.constant 0 : index
    %c0_293 = arith.constant 0 : index
    %393 = vector.load %arg10[%c1_290, %c2_291, %c0_292, %c0_293] : memref<2x4x1x32xf32, #tpu.memory_space<vmem>>, vector<1x1x1x32xf32>
    %394 = vector.shape_cast %393 : vector<1x1x1x32xf32> to vector<1x32xf32>
    %395 = vector.broadcast %394 : vector<1x32xf32> to vector<64x32xf32>
    %396 = arith.addf %392, %395 : vector<64x32xf32>
    %c1_294 = arith.constant 1 : index
    %c2_295 = arith.constant 2 : index
    %c0_296 = arith.constant 0 : index
    %c0_297 = arith.constant 0 : index
    %397 = vector.load %arg11[%c1_294, %c2_295, %c0_296, %c0_297] : memref<2x4x128x32xbf16, #tpu.memory_space<vmem>>, vector<1x1x128x32xbf16>
    %398 = vector.shape_cast %397 : vector<1x1x128x32xbf16> to vector<128x32xbf16>
    %cst_298 = arith.constant dense<0.000000e+00> : vector<64x32xf32>
    %399 = tpu.matmul %304, %398, %cst_298 {dimension_numbers = #tpu.dot_dimension_numbers<[1], [0], [0], [1], [0, 0, 1, 1], [], []>} : vector<64x128xbf16>, vector<128x32xbf16>, vector<64x32xf32> -> vector<64x32xf32>
    %c1_299 = arith.constant 1 : index
    %c2_300 = arith.constant 2 : index
    %c0_301 = arith.constant 0 : index
    %c0_302 = arith.constant 0 : index
    %400 = vector.load %arg12[%c1_299, %c2_300, %c0_301, %c0_302] : memref<2x4x1x32xf32, #tpu.memory_space<vmem>>, vector<1x1x1x32xf32>
    %401 = vector.shape_cast %400 : vector<1x1x1x32xf32> to vector<1x32xf32>
    %402 = vector.broadcast %401 : vector<1x32xf32> to vector<64x32xf32>
    %403 = arith.addf %399, %402 : vector<64x32xf32>
    %c1_303 = arith.constant 1 : index
    %c2_304 = arith.constant 2 : index
    %c0_305 = arith.constant 0 : index
    %c0_306 = arith.constant 0 : index
    %404 = vector.load %arg13[%c1_303, %c2_304, %c0_305, %c0_306] : memref<2x4x128x32xbf16, #tpu.memory_space<vmem>>, vector<1x1x128x32xbf16>
    %405 = vector.shape_cast %404 : vector<1x1x128x32xbf16> to vector<128x32xbf16>
    %cst_307 = arith.constant dense<0.000000e+00> : vector<64x32xf32>
    %406 = tpu.matmul %304, %405, %cst_307 {dimension_numbers = #tpu.dot_dimension_numbers<[1], [0], [0], [1], [0, 0, 1, 1], [], []>} : vector<64x128xbf16>, vector<128x32xbf16>, vector<64x32xf32> -> vector<64x32xf32>
    %c1_308 = arith.constant 1 : index
    %c2_309 = arith.constant 2 : index
    %c0_310 = arith.constant 0 : index
    %c0_311 = arith.constant 0 : index
    %407 = vector.load %arg14[%c1_308, %c2_309, %c0_310, %c0_311] : memref<2x4x1x32xf32, #tpu.memory_space<vmem>>, vector<1x1x1x32xf32>
    %408 = vector.shape_cast %407 : vector<1x1x1x32xf32> to vector<1x32xf32>
    %409 = vector.broadcast %408 : vector<1x32xf32> to vector<64x32xf32>
    %410 = arith.addf %406, %409 : vector<64x32xf32>
    %411 = tpu.transpose %403, [1, 0] : vector<64x32xf32> -> vector<32x64xf32>
    %cst_312 = arith.constant dense<0.000000e+00> : vector<64x64xf32>
    %412 = tpu.matmul %396, %411, %cst_312 {dimension_numbers = #tpu.dot_dimension_numbers<[1], [0], [0], [1], [0, 0, 1, 1], [], []>} : vector<64x32xf32>, vector<32x64xf32>, vector<64x64xf32> -> vector<64x64xf32>
    %cst_313 = arith.constant 0.176776692 : f32
    %413 = vector.broadcast %cst_313 : f32 to vector<64x64xf32>
    %414 = arith.mulf %412, %413 : vector<64x64xf32>
    %415 = arith.addf %414, %46 : vector<64x64xf32>
    %cst_314 = arith.constant dense<0xFF800000> : vector<64xf32>
    %416 = vector.multi_reduction <maximumf>, %415, %cst_314 [1] : vector<64x64xf32> to vector<64xf32>
    %417 = vector.shape_cast %416 : vector<64xf32> to vector<64x1xf32>
    %418 = vector.broadcast %417 : vector<64x1xf32> to vector<64x64xf32>
    %419 = arith.subf %415, %418 : vector<64x64xf32>
    %420 = math.exp %419 : vector<64x64xf32>
    %cst_315 = arith.constant dense<0.000000e+00> : vector<64xf32>
    %421 = vector.multi_reduction <add>, %420, %cst_315 [1] : vector<64x64xf32> to vector<64xf32>
    %422 = vector.shape_cast %421 : vector<64xf32> to vector<64x1xf32>
    %423 = tpu.reciprocal %422 {approx = true} : vector<64x1xf32> -> vector<64x1xf32>
    %424 = vector.broadcast %423 : vector<64x1xf32> to vector<64x64xf32>
    %425 = arith.mulf %420, %424 : vector<64x64xf32>
    %cst_316 = arith.constant dense<0.000000e+00> : vector<64x32xf32>
    %426 = tpu.matmul %425, %410, %cst_316 {dimension_numbers = #tpu.dot_dimension_numbers<[1], [0], [0], [1], [0, 0, 1, 1], [], []>} : vector<64x64xf32>, vector<64x32xf32>, vector<64x32xf32> -> vector<64x32xf32>
    %427 = arith.truncf %426 : vector<64x32xf32> to vector<64x32xbf16>
    %c1_317 = arith.constant 1 : index
    %c2_318 = arith.constant 2 : index
    %c0_319 = arith.constant 0 : index
    %c0_320 = arith.constant 0 : index
    %428 = vector.load %arg15[%c1_317, %c2_318, %c0_319, %c0_320] : memref<2x4x32x128xbf16, #tpu.memory_space<vmem>>, vector<1x1x32x128xbf16>
    %429 = vector.shape_cast %428 : vector<1x1x32x128xbf16> to vector<32x128xbf16>
    %cst_321 = arith.constant dense<0.000000e+00> : vector<64x128xf32>
    %430 = tpu.matmul %427, %429, %cst_321 {dimension_numbers = #tpu.dot_dimension_numbers<[1], [0], [0], [1], [0, 0, 1, 1], [], []>} : vector<64x32xbf16>, vector<32x128xbf16>, vector<64x128xf32> -> vector<64x128xf32>
    %431 = arith.addf %389, %430 : vector<64x128xf32>
    %c1_322 = arith.constant 1 : index
    %c3_323 = arith.constant 3 : index
    %c0_324 = arith.constant 0 : index
    %c0_325 = arith.constant 0 : index
    %432 = vector.load %arg9[%c1_322, %c3_323, %c0_324, %c0_325] : memref<2x4x128x32xbf16, #tpu.memory_space<vmem>>, vector<1x1x128x32xbf16>
    %433 = vector.shape_cast %432 : vector<1x1x128x32xbf16> to vector<128x32xbf16>
    %cst_326 = arith.constant dense<0.000000e+00> : vector<64x32xf32>
    %434 = tpu.matmul %304, %433, %cst_326 {dimension_numbers = #tpu.dot_dimension_numbers<[1], [0], [0], [1], [0, 0, 1, 1], [], []>} : vector<64x128xbf16>, vector<128x32xbf16>, vector<64x32xf32> -> vector<64x32xf32>
    %c1_327 = arith.constant 1 : index
    %c3_328 = arith.constant 3 : index
    %c0_329 = arith.constant 0 : index
    %c0_330 = arith.constant 0 : index
    %435 = vector.load %arg10[%c1_327, %c3_328, %c0_329, %c0_330] : memref<2x4x1x32xf32, #tpu.memory_space<vmem>>, vector<1x1x1x32xf32>
    %436 = vector.shape_cast %435 : vector<1x1x1x32xf32> to vector<1x32xf32>
    %437 = vector.broadcast %436 : vector<1x32xf32> to vector<64x32xf32>
    %438 = arith.addf %434, %437 : vector<64x32xf32>
    %c1_331 = arith.constant 1 : index
    %c3_332 = arith.constant 3 : index
    %c0_333 = arith.constant 0 : index
    %c0_334 = arith.constant 0 : index
    %439 = vector.load %arg11[%c1_331, %c3_332, %c0_333, %c0_334] : memref<2x4x128x32xbf16, #tpu.memory_space<vmem>>, vector<1x1x128x32xbf16>
    %440 = vector.shape_cast %439 : vector<1x1x128x32xbf16> to vector<128x32xbf16>
    %cst_335 = arith.constant dense<0.000000e+00> : vector<64x32xf32>
    %441 = tpu.matmul %304, %440, %cst_335 {dimension_numbers = #tpu.dot_dimension_numbers<[1], [0], [0], [1], [0, 0, 1, 1], [], []>} : vector<64x128xbf16>, vector<128x32xbf16>, vector<64x32xf32> -> vector<64x32xf32>
    %c1_336 = arith.constant 1 : index
    %c3_337 = arith.constant 3 : index
    %c0_338 = arith.constant 0 : index
    %c0_339 = arith.constant 0 : index
    %442 = vector.load %arg12[%c1_336, %c3_337, %c0_338, %c0_339] : memref<2x4x1x32xf32, #tpu.memory_space<vmem>>, vector<1x1x1x32xf32>
    %443 = vector.shape_cast %442 : vector<1x1x1x32xf32> to vector<1x32xf32>
    %444 = vector.broadcast %443 : vector<1x32xf32> to vector<64x32xf32>
    %445 = arith.addf %441, %444 : vector<64x32xf32>
    %c1_340 = arith.constant 1 : index
    %c3_341 = arith.constant 3 : index
    %c0_342 = arith.constant 0 : index
    %c0_343 = arith.constant 0 : index
    %446 = vector.load %arg13[%c1_340, %c3_341, %c0_342, %c0_343] : memref<2x4x128x32xbf16, #tpu.memory_space<vmem>>, vector<1x1x128x32xbf16>
    %447 = vector.shape_cast %446 : vector<1x1x128x32xbf16> to vector<128x32xbf16>
    %cst_344 = arith.constant dense<0.000000e+00> : vector<64x32xf32>
    %448 = tpu.matmul %304, %447, %cst_344 {dimension_numbers = #tpu.dot_dimension_numbers<[1], [0], [0], [1], [0, 0, 1, 1], [], []>} : vector<64x128xbf16>, vector<128x32xbf16>, vector<64x32xf32> -> vector<64x32xf32>
    %c1_345 = arith.constant 1 : index
    %c3_346 = arith.constant 3 : index
    %c0_347 = arith.constant 0 : index
    %c0_348 = arith.constant 0 : index
    %449 = vector.load %arg14[%c1_345, %c3_346, %c0_347, %c0_348] : memref<2x4x1x32xf32, #tpu.memory_space<vmem>>, vector<1x1x1x32xf32>
    %450 = vector.shape_cast %449 : vector<1x1x1x32xf32> to vector<1x32xf32>
    %451 = vector.broadcast %450 : vector<1x32xf32> to vector<64x32xf32>
    %452 = arith.addf %448, %451 : vector<64x32xf32>
    %453 = tpu.transpose %445, [1, 0] : vector<64x32xf32> -> vector<32x64xf32>
    %cst_349 = arith.constant dense<0.000000e+00> : vector<64x64xf32>
    %454 = tpu.matmul %438, %453, %cst_349 {dimension_numbers = #tpu.dot_dimension_numbers<[1], [0], [0], [1], [0, 0, 1, 1], [], []>} : vector<64x32xf32>, vector<32x64xf32>, vector<64x64xf32> -> vector<64x64xf32>
    %cst_350 = arith.constant 0.176776692 : f32
    %455 = vector.broadcast %cst_350 : f32 to vector<64x64xf32>
    %456 = arith.mulf %454, %455 : vector<64x64xf32>
    %457 = arith.addf %456, %46 : vector<64x64xf32>
    %cst_351 = arith.constant dense<0xFF800000> : vector<64xf32>
    %458 = vector.multi_reduction <maximumf>, %457, %cst_351 [1] : vector<64x64xf32> to vector<64xf32>
    %459 = vector.shape_cast %458 : vector<64xf32> to vector<64x1xf32>
    %460 = vector.broadcast %459 : vector<64x1xf32> to vector<64x64xf32>
    %461 = arith.subf %457, %460 : vector<64x64xf32>
    %462 = math.exp %461 : vector<64x64xf32>
    %cst_352 = arith.constant dense<0.000000e+00> : vector<64xf32>
    %463 = vector.multi_reduction <add>, %462, %cst_352 [1] : vector<64x64xf32> to vector<64xf32>
    %464 = vector.shape_cast %463 : vector<64xf32> to vector<64x1xf32>
    %465 = tpu.reciprocal %464 {approx = true} : vector<64x1xf32> -> vector<64x1xf32>
    %466 = vector.broadcast %465 : vector<64x1xf32> to vector<64x64xf32>
    %467 = arith.mulf %462, %466 : vector<64x64xf32>
    %cst_353 = arith.constant dense<0.000000e+00> : vector<64x32xf32>
    %468 = tpu.matmul %467, %452, %cst_353 {dimension_numbers = #tpu.dot_dimension_numbers<[1], [0], [0], [1], [0, 0, 1, 1], [], []>} : vector<64x64xf32>, vector<64x32xf32>, vector<64x32xf32> -> vector<64x32xf32>
    %469 = arith.truncf %468 : vector<64x32xf32> to vector<64x32xbf16>
    %c1_354 = arith.constant 1 : index
    %c3_355 = arith.constant 3 : index
    %c0_356 = arith.constant 0 : index
    %c0_357 = arith.constant 0 : index
    %470 = vector.load %arg15[%c1_354, %c3_355, %c0_356, %c0_357] : memref<2x4x32x128xbf16, #tpu.memory_space<vmem>>, vector<1x1x32x128xbf16>
    %471 = vector.shape_cast %470 : vector<1x1x32x128xbf16> to vector<32x128xbf16>
    %cst_358 = arith.constant dense<0.000000e+00> : vector<64x128xf32>
    %472 = tpu.matmul %469, %471, %cst_358 {dimension_numbers = #tpu.dot_dimension_numbers<[1], [0], [0], [1], [0, 0, 1, 1], [], []>} : vector<64x32xbf16>, vector<32x128xbf16>, vector<64x128xf32> -> vector<64x128xf32>
    %473 = arith.addf %431, %472 : vector<64x128xf32>
    %c1_359 = arith.constant 1 : index
    %c0_360 = arith.constant 0 : index
    %c0_361 = arith.constant 0 : index
    %474 = vector.load %arg16[%c1_359, %c0_360, %c0_361] : memref<2x1x128xf32, #tpu.memory_space<vmem>>, vector<1x1x128xf32>
    %475 = vector.shape_cast %474 : vector<1x1x128xf32> to vector<1x128xf32>
    %476 = vector.broadcast %475 : vector<1x128xf32> to vector<64x128xf32>
    %477 = arith.addf %473, %476 : vector<64x128xf32>
    %478 = arith.addf %303, %477 : vector<64x128xf32>
    %c1_362 = arith.constant 1 : index
    %c0_363 = arith.constant 0 : index
    %c0_364 = arith.constant 0 : index
    %479 = vector.load %arg17[%c1_362, %c0_363, %c0_364] : memref<2x1x128xf32, #tpu.memory_space<vmem>>, vector<1x1x128xf32>
    %480 = vector.shape_cast %479 : vector<1x1x128xf32> to vector<1x128xf32>
    %c1_365 = arith.constant 1 : index
    %c0_366 = arith.constant 0 : index
    %c0_367 = arith.constant 0 : index
    %481 = vector.load %arg18[%c1_365, %c0_366, %c0_367] : memref<2x1x128xf32, #tpu.memory_space<vmem>>, vector<1x1x128xf32>
    %482 = vector.shape_cast %481 : vector<1x1x128xf32> to vector<1x128xf32>
    %cst_368 = arith.constant dense<0.000000e+00> : vector<64xf32>
    %483 = vector.multi_reduction <add>, %478, %cst_368 [1] : vector<64x128xf32> to vector<64xf32>
    %484 = vector.shape_cast %483 : vector<64xf32> to vector<64x1xf32>
    %cst_369 = arith.constant 1.280000e+02 : f32
    %485 = vector.broadcast %cst_369 : f32 to vector<64x1xf32>
    %486 = arith.divf %484, %485 : vector<64x1xf32>
    %487 = vector.broadcast %486 : vector<64x1xf32> to vector<64x128xf32>
    %488 = arith.subf %478, %487 : vector<64x128xf32>
    %489 = arith.mulf %488, %488 : vector<64x128xf32>
    %cst_370 = arith.constant dense<0.000000e+00> : vector<64xf32>
    %490 = vector.multi_reduction <add>, %489, %cst_370 [1] : vector<64x128xf32> to vector<64xf32>
    %491 = vector.shape_cast %490 : vector<64xf32> to vector<64x1xf32>
    %cst_371 = arith.constant 1.280000e+02 : f32
    %492 = vector.broadcast %cst_371 : f32 to vector<64x1xf32>
    %493 = arith.divf %491, %492 : vector<64x1xf32>
    %494 = vector.broadcast %486 : vector<64x1xf32> to vector<64x128xf32>
    %495 = arith.subf %478, %494 : vector<64x128xf32>
    %cst_372 = arith.constant 9.99999974E-6 : f32
    %496 = vector.broadcast %cst_372 : f32 to vector<64x1xf32>
    %497 = arith.addf %493, %496 : vector<64x1xf32>
    %498 = math.rsqrt %497 : vector<64x1xf32>
    %499 = vector.broadcast %498 : vector<64x1xf32> to vector<64x128xf32>
    %500 = arith.mulf %495, %499 : vector<64x128xf32>
    %501 = vector.broadcast %480 : vector<1x128xf32> to vector<64x128xf32>
    %502 = arith.mulf %500, %501 : vector<64x128xf32>
    %503 = vector.broadcast %482 : vector<1x128xf32> to vector<64x128xf32>
    %504 = arith.addf %502, %503 : vector<64x128xf32>
    %505 = arith.truncf %504 : vector<64x128xf32> to vector<64x128xbf16>
    %c1_373 = arith.constant 1 : index
    %c0_374 = arith.constant 0 : index
    %c0_375 = arith.constant 0 : index
    %506 = vector.load %arg19[%c1_373, %c0_374, %c0_375] : memref<2x128x256xbf16, #tpu.memory_space<vmem>>, vector<1x128x256xbf16>
    %507 = vector.shape_cast %506 : vector<1x128x256xbf16> to vector<128x256xbf16>
    %cst_376 = arith.constant dense<0.000000e+00> : vector<64x256xf32>
    %508 = tpu.matmul %505, %507, %cst_376 {dimension_numbers = #tpu.dot_dimension_numbers<[1], [0], [0], [1], [0, 0, 1, 1], [], []>} : vector<64x128xbf16>, vector<128x256xbf16>, vector<64x256xf32> -> vector<64x256xf32>
    %c1_377 = arith.constant 1 : index
    %c0_378 = arith.constant 0 : index
    %c0_379 = arith.constant 0 : index
    %509 = vector.load %arg20[%c1_377, %c0_378, %c0_379] : memref<2x1x256xf32, #tpu.memory_space<vmem>>, vector<1x1x256xf32>
    %510 = vector.shape_cast %509 : vector<1x1x256xf32> to vector<1x256xf32>
    %511 = vector.broadcast %510 : vector<1x256xf32> to vector<64x256xf32>
    %512 = arith.addf %508, %511 : vector<64x256xf32>
    %cst_380 = arith.constant 5.000000e-01 : f32
    %513 = vector.broadcast %cst_380 : f32 to vector<64x256xf32>
    %514 = arith.mulf %513, %512 : vector<64x256xf32>
    %cst_381 = arith.constant 4.471500e-02 : f32
    %515 = vector.broadcast %cst_381 : f32 to vector<64x256xf32>
    %516 = arith.mulf %515, %512 : vector<64x256xf32>
    %517 = arith.mulf %516, %512 : vector<64x256xf32>
    %518 = arith.mulf %517, %512 : vector<64x256xf32>
    %519 = arith.addf %512, %518 : vector<64x256xf32>
    %cst_382 = arith.constant 0.797884583 : f32
    %520 = vector.broadcast %cst_382 : f32 to vector<64x256xf32>
    %521 = arith.mulf %520, %519 : vector<64x256xf32>
    %522 = math.tanh %521 : vector<64x256xf32>
    %cst_383 = arith.constant 1.000000e+00 : f32
    %523 = vector.broadcast %cst_383 : f32 to vector<64x256xf32>
    %524 = arith.addf %523, %522 : vector<64x256xf32>
    %525 = arith.mulf %514, %524 : vector<64x256xf32>
    %526 = arith.truncf %525 : vector<64x256xf32> to vector<64x256xbf16>
    %c1_384 = arith.constant 1 : index
    %c0_385 = arith.constant 0 : index
    %c0_386 = arith.constant 0 : index
    %527 = vector.load %arg21[%c1_384, %c0_385, %c0_386] : memref<2x256x128xbf16, #tpu.memory_space<vmem>>, vector<1x256x128xbf16>
    %528 = vector.shape_cast %527 : vector<1x256x128xbf16> to vector<256x128xbf16>
    %cst_387 = arith.constant dense<0.000000e+00> : vector<64x128xf32>
    %529 = tpu.matmul %526, %528, %cst_387 {dimension_numbers = #tpu.dot_dimension_numbers<[1], [0], [0], [1], [0, 0, 1, 1], [], []>} : vector<64x256xbf16>, vector<256x128xbf16>, vector<64x128xf32> -> vector<64x128xf32>
    %c1_388 = arith.constant 1 : index
    %c0_389 = arith.constant 0 : index
    %c0_390 = arith.constant 0 : index
    %530 = vector.load %arg22[%c1_388, %c0_389, %c0_390] : memref<2x1x128xf32, #tpu.memory_space<vmem>>, vector<1x1x128xf32>
    %531 = vector.shape_cast %530 : vector<1x1x128xf32> to vector<1x128xf32>
    %532 = vector.broadcast %531 : vector<1x128xf32> to vector<64x128xf32>
    %533 = arith.addf %529, %532 : vector<64x128xf32>
    %534 = arith.addf %504, %533 : vector<64x128xf32>
    %c1_391 = arith.constant 1 : index
    %c0_392 = arith.constant 0 : index
    %c0_393 = arith.constant 0 : index
    %535 = vector.load %arg23[%c1_391, %c0_392, %c0_393] : memref<2x1x128xf32, #tpu.memory_space<vmem>>, vector<1x1x128xf32>
    %536 = vector.shape_cast %535 : vector<1x1x128xf32> to vector<1x128xf32>
    %c1_394 = arith.constant 1 : index
    %c0_395 = arith.constant 0 : index
    %c0_396 = arith.constant 0 : index
    %537 = vector.load %arg24[%c1_394, %c0_395, %c0_396] : memref<2x1x128xf32, #tpu.memory_space<vmem>>, vector<1x1x128xf32>
    %538 = vector.shape_cast %537 : vector<1x1x128xf32> to vector<1x128xf32>
    %cst_397 = arith.constant dense<0.000000e+00> : vector<64xf32>
    %539 = vector.multi_reduction <add>, %534, %cst_397 [1] : vector<64x128xf32> to vector<64xf32>
    %540 = vector.shape_cast %539 : vector<64xf32> to vector<64x1xf32>
    %cst_398 = arith.constant 1.280000e+02 : f32
    %541 = vector.broadcast %cst_398 : f32 to vector<64x1xf32>
    %542 = arith.divf %540, %541 : vector<64x1xf32>
    %543 = vector.broadcast %542 : vector<64x1xf32> to vector<64x128xf32>
    %544 = arith.subf %534, %543 : vector<64x128xf32>
    %545 = arith.mulf %544, %544 : vector<64x128xf32>
    %cst_399 = arith.constant dense<0.000000e+00> : vector<64xf32>
    %546 = vector.multi_reduction <add>, %545, %cst_399 [1] : vector<64x128xf32> to vector<64xf32>
    %547 = vector.shape_cast %546 : vector<64xf32> to vector<64x1xf32>
    %cst_400 = arith.constant 1.280000e+02 : f32
    %548 = vector.broadcast %cst_400 : f32 to vector<64x1xf32>
    %549 = arith.divf %547, %548 : vector<64x1xf32>
    %550 = vector.broadcast %542 : vector<64x1xf32> to vector<64x128xf32>
    %551 = arith.subf %534, %550 : vector<64x128xf32>
    %cst_401 = arith.constant 9.99999974E-6 : f32
    %552 = vector.broadcast %cst_401 : f32 to vector<64x1xf32>
    %553 = arith.addf %549, %552 : vector<64x1xf32>
    %554 = math.rsqrt %553 : vector<64x1xf32>
    %555 = vector.broadcast %554 : vector<64x1xf32> to vector<64x128xf32>
    %556 = arith.mulf %551, %555 : vector<64x128xf32>
    %557 = vector.broadcast %536 : vector<1x128xf32> to vector<64x128xf32>
    %558 = arith.mulf %556, %557 : vector<64x128xf32>
    %559 = vector.broadcast %538 : vector<1x128xf32> to vector<64x128xf32>
    %560 = arith.addf %558, %559 : vector<64x128xf32>
    %c0_402 = arith.constant 0 : index
    %c0_403 = arith.constant 0 : index
    %561 = vector.load %arg25[%c0_402, %c0_403] : memref<64x128xf32, #tpu.memory_space<vmem>>, vector<64x128xf32>
    tpu.vector_store %arg25[%c0_402, %c0_403], %560 {strides = array<i32>} : memref<64x128xf32, #tpu.memory_space<vmem>>, vector<64x128xf32>,
    return
  }
  func.func @transform_0(%arg0: i32) -> (i32, i32) {
    %c0_i32 = arith.constant 0 : i32
    %c0_i32_0 = arith.constant 0 : i32
    %c0_i32_1 = arith.constant 0 : i32
    return %c0_i32, %c0_i32_0 : i32, i32
  }
  func.func @transform_1(%arg0: i32) -> (i32, i32) {
    %c0_i32 = arith.constant 0 : i32
    %c0_i32_0 = arith.constant 0 : i32
    %c0_i32_1 = arith.constant 0 : i32
    return %c0_i32, %c0_i32_0 : i32, i32
  }
  func.func @transform_2(%arg0: i32) -> (i32, i32) {
    %c0_i32 = arith.constant 0 : i32
    %c0_i32_0 = arith.constant 0 : i32
    %c0_i32_1 = arith.constant 0 : i32
    return %c0_i32, %c0_i32_0 : i32, i32
  }
  func.func @transform_3(%arg0: i32) -> (i32, i32) {
    %c0_i32 = arith.constant 0 : i32
    %c0_i32_0 = arith.constant 0 : i32
    %c0_i32_1 = arith.constant 0 : i32
    return %c0_i32, %c0_i32_0 : i32, i32
  }
  func.func @transform_4(%arg0: i32) -> (i32, i32) {
    %c0_i32 = arith.constant 0 : i32
    %c0_i32_0 = arith.constant 0 : i32
    %c0_i32_1 = arith.constant 0 : i32
    return %c0_i32, %c0_i32_0 : i32, i32
  }
  func.func @transform_5(%arg0: i32) -> (i32, i32) {
    %c0_i32 = arith.constant 0 : i32
    %c0_i32_0 = arith.constant 0 : i32
    %c0_i32_1 = arith.constant 0 : i32
    return %c0_i32, %c0_i32_0 : i32, i32
  }
  func.func @transform_6(%arg0: i32) -> (i32, i32) {
    %c0_i32 = arith.constant 0 : i32
    %c0_i32_0 = arith.constant 0 : i32
    %c0_i32_1 = arith.constant 0 : i32
    return %c0_i32, %c0_i32_0 : i32, i32
  }
  func.func @transform_7(%arg0: i32) -> (i32, i32) {
    %c0_i32 = arith.constant 0 : i32
    %c0_i32_0 = arith.constant 0 : i32
    %c0_i32_1 = arith.constant 0 : i32
    return %c0_i32, %c0_i32_0 : i32, i32
  }
  func.func @transform_8(%arg0: i32) -> (i32, i32, i32, i32) {
    %c0_i32 = arith.constant 0 : i32
    %c0_i32_0 = arith.constant 0 : i32
    %c0_i32_1 = arith.constant 0 : i32
    %c0_i32_2 = arith.constant 0 : i32
    %c0_i32_3 = arith.constant 0 : i32
    return %c0_i32, %c0_i32_0, %c0_i32_1, %c0_i32_2 : i32, i32, i32, i32
  }
  func.func @transform_9(%arg0: i32) -> (i32, i32, i32, i32) {
    %c0_i32 = arith.constant 0 : i32
    %c0_i32_0 = arith.constant 0 : i32
    %c0_i32_1 = arith.constant 0 : i32
    %c0_i32_2 = arith.constant 0 : i32
    %c0_i32_3 = arith.constant 0 : i32
    return %c0_i32, %c0_i32_0, %c0_i32_1, %c0_i32_2 : i32, i32, i32, i32
  }
  func.func @transform_10(%arg0: i32) -> (i32, i32, i32, i32) {
    %c0_i32 = arith.constant 0 : i32
    %c0_i32_0 = arith.constant 0 : i32
    %c0_i32_1 = arith.constant 0 : i32
    %c0_i32_2 = arith.constant 0 : i32
    %c0_i32_3 = arith.constant 0 : i32
    return %c0_i32, %c0_i32_0, %c0_i32_1, %c0_i32_2 : i32, i32, i32, i32
  }
  func.func @transform_11(%arg0: i32) -> (i32, i32, i32, i32) {
    %c0_i32 = arith.constant 0 : i32
    %c0_i32_0 = arith.constant 0 : i32
    %c0_i32_1 = arith.constant 0 : i32
    %c0_i32_2 = arith.constant 0 : i32
    %c0_i32_3 = arith.constant 0 : i32
    return %c0_i32, %c0_i32_0, %c0_i32_1, %c0_i32_2 : i32, i32, i32, i32
  }
  func.func @transform_12(%arg0: i32) -> (i32, i32, i32, i32) {
    %c0_i32 = arith.constant 0 : i32
    %c0_i32_0 = arith.constant 0 : i32
    %c0_i32_1 = arith.constant 0 : i32
    %c0_i32_2 = arith.constant 0 : i32
    %c0_i32_3 = arith.constant 0 : i32
    return %c0_i32, %c0_i32_0, %c0_i32_1, %c0_i32_2 : i32, i32, i32, i32
  }
  func.func @transform_13(%arg0: i32) -> (i32, i32, i32, i32) {
    %c0_i32 = arith.constant 0 : i32
    %c0_i32_0 = arith.constant 0 : i32
    %c0_i32_1 = arith.constant 0 : i32
    %c0_i32_2 = arith.constant 0 : i32
    %c0_i32_3 = arith.constant 0 : i32
    return %c0_i32, %c0_i32_0, %c0_i32_1, %c0_i32_2 : i32, i32, i32, i32
  }
  func.func @transform_14(%arg0: i32) -> (i32, i32, i32, i32) {
    %c0_i32 = arith.constant 0 : i32
    %c0_i32_0 = arith.constant 0 : i32
    %c0_i32_1 = arith.constant 0 : i32
    %c0_i32_2 = arith.constant 0 : i32
    %c0_i32_3 = arith.constant 0 : i32
    return %c0_i32, %c0_i32_0, %c0_i32_1, %c0_i32_2 : i32, i32, i32, i32
  }
  func.func @transform_15(%arg0: i32) -> (i32, i32, i32) {
    %c0_i32 = arith.constant 0 : i32
    %c0_i32_0 = arith.constant 0 : i32
    %c0_i32_1 = arith.constant 0 : i32
    %c0_i32_2 = arith.constant 0 : i32
    return %c0_i32, %c0_i32_0, %c0_i32_1 : i32, i32, i32
  }
  func.func @transform_16(%arg0: i32) -> (i32, i32, i32) {
    %c0_i32 = arith.constant 0 : i32
    %c0_i32_0 = arith.constant 0 : i32
    %c0_i32_1 = arith.constant 0 : i32
    %c0_i32_2 = arith.constant 0 : i32
    return %c0_i32, %c0_i32_0, %c0_i32_1 : i32, i32, i32
  }
  func.func @transform_17(%arg0: i32) -> (i32, i32, i32) {
    %c0_i32 = arith.constant 0 : i32
    %c0_i32_0 = arith.constant 0 : i32
    %c0_i32_1 = arith.constant 0 : i32
    %c0_i32_2 = arith.constant 0 : i32
    return %c0_i32, %c0_i32_0, %c0_i32_1 : i32, i32, i32
  }
  func.func @transform_18(%arg0: i32) -> (i32, i32, i32) {
    %c0_i32 = arith.constant 0 : i32
    %c0_i32_0 = arith.constant 0 : i32
    %c0_i32_1 = arith.constant 0 : i32
    %c0_i32_2 = arith.constant 0 : i32
    return %c0_i32, %c0_i32_0, %c0_i32_1 : i32, i32, i32
  }
  func.func @transform_19(%arg0: i32) -> (i32, i32, i32) {
    %c0_i32 = arith.constant 0 : i32
    %c0_i32_0 = arith.constant 0 : i32
    %c0_i32_1 = arith.constant 0 : i32
    %c0_i32_2 = arith.constant 0 : i32
    return %c0_i32, %c0_i32_0, %c0_i32_1 : i32, i32, i32
  }
  func.func @transform_20(%arg0: i32) -> (i32, i32, i32) {
    %c0_i32 = arith.constant 0 : i32
    %c0_i32_0 = arith.constant 0 : i32
    %c0_i32_1 = arith.constant 0 : i32
    %c0_i32_2 = arith.constant 0 : i32
    return %c0_i32, %c0_i32_0, %c0_i32_1 : i32, i32, i32
  }
  func.func @transform_21(%arg0: i32) -> (i32, i32, i32) {
    %c0_i32 = arith.constant 0 : i32
    %c0_i32_0 = arith.constant 0 : i32
    %c0_i32_1 = arith.constant 0 : i32
    %c0_i32_2 = arith.constant 0 : i32
    return %c0_i32, %c0_i32_0, %c0_i32_1 : i32, i32, i32
  }
  func.func @transform_22(%arg0: i32) -> (i32, i32, i32) {
    %c0_i32 = arith.constant 0 : i32
    %c0_i32_0 = arith.constant 0 : i32
    %c0_i32_1 = arith.constant 0 : i32
    %c0_i32_2 = arith.constant 0 : i32
    return %c0_i32, %c0_i32_0, %c0_i32_1 : i32, i32, i32
  }
  func.func @transform_23(%arg0: i32) -> (i32, i32, i32) {
    %c0_i32 = arith.constant 0 : i32
    %c0_i32_0 = arith.constant 0 : i32
    %c0_i32_1 = arith.constant 0 : i32
    %c0_i32_2 = arith.constant 0 : i32
    return %c0_i32, %c0_i32_0, %c0_i32_1 : i32, i32, i32
  }
  func.func @transform_24(%arg0: i32) -> (i32, i32) {
    %c0_i32 = arith.constant 0 : i32
    %c0_i32_0 = arith.constant 0 : i32
    %c0_i32_1 = arith.constant 0 : i32
    return %c0_i32, %c0_i32_0 : i32, i32
  }
}

</mosaic_0001>

<bundles_post_ra>
// kernel: eq.11
= control target key start
LH: loop header
LB: loop body
LE: loop exit
PB: predicated region body
PF: predicated region fallthrough
CT: control target
= control target key end

     0   :  { %vm8_vm0 = vcmask 261120   ;;  %vm14_vm1 = vcmask 523520   ;;  %s42_s0 = inlined_call_operand.vmem [shape: s32[2,32], index: 0, kind: input, shape index: {}]   ;;  %s43_s1 = inlined_call_operand.vmem [shape: s32[64], index: 1, kind: output, shape index: {}]  }
   0x1   :  { %v5_v0 = vld [vmem:[%s42_s0] sm:$0x3]  ;;  %s25_s0 = smov 32  }
   0x2   :  { %6 = vst [vmem:[#allocation1] sm:$0x3] %v5_v0 }
   0x9   :  { %v11_v1 = vld [vmem:[#allocation1 + $0x1] sm:$0x1]   ;;  %v7_v2 = vld [vmem:[#allocation1] sm:$0x1]  }
   0xa   :  { %12 = vrot.lane.b32.xlu0 %v11_v1, %s25_s0  ;;  %9 = vst.msk [vmem:[#allocation0] sm:$0x1] %vm8_vm0, %v7_v2  }
  0x7c   :  { %v13_v3 = vpop.permute.xlu0 %12  }
  0x7d   :  { %15 = vst.msk [vmem:[#allocation0] sm:$0x1] %vm14_vm1, %v13_v3  }
  0x84   :  { %v20_v4 = vld [vmem:[#allocation0] sm:$0x1] }
  0x85   :  { %23 = vst [vmem:[%s43_s1] sm:$0x1] %v20_v4 }

// kernel: xlmr_word_embedder_forward.1
= control target key start
LH: loop header
LB: loop body
LE: loop exit
PB: predicated region body
PF: predicated region fallthrough
CT: control target
= control target key end

     0   :  { %v13040_v0 = vmov 0   ;;  %v86_v29 = vlaneseq  ;;  %vm248_vm4 = vcmask 523264   ;;  %v13041_v35 = vmov 0.0   ;;  %s16002_s1 = inlined_call_operand.vmem [shape: s32[64,1], index: 1, kind: input, shape index: {}]   ;;  %s16003_s0 = inlined_call_operand.vmem [shape: s32[64,1], index: 0, kind: input, shape index: {}]   ;;  %s16004_s3 = inlined_call_operand.vmem [shape: bf16[128,128], index: 3, kind: input, shape index: {}]   ;;  %s16005_s4 = inlined_call_operand.vmem [shape: bf16[64,128], index: 4, kind: input, shape index: {}]   ;;  %s16006_s5 = inlined_call_operand.vmem [shape: f32[1,128], index: 5, kind: input, shape index: {}]   ;;  %s16007_s8 = inlined_call_operand.vmem [shape: bf16[2,4,128,32], index: 8, kind: input, shape index: {}]   ;;  %s16008_s10 = inlined_call_operand.vmem [shape: bf16[2,4,128,32], index: 10, kind: input, shape index: {}]   ;;  %s16009_s12 = inlined_call_operand.vmem [shape: bf16[2,4,128,32], index: 12, kind: input, shape index: {}]   ;;  %s16010_s6 = inlined_call_operand.vmem [shape: f32[1,128], index: 6, kind: input, shape index: {}]   ;;  %s16011_s7 = inlined_call_operand.vmem [shape: f32[1,128], index: 7, kind: input, shape index: {}]   ;;  %s16012_s9 = inlined_call_operand.vmem [shape: f32[2,4,1,32], index: 9, kind: input, shape index: {}]   ;;  %s16013_s11 = inlined_call_operand.vmem [shape: f32[2,4,1,32], index: 11, kind: input, shape index: {}]   ;;  %s16014_s13 = inlined_call_operand.vmem [shape: f32[2,4,1,32], index: 13, kind: input, shape index: {}]   ;;  %s16015_s2 = inlined_call_operand.vmem [shape: f32[64,64], index: 2, kind: input, shape index: {}]   ;;  %s16016_s14 = inlined_call_operand.vmem [shape: bf16[2,4,32,128], index: 14, kind: input, shape index: {}]   ;;  %s16017_s15 = inlined_call_operand.vmem [shape: f32[2,1,128], index: 15, kind: input, shape index: {}]   ;;  %s16018_s18 = inlined_call_operand.vmem [shape: bf16[2,128,256], index: 18, kind: input, shape index: {}]   ;;  %s16019_s16 = inlined_call_operand.vmem [shape: f32[2,1,128], index: 16, kind: input, shape index: {}]   ;;  %s16020_s17 = inlined_call_operand.vmem [shape: f32[2,1,128], index: 17, kind: input, shape index: {}]   ;;  %s16021_s20 = inlined_call_operand.vmem [shape: bf16[2,256,128], index: 20, kind: input, shape index: {}]   ;;  %s16022_s19 = inlined_call_operand.vmem [shape: f32[2,1,256], index: 19, kind: input, shape index: {}]   ;;  %s16023_s21 = inlined_call_operand.vmem [shape: f32[2,1,128], index: 21, kind: input, shape index: {}]   ;;  %s16024_s22 = inlined_call_operand.vmem [shape: f32[2,1,128], index: 22, kind: input, shape index: {}]   ;;  %s16025_s23 = inlined_call_operand.vmem [shape: f32[2,1,128], index: 23, kind: input, shape index: {}]   ;;  %s16026_s24 = inlined_call_operand.vmem [shape: f32[64,128], index: 24, kind: output, shape index: {}]  }
   0x1   :  { %16035 = sst [smem:[#allocation2_spill]] %s16002_s1  ;;  %12315 = vset.pattern.permute.xlu1 %v13040_v0  ;;  %12314 = vset.pattern.permute.xlu0 %v13040_v0  ;;  %v13042_v44 = vmov 1.0|1.0  }
   0x2   :  { %16036 = sst [smem:[#allocation3_spill]] %s16003_s0  ;;  %v87_v30 = vand.u32 127, %v86_v29 }
   0x3   :  { %16037 = sst [smem:[#allocation4_spill]] %s16004_s3 }
   0x4   :  { %16038 = sst [smem:[#allocation5_spill]] %s16005_s4 }
   0x5   :  { %16039 = sst [smem:[#allocation6_spill]] %s16006_s5 }
   0x6   :  { %16040 = sst [smem:[#allocation7_spill]] %s16007_s8 }
   0x7   :  { %16041 = sst [smem:[#allocation8_spill]] %s16008_s10 }
   0x8   :  { %16042 = sst [smem:[#allocation9_spill]] %s16009_s12 }
   0x9   :  { %16043 = sst [smem:[#allocation10_spill]] %s16010_s6 }
   0xa   :  { %s16044_s27 = sld [smem:[#allocation2_spill]] }
   0xb   :  { %s16045_s25 = sld [smem:[#allocation3_spill]] }
   0xc   :  { %s16046_s26 = sld [smem:[#allocation4_spill]] }
   0xd   :  { %s16047_s6 = sld [smem:[#allocation5_spill]] }
   0xe   :  { %s16048_s4 = sld [smem:[#allocation6_spill]] }
   0xf   :  { %s16050_s28 = sld [smem:[#allocation8_spill]] }
  0x10   :  { %v142_v1 = vld [vmem:[%s16044_s27 + $0x10] sm:$0xff]  ;;  %v140_v2 = vld [vmem:[%s16044_s27] sm:$0xff]  ;;  %v143_v3 = vld [vmem:[%s16044_s27 + $0x18] sm:$0xff]  ;;  %s16051_s12 = sld [smem:[#allocation9_spill]] }
  0x11   :  { %155 = vperm.xlu1 %12315, %v142_v1   ;;  %149 = vperm.xlu0 %12314, %v140_v2   ;;  %v141_v4 = vld [vmem:[%s16044_s27 + $0x8] sm:$0xff]  ;;  %v78_v6 = vld [vmem:[%s16045_s25] sm:$0xff]  ;;  %v81_v9 = vld [vmem:[%s16045_s25 + $0x18] sm:$0xff] }
  0x12   :  { %v79_v5 = vld [vmem:[%s16045_s25 + $0x8] sm:$0xff]  ;;  %v12316_v7 = vld [vmem:[%s16046_s26 + $0x38] sm:$0xff]   ;;  %v12317_v8 = vld [vmem:[%s16046_s26 + $0x30] sm:$0xff]  }
  0x13   :  { %v80_v10 = vld [vmem:[%s16045_s25 + $0x10] sm:$0xff]  ;;  %11151 = vmatprep.subr.bf16.mxu1 %v12316_v7  ;;  %v12319_v11 = vld [vmem:[%s16047_s6 + $0x18] sm:$0xff]   ;;  %v12318_v12 = vld [vmem:[%s16046_s26 + $0x28] sm:$0xff]  }
  0x14   :  { %11152 = vmatpush3.bf16.msra.mxu1 %v12316_v7  ;;  %11135 = vmatprep.subr.bf16.mxu0 %v12319_v11  ;;  %v12321_v13 = vld [vmem:[%s16047_s6 + $0x10] sm:$0xff]   ;;  %v145_v14 = vld [vmem:[%s16044_s27 + $0x28] sm:$0xff]  ;;  %v144_v15 = vld [vmem:[%s16044_s27 + $0x20] sm:$0xff] }
  0x15   :  { %158 = vperm.xlu1 %12315, %v143_v3   ;;  %152 = vperm.xlu0 %12314, %v141_v4   ;;  %v12323_v16 = vld [vmem:[%s16047_s6 + $0x8] sm:$0xff]   ;;  %v12320_v17 = vld [vmem:[%s16046_s26 + $0x20] sm:$0xff]   ;;  %v147_v18 = vld [vmem:[%s16044_s27 + $0x38] sm:$0xff] }
  0x16   :  { %11153 = vmatprep.subr.bf16.mxu1 %v12317_v8  ;;  %11136 = vmatpush3.bf16.msra.mxu0 %v12319_v11  ;;  %v146_v19 = vld [vmem:[%s16044_s27 + $0x30] sm:$0xff]  ;;  %v12325_v20 = vld [vmem:[%s16047_s6] sm:$0xff]   ;;  %v12322_v21 = vld [vmem:[%s16046_s26 + $0x18] sm:$0xff]   ;;  %s16049_s6 = sld [smem:[#allocation7_spill]] }
  0x17   :  { %11137 = vmatprep.subr.bf16.mxu0 %v12321_v13  ;;  %v83_v22 = vld [vmem:[%s16045_s25 + $0x28] sm:$0xff]  ;;  %v82_v23 = vld [vmem:[%s16045_s25 + $0x20] sm:$0xff]  ;;  %v12324_v24 = vld [vmem:[%s16046_s26 + $0x10] sm:$0xff]  }
  0x18   :  { %11154 = vmatpush3.bf16.msra.mxu1 %v12317_v8  ;;  %v85_v25 = vld [vmem:[%s16045_s25 + $0x38] sm:$0xff]  ;;  %v84_v26 = vld [vmem:[%s16045_s25 + $0x30] sm:$0xff]  ;;  %v12326_v27 = vld [vmem:[%s16046_s26 + $0x8] sm:$0xff]  }
  0x19   :  { %92 = vperm.xlu1 %12315, %v79_v5   ;;  %89 = vperm.xlu0 %12314, %v78_v6   ;;  %v12327_v28 = vld [vmem:[%s16046_s26] sm:$0xff]   ;;  %s16052_s26 = sld [smem:[#allocation10_spill]] }
  0x1a   :  { %11155 = vmatprep.subr.bf16.mxu1 %v12318_v12  ;;  %11138 = vmatpush3.bf16.msra.mxu0 %v12321_v13  ;;  %v9468_v5 = vld [vmem:[%s16048_s4] ss:$0 sm:$0xff] }
  0x1b   :  { %11139 = vmatprep.subr.bf16.mxu0 %v12323_v16 }
  0x1c   :  { %11156 = vmatpush3.bf16.msra.mxu1 %v12318_v12 }
  0x1d   :  { %98 = vperm.xlu1 %12315, %v81_v9   ;;  %95 = vperm.xlu0 %12314, %v80_v10  }
  0x1e   :  { %11157 = vmatprep.subr.bf16.mxu1 %v12320_v17  ;;  %11140 = vmatpush3.bf16.msra.mxu0 %v12323_v16 }
  0x1f   :  { %11141 = vmatprep.subr.bf16.mxu0 %v12325_v20 }
  0x20   :  { %11158 = vmatpush3.bf16.msra.mxu1 %v12320_v17 }
  0x21   :  { %164 = vperm.xlu1 %12315, %v145_v14   ;;  %161 = vperm.xlu0 %12314, %v144_v15  }
  0x22   :  { %11159 = vmatprep.subr.bf16.mxu1 %v12322_v21  ;;  %11142 = vmatpush3.bf16.msra.mxu0 %v12325_v20 }
  0x24   :  { %11160 = vmatpush3.bf16.msra.mxu1 %v12322_v21 }
  0x25   :  { %170 = vperm.xlu1 %12315, %v147_v18   ;;  %167 = vperm.xlu0 %12314, %v146_v19  }
  0x26   :  { %11161 = vmatprep.subr.bf16.mxu1 %v12324_v24 }
  0x28   :  { %11162 = vmatpush3.bf16.msra.mxu1 %v12324_v24 }
  0x29   :  { %104 = vperm.xlu1 %12315, %v83_v22   ;;  %101 = vperm.xlu0 %12314, %v82_v23  }
  0x2a   :  { %11163 = vmatprep.subr.bf16.mxu1 %v12326_v27 }
  0x2c   :  { %11164 = vmatpush3.bf16.msra.mxu1 %v12326_v27 }
  0x2d   :  { %110 = vperm.xlu1 %12315, %v85_v25   ;;  %107 = vperm.xlu0 %12314, %v84_v26  }
  0x2e   :  { %11165 = vmatprep.subr.bf16.mxu1 %v12327_v28 }
  0x30   :  { %11166 = vmatpush3.bf16.msra.mxu1 %v12327_v28 }
  0x8c   :  { %v156_v31 = vpop.permute.xlu1 %155  ;;  %v150_v32 = vpop.permute.xlu0 %149 }
  0x8d   :  { %vm174_vm0 = vcmp.eq.s32.totalorder %v156_v31, %v87_v30  ;;  %vm172_vm1 = vcmp.eq.s32.totalorder %v150_v32, %v87_v30 }
  0x8e   :  { %v9438_v36 = vsel %vm174_vm0, 1.0, %v13041_v35  ;;  %v9436_v38 = vsel %vm172_vm1, 1.0, %v13041_v35 }
  0x90   :  { %v159_v33 = vpop.permute.xlu1 %158  ;;  %v153_v34 = vpop.permute.xlu0 %152 }
  0x91   :  { %vm175_vm2 = vcmp.eq.s32.totalorder %v159_v33, %v87_v30  ;;  %vm173_vm3 = vcmp.eq.s32.totalorder %v153_v34, %v87_v30 }
  0x92   :  { %v9439_v37 = vsel %vm175_vm2, 1.0, %v13041_v35  ;;  %v9437_v39 = vsel %vm173_vm3, 1.0, %v13041_v35 }
  0x93   :  { %v197_v40 = vpack.c.bf16 %v9439_v37, %v9438_v36  ;;  %v196_v41 = vpack.c.bf16 %v9437_v39, %v9436_v38 }
  0x94   :  { %v93_v42 = vpop.permute.xlu1 %92  ;;  %v90_v43 = vpop.permute.xlu0 %89 }
  0x95   :  { %11143 = vmatprep.mubr.msk.bf16.mxu0 %vm248_vm4, %v196_v41  ;;  %vm112_vm5 = vcmp.eq.s32.totalorder %v90_v43, %v87_v30  ;;  %vm113_vm6 = vcmp.eq.s32.totalorder %v93_v42, %v87_v30 }
  0x96   :  { %11144 = vmatmul.mubr.msk.bf16.vlgmr.msra.gmra.mxu0 %vm248_vm4, %v197_v40  ;;  %vm9460_vm7 = vmpackc.low %vm113_vm6, %vm112_vm5  ;;  %vm993_vm6 = vcmask 261120  }
  0x97   :  { %11167 = vmatprep.mubr.msk.bf16.mxu1 %vm9460_vm7, %v13042_v44 }
  0x98   :  { %v99_v45 = vpop.permute.xlu1 %98  ;;  %v96_v46 = vpop.permute.xlu0 %95 }
  0x99   :  { %vm115_vm8 = vcmp.eq.s32.totalorder %v99_v45, %v87_v30  ;;  %vm114_vm9 = vcmp.eq.s32.totalorder %v96_v46, %v87_v30 }
  0x9a   :  { %vm9462_vm10 = vmpackc.low %vm115_vm8, %vm114_vm9 }
  0x9b   :  { %11168 = vmatmul.mubr.msk.bf16.vlgmr.msra.gmra.mxu1 %vm9462_vm10, %v13042_v44 }
  0x9c   :  { %v165_v47 = vpop.permute.xlu1 %164  ;;  %v162_v48 = vpop.permute.xlu0 %161 }
  0x9d   :  { %vm177_vm11 = vcmp.eq.s32.totalorder %v165_v47, %v87_v30  ;;  %vm176_vm12 = vcmp.eq.s32.totalorder %v162_v48, %v87_v30 }
  0x9e   :  { %v9441_v49 = vsel %vm177_vm11, 1.0, %v13041_v35  ;;  %v9440_v50 = vsel %vm176_vm12, 1.0, %v13041_v35 }
  0x9f   :  { %v198_v51 = vpack.c.bf16 %v9441_v49, %v9440_v50  ;;  %v12328_v49 = vld [vmem:[%s16049_s6 + $0x38] sm:$0xff]  }
  0xa0   :  { %v171_v52 = vpop.permute.xlu1 %170  ;;  %v168_v53 = vpop.permute.xlu0 %167  ;;  %11175 = vmatprep.subr.bf16.mxu0 %v12328_v49 }
  0xa1   :  { %vm179_vm13 = vcmp.eq.s32.totalorder %v171_v52, %v87_v30  ;;  %vm178_vm14 = vcmp.eq.s32.totalorder %v168_v53, %v87_v30  ;;  %11147 = vmatprep.mubr.msk.bf16.mxu0 %vm248_vm4, %v198_v51  ;;  %v12329_v51 = vld [vmem:[%s16050_s28 + $0x38] sm:$0xff]   ;;  %11176 = vmatpush3.bf16.msra.mxu0 %v12328_v49 }
  0xa2   :  { %v9443_v54 = vsel %vm179_vm13, 1.0, %v13041_v35  ;;  %v9442_v55 = vsel %vm178_vm14, 1.0, %v13041_v35  ;;  %11199 = vmatprep.subr.bf16.mxu1 %v12329_v51 }
  0xa3   :  { %v199_v56 = vpack.c.bf16 %v9443_v54, %v9442_v55  ;;  %11200 = vmatpush3.bf16.msra.mxu1 %v12329_v51 }
  0xa4   :  { %v105_v57 = vpop.permute.xlu1 %104  ;;  %v102_v58 = vpop.permute.xlu0 %101 }
  0xa5   :  { %vm117_vm15 = vcmp.eq.s32.totalorder %v105_v57, %v87_v30  ;;  %vm116_vm0 = vcmp.eq.s32.totalorder %v102_v58, %v87_v30  ;;  %11148 = vmatmul.mubr.msk.bf16.gmra.mxu0 %vm248_vm4, %v199_v56  ;;  %v12330_v58 = vld [vmem:[%s16049_s6 + $0x30] sm:$0xff]  }
  0xa6   :  { %vm9464_vm1 = vmpackc.low %vm117_vm15, %vm116_vm0  ;;  %11177 = vmatprep.subr.bf16.mxu0 %v12330_v58 }
  0xa7   :  { %11171 = vmatprep.mubr.msk.bf16.mxu1 %vm9464_vm1, %v13042_v44  ;;  %11178 = vmatpush3.bf16.msra.mxu0 %v12330_v58 }
  0xa8   :  { %v111_v59 = vpop.permute.xlu1 %110  ;;  %v108_v60 = vpop.permute.xlu0 %107 }
  0xa9   :  { %vm119_vm2 = vcmp.eq.s32.totalorder %v111_v59, %v87_v30  ;;  %vm118_vm3 = vcmp.eq.s32.totalorder %v108_v60, %v87_v30  ;;  %v12331_v59 = vld [vmem:[%s16050_s28 + $0x30] sm:$0xff]  }
  0xaa   :  { %vm9466_vm5 = vmpackc.low %vm119_vm2, %vm118_vm3  ;;  %11201 = vmatprep.subr.bf16.mxu1 %v12331_v59 }
  0xab   :  { %11172 = vmatmul.mubr.msk.bf16.gmra.mxu1 %vm9466_vm5, %v13042_v44 }
  0xac   :  { %11202 = vmatpush3.bf16.msra.mxu1 %v12331_v59 }
 0x156   :  { %v11145_v61 = vpop.f32.mrf.mxu0 }
 0x158   :  { %v295_v62 = vpop.f32.mrf.mxu0 }
 0x15a   :  { %v11146_v1 = vpop.f32.mrf.mxu0 }
 0x15b   :  { %v11169_v63 = vpop.f32.mrf.mxu1 }
 0x15c   :  { %v417_v6 = vadd.f32 %v11169_v63, %v11145_v61  ;;  %v298_v8 = vpop.f32.mrf.mxu0 }
 0x15d   :  { %v408_v2 = vpop.f32.mrf.mxu1 }
 0x15e   :  { %v409_v3 = vadd.f32 %v408_v2, %v295_v62  ;;  %v448_v13 = vadd.f32 %v9468_v5, %v417_v6 }
 0x15f   :  { %v11170_v4 = vpop.f32.mrf.mxu1 }
 0x160   :  { %v446_v7 = vadd.f32 %v9468_v5, %v409_v3  ;;  %v420_v11 = vadd.f32 %v11170_v4, %v11146_v1  ;;  %v12332_v3 = vld [vmem:[%s16049_s6 + $0x28] sm:$0xff]  }
 0x161   :  { %v411_v9 = vpop.f32.mrf.mxu1  ;;  %v12333_v4 = vld [vmem:[%s16050_s28 + $0x28] sm:$0xff]   ;;  %11179 = vmatprep.subr.bf16.mxu0 %v12332_v3 }
 0x162   :  { %v412_v10 = vadd.f32 %v411_v9, %v298_v8  ;;  %456 = vadd.xlane.f32.xlu0 %v446_v7  ;;  %v449_v15 = vadd.f32 %v9468_v5, %v420_v11  ;;  %11203 = vmatprep.subr.bf16.mxu1 %v12333_v4  ;;  %v12335_v8 = vld [vmem:[%s16050_s28 + $0x20] sm:$0xff]   ;;  %v12336_v9 = vld [vmem:[%s16049_s6 + $0x18] sm:$0xff]   ;;  %v12338_v11 = vld [vmem:[%s16049_s6 + $0x10] sm:$0xff]  }
 0x163   :  { %11180 = vmatpush3.bf16.msra.mxu0 %v12332_v3  ;;  %11204 = vmatpush3.bf16.msra.mxu1 %v12333_v4  ;;  %v12345_v3 = vld [vmem:[%s16051_s12 + $0x30] sm:$0xff]  }
 0x164   :  { %v447_v12 = vadd.f32 %v9468_v5, %v412_v10  ;;  %11205 = vmatprep.subr.bf16.mxu1 %v12335_v8  ;;  %v12337_v10 = vld [vmem:[%s16050_s28 + $0x18] sm:$0xff]  }
 0x165   :  { %v11149_v14 = vpop.f32.mrf.mxu0 }
 0x166   :  { %458 = vadd.xlane.f32.xlu1 %v447_v12  ;;  %460 = vadd.xlane.f32.xlu0 %v448_v13 }
 0x167   :  { %v311_v16 = vpop.f32.mrf.mxu0  ;;  %11206 = vmatpush3.bf16.msra.mxu1 %v12335_v8 }
 0x168   :  { %11207 = vmatprep.subr.bf16.mxu1 %v12337_v10 }
 0x169   :  { %v11150_v18 = vpop.f32.mrf.mxu0 }
 0x16a   :  { %462 = vadd.xlane.f32.xlu0 %v449_v15 }
 0x16b   :  { %v11173_v17 = vpop.f32.mrf.mxu1  ;;  %v314_v24 = vpop.f32.mrf.mxu0  ;;  %11208 = vmatpush3.bf16.msra.mxu1 %v12337_v10 }
 0x16c   :  { %v433_v22 = vadd.f32 %v11173_v17, %v11149_v14  ;;  %v12341_v14 = vld [vmem:[%s16050_s28 + $0x8] sm:$0xff]   ;;  %v13345_v17 = vld [vmem:[%s16051_s12 + $0x38] sm:$0xff]  }
 0x16d   :  { %v424_v19 = vpop.f32.mrf.mxu1 }
 0x16e   :  { %v425_v20 = vadd.f32 %v424_v19, %v311_v16  ;;  %v452_v30 = vadd.f32 %v9468_v5, %v433_v22  ;;  %v12343_v16 = vld [vmem:[%s16050_s28] sm:$0xff]  }
 0x16f   :  { %v11174_v21 = vpop.f32.mrf.mxu1 }
 0x170   :  { %v450_v23 = vadd.f32 %v9468_v5, %v425_v20  ;;  %v436_v27 = vadd.f32 %v11174_v21, %v11150_v18 }
 0x171   :  { %v427_v25 = vpop.f32.mrf.mxu1 }
 0x172   :  { %v428_v26 = vadd.f32 %v427_v25, %v314_v24  ;;  %464 = vadd.xlane.f32.xlu1 %v450_v23  ;;  %v453_v31 = vadd.f32 %v9468_v5, %v436_v27 }
 0x174   :  { %v451_v28 = vadd.f32 %v9468_v5, %v428_v26 }
 0x176   :  { %466 = vadd.xlane.f32.xlu0 %v451_v28  ;;  %468 = vadd.xlane.f32.xlu1 %v452_v30 }
 0x17a   :  { %470 = vadd.xlane.f32.xlu0 %v453_v31 }
 0x1eb   :  { %v457_v32 = vpop.xlane.xlu0 %456 }
 0x1ec   :  { %v473_v33 = vmul.f32 0.0078125, %v457_v32 }
 0x1ee   :  { %v13262_v34 = vsub.f32 %v446_v7, %v473_v33  ;;  %v12334_v7 = vld [vmem:[%s16049_s6 + $0x20] sm:$0xff]  }
 0x1ef   :  { %v459_v35 = vpop.xlane.xlu1 %458  ;;  %v461_v36 = vpop.xlane.xlu0 %460  ;;  %11181 = vmatprep.subr.bf16.mxu0 %v12334_v7 }
 0x1f0   :  { %v474_v37 = vmul.f32 0.0078125, %v459_v35  ;;  %v475_v38 = vmul.f32 0.0078125, %v461_v36  ;;  %v489_v39 = vmul.f32 %v13262_v34, %v13262_v34  ;;  %11182 = vmatpush3.bf16.msra.mxu0 %v12334_v7  ;;  %v12346_v7 = vld [vmem:[%s16051_s12 + $0x28] sm:$0xff]  }
 0x1f1   :  { %11183 = vmatprep.subr.bf16.mxu0 %v12336_v9 }
 0x1f2   :  { %497 = vadd.xlane.f32.xlu1 %v489_v39  ;;  %v13266_v40 = vsub.f32 %v447_v12, %v474_v37  ;;  %v13268_v41 = vsub.f32 %v448_v13, %v475_v38  ;;  %v12339_v12 = vld [vmem:[%s16050_s28 + $0x10] sm:$0xff]   ;;  %v12340_v13 = vld [vmem:[%s16049_s6 + $0x8] sm:$0xff]   ;;  %v9469_v39 = vld [vmem:[%s16052_s26] ss:$0 sm:$0xff] }
 0x1f3   :  { %v463_v42 = vpop.xlane.xlu0 %462  ;;  %11209 = vmatprep.subr.bf16.mxu1 %v12339_v12 }
 0x1f4   :  { %v476_v43 = vmul.f32 0.0078125, %v463_v42  ;;  %v490_v44 = vmul.f32 %v13266_v40, %v13266_v40  ;;  %v491_v45 = vmul.f32 %v13268_v41, %v13268_v41  ;;  %11184 = vmatpush3.bf16.msra.mxu0 %v12336_v9  ;;  %11210 = vmatpush3.bf16.msra.mxu1 %v12339_v12 }
 0x1f5   :  { %11185 = vmatprep.subr.bf16.mxu0 %v12338_v11  ;;  %11211 = vmatprep.subr.bf16.mxu1 %v12341_v14 }
 0x1f6   :  { %499 = vadd.xlane.f32.xlu0 %v490_v44  ;;  %501 = vadd.xlane.f32.xlu1 %v491_v45  ;;  %v13274_v46 = vsub.f32 %v449_v15, %v476_v43  ;;  %v12342_v15 = vld [vmem:[%s16049_s6] sm:$0xff]  }
 0x1f8   :  { %v492_v47 = vmul.f32 %v13274_v46, %v13274_v46  ;;  %11186 = vmatpush3.bf16.msra.mxu0 %v12338_v11  ;;  %11212 = vmatpush3.bf16.msra.mxu1 %v12341_v14 }
 0x1f9   :  { %11187 = vmatprep.subr.bf16.mxu0 %v12340_v13  ;;  %11213 = vmatprep.subr.bf16.mxu1 %v12343_v16 }
 0x1fa   :  { %503 = vadd.xlane.f32.xlu0 %v492_v47 }
 0x1fb   :  { %v465_v48 = vpop.xlane.xlu1 %464 }
 0x1fc   :  { %v477_v50 = vmul.f32 0.0078125, %v465_v48  ;;  %11188 = vmatpush3.bf16.msra.mxu0 %v12340_v13  ;;  %11214 = vmatpush3.bf16.msra.mxu1 %v12343_v16 }
 0x1fd   :  { %11189 = vmatprep.subr.bf16.mxu0 %v12342_v15 }
 0x1fe   :  { %v13284_v52 = vsub.f32 %v450_v23, %v477_v50 }
 0x1ff   :  { %v469_v53 = vpop.xlane.xlu1 %468  ;;  %v467_v54 = vpop.xlane.xlu0 %466 }
 0x200   :  { %v479_v55 = vmul.f32 0.0078125, %v469_v53  ;;  %v478_v56 = vmul.f32 0.0078125, %v467_v54  ;;  %v493_v57 = vmul.f32 %v13284_v52, %v13284_v52  ;;  %11190 = vmatpush3.bf16.msra.mxu0 %v12342_v15 }
 0x201   :  { %11223 = vmatprep.subr.bf16.mxu0 %v13345_v17 }
 0x202   :  { %505 = vadd.xlane.f32.xlu1 %v493_v57  ;;  %v13294_v60 = vsub.f32 %v452_v30, %v479_v55  ;;  %v13296_v61 = vsub.f32 %v451_v28, %v478_v56 }
 0x203   :  { %v471_v62 = vpop.xlane.xlu0 %470 }
 0x204   :  { %v480_v63 = vmul.f32 0.0078125, %v471_v62  ;;  %v495_v1 = vmul.f32 %v13294_v60, %v13294_v60  ;;  %v494_v2 = vmul.f32 %v13296_v61, %v13296_v61 }
 0x206   :  { %509 = vadd.xlane.f32.xlu1 %v495_v1  ;;  %507 = vadd.xlane.f32.xlu0 %v494_v2  ;;  %v13308_v5 = vsub.f32 %v453_v31, %v480_v63 }
 0x208   :  { %v496_v6 = vmul.f32 %v13308_v5, %v13308_v5 }
 0x20a   :  { %511 = vadd.xlane.f32.xlu0 %v496_v6 }
 0x27b   :  { %v498_v18 = vpop.xlane.xlu1 %497 }
 0x27c   :  { %v513_v19 = vmul.f32 0.0078125, %v498_v18 }
 0x27e   :  { %v521_v20 = vadd.f32 1e-05, %v513_v19  ;;  %v12348_v19 = vld [vmem:[%s16051_s12 + $0x18] sm:$0xff]  }
 0x27f   :  { %v502_v21 = vpop.xlane.xlu1 %501  ;;  %v500_v22 = vpop.xlane.xlu0 %499 }
 0x280   :  { %12616 = vrsqrt.f32 %v521_v20  ;;  %v515_v23 = vmul.f32 0.0078125, %v502_v21  ;;  %v514_v24 = vmul.f32 0.0078125, %v500_v22  ;;  %v12349_v22 = vld [vmem:[%s16051_s12 + $0x10] sm:$0xff]  }
 0x282   :  { %v523_v25 = vadd.f32 1e-05, %v515_v23  ;;  %v522_v26 = vadd.f32 1e-05, %v514_v24  ;;  %v12350_v23 = vld [vmem:[%s16051_s12 + $0x8] sm:$0xff]   ;;  %v12351_v24 = vld [vmem:[%s16051_s12] sm:$0xff]  }
 0x283   :  { %v504_v27 = vpop.xlane.xlu0 %503 }
 0x284   :  { %12618 = vrsqrt.f32 %v523_v25  ;;  %v516_v28 = vmul.f32 0.0078125, %v504_v27 }
 0x285   :  { %12620 = vrsqrt.f32 %v522_v26  ;;  %v13433_v26 = vld [vmem:[%s16012_s9] ss:$0 sm:$0xff] }
 0x286   :  { %v524_v30 = vadd.f32 1e-05, %v516_v28 }
 0x288   :  { %12622 = vrsqrt.f32 %v524_v30 }
 0x28b   :  { %v506_v31 = vpop.xlane.xlu1 %505 }
 0x28c   :  { %v517_v32 = vmul.f32 0.0078125, %v506_v31 }
 0x28d   :  { %v12617_v33 = vpop.eup %12616 }
 0x28e   :  { %v525_v35 = vadd.f32 1e-05, %v517_v32  ;;  %v537_v36 = vmul.f32 %v12617_v33, %v13262_v34  ;;  %v9470_v34 = vld [vmem:[%s16011_s7] ss:$0 sm:$0xff] }
 0x28f   :  { %v510_v37 = vpop.xlane.xlu1 %509  ;;  %v508_v38 = vpop.xlane.xlu0 %507 }
 0x290   :  { %12624 = vrsqrt.f32 %v525_v35  ;;  %v519_v42 = vmul.f32 0.0078125, %v510_v37  ;;  %v518_v43 = vmul.f32 0.0078125, %v508_v38  ;;  %v551_v50 = vmul.f32 %v9469_v39, %v537_v36 }
 0x291   :  { %v12619_v44 = vpop.eup %12618 }
 0x292   :  { %v12621_v45 = vpop.eup %12620  ;;  %v539_v47 = vmul.f32 %v12619_v44, %v13268_v41  ;;  %v527_v48 = vadd.f32 1e-05, %v519_v42  ;;  %v526_v49 = vadd.f32 1e-05, %v518_v43  ;;  %v13358_v41 = vadd.f32 %v9470_v34, %v551_v50  ;;  %v9480_v42 = vld [vmem:[%s16013_s11] ss:$0 sm:$0xff] }
 0x293   :  { %v538_v51 = vmul.f32 %v12621_v45, %v13266_v40  ;;  %v512_v53 = vpop.xlane.xlu0 %511 }
 0x294   :  { %12626 = vrsqrt.f32 %v527_v48  ;;  %v520_v54 = vmul.f32 0.0078125, %v512_v53  ;;  %v553_v57 = vmul.f32 %v9469_v39, %v539_v47 }
 0x295   :  { %v12623_v55 = vpop.eup %12622  ;;  %v552_v56 = vmul.f32 %v9469_v39, %v538_v51  ;;  %12628 = vrsqrt.f32 %v526_v49 }
 0x296   :  { %v540_v58 = vmul.f32 %v12623_v55, %v13274_v46  ;;  %v528_v59 = vadd.f32 1e-05, %v520_v54  ;;  %v13366_v1 = vadd.f32 %v9470_v34, %v553_v57 }
 0x297   :  { %v13360_v62 = vadd.f32 %v9470_v34, %v552_v56 }
 0x298   :  { %v554_v63 = vmul.f32 %v9469_v39, %v540_v58  ;;  %12630 = vrsqrt.f32 %v528_v59 }
 0x299   :  { %v13364_v40 = vpack.c.bf16 %v13360_v62, %v13358_v41 }
 0x29a   :  { %v13368_v2 = vadd.f32 %v9470_v34, %v554_v63 }
 0x29b   :  { %11191 = vmatprep.mubr.bf16.mxu0 %v13364_v40  ;;  %11215 = vmatprep.mubr.bf16.mxu1 %v13364_v40 }
 0x29c   :  { %v13374_v46 = vpack.c.bf16 %v13368_v2, %v13366_v1 }
 0x29d   :  { %v12625_v4 = vpop.eup %12624 }
 0x29e   :  { %11192 = vmatmul.mubr.bf16.vlgmr.msra.gmra.mxu0 %v13374_v46  ;;  %11216 = vmatmul.mubr.bf16.vlgmr.msra.gmra.mxu1 %v13374_v46  ;;  %v541_v6 = vmul.f32 %v12625_v4, %v13284_v52  ;;  %v12347_v52 = vld [vmem:[%s16051_s12 + $0x20] sm:$0xff]  }
 0x29f   :  { %11224 = vmatpush3.bf16.msra.mxu0 %v13345_v17  ;;  %v9489_v4 = vld [vmem:[%s16014_s13] ss:$0 sm:$0xff] }
 0x2a0   :  { %11225 = vmatprep.subr.bf16.mxu0 %v12345_v3  ;;  %v555_v11 = vmul.f32 %v9469_v39, %v541_v6 }
 0x2a1   :  { %v12627_v8 = vpop.eup %12626 }
 0x2a2   :  { %v12629_v9 = vpop.eup %12628  ;;  %v543_v10 = vmul.f32 %v12627_v8, %v13294_v60  ;;  %v13392_v17 = vadd.f32 %v9470_v34, %v555_v11  ;;  %v12352_v11 = vld [vmem:[%s16050_s28 + $0x78] sm:$0xff]  }
 0x2a3   :  { %v542_v12 = vmul.f32 %v12629_v9, %v13296_v61  ;;  %11226 = vmatpush3.bf16.msra.mxu0 %v12345_v3 }
 0x2a4   :  { %11227 = vmatprep.subr.bf16.mxu0 %v12346_v7  ;;  %v557_v15 = vmul.f32 %v9469_v39, %v543_v10 }
 0x2a5   :  { %v12631_v13 = vpop.eup %12630  ;;  %v556_v14 = vmul.f32 %v9469_v39, %v542_v12 }
 0x2a6   :  { %v544_v16 = vmul.f32 %v12631_v13, %v13308_v5  ;;  %v13403_v20 = vadd.f32 %v9470_v34, %v557_v15 }
 0x2a7   :  { %v13394_v18 = vadd.f32 %v9470_v34, %v556_v14  ;;  %11228 = vmatpush3.bf16.msra.mxu0 %v12346_v7 }
 0x2a8   :  { %v558_v60 = vmul.f32 %v9469_v39, %v544_v16  ;;  %11229 = vmatprep.subr.bf16.mxu0 %v12347_v52  ;;  %v12353_v16 = vld [vmem:[%s16050_s28 + $0x70] sm:$0xff]  }
 0x2a9   :  { %v13398_v61 = vpack.c.bf16 %v13394_v18, %v13392_v17 }
 0x2aa   :  { %v13405_v21 = vadd.f32 %v9470_v34, %v558_v60 }
 0x2ab   :  { %11195 = vmatprep.mubr.bf16.mxu0 %v13398_v61  ;;  %11219 = vmatprep.mubr.bf16.mxu1 %v13398_v61 }
 0x2ac   :  { %v13411_v5 = vpack.c.bf16 %v13405_v21, %v13403_v20  ;;  %11230 = vmatpush3.bf16.msra.mxu0 %v12347_v52 }
 0x2ad   :  { %11231 = vmatprep.subr.bf16.mxu0 %v12348_v19 }
 0x2ae   :  { %11196 = vmatmul.mubr.bf16.gmra.mxu0 %v13411_v5  ;;  %11220 = vmatmul.mubr.bf16.gmra.mxu1 %v13411_v5 }
 0x2af   :  { %11239 = vmatprep.mubr.bf16.mxu0 %v13364_v40 }
 0x2b0   :  { %11232 = vmatpush3.bf16.msra.mxu0 %v12348_v19 }
 0x2b1   :  { %11233 = vmatprep.subr.bf16.mxu0 %v12349_v22 }
 0x2b4   :  { %11234 = vmatpush3.bf16.msra.mxu0 %v12349_v22 }
 0x2b5   :  { %11235 = vmatprep.subr.bf16.mxu0 %v12350_v23 }
 0x2b8   :  { %11236 = vmatpush3.bf16.msra.mxu0 %v12350_v23 }
 0x2b9   :  { %11237 = vmatprep.subr.bf16.mxu0 %v12351_v24 }
 0x2bc   :  { %11238 = vmatpush3.bf16.msra.mxu0 %v12351_v24  ;;  %v12354_v24 = vld [vmem:[%s16050_s28 + $0x68] sm:$0xff]  }
 0x2bf   :  { %11240 = vmatmul.mubr.bf16.vlgmr.msra.gmra.mxu0 %v13374_v46 }
 0x2c0   :  { %11243 = vmatprep.mubr.bf16.mxu0 %v13398_v61 }
 0x2c7   :  { %11244 = vmatmul.mubr.bf16.gmra.mxu0 %v13411_v5 }
 0x35e   :  { %v13428_v25 = vpop.f32.mrf.mxu0  ;;  %v11217_v27 = vpop.f32.mrf.mxu1 }
 0x35f   :  { %v835_v57 = vadd.f32 %v11217_v27, %v9480_v42  ;;  %v699_v14 = vadd.f32 %v13428_v25, %v13433_v26 }
 0x360   :  { %v690_v28 = vpop.f32.mrf.mxu0  ;;  %v826_v31 = vpop.f32.mrf.mxu1 }
 0x361   :  { %v691_v30 = vadd.f32 %v13433_v26, %v690_v28  ;;  %v827_v8 = vadd.f32 %v9480_v42, %v826_v31 }
 0x362   :  { %v11218_v32 = vpop.f32.mrf.mxu1  ;;  %v13437_v33 = vpop.f32.mrf.mxu0 }
 0x363   :  { %11263 = vmatprep.mubr.msk.f32.mxu1 %vm993_vm6, %v691_v30  ;;  %v838_v54 = vadd.f32 %v11218_v32, %v9480_v42  ;;  %v702_v19 = vadd.f32 %v13437_v33, %v13433_v26  ;;  %v12355_v30 = vld [vmem:[%s16050_s28 + $0x60] sm:$0xff]   ;;  %v12356_v32 = vld [vmem:[%s16050_s28 + $0x58] sm:$0xff]   ;;  %v12357_v33 = vld [vmem:[%s16050_s28 + $0x50] sm:$0xff]  }
 0x364   :  { %v829_v35 = vpop.f32.mrf.mxu1  ;;  %v693_v37 = vpop.f32.mrf.mxu0 }
 0x365   :  { %v830_v63 = vadd.f32 %v9480_v42, %v829_v35  ;;  %v694_v13 = vadd.f32 %v13433_v26, %v693_v37  ;;  %v12359_v35 = vld [vmem:[%s16050_s28 + $0x40] sm:$0xff]   ;;  %v13514_v37 = vld [vmem:[%s16015_s2 + $0x8] sm:$0xff] }
 0x36e   :  { %v11221_v36 = vpop.f32.mrf.mxu1  ;;  %v13439_v39 = vpop.f32.mrf.mxu0 }
 0x36f   :  { %v851_v45 = vadd.f32 %v11221_v36, %v9480_v42  ;;  %v715_v28 = vadd.f32 %v13439_v39, %v13433_v26 }
 0x370   :  { %v842_v38 = vpop.f32.mrf.mxu1  ;;  %v706_v47 = vpop.f32.mrf.mxu0 }
 0x371   :  { %v843_v51 = vadd.f32 %v9480_v42, %v842_v38  ;;  %v707_v22 = vadd.f32 %v13433_v26, %v706_v47  ;;  %v13527_v47 = vld [vmem:[%s16015_s2 + $0x18] sm:$0xff] }
 0x372   :  { %v11222_v43 = vpop.f32.mrf.mxu1  ;;  %v13447_v49 = vpop.f32.mrf.mxu0 }
 0x373   :  { %v854_v44 = vadd.f32 %v11222_v43, %v9480_v42  ;;  %v718_v31 = vadd.f32 %v13447_v49, %v13433_v26 }
 0x374   :  { %v845_v48 = vpop.f32.mrf.mxu1  ;;  %v709_v53 = vpop.f32.mrf.mxu0 }
 0x375   :  { %11247 = vmatprep.subr.msk.mxu1 %vm993_vm6, %v854_v44  ;;  %v846_v50 = vadd.f32 %v9480_v42, %v845_v48  ;;  %v710_v27 = vadd.f32 %v13433_v26, %v709_v53  ;;  %v12358_v26 = vld [vmem:[%s16050_s28 + $0x48] sm:$0xff]   ;;  %v13519_v42 = vld [vmem:[%s16015_s2] sm:$0xff]  ;;  %v13537_v53 = vld [vmem:[%s16015_s2 + $0x10] sm:$0xff] }
 0x376   :  { %11248 = vmatpush3.xpose.msk.msra.mxu1 %vm993_vm6, %v854_v44 }
 0x377   :  { %11249 = vmatprep.subr.msk.mxu1 %vm993_vm6, %v851_v45 }
 0x37a   :  { %11250 = vmatpush3.xpose.msk.msra.mxu1 %vm993_vm6, %v851_v45 }
 0x37b   :  { %11251 = vmatprep.subr.msk.mxu1 %vm993_vm6, %v846_v50 }
 0x37e   :  { %11252 = vmatpush3.xpose.msk.msra.mxu1 %vm993_vm6, %v846_v50 }
 0x37f   :  { %v11241_v34 = vpop.f32.mrf.mxu0  ;;  %11253 = vmatprep.subr.msk.mxu1 %vm993_vm6, %v843_v51 }
 0x380   :  { %v971_v60 = vadd.f32 %v11241_v34, %v9489_v4 }
 0x381   :  { %v962_v55 = vpop.f32.mrf.mxu0 }
 0x382   :  { %11254 = vmatpush3.xpose.msk.msra.mxu1 %vm993_vm6, %v843_v51  ;;  %v963_v25 = vadd.f32 %v9489_v4, %v962_v55 }
 0x383   :  { %v11242_v56 = vpop.f32.mrf.mxu0  ;;  %11255 = vmatprep.subr.msk.mxu1 %vm993_vm6, %v838_v54 }
 0x384   :  { %v974_v15 = vadd.f32 %v11242_v56, %v9489_v4 }
 0x385   :  { %v965_v58 = vpop.f32.mrf.mxu0 }
 0x386   :  { %11256 = vmatpush3.xpose.msk.msra.mxu1 %vm993_vm6, %v838_v54  ;;  %v966_v23 = vadd.f32 %v9489_v4, %v965_v58 }
 0x387   :  { %v11245_v59 = vpop.f32.mrf.mxu0  ;;  %11257 = vmatprep.subr.msk.mxu1 %vm993_vm6, %v835_v57 }
 0x388   :  { %v987_v10 = vadd.f32 %v11245_v59, %v9489_v4 }
 0x389   :  { %v978_v3 = vpop.f32.mrf.mxu0 }
 0x38a   :  { %11258 = vmatpush3.xpose.msk.msra.mxu1 %vm993_vm6, %v835_v57  ;;  %v979_v52 = vadd.f32 %v9489_v4, %v978_v3  ;;  %v13547_v57 = vld [vmem:[%s16015_s2 + $0x28] sm:$0xff] }
 0x38b   :  { %v11246_v6 = vpop.f32.mrf.mxu0  ;;  %11259 = vmatprep.subr.msk.mxu1 %vm993_vm6, %v830_v63 }
 0x38c   :  { %v990_v7 = vadd.f32 %v11246_v6, %v9489_v4 }
 0x38d   :  { %v981_v9 = vpop.f32.mrf.mxu0 }
 0x38e   :  { %11275 = vmatprep.subr.mxu0 %v990_v7  ;;  %11260 = vmatpush3.xpose.msk.msra.mxu1 %vm993_vm6, %v830_v63  ;;  %v982_v12 = vadd.f32 %v9489_v4, %v981_v9  ;;  %v13557_v4 = vld [vmem:[%s16015_s2 + $0x20] sm:$0xff] }
 0x38f   :  { %11276 = vmatpush3.msra.mxu0 %v990_v7  ;;  %11261 = vmatprep.subr.msk.mxu1 %vm993_vm6, %v827_v8 }
 0x390   :  { %11277 = vmatprep.subr.mxu0 %v987_v10 }
 0x391   :  { %11278 = vmatpush3.msra.mxu0 %v987_v10  ;;  %v13567_v10 = vld [vmem:[%s16015_s2 + $0x38] sm:$0xff] }
 0x392   :  { %11279 = vmatprep.subr.mxu0 %v982_v12  ;;  %11262 = vmatpush3.xpose.msk.msra.mxu1 %vm993_vm6, %v827_v8 }
 0x393   :  { %11280 = vmatpush3.msra.mxu0 %v982_v12  ;;  %11327 = vmatprep.subr.bf16.mxu1 %v12352_v11 }
 0x394   :  { %11281 = vmatprep.subr.mxu0 %v979_v52 }
 0x395   :  { %11282 = vmatpush3.msra.mxu0 %v979_v52  ;;  %11264 = vmatmul.mubr.msk.f32.vlgmr.msra.gmra.mxu1 %vm993_vm6, %v694_v13 }
 0x396   :  { %11283 = vmatprep.subr.mxu0 %v974_v15  ;;  %11266 = vmatprep.mubr.msk.f32.mxu1 %vm993_vm6, %v699_v14  ;;  %v13577_v14 = vld [vmem:[%s16015_s2 + $0x30] sm:$0xff] }
 0x397   :  { %11284 = vmatpush3.msra.mxu0 %v974_v15  ;;  %11328 = vmatpush3.bf16.msra.mxu1 %v12352_v11 }
 0x398   :  { %11285 = vmatprep.subr.mxu0 %v971_v60  ;;  %11329 = vmatprep.subr.bf16.mxu1 %v12353_v16 }
 0x399   :  { %11286 = vmatpush3.msra.mxu0 %v971_v60  ;;  %11267 = vmatmul.mubr.msk.f32.gmra.mxu1 %vm993_vm6, %v702_v19 }
 0x39a   :  { %11287 = vmatprep.subr.mxu0 %v966_v23  ;;  %11269 = vmatprep.mubr.msk.f32.mxu1 %vm993_vm6, %v707_v22 }
 0x39b   :  { %11288 = vmatpush3.msra.mxu0 %v966_v23  ;;  %11330 = vmatpush3.bf16.msra.mxu1 %v12353_v16 }
 0x39c   :  { %11289 = vmatprep.subr.mxu0 %v963_v25  ;;  %11331 = vmatprep.subr.bf16.mxu1 %v12354_v24 }
 0x39d   :  { %11290 = vmatpush3.msra.mxu0 %v963_v25  ;;  %11270 = vmatmul.mubr.msk.f32.gmra.mxu1 %vm993_vm6, %v710_v27 }
 0x39e   :  { %11272 = vmatprep.mubr.msk.f32.mxu1 %vm993_vm6, %v715_v28 }
 0x39f   :  { %11332 = vmatpush3.bf16.msra.mxu1 %v12354_v24 }
 0x3a0   :  { %11333 = vmatprep.subr.bf16.mxu1 %v12355_v30 }
 0x3a1   :  { %11273 = vmatmul.mubr.msk.f32.gmra.mxu1 %vm993_vm6, %v718_v31 }
 0x3a2   :  { %11343 = vmatprep.mubr.bf16.mxu1 %v13364_v40 }
 0x3a3   :  { %11334 = vmatpush3.bf16.msra.mxu1 %v12355_v30 }
 0x3a4   :  { %11335 = vmatprep.subr.bf16.mxu1 %v12356_v32 }
 0x3a7   :  { %11336 = vmatpush3.bf16.msra.mxu1 %v12356_v32  ;;  %v9565_v32 = vld [vmem:[%s16013_s11 + $0x1] ss:$0 sm:$0xff] }
 0x3a8   :  { %11337 = vmatprep.subr.bf16.mxu1 %v12357_v33 }
 0x3ab   :  { %11338 = vmatpush3.bf16.msra.mxu1 %v12357_v33 }
 0x3ac   :  { %11339 = vmatprep.subr.bf16.mxu1 %v12358_v26 }
 0x3af   :  { %11340 = vmatpush3.bf16.msra.mxu1 %v12358_v26 }
 0x3b0   :  { %11341 = vmatprep.subr.bf16.mxu1 %v12359_v35 }
 0x3b3   :  { %11342 = vmatpush3.bf16.msra.mxu1 %v12359_v35 }
 0x3b6   :  { %11344 = vmatmul.mubr.bf16.vlgmr.msra.gmra.mxu1 %v13374_v46 }
 0x3b7   :  { %11347 = vmatprep.mubr.bf16.mxu1 %v13398_v61 }
 0x3be   :  { %11348 = vmatmul.mubr.bf16.gmra.mxu1 %v13411_v5 }
 0x455   :  { %v11265_v36 = vpop.f32.mrf.mxu1 }
 0x456   :  { %v1148_v38 = vmul.f32 0.17677669, %v11265_v36 }
 0x457   :  { %v1108_v39 = vpop.f32.mrf.mxu1 }
 0x458   :  { %v1147_v43 = vmul.f32 0.17677669, %v1108_v39  ;;  %v13522_v44 = vadd.f32 %v1148_v38, %v13514_v37 }
 0x459   :  { %v11268_v45 = vpop.f32.mrf.mxu1 }
 0x45a   :  { %v1150_v48 = vmul.f32 0.17677669, %v11268_v45  ;;  %v1166_v49 = vsel %vm248_vm4, %v13522_v44, -inf  ;;  %v13532_v50 = vadd.f32 %v1147_v43, %v13519_v42 }
 0x45b   :  { %1167 = vmax.xlane.f32.xlu0 %v1166_v49  ;;  %v1118_v51 = vpop.f32.mrf.mxu1 }
 0x45c   :  { %v1149_v34 = vmul.f32 0.17677669, %v1118_v51  ;;  %v1163_v54 = vsel %vm248_vm4, %v13532_v50, -inf  ;;  %v13542_v55 = vadd.f32 %v1150_v48, %v13527_v47 }
 0x45d   :  { %1164 = vmax.xlane.f32.xlu1 %v1163_v54  ;;  %v11271_v56 = vpop.f32.mrf.mxu1 }
 0x45e   :  { %v1152_v58 = vmul.f32 0.17677669, %v11271_v56  ;;  %v1172_v59 = vsel %vm248_vm4, %v13542_v55, -inf  ;;  %v13552_v63 = vadd.f32 %v1149_v34, %v13537_v53 }
 0x45f   :  { %1173 = vmax.xlane.f32.xlu0 %v1172_v59  ;;  %v1128_v3 = vpop.f32.mrf.mxu1 }
 0x460   :  { %v1151_v6 = vmul.f32 0.17677669, %v1128_v3  ;;  %v1169_v7 = vsel %vm248_vm4, %v13552_v63, -inf  ;;  %v13562_v8 = vadd.f32 %v1152_v58, %v13547_v57 }
 0x461   :  { %1170 = vmax.xlane.f32.xlu1 %v1169_v7  ;;  %v11274_v9 = vpop.f32.mrf.mxu1 }
 0x462   :  { %v1154_v11 = vmul.f32 0.17677669, %v11274_v9  ;;  %v1178_v12 = vsel %vm248_vm4, %v13562_v8, -inf  ;;  %v13572_v52 = vadd.f32 %v1151_v6, %v13557_v4 }
 0x463   :  { %1179 = vmax.xlane.f32.xlu0 %v1178_v12  ;;  %v1138_v13 = vpop.f32.mrf.mxu1 }
 0x464   :  { %v1153_v15 = vmul.f32 0.17677669, %v1138_v13  ;;  %v1175_v16 = vsel %vm248_vm4, %v13572_v52, -inf  ;;  %v13582_v60 = vadd.f32 %v1154_v11, %v13567_v10 }
 0x465   :  { %1176 = vmax.xlane.f32.xlu1 %v1175_v16 }
 0x466   :  { %v1184_v19 = vsel %vm248_vm4, %v13582_v60, -inf  ;;  %v13587_v22 = vadd.f32 %v1153_v15, %v13577_v14 }
 0x467   :  { %1185 = vmax.xlane.f32.xlu0 %v1184_v19 }
 0x468   :  { %v1181_v23 = vsel %vm248_vm4, %v13587_v22, -inf }
 0x469   :  { %1182 = vmax.xlane.f32.xlu1 %v1181_v23 }
 0x476   :  { %v11345_v24 = vpop.f32.mrf.mxu1 }
 0x477   :  { %v1642_v45 = vadd.f32 %v11345_v24, %v9565_v32 }
 0x478   :  { %v1633_v25 = vpop.f32.mrf.mxu1 }
 0x479   :  { %v1634_v49 = vadd.f32 %v9565_v32, %v1633_v25 }
 0x47a   :  { %v11346_v27 = vpop.f32.mrf.mxu1 }
 0x47b   :  { %v1645_v43 = vadd.f32 %v11346_v27, %v9565_v32 }
 0x47c   :  { %v1636_v28 = vpop.f32.mrf.mxu1 }
 0x47d   :  { %v1637_v48 = vadd.f32 %v9565_v32, %v1636_v28 }
 0x47e   :  { %v11349_v30 = vpop.f32.mrf.mxu1 }
 0x47f   :  { %v1658_v35 = vadd.f32 %v11349_v30, %v9565_v32 }
 0x480   :  { %v1649_v31 = vpop.f32.mrf.mxu1 }
 0x481   :  { %v1650_v39 = vadd.f32 %v9565_v32, %v1649_v31 }
 0x482   :  { %v11350_v33 = vpop.f32.mrf.mxu1 }
 0x483   :  { %v1661_v26 = vadd.f32 %v11350_v33, %v9565_v32 }
 0x484   :  { %v1652_v36 = vpop.f32.mrf.mxu1 }
 0x485   :  { %11375 = vmatprep.subr.msk.mxu1 %vm993_vm6, %v1661_v26  ;;  %v1653_v38 = vadd.f32 %v9565_v32, %v1652_v36 }
 0x486   :  { %11376 = vmatpush3.xpose.msk.msra.mxu1 %vm993_vm6, %v1661_v26 }
 0x487   :  { %11377 = vmatprep.subr.msk.mxu1 %vm993_vm6, %v1658_v35 }
 0x48a   :  { %11378 = vmatpush3.xpose.msk.msra.mxu1 %vm993_vm6, %v1658_v35 }
 0x48b   :  { %11379 = vmatprep.subr.msk.mxu1 %vm993_vm6, %v1653_v38 }
 0x48e   :  { %11380 = vmatpush3.xpose.msk.msra.mxu1 %vm993_vm6, %v1653_v38 }
 0x48f   :  { %11381 = vmatprep.subr.msk.mxu1 %vm993_vm6, %v1650_v39 }
 0x492   :  { %11382 = vmatpush3.xpose.msk.msra.mxu1 %vm993_vm6, %v1650_v39 }
 0x493   :  { %11383 = vmatprep.subr.msk.mxu1 %vm993_vm6, %v1645_v43 }
 0x496   :  { %11384 = vmatpush3.xpose.msk.msra.mxu1 %vm993_vm6, %v1645_v43 }
 0x497   :  { %11385 = vmatprep.subr.msk.mxu1 %vm993_vm6, %v1642_v45 }
 0x49a   :  { %11386 = vmatpush3.xpose.msk.msra.mxu1 %vm993_vm6, %v1642_v45 }
 0x49b   :  { %11387 = vmatprep.subr.msk.mxu1 %vm993_vm6, %v1637_v48 }
 0x49e   :  { %11388 = vmatpush3.xpose.msk.msra.mxu1 %vm993_vm6, %v1637_v48  ;;  %v12360_v48 = vld [vmem:[%s16049_s6 + $0x78] sm:$0xff]  }
 0x49f   :  { %11389 = vmatprep.subr.msk.mxu1 %vm993_vm6, %v1634_v49  ;;  %11303 = vmatprep.subr.bf16.mxu0 %v12360_v48 }
 0x4a2   :  { %11390 = vmatpush3.xpose.msk.msra.mxu1 %vm993_vm6, %v1634_v49 }
 0x4e4   :  { %v1168_v51 = vpop.xlane.xlu0 %1167 }
 0x4e5   :  { %v1188_v34 = vsub.f32 %v13522_v44, %v1168_v51 }
 0x4e6   :  { %v1165_v54 = vpop.xlane.xlu1 %1164 }
 0x4e7   :  { %v1197_v56 = vmul.f32 1.442695, %v1188_v34  ;;  %v1187_v58 = vsub.f32 %v13532_v50, %v1165_v54 }
 0x4e8   :  { %v1174_v59 = vpop.xlane.xlu0 %1173 }
 0x4e9   :  { %12632 = vpow2.f32 %v1197_v56  ;;  %v1195_v3 = vmul.f32 1.442695, %v1187_v58  ;;  %v1190_v6 = vsub.f32 %v13542_v55, %v1174_v59 }
 0x4ea   :  { %v1171_v7 = vpop.xlane.xlu1 %1170 }
 0x4eb   :  { %12634 = vpow2.f32 %v1195_v3  ;;  %v1201_v9 = vmul.f32 1.442695, %v1190_v6  ;;  %v1189_v11 = vsub.f32 %v13552_v63, %v1171_v7 }
 0x4ec   :  { %v1180_v12 = vpop.xlane.xlu0 %1179 }
 0x4ed   :  { %12636 = vpow2.f32 %v1201_v9  ;;  %v1199_v13 = vmul.f32 1.442695, %v1189_v11  ;;  %v1192_v15 = vsub.f32 %v13562_v8, %v1180_v12  ;;  %v12361_v12 = vld [vmem:[%s16049_s6 + $0x70] sm:$0xff]  }
 0x4ee   :  { %v1177_v44 = vpop.xlane.xlu1 %1176 }
 0x4ef   :  { %12638 = vpow2.f32 %v1199_v13  ;;  %v1205_v16 = vmul.f32 1.442695, %v1192_v15  ;;  %v1191_v50 = vsub.f32 %v13572_v52, %v1177_v44 }
 0x4f0   :  { %v1186_v19 = vpop.xlane.xlu0 %1185 }
 0x4f1   :  { %12640 = vpow2.f32 %v1205_v16  ;;  %v1203_v23 = vmul.f32 1.442695, %v1191_v50  ;;  %v1194_v55 = vsub.f32 %v13582_v60, %v1186_v19  ;;  %v12362_v50 = vld [vmem:[%s16049_s6 + $0x68] sm:$0xff]  }
 0x4f2   :  { %v1183_v24 = vpop.xlane.xlu1 %1182 }
 0x4f3   :  { %12642 = vpow2.f32 %v1203_v23  ;;  %v1209_v25 = vmul.f32 1.442695, %v1194_v55  ;;  %v1193_v63 = vsub.f32 %v13587_v22, %v1183_v24 }
 0x4f5   :  { %12644 = vpow2.f32 %v1209_v25  ;;  %v1207_v27 = vmul.f32 1.442695, %v1193_v63  ;;  %v12363_v25 = vld [vmem:[%s16049_s6 + $0x60] sm:$0xff]  }
 0x4f6   :  { %v12633_v28 = vpop.eup %12632 }
 0x4f7   :  { %12646 = vpow2.f32 %v1207_v27  ;;  %v1214_v8 = vsel %vm248_vm4, %v12633_v28, 0.0 }
 0x4f8   :  { %v12635_v30 = vpop.eup %12634  ;;  %1215 = vadd.xlane.f32.xlu0 %v1214_v8 }
 0x4f9   :  { %v1211_v52 = vsel %vm248_vm4, %v12635_v30, 0.0 }
 0x4fa   :  { %v12637_v31 = vpop.eup %12636  ;;  %1212 = vadd.xlane.f32.xlu1 %v1211_v52  ;;  %v12365_v52 = vld [vmem:[%s16049_s6 + $0x50] sm:$0xff]  }
 0x4fb   :  { %v1220_v32 = vsel %vm248_vm4, %v12637_v31, 0.0 }
 0x4fc   :  { %v12639_v60 = vpop.eup %12638  ;;  %1221 = vadd.xlane.f32.xlu0 %v1220_v32  ;;  %v12367_v32 = vld [vmem:[%s16049_s6 + $0x40] sm:$0xff]  }
 0x4fd   :  { %v1217_v33 = vsel %vm248_vm4, %v12639_v60, 0.0 }
 0x4fe   :  { %v12641_v26 = vpop.eup %12640  ;;  %1218 = vadd.xlane.f32.xlu1 %v1217_v33  ;;  %v12369_v33 = vld [vmem:[%s16051_s12 + $0x70] sm:$0xff]  }
 0x4ff   :  { %v1226_v22 = vsel %vm248_vm4, %v12641_v26, 0.0 }
 0x500   :  { %v12643_v35 = vpop.eup %12642  ;;  %1227 = vadd.xlane.f32.xlu0 %v1226_v22  ;;  %v12371_v22 = vld [vmem:[%s16051_s12 + $0x60] sm:$0xff]  }
 0x501   :  { %v1223_v36 = vsel %vm248_vm4, %v12643_v35, 0.0 }
 0x502   :  { %v12645_v38 = vpop.eup %12644  ;;  %1224 = vadd.xlane.f32.xlu1 %v1223_v36  ;;  %v12373_v36 = vld [vmem:[%s16051_s12 + $0x50] sm:$0xff]  }
 0x503   :  { %v1232_v39 = vsel %vm248_vm4, %v12645_v38, 0.0 }
 0x504   :  { %v12647_v43 = vpop.eup %12646  ;;  %1233 = vadd.xlane.f32.xlu0 %v1232_v39  ;;  %v12375_v39 = vld [vmem:[%s16051_s12 + $0x40] sm:$0xff]  }
 0x505   :  { %v1229_v45 = vsel %vm248_vm4, %v12647_v43, 0.0 }
 0x506   :  { %1230 = vadd.xlane.f32.xlu1 %v1229_v45 }
 0x581   :  { %v1216_v49 = vpop.xlane.xlu0 %1215 }
 0x582   :  { %12648 = vrcp.f32 %v1216_v49 }
 0x583   :  { %v1213_v51 = vpop.xlane.xlu1 %1212 }
 0x584   :  { %12650 = vrcp.f32 %v1213_v51 }
 0x585   :  { %v1222_v34 = vpop.xlane.xlu0 %1221 }
 0x586   :  { %12652 = vrcp.f32 %v1222_v34 }
 0x587   :  { %v1219_v54 = vpop.xlane.xlu1 %1218 }
 0x588   :  { %12654 = vrcp.f32 %v1219_v54 }
 0x589   :  { %v1228_v56 = vpop.xlane.xlu0 %1227 }
 0x58a   :  { %12656 = vrcp.f32 %v1228_v56 }
 0x58b   :  { %v1225_v58 = vpop.xlane.xlu1 %1224 }
 0x58c   :  { %12658 = vrcp.f32 %v1225_v58 }
 0x58d   :  { %v1234_v59 = vpop.xlane.xlu0 %1233 }
 0x58e   :  { %12660 = vrcp.f32 %v1234_v59 }
 0x58f   :  { %v1231_v3 = vpop.xlane.xlu1 %1230  ;;  %v12649_v6 = vpop.eup %12648 }
 0x590   :  { %12662 = vrcp.f32 %v1231_v3  ;;  %v1244_v11 = vmul.f32 %v12649_v6, %v12633_v28  ;;  %v9539_v3 = vld [vmem:[%s16012_s9 + $0x1] ss:$0 sm:$0xff] }
 0x591   :  { %v12651_v7 = vpop.eup %12650 }
 0x592   :  { %v1243_v9 = vmul.f32 %v12651_v7, %v12635_v30  ;;  %v12364_v30 = vld [vmem:[%s16049_s6 + $0x58] sm:$0xff]  }
 0x593   :  { %v12653_v13 = vpop.eup %12652 }
 0x594   :  { %11291 = vmatprep.mubr.msk.f32.mxu0 %vm248_vm4, %v1243_v9  ;;  %v1246_v16 = vmul.f32 %v12653_v13, %v12637_v31  ;;  %v12366_v31 = vld [vmem:[%s16049_s6 + $0x48] sm:$0xff]  }
 0x595   :  { %v12655_v15 = vpop.eup %12654  ;;  %11292 = vmatmul.mubr.msk.f32.vlgmr.msra.gmra.mxu0 %vm248_vm4, %v1244_v11 }
 0x596   :  { %11304 = vmatpush3.bf16.msra.mxu0 %v12360_v48  ;;  %v1245_v44 = vmul.f32 %v12655_v15, %v12639_v60  ;;  %v12368_v60 = vld [vmem:[%s16051_s12 + $0x78] sm:$0xff]  }
 0x597   :  { %11305 = vmatprep.subr.bf16.mxu0 %v12361_v12  ;;  %v12657_v19 = vpop.eup %12656 }
 0x598   :  { %11294 = vmatprep.mubr.msk.f32.mxu0 %vm248_vm4, %v1245_v44  ;;  %v1248_v24 = vmul.f32 %v12657_v19, %v12641_v26  ;;  %v12370_v26 = vld [vmem:[%s16051_s12 + $0x68] sm:$0xff]  }
 0x599   :  { %v12659_v23 = vpop.eup %12658  ;;  %11295 = vmatmul.mubr.msk.f32.gmra.mxu0 %vm248_vm4, %v1246_v16 }
 0x59a   :  { %11306 = vmatpush3.bf16.msra.mxu0 %v12361_v12  ;;  %v1247_v55 = vmul.f32 %v12659_v23, %v12643_v35  ;;  %v12372_v35 = vld [vmem:[%s16051_s12 + $0x58] sm:$0xff]  }
 0x59b   :  { %11307 = vmatprep.subr.bf16.mxu0 %v12362_v50  ;;  %v12661_v63 = vpop.eup %12660 }
 0x59c   :  { %11297 = vmatprep.mubr.msk.f32.mxu0 %vm248_vm4, %v1247_v55  ;;  %v1250_v8 = vmul.f32 %v12661_v63, %v12645_v38  ;;  %v12374_v38 = vld [vmem:[%s16051_s12 + $0x48] sm:$0xff]  }
 0x59d   :  { %v12663_v27 = vpop.eup %12662  ;;  %11298 = vmatmul.mubr.msk.f32.gmra.mxu0 %vm248_vm4, %v1248_v24 }
 0x59e   :  { %11308 = vmatpush3.bf16.msra.mxu0 %v12362_v50  ;;  %v1249_v28 = vmul.f32 %v12663_v27, %v12647_v43 }
 0x59f   :  { %11309 = vmatprep.subr.bf16.mxu0 %v12363_v25 }
 0x5a0   :  { %11300 = vmatprep.mubr.msk.f32.mxu0 %vm248_vm4, %v1249_v28 }
 0x5a1   :  { %11301 = vmatmul.mubr.msk.f32.gmra.mxu0 %vm248_vm4, %v1250_v8 }
 0x5a2   :  { %11310 = vmatpush3.bf16.msra.mxu0 %v12363_v25  ;;  %11319 = vmatprep.mubr.bf16.mxu0 %v13364_v40 }
 0x5a3   :  { %11311 = vmatprep.subr.bf16.mxu0 %v12364_v30 }
 0x5a6   :  { %11312 = vmatpush3.bf16.msra.mxu0 %v12364_v30 }
 0x5a7   :  { %11313 = vmatprep.subr.bf16.mxu0 %v12365_v52 }
 0x5aa   :  { %11314 = vmatpush3.bf16.msra.mxu0 %v12365_v52 }
 0x5ab   :  { %11315 = vmatprep.subr.bf16.mxu0 %v12366_v31 }
 0x5ae   :  { %11316 = vmatpush3.bf16.msra.mxu0 %v12366_v31  ;;  %v9591_v31 = vld [vmem:[%s16014_s13 + $0x1] ss:$0 sm:$0xff] }
 0x5af   :  { %11317 = vmatprep.subr.bf16.mxu0 %v12367_v32 }
 0x5b2   :  { %11318 = vmatpush3.bf16.msra.mxu0 %v12367_v32 }
 0x5b3   :  { %11351 = vmatprep.subr.bf16.mxu0 %v12368_v60 }
 0x5b5   :  { %11320 = vmatmul.mubr.bf16.vlgmr.msra.gmra.mxu0 %v13374_v46 }
 0x5b6   :  { %11323 = vmatprep.mubr.bf16.mxu0 %v13398_v61  ;;  %11352 = vmatpush3.bf16.msra.mxu0 %v12368_v60 }
 0x5b7   :  { %11353 = vmatprep.subr.bf16.mxu0 %v12369_v33 }
 0x5ba   :  { %11354 = vmatpush3.bf16.msra.mxu0 %v12369_v33 }
 0x5bb   :  { %11355 = vmatprep.subr.bf16.mxu0 %v12370_v26 }
 0x5bd   :  { %11324 = vmatmul.mubr.bf16.gmra.mxu0 %v13411_v5 }
 0x5be   :  { %11356 = vmatpush3.bf16.msra.mxu0 %v12370_v26  ;;  %11367 = vmatprep.mubr.bf16.mxu0 %v13364_v40 }
 0x5bf   :  { %11357 = vmatprep.subr.bf16.mxu0 %v12371_v22 }
 0x5c2   :  { %11358 = vmatpush3.bf16.msra.mxu0 %v12371_v22 }
 0x5c3   :  { %11359 = vmatprep.subr.bf16.mxu0 %v12372_v35 }
 0x5c6   :  { %11360 = vmatpush3.bf16.msra.mxu0 %v12372_v35 }
 0x5c7   :  { %11361 = vmatprep.subr.bf16.mxu0 %v12373_v36 }
 0x5ca   :  { %11362 = vmatpush3.bf16.msra.mxu0 %v12373_v36 }
 0x5cb   :  { %11363 = vmatprep.subr.bf16.mxu0 %v12374_v38 }
 0x5ce   :  { %11364 = vmatpush3.bf16.msra.mxu0 %v12374_v38 }
 0x5cf   :  { %11365 = vmatprep.subr.bf16.mxu0 %v12375_v39 }
 0x5d2   :  { %11366 = vmatpush3.bf16.msra.mxu0 %v12375_v39 }
 0x5d5   :  { %11368 = vmatmul.mubr.bf16.vlgmr.msra.gmra.mxu0 %v13374_v46 }
 0x5d6   :  { %11371 = vmatprep.mubr.bf16.mxu0 %v13398_v61 }
 0x5dd   :  { %11372 = vmatmul.mubr.bf16.gmra.mxu0 %v13411_v5 }
 0x655   :  { %v13690_v43 = vpop.f32.mrf.mxu0 }
 0x657   :  { %v13692_v45 = vpop.f32.mrf.mxu0 }
 0x659   :  { %v13694_v48 = vpop.f32.mrf.mxu0 }
 0x65b   :  { %v13696_v49 = vpop.f32.mrf.mxu0 }
 0x65d   :  { %v13698_v51 = vpop.f32.mrf.mxu0 }
 0x65f   :  { %v13700_v34 = vpop.f32.mrf.mxu0 }
 0x660   :  { %v1382_v54 = vpack.c.bf16 %v13698_v51, %v13700_v34  ;;  %v12381_v51 = vld [vmem:[%s16050_s28 + $0xa0] sm:$0xff]   ;;  %v12382_v34 = vld [vmem:[%s16050_s28 + $0x98] sm:$0xff]  }
 0x661   :  { %v13704_v56 = vpop.f32.mrf.mxu0 }
 0x663   :  { %v13706_v58 = vpop.f32.mrf.mxu0 }
 0x675   :  { %v11321_v59 = vpop.f32.mrf.mxu0 }
 0x676   :  { %v1504_v13 = vadd.f32 %v11321_v59, %v9539_v3 }
 0x677   :  { %v1495_v6 = vpop.f32.mrf.mxu0 }
 0x678   :  { %v1496_v7 = vadd.f32 %v9539_v3, %v1495_v6 }
 0x679   :  { %v11322_v9 = vpop.f32.mrf.mxu0 }
 0x67a   :  { %11391 = vmatprep.mubr.msk.f32.mxu1 %vm993_vm6, %v1496_v7  ;;  %v1507_v16 = vadd.f32 %v11322_v9, %v9539_v3 }
 0x67b   :  { %v1498_v11 = vpop.f32.mrf.mxu0 }
 0x67c   :  { %v1499_v12 = vadd.f32 %v9539_v3, %v1498_v11 }
 0x67d   :  { %v11325_v15 = vpop.f32.mrf.mxu0 }
 0x67e   :  { %11392 = vmatmul.mubr.msk.f32.vlgmr.msra.gmra.mxu1 %vm993_vm6, %v1499_v12  ;;  %v1520_v24 = vadd.f32 %v11325_v15, %v9539_v3 }
 0x67f   :  { %v1511_v44 = vpop.f32.mrf.mxu0  ;;  %11394 = vmatprep.mubr.msk.f32.mxu1 %vm993_vm6, %v1504_v13 }
 0x680   :  { %v1512_v50 = vadd.f32 %v9539_v3, %v1511_v44 }
 0x681   :  { %v11326_v19 = vpop.f32.mrf.mxu0 }
 0x682   :  { %11395 = vmatmul.mubr.msk.f32.gmra.mxu1 %vm993_vm6, %v1507_v16  ;;  %v1523_v25 = vadd.f32 %v11326_v19, %v9539_v3 }
 0x683   :  { %v1514_v23 = vpop.f32.mrf.mxu0  ;;  %11397 = vmatprep.mubr.msk.f32.mxu1 %vm993_vm6, %v1512_v50 }
 0x684   :  { %v1515_v55 = vadd.f32 %v9539_v3, %v1514_v23 }
 0x686   :  { %11398 = vmatmul.mubr.msk.f32.gmra.mxu1 %vm993_vm6, %v1515_v55 }
 0x687   :  { %11400 = vmatprep.mubr.msk.f32.mxu1 %vm993_vm6, %v1520_v24 }
 0x68a   :  { %11401 = vmatmul.mubr.msk.f32.gmra.mxu1 %vm993_vm6, %v1523_v25 }
 0x695   :  { %v11369_v63 = vpop.f32.mrf.mxu0 }
 0x696   :  { %v1780_v38 = vadd.f32 %v11369_v63, %v9591_v31 }
 0x697   :  { %v1771_v27 = vpop.f32.mrf.mxu0 }
 0x698   :  { %v1772_v59 = vadd.f32 %v9591_v31, %v1771_v27 }
 0x699   :  { %v11370_v28 = vpop.f32.mrf.mxu0 }
 0x69a   :  { %v1783_v36 = vadd.f32 %v11370_v28, %v9591_v31 }
 0x69b   :  { %v1774_v8 = vpop.f32.mrf.mxu0 }
 0x69c   :  { %v1775_v39 = vadd.f32 %v9591_v31, %v1774_v8 }
 0x69d   :  { %v11373_v30 = vpop.f32.mrf.mxu0 }
 0x69e   :  { %v1796_v26 = vadd.f32 %v11373_v30, %v9591_v31 }
 0x69f   :  { %v1787_v52 = vpop.f32.mrf.mxu0 }
 0x6a0   :  { %v1788_v35 = vadd.f32 %v9591_v31, %v1787_v52 }
 0x6a1   :  { %v11374_v32 = vpop.f32.mrf.mxu0 }
 0x6a2   :  { %v1799_v60 = vadd.f32 %v11374_v32, %v9591_v31 }
 0x6a3   :  { %v1790_v33 = vpop.f32.mrf.mxu0 }
 0x6a4   :  { %11403 = vmatprep.subr.mxu0 %v1799_v60  ;;  %12295 = vmatprep.subr.mxu1 %v1799_v60  ;;  %v1791_v22 = vadd.f32 %v9591_v31, %v1790_v33 }
 0x6a5   :  { %11404 = vmatpush3.msra.mxu0 %v1799_v60  ;;  %12303 = vmatpush3.msra.mxu1 %v1799_v60 }
 0x6a6   :  { %11405 = vmatprep.subr.mxu0 %v1796_v26  ;;  %12296 = vmatprep.subr.mxu1 %v1796_v26 }
 0x6a7   :  { %11406 = vmatpush3.msra.mxu0 %v1796_v26  ;;  %12304 = vmatpush3.msra.mxu1 %v1796_v26 }
 0x6a8   :  { %11407 = vmatprep.subr.mxu0 %v1791_v22  ;;  %12297 = vmatprep.subr.mxu1 %v1791_v22 }
 0x6a9   :  { %11408 = vmatpush3.msra.mxu0 %v1791_v22  ;;  %12305 = vmatpush3.msra.mxu1 %v1791_v22 }
 0x6aa   :  { %11409 = vmatprep.subr.mxu0 %v1788_v35  ;;  %12298 = vmatprep.subr.mxu1 %v1788_v35 }
 0x6ab   :  { %11410 = vmatpush3.msra.mxu0 %v1788_v35  ;;  %12306 = vmatpush3.msra.mxu1 %v1788_v35 }
 0x6ac   :  { %11411 = vmatprep.subr.mxu0 %v1783_v36  ;;  %12299 = vmatprep.subr.mxu1 %v1783_v36 }
 0x6ad   :  { %11412 = vmatpush3.msra.mxu0 %v1783_v36  ;;  %12307 = vmatpush3.msra.mxu1 %v1783_v36 }
 0x6ae   :  { %11413 = vmatprep.subr.mxu0 %v1780_v38  ;;  %12300 = vmatprep.subr.mxu1 %v1780_v38 }
 0x6af   :  { %11414 = vmatpush3.msra.mxu0 %v1780_v38  ;;  %12308 = vmatpush3.msra.mxu1 %v1780_v38 }
 0x6b0   :  { %11415 = vmatprep.subr.mxu0 %v1775_v39  ;;  %12301 = vmatprep.subr.mxu1 %v1775_v39 }
 0x6b1   :  { %11416 = vmatpush3.msra.mxu0 %v1775_v39  ;;  %12309 = vmatpush3.msra.mxu1 %v1775_v39 }
 0x6b2   :  { %11417 = vmatprep.subr.mxu0 %v1772_v59  ;;  %12302 = vmatprep.subr.mxu1 %v1772_v59 }
 0x6b3   :  { %11418 = vmatpush3.msra.mxu0 %v1772_v59  ;;  %12310 = vmatpush3.msra.mxu1 %v1772_v59 }
 0x73e   :  { %v11393_v3 = vpop.f32.mrf.mxu1 }
 0x73f   :  { %v1956_v6 = vmul.f32 0.17677669, %v11393_v3 }
 0x740   :  { %v1916_v7 = vpop.f32.mrf.mxu1 }
 0x741   :  { %v1955_v9 = vmul.f32 0.17677669, %v1916_v7  ;;  %v1964_v11 = vadd.f32 %v1956_v6, %v13514_v37 }
 0x742   :  { %v11396_v12 = vpop.f32.mrf.mxu1 }
 0x743   :  { %v1958_v13 = vmul.f32 0.17677669, %v11396_v12  ;;  %v1974_v15 = vsel %vm248_vm4, %v1964_v11, -inf  ;;  %v1963_v44 = vadd.f32 %v1955_v9, %v13519_v42 }
 0x744   :  { %1975 = vmax.xlane.f32.xlu0 %v1974_v15  ;;  %v1926_v16 = vpop.f32.mrf.mxu1 }
 0x745   :  { %v1957_v50 = vmul.f32 0.17677669, %v1926_v16  ;;  %v1971_v19 = vsel %vm248_vm4, %v1963_v44, -inf  ;;  %v1966_v23 = vadd.f32 %v1958_v13, %v13527_v47 }
 0x746   :  { %1972 = vmax.xlane.f32.xlu1 %v1971_v19  ;;  %v11399_v55 = vpop.f32.mrf.mxu1 }
 0x747   :  { %v1960_v24 = vmul.f32 0.17677669, %v11399_v55  ;;  %v1980_v25 = vsel %vm248_vm4, %v1966_v23, -inf  ;;  %v1965_v37 = vadd.f32 %v1957_v50, %v13537_v53 }
 0x748   :  { %1981 = vmax.xlane.f32.xlu0 %v1980_v25  ;;  %v1936_v63 = vpop.f32.mrf.mxu1 }
 0x749   :  { %v1959_v27 = vmul.f32 0.17677669, %v1936_v63  ;;  %v1977_v28 = vsel %vm248_vm4, %v1965_v37, -inf  ;;  %v1968_v42 = vadd.f32 %v1960_v24, %v13547_v57 }
 0x74a   :  { %1978 = vmax.xlane.f32.xlu1 %v1977_v28  ;;  %v11402_v8 = vpop.f32.mrf.mxu1 }
 0x74b   :  { %v1962_v30 = vmul.f32 0.17677669, %v11402_v8  ;;  %v1986_v52 = vsel %vm248_vm4, %v1968_v42, -inf  ;;  %v1967_v47 = vadd.f32 %v1959_v27, %v13557_v4 }
 0x74c   :  { %1987 = vmax.xlane.f32.xlu0 %v1986_v52  ;;  %v1946_v31 = vpop.f32.mrf.mxu1 }
 0x74d   :  { %v1961_v32 = vmul.f32 0.17677669, %v1946_v31  ;;  %v1983_v60 = vsel %vm248_vm4, %v1967_v47, -inf  ;;  %v1970_v53 = vadd.f32 %v1962_v30, %v13567_v10 }
 0x74e   :  { %1984 = vmax.xlane.f32.xlu1 %v1983_v60 }
 0x74f   :  { %v1992_v33 = vsel %vm248_vm4, %v1970_v53, -inf  ;;  %v1969_v26 = vadd.f32 %v1961_v32, %v13577_v14 }
 0x750   :  { %1993 = vmax.xlane.f32.xlu0 %v1992_v33 }
 0x751   :  { %v1989_v57 = vsel %vm248_vm4, %v1969_v26, -inf }
 0x752   :  { %1990 = vmax.xlane.f32.xlu1 %v1989_v57  ;;  %v12376_v57 = vld [vmem:[%s16016_s14 + $0x8] sm:$0xff]  }
 0x753   :  { %11443 = vmatprep.subr.bf16.mxu0 %v12376_v57 }
 0x7cd   :  { %v1976_v22 = vpop.xlane.xlu0 %1975 }
 0x7ce   :  { %v1996_v35 = vsub.f32 %v1964_v11, %v1976_v22 }
 0x7cf   :  { %v1973_v36 = vpop.xlane.xlu1 %1972 }
 0x7d0   :  { %v2005_v4 = vmul.f32 1.442695, %v1996_v35  ;;  %v1995_v38 = vsub.f32 %v1963_v44, %v1973_v36 }
 0x7d1   :  { %v1982_v39 = vpop.xlane.xlu0 %1981 }
 0x7d2   :  { %12664 = vpow2.f32 %v2005_v4  ;;  %v2003_v59 = vmul.f32 1.442695, %v1995_v38  ;;  %v1998_v3 = vsub.f32 %v1966_v23, %v1982_v39 }
 0x7d3   :  { %v1979_v6 = vpop.xlane.xlu1 %1978 }
 0x7d4   :  { %12666 = vpow2.f32 %v2003_v59  ;;  %v2009_v10 = vmul.f32 1.442695, %v1998_v3  ;;  %v1997_v7 = vsub.f32 %v1965_v37, %v1979_v6 }
 0x7d5   :  { %v1988_v9 = vpop.xlane.xlu0 %1987 }
 0x7d6   :  { %12668 = vpow2.f32 %v2009_v10  ;;  %v2007_v14 = vmul.f32 1.442695, %v1997_v7  ;;  %v2000_v12 = vsub.f32 %v1968_v42, %v1988_v9 }
 0x7d7   :  { %v1985_v13 = vpop.xlane.xlu1 %1984 }
 0x7d8   :  { %12670 = vpow2.f32 %v2007_v14  ;;  %v2013_v15 = vmul.f32 1.442695, %v2000_v12  ;;  %v1999_v16 = vsub.f32 %v1967_v47, %v1985_v13  ;;  %v12377_v14 = vld [vmem:[%s16016_s14] sm:$0xff]  }
 0x7d9   :  { %v1994_v11 = vpop.xlane.xlu0 %1993 }
 0x7da   :  { %12672 = vpow2.f32 %v2013_v15  ;;  %v2011_v50 = vmul.f32 1.442695, %v1999_v16  ;;  %v2002_v44 = vsub.f32 %v1970_v53, %v1994_v11  ;;  %v12378_v11 = vld [vmem:[%s16050_s28 + $0xb8] sm:$0xff]  }
 0x7db   :  { %v1991_v19 = vpop.xlane.xlu1 %1990 }
 0x7dc   :  { %12674 = vpow2.f32 %v2011_v50  ;;  %v2017_v55 = vmul.f32 1.442695, %v2002_v44  ;;  %v2001_v23 = vsub.f32 %v1969_v26, %v1991_v19  ;;  %v1380_v44 = vpack.c.bf16 %v13690_v43, %v13692_v45 }
 0x7de   :  { %12676 = vpow2.f32 %v2017_v55  ;;  %v2015_v24 = vmul.f32 1.442695, %v2001_v23  ;;  %v1381_v23 = vpack.c.bf16 %v13694_v48, %v13696_v49  ;;  %v12380_v49 = vld [vmem:[%s16050_s28 + $0xa8] sm:$0xff]  }
 0x7df   :  { %v12665_v25 = vpop.eup %12664 }
 0x7e0   :  { %12678 = vpow2.f32 %v2015_v24  ;;  %v2022_v37 = vsel %vm248_vm4, %v12665_v25, 0.0 }
 0x7e1   :  { %v12667_v63 = vpop.eup %12666  ;;  %2023 = vadd.xlane.f32.xlu0 %v2022_v37 }
 0x7e2   :  { %v2019_v27 = vsel %vm248_vm4, %v12667_v63, 0.0 }
 0x7e3   :  { %v12669_v28 = vpop.eup %12668  ;;  %2020 = vadd.xlane.f32.xlu1 %v2019_v27  ;;  %v12386_v27 = vld [vmem:[%s16016_s14 + $0x18] sm:$0xff]  }
 0x7e4   :  { %v2028_v42 = vsel %vm248_vm4, %v12669_v28, 0.0  ;;  %11431 = vmatprep.subr.bf16.mxu1 %v12386_v27 }
 0x7e5   :  { %v12671_v8 = vpop.eup %12670  ;;  %2029 = vadd.xlane.f32.xlu0 %v2028_v42  ;;  %v12388_v42 = vld [vmem:[%s16049_s6 + $0xb8] sm:$0xff]  }
 0x7e6   :  { %v2025_v30 = vsel %vm248_vm4, %v12671_v8, 0.0 }
 0x7e7   :  { %v12673_v52 = vpop.eup %12672  ;;  %2026 = vadd.xlane.f32.xlu1 %v2025_v30 }
 0x7e8   :  { %v2034_v47 = vsel %vm248_vm4, %v12673_v52, 0.0 }
 0x7e9   :  { %v12675_v31 = vpop.eup %12674  ;;  %2035 = vadd.xlane.f32.xlu0 %v2034_v47 }
 0x7ea   :  { %v2031_v32 = vsel %vm248_vm4, %v12675_v31, 0.0 }
 0x7eb   :  { %v12677_v60 = vpop.eup %12676  ;;  %2032 = vadd.xlane.f32.xlu1 %v2031_v32 }
 0x7ec   :  { %v2040_v53 = vsel %vm248_vm4, %v12677_v60, 0.0 }
 0x7ed   :  { %v12679_v33 = vpop.eup %12678  ;;  %2041 = vadd.xlane.f32.xlu0 %v2040_v53 }
 0x7ee   :  { %v2037_v26 = vsel %vm248_vm4, %v12679_v33, 0.0 }
 0x7ef   :  { %2038 = vadd.xlane.f32.xlu1 %v2037_v26 }
 0x86a   :  { %v2024_v22 = vpop.xlane.xlu0 %2023 }
 0x86b   :  { %12680 = vrcp.f32 %v2024_v22  ;;  %v12390_v22 = vld [vmem:[%s16049_s6 + $0xa8] sm:$0xff]  }
 0x86c   :  { %v2021_v35 = vpop.xlane.xlu1 %2020 }
 0x86d   :  { %12682 = vrcp.f32 %v2021_v35 }
 0x86e   :  { %v2030_v36 = vpop.xlane.xlu0 %2029 }
 0x86f   :  { %12684 = vrcp.f32 %v2030_v36 }
 0x870   :  { %v2027_v4 = vpop.xlane.xlu1 %2026 }
 0x871   :  { %12686 = vrcp.f32 %v2027_v4 }
 0x872   :  { %v2036_v38 = vpop.xlane.xlu0 %2035 }
 0x873   :  { %12688 = vrcp.f32 %v2036_v38 }
 0x874   :  { %v2033_v39 = vpop.xlane.xlu1 %2032 }
 0x875   :  { %12690 = vrcp.f32 %v2033_v39  ;;  %v12391_v39 = vld [vmem:[%s16049_s6 + $0xa0] sm:$0xff]  }
 0x876   :  { %v2042_v59 = vpop.xlane.xlu0 %2041 }
 0x877   :  { %12692 = vrcp.f32 %v2042_v59 }
 0x878   :  { %v2039_v3 = vpop.xlane.xlu1 %2038  ;;  %v12681_v6 = vpop.eup %12680 }
 0x879   :  { %12694 = vrcp.f32 %v2039_v3  ;;  %v2052_v9 = vmul.f32 %v12681_v6, %v12665_v25  ;;  %v12379_v25 = vld [vmem:[%s16050_s28 + $0xb0] sm:$0xff]   ;;  %v12392_v3 = vld [vmem:[%s16049_s6 + $0x98] sm:$0xff]  }
 0x87a   :  { %v12683_v10 = vpop.eup %12682 }
 0x87b   :  { %v2051_v7 = vmul.f32 %v12683_v10, %v12667_v63  ;;  %v1383_v63 = vpack.c.bf16 %v13704_v56, %v13706_v58  ;;  %v12384_v56 = vld [vmem:[%s16050_s28 + $0x88] sm:$0xff]   ;;  %v12385_v58 = vld [vmem:[%s16050_s28 + $0x80] sm:$0xff]   ;;  %v12393_v10 = vld [vmem:[%s16049_s6 + $0x90] sm:$0xff]  }
 0x87c   :  { %v12685_v12 = vpop.eup %12684 }
 0x87d   :  { %11419 = vmatprep.mubr.msk.f32.mxu0 %vm248_vm4, %v2051_v7  ;;  %v2054_v16 = vmul.f32 %v12685_v12, %v12669_v28  ;;  %v12387_v28 = vld [vmem:[%s16016_s14 + $0x10] sm:$0xff]   ;;  %v12395_v12 = vld [vmem:[%s16049_s6 + $0x80] sm:$0xff]  }
 0x87e   :  { %v12687_v13 = vpop.eup %12686  ;;  %11420 = vmatmul.mubr.msk.f32.vlgmr.msra.gmra.mxu0 %vm248_vm4, %v2052_v9  ;;  %v12394_v9 = vld [vmem:[%s16049_s6 + $0x88] sm:$0xff]  }
 0x87f   :  { %11444 = vmatpush3.bf16.msra.mxu0 %v12376_v57  ;;  %v2053_v15 = vmul.f32 %v12687_v13, %v12671_v8 }
 0x880   :  { %11445 = vmatprep.subr.bf16.mxu0 %v12377_v14  ;;  %v12689_v50 = vpop.eup %12688 }
 0x881   :  { %11422 = vmatprep.mubr.msk.f32.mxu0 %vm248_vm4, %v2053_v15  ;;  %v2056_v24 = vmul.f32 %v12689_v50, %v12673_v52  ;;  %v12396_v15 = vld [vmem:[%s16051_s12 + $0xb8] sm:$0xff]  }
 0x882   :  { %v12691_v19 = vpop.eup %12690  ;;  %11423 = vmatmul.mubr.msk.f32.gmra.mxu0 %vm248_vm4, %v2054_v16 }
 0x883   :  { %11446 = vmatpush3.bf16.msra.mxu0 %v12377_v14  ;;  %11447 = vmatprep.mubr.msk.bf16.mxu0 %vm993_vm6, %v1380_v44  ;;  %v2055_v55 = vmul.f32 %v12691_v19, %v12675_v31  ;;  %v12398_v19 = vld [vmem:[%s16051_s12 + $0xa8] sm:$0xff]  }
 0x884   :  { %11479 = vmatprep.subr.bf16.mxu0 %v12378_v11  ;;  %v12693_v37 = vpop.eup %12692 }
 0x885   :  { %11425 = vmatprep.mubr.msk.f32.mxu1 %vm248_vm4, %v2055_v55  ;;  %v2058_v48 = vmul.f32 %v12693_v37, %v12677_v60  ;;  %v12389_v60 = vld [vmem:[%s16049_s6 + $0xb0] sm:$0xff]  }
 0x886   :  { %v12695_v43 = vpop.eup %12694  ;;  %11426 = vmatmul.mubr.msk.f32.vlgmr.msra.gmra.mxu1 %vm248_vm4, %v2056_v24  ;;  %11448 = vmatmul.mubr.msk.bf16.vlgmr.msra.gmra.mxu0 %vm993_vm6, %v1381_v23  ;;  %v12399_v24 = vld [vmem:[%s16051_s12 + $0xa0] sm:$0xff]  }
 0x887   :  { %11480 = vmatpush3.bf16.msra.mxu0 %v12378_v11  ;;  %11451 = vmatprep.mubr.msk.bf16.mxu0 %vm993_vm6, %v1382_v54  ;;  %v2057_v45 = vmul.f32 %v12695_v43, %v12679_v33  ;;  %v12383_v54 = vld [vmem:[%s16050_s28 + $0x90] sm:$0xff]   ;;  %v12400_v43 = vld [vmem:[%s16051_s12 + $0x98] sm:$0xff]  }
 0x888   :  { %11481 = vmatprep.subr.bf16.mxu0 %v12379_v25  ;;  %11432 = vmatpush3.bf16.msra.mxu1 %v12386_v27  ;;  %v12397_v11 = vld [vmem:[%s16051_s12 + $0xb0] sm:$0xff]   ;;  %v12403_v27 = vld [vmem:[%s16051_s12 + $0x80] sm:$0xff]  }
 0x889   :  { %11428 = vmatprep.mubr.msk.f32.mxu1 %vm248_vm4, %v2057_v45  ;;  %11433 = vmatprep.subr.bf16.mxu1 %v12387_v28  ;;  %v9683_v45 = vld [vmem:[%s16013_s11 + $0x2] ss:$0 sm:$0xff] }
 0x88a   :  { %11429 = vmatmul.mubr.msk.f32.gmra.mxu1 %vm248_vm4, %v2058_v48 }
 0x88b   :  { %11482 = vmatpush3.bf16.msra.mxu0 %v12379_v25 }
 0x88c   :  { %11483 = vmatprep.subr.bf16.mxu0 %v12380_v49  ;;  %11434 = vmatpush3.bf16.msra.mxu1 %v12387_v28 }
 0x88d   :  { %11455 = vmatprep.subr.bf16.mxu1 %v12388_v42 }
 0x88e   :  { %11452 = vmatmul.mubr.msk.bf16.gmra.mxu0 %vm993_vm6, %v1383_v63 }
 0x88f   :  { %11484 = vmatpush3.bf16.msra.mxu0 %v12380_v49  ;;  %11495 = vmatprep.mubr.bf16.mxu0 %v13364_v40 }
 0x890   :  { %11485 = vmatprep.subr.bf16.mxu0 %v12381_v51 }
 0x893   :  { %11486 = vmatpush3.bf16.msra.mxu0 %v12381_v51  ;;  %v12401_v51 = vld [vmem:[%s16051_s12 + $0x90] sm:$0xff]  }
 0x894   :  { %11487 = vmatprep.subr.bf16.mxu0 %v12382_v34 }
 0x897   :  { %11488 = vmatpush3.bf16.msra.mxu0 %v12382_v34 }
 0x898   :  { %11489 = vmatprep.subr.bf16.mxu0 %v12383_v54 }
 0x89b   :  { %11490 = vmatpush3.bf16.msra.mxu0 %v12383_v54 }
 0x89c   :  { %11491 = vmatprep.subr.bf16.mxu0 %v12384_v56 }
 0x89f   :  { %11492 = vmatpush3.bf16.msra.mxu0 %v12384_v56  ;;  %v12402_v56 = vld [vmem:[%s16051_s12 + $0x88] sm:$0xff]  }
 0x8a0   :  { %11493 = vmatprep.subr.bf16.mxu0 %v12385_v58 }
 0x8a3   :  { %11494 = vmatpush3.bf16.msra.mxu0 %v12385_v58 }
 0x8a6   :  { %11496 = vmatmul.mubr.bf16.vlgmr.msra.gmra.mxu0 %v13374_v46 }
 0x8a7   :  { %11499 = vmatprep.mubr.bf16.mxu0 %v13398_v61 }
 0x8ae   :  { %11500 = vmatmul.mubr.bf16.gmra.mxu0 %v13411_v5 }
 0x93e   :  { %v11421_v8 = vpop.f32.mrf.mxu0 }
 0x940   :  { %v2149_v30 = vpop.f32.mrf.mxu0 }
 0x941   :  { %v2188_v52 = vpack.c.bf16 %v11421_v8, %v2149_v30 }
 0x942   :  { %v11424_v47 = vpop.f32.mrf.mxu0 }
 0x943   :  { %11435 = vmatprep.mubr.msk.bf16.mxu1 %vm993_vm6, %v2188_v52 }
 0x944   :  { %v2159_v31 = vpop.f32.mrf.mxu0 }
 0x945   :  { %v2189_v32 = vpack.c.bf16 %v11424_v47, %v2159_v31 }
 0x946   :  { %v11427_v53 = vpop.f32.mrf.mxu1  ;;  %v13815_v33 = vpop.f32.mrf.mxu0 }
 0x947   :  { %11436 = vmatmul.mubr.msk.bf16.vlgmr.msra.gmra.mxu1 %vm993_vm6, %v2189_v32 }
 0x948   :  { %11456 = vmatpush3.bf16.msra.mxu1 %v12388_v42  ;;  %v2169_v26 = vpop.f32.mrf.mxu1  ;;  %v13821_v36 = vpop.f32.mrf.mxu0 }
 0x949   :  { %v2190_v57 = vpack.c.bf16 %v11427_v53, %v2169_v26  ;;  %11457 = vmatprep.subr.bf16.mxu1 %v12389_v60 }
 0x94a   :  { %v11430_v35 = vpop.f32.mrf.mxu1  ;;  %v13827_v59 = vpop.f32.mrf.mxu0 }
 0x94b   :  { %11439 = vmatprep.mubr.msk.bf16.mxu1 %vm993_vm6, %v2190_v57 }
 0x94c   :  { %11458 = vmatpush3.bf16.msra.mxu1 %v12389_v60  ;;  %v2179_v4 = vpop.f32.mrf.mxu1  ;;  %v13833_v6 = vpop.f32.mrf.mxu0 }
 0x94d   :  { %v2191_v38 = vpack.c.bf16 %v11430_v35, %v2179_v4  ;;  %11459 = vmatprep.subr.bf16.mxu1 %v12390_v22  ;;  %v9657_v35 = vld [vmem:[%s16012_s9 + $0x2] ss:$0 sm:$0xff] }
 0x94e   :  { %v13838_v7 = vpop.f32.mrf.mxu0 }
 0x94f   :  { %11440 = vmatmul.mubr.msk.bf16.gmra.mxu1 %vm993_vm6, %v2191_v38 }
 0x950   :  { %11460 = vmatpush3.bf16.msra.mxu1 %v12390_v22  ;;  %11471 = vmatprep.mubr.bf16.mxu1 %v13364_v40  ;;  %v13843_v14 = vpop.f32.mrf.mxu0 }
 0x951   :  { %11461 = vmatprep.subr.bf16.mxu1 %v12391_v39 }
 0x952   :  { %v13848_v13 = vpop.f32.mrf.mxu0 }
 0x954   :  { %11462 = vmatpush3.bf16.msra.mxu1 %v12391_v39  ;;  %v13853_v16 = vpop.f32.mrf.mxu0 }
 0x955   :  { %11463 = vmatprep.subr.bf16.mxu1 %v12392_v3 }
 0x958   :  { %11464 = vmatpush3.bf16.msra.mxu1 %v12392_v3 }
 0x959   :  { %11465 = vmatprep.subr.bf16.mxu1 %v12393_v10 }
 0x95c   :  { %11466 = vmatpush3.bf16.msra.mxu1 %v12393_v10 }
 0x95d   :  { %11467 = vmatprep.subr.bf16.mxu1 %v12394_v9 }
 0x960   :  { %11468 = vmatpush3.bf16.msra.mxu1 %v12394_v9 }
 0x961   :  { %11469 = vmatprep.subr.bf16.mxu1 %v12395_v12 }
 0x964   :  { %11470 = vmatpush3.bf16.msra.mxu1 %v12395_v12 }
 0x965   :  { %11503 = vmatprep.subr.bf16.mxu1 %v12396_v15 }
 0x966   :  { %v11497_v50 = vpop.f32.mrf.mxu0 }
 0x967   :  { %11472 = vmatmul.mubr.bf16.vlgmr.msra.gmra.mxu1 %v13374_v46  ;;  %v2629_v42 = vadd.f32 %v11497_v50, %v9683_v45 }
 0x968   :  { %11475 = vmatprep.mubr.bf16.mxu1 %v13398_v61  ;;  %v2620_v44 = vpop.f32.mrf.mxu0  ;;  %11504 = vmatpush3.bf16.msra.mxu1 %v12396_v15 }
 0x969   :  { %11505 = vmatprep.subr.bf16.mxu1 %v12397_v11  ;;  %v2621_v30 = vadd.f32 %v9683_v45, %v2620_v44 }
 0x96a   :  { %v11498_v55 = vpop.f32.mrf.mxu0 }
 0x96b   :  { %v2632_v28 = vadd.f32 %v11498_v55, %v9683_v45 }
 0x96c   :  { %v2623_v23 = vpop.f32.mrf.mxu0  ;;  %11506 = vmatpush3.bf16.msra.mxu1 %v12397_v11 }
 0x96d   :  { %11507 = vmatprep.subr.bf16.mxu1 %v12398_v19  ;;  %v2624_v8 = vadd.f32 %v9683_v45, %v2623_v23 }
 0x96e   :  { %v11501_v25 = vpop.f32.mrf.mxu0 }
 0x96f   :  { %11476 = vmatmul.mubr.bf16.gmra.mxu1 %v13411_v5  ;;  %v2645_v63 = vadd.f32 %v11501_v25, %v9683_v45 }
 0x970   :  { %v2636_v37 = vpop.f32.mrf.mxu0  ;;  %11508 = vmatpush3.bf16.msra.mxu1 %v12398_v19  ;;  %11519 = vmatprep.mubr.bf16.mxu1 %v13364_v40 }
 0x971   :  { %11509 = vmatprep.subr.bf16.mxu1 %v12399_v24  ;;  %v2637_v58 = vadd.f32 %v9683_v45, %v2636_v37 }
 0x972   :  { %v11502_v48 = vpop.f32.mrf.mxu0 }
 0x973   :  { %v2648_v49 = vadd.f32 %v11502_v48, %v9683_v45 }
 0x974   :  { %11510 = vmatpush3.bf16.msra.mxu1 %v12399_v24  ;;  %v2639_v34 = vpop.f32.mrf.mxu0 }
 0x975   :  { %11527 = vmatprep.subr.msk.mxu0 %vm993_vm6, %v2648_v49  ;;  %11511 = vmatprep.subr.bf16.mxu1 %v12400_v43  ;;  %v2640_v54 = vadd.f32 %v9683_v45, %v2639_v34 }
 0x976   :  { %11528 = vmatpush3.xpose.msk.msra.mxu0 %vm993_vm6, %v2648_v49 }
 0x977   :  { %11529 = vmatprep.subr.msk.mxu0 %vm993_vm6, %v2645_v63 }
 0x978   :  { %11512 = vmatpush3.bf16.msra.mxu1 %v12400_v43 }
 0x979   :  { %11513 = vmatprep.subr.bf16.mxu1 %v12401_v51 }
 0x97a   :  { %11530 = vmatpush3.xpose.msk.msra.mxu0 %vm993_vm6, %v2645_v63  ;;  %v9709_v63 = vld [vmem:[%s16014_s13 + $0x2] ss:$0 sm:$0xff] }
 0x97b   :  { %11531 = vmatprep.subr.msk.mxu0 %vm993_vm6, %v2640_v54 }
 0x97c   :  { %11514 = vmatpush3.bf16.msra.mxu1 %v12401_v51 }
 0x97d   :  { %11515 = vmatprep.subr.bf16.mxu1 %v12402_v56 }
 0x97e   :  { %11532 = vmatpush3.xpose.msk.msra.mxu0 %vm993_vm6, %v2640_v54 }
 0x97f   :  { %11533 = vmatprep.subr.msk.mxu0 %vm993_vm6, %v2637_v58 }
 0x980   :  { %11516 = vmatpush3.bf16.msra.mxu1 %v12402_v56 }
 0x981   :  { %11517 = vmatprep.subr.bf16.mxu1 %v12403_v27 }
 0x982   :  { %11534 = vmatpush3.xpose.msk.msra.mxu0 %vm993_vm6, %v2637_v58 }
 0x983   :  { %11535 = vmatprep.subr.msk.mxu0 %vm993_vm6, %v2632_v28 }
 0x984   :  { %11518 = vmatpush3.bf16.msra.mxu1 %v12403_v27 }
 0x986   :  { %11536 = vmatpush3.xpose.msk.msra.mxu0 %vm993_vm6, %v2632_v28 }
 0x987   :  { %11520 = vmatmul.mubr.bf16.vlgmr.msra.gmra.mxu1 %v13374_v46  ;;  %11537 = vmatprep.subr.msk.mxu0 %vm993_vm6, %v2629_v42 }
 0x988   :  { %11523 = vmatprep.mubr.bf16.mxu1 %v13398_v61 }
 0x98a   :  { %11538 = vmatpush3.xpose.msk.msra.mxu0 %vm993_vm6, %v2629_v42 }
 0x98b   :  { %11539 = vmatprep.subr.msk.mxu0 %vm993_vm6, %v2624_v8 }
 0x98e   :  { %11540 = vmatpush3.xpose.msk.msra.mxu0 %vm993_vm6, %v2624_v8 }
 0x98f   :  { %11524 = vmatmul.mubr.bf16.gmra.mxu1 %v13411_v5  ;;  %11541 = vmatprep.subr.msk.mxu0 %vm993_vm6, %v2621_v30 }
 0x992   :  { %11542 = vmatpush3.xpose.msk.msra.mxu0 %vm993_vm6, %v2621_v30 }
 0xa07   :  { %v13902_v52 = vpop.f32.mrf.mxu1 }
 0xa09   :  { %v13904_v47 = vpop.f32.mrf.mxu1 }
 0xa0b   :  { %v13906_v31 = vpop.f32.mrf.mxu1 }
 0xa0d   :  { %v13908_v32 = vpop.f32.mrf.mxu1 }
 0xa0f   :  { %v13910_v60 = vpop.f32.mrf.mxu1 }
 0xa11   :  { %v13912_v53 = vpop.f32.mrf.mxu1 }
 0xa13   :  { %v13914_v26 = vpop.f32.mrf.mxu1 }
 0xa15   :  { %v13916_v57 = vpop.f32.mrf.mxu1 }
 0xa27   :  { %v11473_v22 = vpop.f32.mrf.mxu1 }
 0xa28   :  { %v2491_v9 = vadd.f32 %v11473_v22, %v9657_v35 }
 0xa29   :  { %v2482_v4 = vpop.f32.mrf.mxu1 }
 0xa2a   :  { %v2483_v38 = vadd.f32 %v9657_v35, %v2482_v4 }
 0xa2b   :  { %v11474_v39 = vpop.f32.mrf.mxu1 }
 0xa2c   :  { %11543 = vmatprep.mubr.msk.f32.mxu0 %vm993_vm6, %v2483_v38  ;;  %v2494_v11 = vadd.f32 %v11474_v39, %v9657_v35  ;;  %v13935_v39 = vld [vmem:[%s16015_s2 + $0x8] sm:$0xff] }
 0xa2d   :  { %v2485_v3 = vpop.f32.mrf.mxu1 }
 0xa2e   :  { %v2486_v10 = vadd.f32 %v9657_v35, %v2485_v3 }
 0xa2f   :  { %v11477_v12 = vpop.f32.mrf.mxu1 }
 0xa30   :  { %11544 = vmatmul.mubr.msk.f32.vlgmr.msra.gmra.mxu0 %vm993_vm6, %v2486_v10  ;;  %v2507_v23 = vadd.f32 %v11477_v12, %v9657_v35 }
 0xa31   :  { %v2498_v15 = vpop.f32.mrf.mxu1  ;;  %11546 = vmatprep.mubr.msk.f32.mxu0 %vm993_vm6, %v2491_v9 }
 0xa32   :  { %v2499_v50 = vadd.f32 %v9657_v35, %v2498_v15  ;;  %v13942_v15 = vld [vmem:[%s16015_s2] sm:$0xff] }
 0xa33   :  { %v11478_v44 = vpop.f32.mrf.mxu1 }
 0xa34   :  { %11547 = vmatmul.mubr.msk.f32.gmra.mxu0 %vm993_vm6, %v2494_v11  ;;  %v2510_v24 = vadd.f32 %v11478_v44, %v9657_v35 }
 0xa35   :  { %v2501_v19 = vpop.f32.mrf.mxu1  ;;  %11549 = vmatprep.mubr.msk.f32.mxu0 %vm993_vm6, %v2499_v50 }
 0xa36   :  { %v2502_v55 = vadd.f32 %v9657_v35, %v2501_v19 }
 0xa38   :  { %11550 = vmatmul.mubr.msk.f32.gmra.mxu0 %vm993_vm6, %v2502_v55  ;;  %v13949_v55 = vld [vmem:[%s16015_s2 + $0x18] sm:$0xff] }
 0xa39   :  { %11552 = vmatprep.mubr.msk.f32.mxu0 %vm993_vm6, %v2507_v23 }
 0xa3c   :  { %11553 = vmatmul.mubr.msk.f32.gmra.mxu0 %vm993_vm6, %v2510_v24 }
 0xa47   :  { %v11521_v25 = vpop.f32.mrf.mxu1 }
 0xa48   :  { %v2767_v42 = vadd.f32 %v11521_v25, %v9709_v63 }
 0xa49   :  { %v2758_v37 = vpop.f32.mrf.mxu1 }
 0xa4a   :  { %v2759_v30 = vadd.f32 %v9709_v63, %v2758_v37 }
 0xa4b   :  { %v11522_v43 = vpop.f32.mrf.mxu1 }
 0xa4c   :  { %v2770_v28 = vadd.f32 %v11522_v43, %v9709_v63  ;;  %v13956_v43 = vld [vmem:[%s16015_s2 + $0x10] sm:$0xff] }
 0xa4d   :  { %v2761_v45 = vpop.f32.mrf.mxu1 }
 0xa4e   :  { %v2762_v8 = vadd.f32 %v9709_v63, %v2761_v45 }
 0xa4f   :  { %v11525_v48 = vpop.f32.mrf.mxu1 }
 0xa50   :  { %v2783_v56 = vadd.f32 %v11525_v48, %v9709_v63 }
 0xa51   :  { %v2774_v49 = vpop.f32.mrf.mxu1 }
 0xa52   :  { %v2775_v27 = vadd.f32 %v9709_v63, %v2774_v49 }
 0xa53   :  { %v11526_v51 = vpop.f32.mrf.mxu1 }
 0xa54   :  { %v2786_v34 = vadd.f32 %v11526_v51, %v9709_v63  ;;  %v13963_v51 = vld [vmem:[%s16015_s2 + $0x28] sm:$0xff] }
 0xa55   :  { %v2777_v54 = vpop.f32.mrf.mxu1 }
 0xa56   :  { %11555 = vmatprep.subr.mxu1 %v2786_v34  ;;  %v2778_v58 = vadd.f32 %v9709_v63, %v2777_v54 }
 0xa57   :  { %11556 = vmatpush3.msra.mxu1 %v2786_v34 }
 0xa58   :  { %11557 = vmatprep.subr.mxu1 %v2783_v56 }
 0xa59   :  { %11558 = vmatpush3.msra.mxu1 %v2783_v56 }
 0xa5a   :  { %11559 = vmatprep.subr.mxu1 %v2778_v58 }
 0xa5b   :  { %11560 = vmatpush3.msra.mxu1 %v2778_v58 }
 0xa5c   :  { %11561 = vmatprep.subr.mxu1 %v2775_v27 }
 0xa5d   :  { %11562 = vmatpush3.msra.mxu1 %v2775_v27  ;;  %v13970_v27 = vld [vmem:[%s16015_s2 + $0x20] sm:$0xff] }
 0xa5e   :  { %11563 = vmatprep.subr.mxu1 %v2770_v28 }
 0xa5f   :  { %11564 = vmatpush3.msra.mxu1 %v2770_v28 }
 0xa60   :  { %11565 = vmatprep.subr.mxu1 %v2767_v42 }
 0xa61   :  { %11566 = vmatpush3.msra.mxu1 %v2767_v42 }
 0xa62   :  { %11567 = vmatprep.subr.mxu1 %v2762_v8 }
 0xa63   :  { %11568 = vmatpush3.msra.mxu1 %v2762_v8 }
 0xa64   :  { %11569 = vmatprep.subr.mxu1 %v2759_v30 }
 0xa65   :  { %11570 = vmatpush3.msra.mxu1 %v2759_v30 }
 0xaf0   :  { %v11545_v22 = vpop.f32.mrf.mxu0 }
 0xaf1   :  { %v2943_v35 = vmul.f32 0.17677669, %v11545_v22  ;;  %v13977_v22 = vld [vmem:[%s16015_s2 + $0x38] sm:$0xff] }
 0xaf2   :  { %v2903_v4 = vpop.f32.mrf.mxu0 }
 0xaf3   :  { %v2942_v38 = vmul.f32 0.17677669, %v2903_v4  ;;  %v2951_v3 = vadd.f32 %v13935_v39, %v2943_v35 }
 0xaf4   :  { %v11548_v10 = vpop.f32.mrf.mxu0 }
 0xaf5   :  { %v2945_v9 = vmul.f32 0.17677669, %v11548_v10  ;;  %v2961_v12 = vsel %vm248_vm4, %v2951_v3, -inf  ;;  %v2950_v11 = vadd.f32 %v13942_v15, %v2942_v38  ;;  %v13984_v38 = vld [vmem:[%s16015_s2 + $0x30] sm:$0xff] }
 0xaf6   :  { %2962 = vmax.xlane.f32.xlu0 %v2961_v12  ;;  %v2913_v50 = vpop.f32.mrf.mxu0 }
 0xaf7   :  { %v2944_v44 = vmul.f32 0.17677669, %v2913_v50  ;;  %v2958_v19 = vsel %vm248_vm4, %v2950_v11, -inf  ;;  %v2953_v23 = vadd.f32 %v13949_v55, %v2945_v9 }
 0xaf8   :  { %2959 = vmax.xlane.f32.xlu1 %v2958_v19  ;;  %v11551_v24 = vpop.f32.mrf.mxu0 }
 0xaf9   :  { %v2947_v25 = vmul.f32 0.17677669, %v11551_v24  ;;  %v2967_v37 = vsel %vm248_vm4, %v2953_v23, -inf  ;;  %v2952_v45 = vadd.f32 %v13956_v43, %v2944_v44 }
 0xafa   :  { %2968 = vmax.xlane.f32.xlu0 %v2967_v37  ;;  %v2923_v48 = vpop.f32.mrf.mxu0 }
 0xafb   :  { %v2946_v49 = vmul.f32 0.17677669, %v2923_v48  ;;  %v2964_v63 = vsel %vm248_vm4, %v2952_v45, -inf  ;;  %v2955_v34 = vadd.f32 %v13963_v51, %v2947_v25 }
 0xafc   :  { %2965 = vmax.xlane.f32.xlu1 %v2964_v63  ;;  %v11554_v54 = vpop.f32.mrf.mxu0 }
 0xafd   :  { %v2949_v56 = vmul.f32 0.17677669, %v11554_v54  ;;  %v2973_v58 = vsel %vm248_vm4, %v2955_v34, -inf  ;;  %v2954_v28 = vadd.f32 %v13970_v27, %v2946_v49 }
 0xafe   :  { %2974 = vmax.xlane.f32.xlu0 %v2973_v58  ;;  %v2933_v42 = vpop.f32.mrf.mxu0 }
 0xaff   :  { %v2948_v8 = vmul.f32 0.17677669, %v2933_v42  ;;  %v2970_v30 = vsel %vm248_vm4, %v2954_v28, -inf  ;;  %v2957_v35 = vadd.f32 %v13977_v22, %v2949_v56 }
 0xb00   :  { %2971 = vmax.xlane.f32.xlu1 %v2970_v30 }
 0xb01   :  { %v2979_v4 = vsel %vm248_vm4, %v2957_v35, -inf  ;;  %v2956_v10 = vadd.f32 %v13984_v38, %v2948_v8 }
 0xb02   :  { %2980 = vmax.xlane.f32.xlu0 %v2979_v4 }
 0xb03   :  { %v2976_v9 = vsel %vm248_vm4, %v2956_v10, -inf }
 0xb04   :  { %2977 = vmax.xlane.f32.xlu1 %v2976_v9 }
 0xb7f   :  { %v2963_v12 = vpop.xlane.xlu0 %2962 }
 0xb80   :  { %v2983_v50 = vsub.f32 %v2951_v3, %v2963_v12 }
 0xb81   :  { %v2960_v44 = vpop.xlane.xlu1 %2959 }
 0xb82   :  { %v2992_v19 = vmul.f32 1.442695, %v2983_v50  ;;  %v2982_v24 = vsub.f32 %v2950_v11, %v2960_v44 }
 0xb83   :  { %v2969_v25 = vpop.xlane.xlu0 %2968 }
 0xb84   :  { %12696 = vpow2.f32 %v2992_v19  ;;  %v2990_v37 = vmul.f32 1.442695, %v2982_v24  ;;  %v2985_v48 = vsub.f32 %v2953_v23, %v2969_v25 }
 0xb85   :  { %v2966_v49 = vpop.xlane.xlu1 %2965 }
 0xb86   :  { %12698 = vpow2.f32 %v2990_v37  ;;  %v2996_v63 = vmul.f32 1.442695, %v2985_v48  ;;  %v2984_v54 = vsub.f32 %v2952_v45, %v2966_v49 }
 0xb87   :  { %v2975_v56 = vpop.xlane.xlu0 %2974 }
 0xb88   :  { %12700 = vpow2.f32 %v2996_v63  ;;  %v2994_v58 = vmul.f32 1.442695, %v2984_v54  ;;  %v2987_v42 = vsub.f32 %v2955_v34, %v2975_v56 }
 0xb89   :  { %v2972_v8 = vpop.xlane.xlu1 %2971 }
 0xb8a   :  { %12702 = vpow2.f32 %v2994_v58  ;;  %v3000_v30 = vmul.f32 1.442695, %v2987_v42  ;;  %v2986_v4 = vsub.f32 %v2954_v28, %v2972_v8  ;;  %v12404_v8 = vld [vmem:[%s16049_s6 + $0xf8] sm:$0xff]  }
 0xb8b   :  { %v2981_v3 = vpop.xlane.xlu0 %2980  ;;  %11595 = vmatprep.subr.bf16.mxu1 %v12404_v8 }
 0xb8c   :  { %12704 = vpow2.f32 %v3000_v30  ;;  %v2998_v9 = vmul.f32 1.442695, %v2986_v4  ;;  %v2989_v11 = vsub.f32 %v2957_v35, %v2981_v3  ;;  %v12420_v30 = vld [vmem:[%s16016_s14 + $0x28] sm:$0xff]  }
 0xb8d   :  { %v2978_v12 = vpop.xlane.xlu1 %2977  ;;  %11583 = vmatprep.subr.bf16.mxu0 %v12420_v30 }
 0xb8e   :  { %12706 = vpow2.f32 %v2998_v9  ;;  %v3004_v50 = vmul.f32 1.442695, %v2989_v11  ;;  %v2988_v23 = vsub.f32 %v2956_v10, %v2978_v12  ;;  %11584 = vmatpush3.bf16.msra.mxu0 %v12420_v30 }
 0xb90   :  { %12708 = vpow2.f32 %v3004_v50  ;;  %v3002_v44 = vmul.f32 1.442695, %v2988_v23 }
 0xb91   :  { %v12697_v19 = vpop.eup %12696 }
 0xb92   :  { %12710 = vpow2.f32 %v3002_v44  ;;  %v3009_v45 = vsel %vm248_vm4, %v12697_v19, 0.0 }
 0xb93   :  { %v12699_v24 = vpop.eup %12698  ;;  %3010 = vadd.xlane.f32.xlu0 %v3009_v45 }
 0xb94   :  { %v3006_v34 = vsel %vm248_vm4, %v12699_v24, 0.0 }
 0xb95   :  { %v12701_v25 = vpop.eup %12700  ;;  %3007 = vadd.xlane.f32.xlu1 %v3006_v34 }
 0xb96   :  { %v3015_v28 = vsel %vm248_vm4, %v12701_v25, 0.0 }
 0xb97   :  { %v12703_v37 = vpop.eup %12702  ;;  %3016 = vadd.xlane.f32.xlu0 %v3015_v28 }
 0xb98   :  { %v3012_v35 = vsel %vm248_vm4, %v12703_v37, 0.0 }
 0xb99   :  { %v12705_v48 = vpop.eup %12704  ;;  %3013 = vadd.xlane.f32.xlu1 %v3012_v35 }
 0xb9a   :  { %v3021_v10 = vsel %vm248_vm4, %v12705_v48, 0.0 }
 0xb9b   :  { %v12707_v49 = vpop.eup %12706  ;;  %3022 = vadd.xlane.f32.xlu0 %v3021_v10  ;;  %v12405_v10 = vld [vmem:[%s16049_s6 + $0xf0] sm:$0xff]  }
 0xb9c   :  { %v3018_v63 = vsel %vm248_vm4, %v12707_v49, 0.0 }
 0xb9d   :  { %v12709_v54 = vpop.eup %12708  ;;  %3019 = vadd.xlane.f32.xlu1 %v3018_v63 }
 0xb9e   :  { %v3027_v56 = vsel %vm248_vm4, %v12709_v54, 0.0 }
 0xb9f   :  { %v12711_v58 = vpop.eup %12710  ;;  %3028 = vadd.xlane.f32.xlu0 %v3027_v56 }
 0xba0   :  { %v3024_v42 = vsel %vm248_vm4, %v12711_v58, 0.0 }
 0xba1   :  { %3025 = vadd.xlane.f32.xlu1 %v3024_v42 }
 0xc1c   :  { %v3011_v4 = vpop.xlane.xlu0 %3010 }
 0xc1d   :  { %12712 = vrcp.f32 %v3011_v4  ;;  %v12406_v4 = vld [vmem:[%s16049_s6 + $0xe8] sm:$0xff]  }
 0xc1e   :  { %v3008_v3 = vpop.xlane.xlu1 %3007 }
 0xc1f   :  { %12714 = vrcp.f32 %v3008_v3 }
 0xc20   :  { %v3017_v9 = vpop.xlane.xlu0 %3016 }
 0xc21   :  { %12716 = vrcp.f32 %v3017_v9 }
 0xc22   :  { %v3014_v11 = vpop.xlane.xlu1 %3013 }
 0xc23   :  { %12718 = vrcp.f32 %v3014_v11 }
 0xc24   :  { %v3023_v12 = vpop.xlane.xlu0 %3022 }
 0xc25   :  { %12720 = vrcp.f32 %v3023_v12 }
 0xc26   :  { %v3020_v50 = vpop.xlane.xlu1 %3019 }
 0xc27   :  { %12722 = vrcp.f32 %v3020_v50  ;;  %v12412_v50 = vld [vmem:[%s16051_s12 + $0xf8] sm:$0xff]  }
 0xc28   :  { %v3029_v23 = vpop.xlane.xlu0 %3028 }
 0xc29   :  { %12724 = vrcp.f32 %v3029_v23  ;;  %v12413_v23 = vld [vmem:[%s16051_s12 + $0xf0] sm:$0xff]  }
 0xc2a   :  { %v3026_v44 = vpop.xlane.xlu1 %3025  ;;  %v12713_v45 = vpop.eup %12712 }
 0xc2b   :  { %12726 = vrcp.f32 %v3026_v44  ;;  %v3039_v35 = vmul.f32 %v12713_v45, %v12697_v19  ;;  %v12414_v44 = vld [vmem:[%s16051_s12 + $0xe8] sm:$0xff]   ;;  %v12415_v45 = vld [vmem:[%s16051_s12 + $0xe0] sm:$0xff]  }
 0xc2c   :  { %v12715_v34 = vpop.eup %12714 }
 0xc2d   :  { %v3038_v28 = vmul.f32 %v12715_v34, %v12699_v24  ;;  %v12416_v34 = vld [vmem:[%s16051_s12 + $0xd8] sm:$0xff]  }
 0xc2e   :  { %v12717_v63 = vpop.eup %12716 }
 0xc2f   :  { %11571 = vmatprep.mubr.msk.f32.mxu1 %vm248_vm4, %v3038_v28  ;;  %v3041_v30 = vmul.f32 %v12717_v63, %v12701_v25  ;;  %v12417_v28 = vld [vmem:[%s16051_s12 + $0xd0] sm:$0xff]   ;;  %v12421_v63 = vld [vmem:[%s16016_s14 + $0x20] sm:$0xff]  }
 0xc30   :  { %v12719_v56 = vpop.eup %12718  ;;  %11572 = vmatmul.mubr.msk.f32.vlgmr.msra.gmra.mxu1 %vm248_vm4, %v3039_v35  ;;  %v12418_v35 = vld [vmem:[%s16051_s12 + $0xc8] sm:$0xff]   ;;  %11585 = vmatprep.subr.bf16.mxu0 %v12421_v63 }
 0xc31   :  { %11596 = vmatpush3.bf16.msra.mxu1 %v12404_v8  ;;  %v3040_v42 = vmul.f32 %v12719_v56, %v12703_v37  ;;  %v12407_v37 = vld [vmem:[%s16049_s6 + $0xe0] sm:$0xff]   ;;  %11586 = vmatpush3.bf16.msra.mxu0 %v12421_v63  ;;  %v12422_v56 = vld [vmem:[%s16050_s28 + $0xf8] sm:$0xff]  }
 0xc32   :  { %11597 = vmatprep.subr.bf16.mxu1 %v12405_v10  ;;  %v12721_v24 = vpop.eup %12720  ;;  %11619 = vmatprep.subr.bf16.mxu0 %v12422_v56 }
 0xc33   :  { %11574 = vmatprep.mubr.msk.f32.mxu1 %vm248_vm4, %v3040_v42  ;;  %v3043_v9 = vmul.f32 %v12721_v24, %v12705_v48  ;;  %v12409_v48 = vld [vmem:[%s16049_s6 + $0xd0] sm:$0xff]  }
 0xc34   :  { %v12723_v19 = vpop.eup %12722  ;;  %11575 = vmatmul.mubr.msk.f32.gmra.mxu1 %vm248_vm4, %v3041_v30 }
 0xc35   :  { %11598 = vmatpush3.bf16.msra.mxu1 %v12405_v10  ;;  %v3042_v3 = vmul.f32 %v12723_v19, %v12707_v49  ;;  %v12408_v49 = vld [vmem:[%s16049_s6 + $0xd8] sm:$0xff]   ;;  %v12419_v10 = vld [vmem:[%s16051_s12 + $0xc0] sm:$0xff]  }
 0xc36   :  { %11599 = vmatprep.subr.bf16.mxu1 %v12406_v4  ;;  %v12725_v8 = vpop.eup %12724 }
 0xc37   :  { %11577 = vmatprep.mubr.msk.f32.mxu1 %vm248_vm4, %v3042_v3  ;;  %v3045_v12 = vmul.f32 %v12725_v8, %v12709_v54  ;;  %v12410_v54 = vld [vmem:[%s16049_s6 + $0xc8] sm:$0xff]  }
 0xc38   :  { %v12727_v25 = vpop.eup %12726  ;;  %11578 = vmatmul.mubr.msk.f32.gmra.mxu1 %vm248_vm4, %v3043_v9  ;;  %v12423_v9 = vld [vmem:[%s16050_s28 + $0xf0] sm:$0xff]  }
 0xc39   :  { %11600 = vmatpush3.bf16.msra.mxu1 %v12406_v4  ;;  %v3044_v11 = vmul.f32 %v12727_v25, %v12711_v58  ;;  %v12411_v58 = vld [vmem:[%s16049_s6 + $0xc0] sm:$0xff]  }
 0xc3a   :  { %11601 = vmatprep.subr.bf16.mxu1 %v12407_v37 }
 0xc3b   :  { %11580 = vmatprep.mubr.msk.f32.mxu1 %vm248_vm4, %v3044_v11  ;;  %v12424_v11 = vld [vmem:[%s16050_s28 + $0xe8] sm:$0xff]  }
 0xc3c   :  { %11581 = vmatmul.mubr.msk.f32.gmra.mxu1 %vm248_vm4, %v3045_v12 }
 0xc3d   :  { %11602 = vmatpush3.bf16.msra.mxu1 %v12407_v37  ;;  %11611 = vmatprep.mubr.bf16.mxu1 %v13364_v40 }
 0xc3e   :  { %11603 = vmatprep.subr.bf16.mxu1 %v12408_v49 }
 0xc41   :  { %11604 = vmatpush3.bf16.msra.mxu1 %v12408_v49 }
 0xc42   :  { %11605 = vmatprep.subr.bf16.mxu1 %v12409_v48 }
 0xc45   :  { %11606 = vmatpush3.bf16.msra.mxu1 %v12409_v48 }
 0xc46   :  { %11607 = vmatprep.subr.bf16.mxu1 %v12410_v54 }
 0xc49   :  { %11608 = vmatpush3.bf16.msra.mxu1 %v12410_v54  ;;  %v12425_v54 = vld [vmem:[%s16050_s28 + $0xe0] sm:$0xff]  }
 0xc4a   :  { %11609 = vmatprep.subr.bf16.mxu1 %v12411_v58 }
 0xc4d   :  { %11610 = vmatpush3.bf16.msra.mxu1 %v12411_v58  ;;  %v12426_v58 = vld [vmem:[%s16050_s28 + $0xd8] sm:$0xff]  }
 0xc4e   :  { %11643 = vmatprep.subr.bf16.mxu1 %v12412_v50 }
 0xc50   :  { %11612 = vmatmul.mubr.bf16.vlgmr.msra.gmra.mxu1 %v13374_v46 }
 0xc51   :  { %11615 = vmatprep.mubr.bf16.mxu1 %v13398_v61  ;;  %11644 = vmatpush3.bf16.msra.mxu1 %v12412_v50  ;;  %v12427_v50 = vld [vmem:[%s16050_s28 + $0xd0] sm:$0xff]  }
 0xc52   :  { %11645 = vmatprep.subr.bf16.mxu1 %v12413_v23 }
 0xc55   :  { %11646 = vmatpush3.bf16.msra.mxu1 %v12413_v23  ;;  %v12428_v23 = vld [vmem:[%s16050_s28 + $0xc8] sm:$0xff]  }
 0xc56   :  { %11647 = vmatprep.subr.bf16.mxu1 %v12414_v44 }
 0xc58   :  { %11616 = vmatmul.mubr.bf16.gmra.mxu1 %v13411_v5 }
 0xc59   :  { %11648 = vmatpush3.bf16.msra.mxu1 %v12414_v44  ;;  %11659 = vmatprep.mubr.bf16.mxu1 %v13364_v40  ;;  %v12429_v44 = vld [vmem:[%s16050_s28 + $0xc0] sm:$0xff]  }
 0xc5a   :  { %11649 = vmatprep.subr.bf16.mxu1 %v12415_v45 }
 0xc5d   :  { %11650 = vmatpush3.bf16.msra.mxu1 %v12415_v45 }
 0xc5e   :  { %11651 = vmatprep.subr.bf16.mxu1 %v12416_v34 }
 0xc61   :  { %11652 = vmatpush3.bf16.msra.mxu1 %v12416_v34 }
 0xc62   :  { %11653 = vmatprep.subr.bf16.mxu1 %v12417_v28 }
 0xc65   :  { %11654 = vmatpush3.bf16.msra.mxu1 %v12417_v28 }
 0xc66   :  { %11655 = vmatprep.subr.bf16.mxu1 %v12418_v35 }
 0xc69   :  { %11656 = vmatpush3.bf16.msra.mxu1 %v12418_v35 }
 0xc6a   :  { %11657 = vmatprep.subr.bf16.mxu1 %v12419_v10 }
 0xc6d   :  { %11658 = vmatpush3.bf16.msra.mxu1 %v12419_v10 }
 0xc70   :  { %11660 = vmatmul.mubr.bf16.vlgmr.msra.gmra.mxu1 %v13374_v46 }
 0xc71   :  { %11663 = vmatprep.mubr.bf16.mxu1 %v13398_v61 }
 0xc78   :  { %11664 = vmatmul.mubr.bf16.gmra.mxu1 %v13411_v5 }
 0xcf0   :  { %v11573_v42 = vpop.f32.mrf.mxu1 }
 0xcf2   :  { %v3136_v30 = vpop.f32.mrf.mxu1 }
 0xcf3   :  { %v3175_v4 = vpack.c.bf16 %v11573_v42, %v3136_v30 }
 0xcf4   :  { %v11576_v24 = vpop.f32.mrf.mxu1 }
 0xcf5   :  { %11587 = vmatprep.mubr.msk.bf16.mxu0 %vm993_vm6, %v3175_v4 }
 0xcf6   :  { %v3146_v19 = vpop.f32.mrf.mxu1 }
 0xcf7   :  { %v3176_v3 = vpack.c.bf16 %v11576_v24, %v3146_v19 }
 0xcf8   :  { %v11579_v37 = vpop.f32.mrf.mxu1 }
 0xcf9   :  { %11588 = vmatmul.mubr.msk.bf16.vlgmr.msra.gmra.mxu0 %vm993_vm6, %v3176_v3 }
 0xcfa   :  { %11620 = vmatpush3.bf16.msra.mxu0 %v12422_v56  ;;  %v3156_v8 = vpop.f32.mrf.mxu1 }
 0xcfb   :  { %v3177_v25 = vpack.c.bf16 %v11579_v37, %v3156_v8  ;;  %11621 = vmatprep.subr.bf16.mxu0 %v12423_v9 }
 0xcfc   :  { %v11582_v12 = vpop.f32.mrf.mxu1 }
 0xcfd   :  { %11591 = vmatprep.mubr.msk.bf16.mxu0 %vm993_vm6, %v3177_v25 }
 0xcfe   :  { %11622 = vmatpush3.bf16.msra.mxu0 %v12423_v9  ;;  %v3166_v49 = vpop.f32.mrf.mxu1 }
 0xcff   :  { %v3178_v48 = vpack.c.bf16 %v11582_v12, %v3166_v49  ;;  %11623 = vmatprep.subr.bf16.mxu0 %v12424_v11  ;;  %v9821_v12 = vld [vmem:[%s16014_s13 + $0x3] ss:$0 sm:$0xff] }
 0xd01   :  { %11592 = vmatmul.mubr.msk.bf16.gmra.mxu0 %vm993_vm6, %v3178_v48 }
 0xd02   :  { %11624 = vmatpush3.bf16.msra.mxu0 %v12424_v11  ;;  %11635 = vmatprep.mubr.bf16.mxu0 %v13364_v40  ;;  %v14095_v40 = vld [vmem:[%s16012_s9 + $0x3] ss:$0 sm:$0xff] }
 0xd03   :  { %11625 = vmatprep.subr.bf16.mxu0 %v12425_v54 }
 0xd06   :  { %11626 = vmatpush3.bf16.msra.mxu0 %v12425_v54 }
 0xd07   :  { %11627 = vmatprep.subr.bf16.mxu0 %v12426_v58 }
 0xd0a   :  { %11628 = vmatpush3.bf16.msra.mxu0 %v12426_v58 }
 0xd0b   :  { %11629 = vmatprep.subr.bf16.mxu0 %v12427_v50 }
 0xd0e   :  { %11630 = vmatpush3.bf16.msra.mxu0 %v12427_v50 }
 0xd0f   :  { %11631 = vmatprep.subr.bf16.mxu0 %v12428_v23 }
 0xd10   :  { %v11613_v45 = vpop.f32.mrf.mxu1 }
 0xd11   :  { %v14101_v34 = vadd.f32 %v11613_v45, %v14095_v40 }
 0xd12   :  { %v3388_v28 = vpop.f32.mrf.mxu1  ;;  %11632 = vmatpush3.bf16.msra.mxu0 %v12428_v23 }
 0xd13   :  { %11633 = vmatprep.subr.bf16.mxu0 %v12429_v44  ;;  %v3389_v3 = vadd.f32 %v14095_v40, %v3388_v28 }
 0xd14   :  { %v11614_v35 = vpop.f32.mrf.mxu1 }
 0xd15   :  { %v14104_v10 = vadd.f32 %v11614_v35, %v14095_v40  ;;  %v2353_v35 = vadd.f32 %v13815_v33, %v13902_v52  ;;  %v2369_v33 = vadd.f32 %v13838_v7, %v13910_v60 }
 0xd16   :  { %v14106_v63 = vpop.f32.mrf.mxu1  ;;  %11634 = vmatpush3.bf16.msra.mxu0 %v12429_v44 }
 0xd18   :  { %v11617_v56 = vpop.f32.mrf.mxu1 }
 0xd19   :  { %v14109_v42 = vadd.f32 %v11617_v56, %v14095_v40  ;;  %11636 = vmatmul.mubr.bf16.vlgmr.msra.gmra.mxu0 %v13374_v46 }
 0xd1a   :  { %v3404_v30 = vpop.f32.mrf.mxu1  ;;  %11639 = vmatprep.mubr.bf16.mxu0 %v13398_v61 }
 0xd1b   :  { %v14114_v4 = vadd.f32 %v14095_v40, %v3404_v30  ;;  %v2345_v30 = vadd.f32 %v13821_v36, %v13904_v47  ;;  %v2361_v36 = vadd.f32 %v13843_v14, %v13912_v53  ;;  %v9795_v14 = vld [vmem:[%s16013_s11 + $0x3] ss:$0 sm:$0xff] }
 0xd1c   :  { %v11618_v24 = vpop.f32.mrf.mxu1 }
 0xd1d   :  { %v14117_v19 = vadd.f32 %v11618_v24, %v14095_v40 }
 0xd1e   :  { %v14122_v9 = vpop.f32.mrf.mxu1 }
 0xd21   :  { %11640 = vmatmul.mubr.bf16.gmra.mxu0 %v13411_v5 }
 0xd22   :  { %11683 = vmatprep.mubr.msk.f32.mxu0 %vm993_vm6, %v3389_v3 }
 0xd30   :  { %v11661_v37 = vpop.f32.mrf.mxu1 }
 0xd31   :  { %v3673_v44 = vadd.f32 %v11661_v37, %v9821_v12  ;;  %v2356_v37 = vadd.f32 %v13827_v59, %v13906_v31  ;;  %v2372_v59 = vadd.f32 %v13848_v13, %v13914_v26 }
 0xd32   :  { %v3664_v46 = vpop.f32.mrf.mxu1 }
 0xd33   :  { %v3665_v28 = vadd.f32 %v9821_v12, %v3664_v46 }
 0xd34   :  { %v11662_v8 = vpop.f32.mrf.mxu1 }
 0xd35   :  { %v3676_v23 = vadd.f32 %v11662_v8, %v9821_v12 }
 0xd36   :  { %v3667_v25 = vpop.f32.mrf.mxu1 }
 0xd37   :  { %v3668_v45 = vadd.f32 %v9821_v12, %v3667_v25 }
 0xd38   :  { %v11665_v61 = vpop.f32.mrf.mxu1 }
 0xd39   :  { %v3689_v58 = vadd.f32 %v11665_v61, %v9821_v12 }
 0xd3a   :  { %v3680_v11 = vpop.f32.mrf.mxu1 }
 0xd3b   :  { %v3681_v50 = vadd.f32 %v9821_v12, %v3680_v11 }
 0xd3c   :  { %v11666_v49 = vpop.f32.mrf.mxu1 }
 0xd3d   :  { %v3692_v48 = vadd.f32 %v11666_v49, %v9821_v12 }
 0xd3e   :  { %v3683_v54 = vpop.f32.mrf.mxu1 }
 0xd3f   :  { %11695 = vmatprep.subr.mxu1 %v3692_v48  ;;  %v3684_v5 = vadd.f32 %v9821_v12, %v3683_v54 }
 0xd40   :  { %11696 = vmatpush3.msra.mxu1 %v3692_v48 }
 0xd41   :  { %11697 = vmatprep.subr.mxu1 %v3689_v58 }
 0xd42   :  { %11698 = vmatpush3.msra.mxu1 %v3689_v58 }
 0xd43   :  { %11699 = vmatprep.subr.mxu1 %v3684_v5 }
 0xd44   :  { %11700 = vmatpush3.msra.mxu1 %v3684_v5 }
 0xd45   :  { %11701 = vmatprep.subr.mxu1 %v3681_v50 }
 0xd46   :  { %11702 = vmatpush3.msra.mxu1 %v3681_v50 }
 0xd47   :  { %11703 = vmatprep.subr.mxu1 %v3676_v23 }
 0xd48   :  { %11704 = vmatpush3.msra.mxu1 %v3676_v23 }
 0xd49   :  { %11705 = vmatprep.subr.mxu1 %v3673_v44 }
 0xd4a   :  { %11706 = vmatpush3.msra.mxu1 %v3673_v44 }
 0xd4b   :  { %11707 = vmatprep.subr.mxu1 %v3668_v45 }
 0xd4c   :  { %11708 = vmatpush3.msra.mxu1 %v3668_v45 }
 0xd4d   :  { %11709 = vmatprep.subr.mxu1 %v3665_v28 }
 0xd4e   :  { %11710 = vmatpush3.msra.mxu1 %v3665_v28 }
 0xdb9   :  { %v11589_v56 = vpop.f32.mrf.mxu0 }
 0xdba   :  { %v14131_v24 = vadd.f32 %v11589_v56, %v2353_v35 }
 0xdbb   :  { %v3242_v3 = vpop.f32.mrf.mxu0 }
 0xdbc   :  { %v14135_v8 = vadd.f32 %v3242_v3, %v2345_v30  ;;  %v3392_v3 = vadd.f32 %v14095_v40, %v14106_v63 }
 0xdbd   :  { %v11590_v46 = vpop.f32.mrf.mxu0 }
 0xdbe   :  { %v14137_v25 = vadd.f32 %v11590_v46, %v2356_v37  ;;  %v3408_v37 = vadd.f32 %v14095_v40, %v14122_v9 }
 0xdbf   :  { %v14139_v61 = vpop.f32.mrf.mxu0 }
 0xdc1   :  { %v11593_v52 = vpop.f32.mrf.mxu0 }
 0xdc2   :  { %v14145_v47 = vadd.f32 %v11593_v52, %v2369_v33 }
 0xdc3   :  { %v3258_v11 = vpop.f32.mrf.mxu0 }
 0xdc4   :  { %v14149_v31 = vadd.f32 %v3258_v11, %v2361_v36 }
 0xdc5   :  { %v11594_v12 = vpop.f32.mrf.mxu0 }
 0xdc6   :  { %v14151_v49 = vadd.f32 %v11594_v12, %v2372_v59 }
 0xdc7   :  { %v14153_v48 = vpop.f32.mrf.mxu0 }
 0xdd9   :  { %v11637_v54 = vpop.f32.mrf.mxu0 }
 0xdda   :  { %v3535_v35 = vadd.f32 %v11637_v54, %v9795_v14 }
 0xddb   :  { %v3526_v58 = vpop.f32.mrf.mxu0 }
 0xddc   :  { %v3527_v30 = vadd.f32 %v9795_v14, %v3526_v58 }
 0xddd   :  { %v11638_v7 = vpop.f32.mrf.mxu0 }
 0xdde   :  { %v3538_v28 = vadd.f32 %v11638_v7, %v9795_v14 }
 0xddf   :  { %v3529_v60 = vpop.f32.mrf.mxu0 }
 0xde0   :  { %v3530_v56 = vadd.f32 %v9795_v14, %v3529_v60 }
 0xde1   :  { %v11641_v5 = vpop.f32.mrf.mxu0 }
 0xde2   :  { %v3551_v13 = vadd.f32 %v11641_v5, %v9795_v14 }
 0xde3   :  { %v3542_v50 = vpop.f32.mrf.mxu0 }
 0xde4   :  { %v3543_v45 = vadd.f32 %v9795_v14, %v3542_v50 }
 0xde5   :  { %v11642_v53 = vpop.f32.mrf.mxu0 }
 0xde6   :  { %v3554_v23 = vadd.f32 %v11642_v53, %v9795_v14 }
 0xde7   :  { %v3545_v26 = vpop.f32.mrf.mxu0 }
 0xde8   :  { %11667 = vmatprep.subr.msk.mxu0 %vm993_vm6, %v3554_v23  ;;  %v3546_v44 = vadd.f32 %v9795_v14, %v3545_v26 }
 0xde9   :  { %11668 = vmatpush3.xpose.msk.msra.mxu0 %vm993_vm6, %v3554_v23 }
 0xdea   :  { %11669 = vmatprep.subr.msk.mxu0 %vm993_vm6, %v3551_v13 }
 0xded   :  { %11670 = vmatpush3.xpose.msk.msra.mxu0 %vm993_vm6, %v3551_v13 }
 0xdee   :  { %11671 = vmatprep.subr.msk.mxu0 %vm993_vm6, %v3546_v44 }
 0xdf1   :  { %11672 = vmatpush3.xpose.msk.msra.mxu0 %vm993_vm6, %v3546_v44 }
 0xdf2   :  { %11673 = vmatprep.subr.msk.mxu0 %vm993_vm6, %v3543_v45 }
 0xdf5   :  { %11674 = vmatpush3.xpose.msk.msra.mxu0 %vm993_vm6, %v3543_v45 }
 0xdf6   :  { %11675 = vmatprep.subr.msk.mxu0 %vm993_vm6, %v3538_v28 }
 0xdf9   :  { %11676 = vmatpush3.xpose.msk.msra.mxu0 %vm993_vm6, %v3538_v28 }
 0xdfa   :  { %11677 = vmatprep.subr.msk.mxu0 %vm993_vm6, %v3535_v35 }
 0xdfd   :  { %11678 = vmatpush3.xpose.msk.msra.mxu0 %vm993_vm6, %v3535_v35 }
 0xdfe   :  { %11679 = vmatprep.subr.msk.mxu0 %vm993_vm6, %v3530_v56 }
 0xe01   :  { %11680 = vmatpush3.xpose.msk.msra.mxu0 %vm993_vm6, %v3530_v56 }
 0xe02   :  { %11681 = vmatprep.subr.msk.mxu0 %vm993_vm6, %v3527_v30 }
 0xe05   :  { %11682 = vmatpush3.xpose.msk.msra.mxu0 %vm993_vm6, %v3527_v30 }
 0xe08   :  { %11684 = vmatmul.mubr.msk.f32.vlgmr.msra.gmra.mxu0 %vm993_vm6, %v3392_v3 }
 0xe09   :  { %11686 = vmatprep.mubr.msk.f32.mxu0 %vm993_vm6, %v14101_v34 }
 0xe0c   :  { %11687 = vmatmul.mubr.msk.f32.gmra.mxu0 %vm993_vm6, %v14104_v10 }
 0xe0d   :  { %11689 = vmatprep.mubr.msk.f32.mxu0 %vm993_vm6, %v14114_v4 }
 0xe10   :  { %11690 = vmatmul.mubr.msk.f32.gmra.mxu0 %vm993_vm6, %v3408_v37 }
 0xe11   :  { %11692 = vmatprep.mubr.msk.f32.mxu0 %vm993_vm6, %v14109_v42 }
 0xe14   :  { %11693 = vmatmul.mubr.msk.f32.gmra.mxu0 %vm993_vm6, %v14117_v19 }
 0xec8   :  { %v11685_v63 = vpop.f32.mrf.mxu0 }
 0xec9   :  { %v3849_v46 = vmul.f32 0.17677669, %v11685_v63 }
 0xeca   :  { %v3809_v34 = vpop.f32.mrf.mxu0 }
 0xecb   :  { %v3848_v33 = vmul.f32 0.17677669, %v3809_v34  ;;  %v3857_v10 = vadd.f32 %v13935_v39, %v3849_v46 }
 0xecc   :  { %v11688_v52 = vpop.f32.mrf.mxu0 }
 0xecd   :  { %v3851_v36 = vmul.f32 0.17677669, %v11688_v52  ;;  %v3867_v4 = vsel %vm248_vm4, %v3857_v10, -inf  ;;  %v3856_v40 = vadd.f32 %v13942_v15, %v3848_v33 }
 0xece   :  { %3868 = vmax.xlane.f32.xlu0 %v3867_v4  ;;  %v3819_v9 = vpop.f32.mrf.mxu0 }
 0xecf   :  { %v3850_v11 = vmul.f32 0.17677669, %v3819_v9  ;;  %v3864_v42 = vsel %vm248_vm4, %v3856_v40, -inf  ;;  %v3859_v59 = vadd.f32 %v13949_v55, %v3851_v36 }
 0xed0   :  { %3865 = vmax.xlane.f32.xlu1 %v3864_v42  ;;  %v11691_v19 = vpop.f32.mrf.mxu0 }
 0xed1   :  { %v3853_v12 = vmul.f32 0.17677669, %v11691_v19  ;;  %v3873_v54 = vsel %vm248_vm4, %v3859_v59, -inf  ;;  %v3858_v39 = vadd.f32 %v13956_v43, %v3850_v11 }
 0xed2   :  { %3874 = vmax.xlane.f32.xlu0 %v3873_v54  ;;  %v3829_v58 = vpop.f32.mrf.mxu0 }
 0xed3   :  { %v3852_v7 = vmul.f32 0.17677669, %v3829_v58  ;;  %v3870_v60 = vsel %vm248_vm4, %v3858_v39, -inf  ;;  %v3861_v15 = vadd.f32 %v13963_v51, %v3853_v12 }
 0xed4   :  { %3871 = vmax.xlane.f32.xlu1 %v3870_v60  ;;  %v11694_v5 = vpop.f32.mrf.mxu0 }
 0xed5   :  { %v3855_v50 = vmul.f32 0.17677669, %v11694_v5  ;;  %v3879_v14 = vsel %vm248_vm4, %v3861_v15, -inf  ;;  %v3860_v55 = vadd.f32 %v13970_v27, %v3852_v7 }
 0xed6   :  { %3880 = vmax.xlane.f32.xlu0 %v3879_v14  ;;  %v3839_v53 = vpop.f32.mrf.mxu0 }
 0xed7   :  { %v3854_v23 = vmul.f32 0.17677669, %v3839_v53  ;;  %v3876_v13 = vsel %vm248_vm4, %v3860_v55, -inf  ;;  %v3863_v43 = vadd.f32 %v13977_v22, %v3855_v50 }
 0xed8   :  { %3877 = vmax.xlane.f32.xlu1 %v3876_v13 }
 0xed9   :  { %v3885_v26 = vsel %vm248_vm4, %v3863_v43, -inf  ;;  %v3862_v44 = vadd.f32 %v13984_v38, %v3854_v23 }
 0xeda   :  { %3886 = vmax.xlane.f32.xlu0 %v3885_v26 }
 0xedb   :  { %v3882_v51 = vsel %vm248_vm4, %v3862_v44, -inf }
 0xedc   :  { %3883 = vmax.xlane.f32.xlu1 %v3882_v51 }
 0xf57   :  { %v3869_v45 = vpop.xlane.xlu0 %3868 }
 0xf58   :  { %v3889_v28 = vsub.f32 %v3857_v10, %v3869_v45 }
 0xf59   :  { %v3866_v35 = vpop.xlane.xlu1 %3865 }
 0xf5a   :  { %v3898_v27 = vmul.f32 1.442695, %v3889_v28  ;;  %v3888_v56 = vsub.f32 %v3856_v40, %v3866_v35 }
 0xf5b   :  { %v3875_v30 = vpop.xlane.xlu0 %3874 }
 0xf5c   :  { %12728 = vpow2.f32 %v3898_v27  ;;  %v3896_v3 = vmul.f32 1.442695, %v3888_v56  ;;  %v3891_v37 = vsub.f32 %v3859_v59, %v3875_v30 }
 0xf5d   :  { %v3872_v63 = vpop.xlane.xlu1 %3871 }
 0xf5e   :  { %12730 = vpow2.f32 %v3896_v3  ;;  %v3902_v22 = vmul.f32 1.442695, %v3891_v37  ;;  %v3890_v46 = vsub.f32 %v3858_v39, %v3872_v63 }
 0xf5f   :  { %v3881_v34 = vpop.xlane.xlu0 %3880 }
 0xf60   :  { %12732 = vpow2.f32 %v3902_v22  ;;  %v3900_v38 = vmul.f32 1.442695, %v3890_v46  ;;  %v3893_v33 = vsub.f32 %v3861_v15, %v3881_v34 }
 0xf61   :  { %v3878_v52 = vpop.xlane.xlu1 %3877 }
 0xf62   :  { %12734 = vpow2.f32 %v3900_v38  ;;  %v3906_v36 = vmul.f32 1.442695, %v3893_v33  ;;  %v3892_v4 = vsub.f32 %v3860_v55, %v3878_v52 }
 0xf63   :  { %v3887_v10 = vpop.xlane.xlu0 %3886 }
 0xf64   :  { %12736 = vpow2.f32 %v3906_v36  ;;  %v3904_v9 = vmul.f32 1.442695, %v3892_v4  ;;  %v3895_v40 = vsub.f32 %v3863_v43, %v3887_v10 }
 0xf65   :  { %v3884_v11 = vpop.xlane.xlu1 %3883 }
 0xf66   :  { %12738 = vpow2.f32 %v3904_v9  ;;  %v3910_v42 = vmul.f32 1.442695, %v3895_v40  ;;  %v3894_v59 = vsub.f32 %v3862_v44, %v3884_v11  ;;  %v12430_v44 = vld [vmem:[%s16016_s14 + $0x38] sm:$0xff]  }
 0xf67   :  { %11723 = vmatprep.subr.bf16.mxu0 %v12430_v44 }
 0xf68   :  { %12740 = vpow2.f32 %v3910_v42  ;;  %v3908_v19 = vmul.f32 1.442695, %v3894_v59  ;;  %11724 = vmatpush3.bf16.msra.mxu0 %v12430_v44 }
 0xf69   :  { %v12729_v12 = vpop.eup %12728 }
 0xf6a   :  { %12742 = vpow2.f32 %v3908_v19  ;;  %v3915_v54 = vsel %vm248_vm4, %v12729_v12, 0.0  ;;  %v12431_v19 = vld [vmem:[%s16016_s14 + $0x30] sm:$0xff]  }
 0xf6b   :  { %v12731_v39 = vpop.eup %12730  ;;  %3916 = vadd.xlane.f32.xlu0 %v3915_v54  ;;  %11725 = vmatprep.subr.bf16.mxu0 %v12431_v19 }
 0xf6c   :  { %v3912_v58 = vsel %vm248_vm4, %v12731_v39, 0.0  ;;  %11726 = vmatpush3.bf16.msra.mxu0 %v12431_v19 }
 0xf6d   :  { %v12733_v7 = vpop.eup %12732  ;;  %3913 = vadd.xlane.f32.xlu1 %v3912_v58 }
 0xf6e   :  { %v3921_v60 = vsel %vm248_vm4, %v12733_v7, 0.0 }
 0xf6f   :  { %v12735_v15 = vpop.eup %12734  ;;  %3922 = vadd.xlane.f32.xlu0 %v3921_v60 }
 0xf70   :  { %v3918_v5 = vsel %vm248_vm4, %v12735_v15, 0.0 }
 0xf71   :  { %v12737_v50 = vpop.eup %12736  ;;  %3919 = vadd.xlane.f32.xlu1 %v3918_v5 }
 0xf72   :  { %v3927_v14 = vsel %vm248_vm4, %v12737_v50, 0.0 }
 0xf73   :  { %v12739_v55 = vpop.eup %12738  ;;  %3928 = vadd.xlane.f32.xlu0 %v3927_v14 }
 0xf74   :  { %v3924_v53 = vsel %vm248_vm4, %v12739_v55, 0.0 }
 0xf75   :  { %v12741_v23 = vpop.eup %12740  ;;  %3925 = vadd.xlane.f32.xlu1 %v3924_v53 }
 0xf76   :  { %v3933_v13 = vsel %vm248_vm4, %v12741_v23, 0.0 }
 0xf77   :  { %v12743_v43 = vpop.eup %12742  ;;  %3934 = vadd.xlane.f32.xlu0 %v3933_v13 }
 0xf78   :  { %v3930_v26 = vsel %vm248_vm4, %v12743_v43, 0.0 }
 0xf79   :  { %3931 = vadd.xlane.f32.xlu1 %v3930_v26 }
 0xff4   :  { %v3917_v51 = vpop.xlane.xlu0 %3916 }
 0xff5   :  { %12744 = vrcp.f32 %v3917_v51  ;;  %v9864_v51 = vld [vmem:[%s16017_s15] ss:$0 sm:$0xff] }
 0xff6   :  { %v3914_v45 = vpop.xlane.xlu1 %3913 }
 0xff7   :  { %12746 = vrcp.f32 %v3914_v45 }
 0xff8   :  { %v3923_v28 = vpop.xlane.xlu0 %3922 }
 0xff9   :  { %12748 = vrcp.f32 %v3923_v28 }
 0xffa   :  { %v3920_v35 = vpop.xlane.xlu1 %3919 }
 0xffb   :  { %12750 = vrcp.f32 %v3920_v35 }
 0xffc   :  { %v3929_v27 = vpop.xlane.xlu0 %3928 }
 0xffd   :  { %12752 = vrcp.f32 %v3929_v27 }
 0xffe   :  { %v3926_v56 = vpop.xlane.xlu1 %3925 }
 0xfff   :  { %12754 = vrcp.f32 %v3926_v56 }
0x1000   :  { %v3935_v30 = vpop.xlane.xlu0 %3934 }
0x1001   :  { %12756 = vrcp.f32 %v3935_v30 }
0x1002   :  { %v3932_v3 = vpop.xlane.xlu1 %3931  ;;  %v12745_v37 = vpop.eup %12744 }
0x1003   :  { %12758 = vrcp.f32 %v3932_v3  ;;  %v3945_v46 = vmul.f32 %v12745_v37, %v12729_v12 }
0x1004   :  { %v12747_v63 = vpop.eup %12746 }
0x1005   :  { %v3944_v22 = vmul.f32 %v12747_v63, %v12731_v39 }
0x1006   :  { %v12749_v34 = vpop.eup %12748 }
0x1007   :  { %11711 = vmatprep.mubr.msk.f32.mxu1 %vm248_vm4, %v3944_v22  ;;  %v3947_v52 = vmul.f32 %v12749_v34, %v12733_v7 }
0x1008   :  { %v12751_v38 = vpop.eup %12750  ;;  %11712 = vmatmul.mubr.msk.f32.vlgmr.msra.gmra.mxu1 %vm248_vm4, %v3945_v46 }
0x1009   :  { %v3946_v33 = vmul.f32 %v12751_v38, %v12735_v15 }
0x100a   :  { %v12753_v36 = vpop.eup %12752 }
0x100b   :  { %11714 = vmatprep.mubr.msk.f32.mxu1 %vm248_vm4, %v3946_v33  ;;  %v3949_v9 = vmul.f32 %v12753_v36, %v12737_v50 }
0x100c   :  { %v12755_v4 = vpop.eup %12754  ;;  %11715 = vmatmul.mubr.msk.f32.gmra.mxu1 %vm248_vm4, %v3947_v52 }
0x100d   :  { %v3948_v10 = vmul.f32 %v12755_v4, %v12739_v55 }
0x100e   :  { %v12757_v40 = vpop.eup %12756 }
0x100f   :  { %11717 = vmatprep.mubr.msk.f32.mxu1 %vm248_vm4, %v3948_v10  ;;  %v3951_v59 = vmul.f32 %v12757_v40, %v12741_v23 }
0x1010   :  { %v12759_v11 = vpop.eup %12758  ;;  %11718 = vmatmul.mubr.msk.f32.gmra.mxu1 %vm248_vm4, %v3949_v9 }
0x1011   :  { %v3950_v42 = vmul.f32 %v12759_v11, %v12743_v43  ;;  %v2348_v43 = vadd.f32 %v13833_v6, %v13908_v32 }
0x1013   :  { %11720 = vmatprep.mubr.msk.f32.mxu1 %vm248_vm4, %v3950_v42  ;;  %v3274_v28 = vadd.f32 %v14139_v61, %v2348_v43 }
0x1014   :  { %11721 = vmatmul.mubr.msk.f32.gmra.mxu1 %vm248_vm4, %v3951_v59 }
0x1015   :  { %4472 = vmatprep.mubr.bf16.mxu1 %v13040_v0 }
0x10c8   :  { %v11713_v12 = vpop.f32.mrf.mxu1 }
0x10ca   :  { %v4042_v54 = vpop.f32.mrf.mxu1 }
0x10cb   :  { %v4081_v39 = vpack.c.bf16 %v11713_v12, %v4042_v54 }
0x10cc   :  { %v11716_v58 = vpop.f32.mrf.mxu1 }
0x10cd   :  { %11727 = vmatprep.mubr.msk.bf16.mxu0 %vm993_vm6, %v4081_v39 }
0x10ce   :  { %v4052_v7 = vpop.f32.mrf.mxu1 }
0x10cf   :  { %v4082_v60 = vpack.c.bf16 %v11716_v58, %v4052_v7 }
0x10d0   :  { %v11719_v15 = vpop.f32.mrf.mxu1 }
0x10d1   :  { %11728 = vmatmul.mubr.msk.bf16.vlgmr.msra.gmra.mxu0 %vm993_vm6, %v4082_v60 }
0x10d2   :  { %v4062_v5 = vpop.f32.mrf.mxu1 }
0x10d3   :  { %v4083_v50 = vpack.c.bf16 %v11719_v15, %v4062_v5 }
0x10d4   :  { %v11722_v14 = vpop.f32.mrf.mxu1 }
0x10d5   :  { %11731 = vmatprep.mubr.msk.bf16.mxu0 %vm993_vm6, %v4083_v50 }
0x10d6   :  { %v4072_v55 = vpop.f32.mrf.mxu1 }
0x10d7   :  { %v4084_v53 = vpack.c.bf16 %v11722_v14, %v4072_v55 }
0x10d9   :  { %11732 = vmatmul.mubr.msk.bf16.gmra.mxu0 %vm993_vm6, %v4084_v53 }
0x1191   :  { %v11729_v23 = vpop.f32.mrf.mxu0 }
0x1192   :  { %v4181_v26 = vadd.f32 %v11729_v23, %v14131_v24  ;;  %v2364_v24 = vadd.f32 %v13853_v16, %v13916_v57 }
0x1193   :  { %v4148_v13 = vpop.f32.mrf.mxu0 }
0x1194   :  { %v4179_v44 = vadd.f32 %v4148_v13, %v14135_v8  ;;  %v4196_v30 = vadd.f32 %v9864_v51, %v4181_v26  ;;  %v3278_v38 = vadd.f32 %v14153_v48, %v2364_v24  ;;  %v12444_v24 = vld [vmem:[%s16018_s18 + $0x30] ss:$8 sps:$4 sm:$0xff]  }
0x1195   :  { %v11730_v45 = vpop.f32.mrf.mxu0 }
0x1196   :  { %v4194_v35 = vadd.f32 %v9864_v51, %v4179_v44  ;;  %v4182_v27 = vadd.f32 %v11730_v45, %v14137_v25  ;;  %v4204_v46 = vadd.f32 %v4196_v30, %v13366_v1  ;;  %v12440_v30 = vld [vmem:[%s16018_s18 + $0x54] ss:$8 sps:$4 sm:$0xff]  }
0x1197   :  { %v4151_v56 = vpop.f32.mrf.mxu0 }
0x1198   :  { %v4180_v3 = vadd.f32 %v4151_v56, %v3274_v28  ;;  %v4202_v37 = vadd.f32 %v4194_v35, %v13358_v41  ;;  %v4197_v8 = vadd.f32 %v9864_v51, %v4182_v27  ;;  %v12437_v28 = vld [vmem:[%s16018_s18 + $0x64] ss:$8 sps:$4 sm:$0xff]   ;;  %v12435_v35 = vld [vmem:[%s16018_s18 + $0x60] ss:$8 sps:$4 sm:$0xff]  }
0x1199   :  { %v11733_v6 = vpop.f32.mrf.mxu0 }
0x119a   :  { %v4195_v32 = vadd.f32 %v9864_v51, %v4180_v3  ;;  %4212 = vadd.xlane.f32.xlu1 %v4202_v37  ;;  %v4185_v22 = vadd.f32 %v11733_v6, %v14145_v47  ;;  %v4205_v52 = vadd.f32 %v4197_v8, %v13368_v2  ;;  %v12432_v2 = vld [vmem:[%s16018_s18 + $0x70] ss:$8 sps:$4 sm:$0xff]   ;;  %v12441_v6 = vld [vmem:[%s16018_s18 + $0x40] ss:$8 sps:$4 sm:$0xff]   ;;  %v12449_v8 = vld [vmem:[%s16018_s18 + $0x24] ss:$8 sps:$4 sm:$0xff]  }
0x119b   :  { %v4164_v63 = vpop.f32.mrf.mxu0  ;;  %v12438_v3 = vld [vmem:[%s16018_s18 + $0x50] ss:$8 sps:$4 sm:$0xff]  }
0x119c   :  { %v4183_v61 = vadd.f32 %v4164_v63, %v14149_v31  ;;  %v4203_v25 = vadd.f32 %v4195_v32, %v13360_v62  ;;  %v4200_v16 = vadd.f32 %v9864_v51, %v4185_v22  ;;  %v12446_v32 = vld [vmem:[%s16018_s18 + $0x34] ss:$8 sps:$4 sm:$0xff]   ;;  %v12447_v63 = vld [vmem:[%s16018_s18 + $0x20] ss:$8 sps:$4 sm:$0xff]  }
0x119d   :  { %v11734_v34 = vpop.f32.mrf.mxu0  ;;  %v12452_v22 = vld [vmem:[%s16018_s18 + $0x14] ss:$8 sps:$4 sm:$0xff]  }
0x119e   :  { %v4198_v41 = vadd.f32 %v9864_v51, %v4183_v61  ;;  %4216 = vadd.xlane.f32.xlu1 %v4204_v46  ;;  %4214 = vadd.xlane.f32.xlu0 %v4203_v25  ;;  %v4186_v57 = vadd.f32 %v11734_v34, %v14151_v49  ;;  %v4208_v48 = vadd.f32 %v4200_v16, %v13403_v20  ;;  %v12450_v61 = vld [vmem:[%s16018_s18 + $0x10] ss:$8 sps:$4 sm:$0xff]  }
0x119f   :  { %v4167_v33 = vpop.f32.mrf.mxu0 }
0x11a0   :  { %v4184_v36 = vadd.f32 %v4167_v33, %v3278_v38  ;;  %v4206_v47 = vadd.f32 %v4198_v41, %v13392_v17  ;;  %v4201_v1 = vadd.f32 %v9864_v51, %v4186_v57  ;;  %v12434_v17 = vld [vmem:[%s16018_s18 + $0x74] ss:$8 sps:$4 sm:$0xff]  }
0x11a1   :  { %4440 = vmatprep.subr.bf16.mxu1 %v12434_v17 }
0x11a2   :  { %v4199_v31 = vadd.f32 %v9864_v51, %v4184_v36  ;;  %4218 = vadd.xlane.f32.xlu0 %v4205_v52  ;;  %4220 = vadd.xlane.f32.xlu1 %v4206_v47  ;;  %v4209_v4 = vadd.f32 %v4201_v1, %v13405_v21 }
0x11a3   :  { %4441 = vmatpush1.bf16.msra.mxu1 %v12432_v2 }
0x11a4   :  { %v4207_v62 = vadd.f32 %v4199_v31, %v13394_v18  ;;  %4442 = vmatprep.subr.bf16.mxu1 %v12437_v28 }
0x11a6   :  { %4222 = vadd.xlane.f32.xlu0 %v4207_v62  ;;  %4224 = vadd.xlane.f32.xlu1 %v4208_v48 }
0x11a7   :  { %4443 = vmatpush1.bf16.msra.mxu1 %v12435_v35 }
0x11a8   :  { %4444 = vmatprep.subr.bf16.mxu1 %v12440_v30 }
0x11aa   :  { %4226 = vadd.xlane.f32.xlu0 %v4209_v4 }
0x11ab   :  { %4445 = vmatpush1.bf16.msra.mxu1 %v12438_v3 }
0x1223   :  { %v4213_v49 = vpop.xlane.xlu1 %4212 }
0x1224   :  { %v4228_v10 = vmul.f32 0.0078125, %v4213_v49 }
0x1226   :  { %v14262_v18 = vsub.f32 %v4202_v37, %v4228_v10  ;;  %v12443_v37 = vld [vmem:[%s16018_s18 + $0x44] ss:$8 sps:$4 sm:$0xff]  }
0x1227   :  { %v4215_v20 = vpop.xlane.xlu0 %4214  ;;  %v4217_v9 = vpop.xlane.xlu1 %4216  ;;  %4446 = vmatprep.subr.bf16.mxu1 %v12443_v37 }
0x1228   :  { %v4229_v40 = vmul.f32 0.0078125, %v4215_v20  ;;  %v4230_v11 = vmul.f32 0.0078125, %v4217_v9  ;;  %v4244_v21 = vmul.f32 %v14262_v18, %v14262_v18  ;;  %4447 = vmatpush1.bf16.msra.mxu1 %v12441_v6 }
0x1229   :  { %4448 = vmatprep.subr.bf16.mxu1 %v12446_v32 }
0x122a   :  { %v14266_v42 = vsub.f32 %v4203_v25, %v4229_v40  ;;  %v14268_v59 = vsub.f32 %v4204_v46, %v4230_v11  ;;  %4252 = vadd.xlane.f32.xlu1 %v4244_v21  ;;  %v12455_v46 = vld [vmem:[%s16018_s18 + $0x4] ss:$8 sps:$4 sm:$0xff]   ;;  %v12453_v25 = vld [vmem:[%s16018_s18] ss:$8 sps:$4 sm:$0xff]  }
0x122b   :  { %v4219_v19 = vpop.xlane.xlu0 %4218  ;;  %v4221_v12 = vpop.xlane.xlu1 %4220 }
0x122c   :  { %v4231_v54 = vmul.f32 0.0078125, %v4219_v19  ;;  %v4232_v39 = vmul.f32 0.0078125, %v4221_v12  ;;  %v4245_v58 = vmul.f32 %v14266_v42, %v14266_v42  ;;  %v4246_v7 = vmul.f32 %v14268_v59, %v14268_v59  ;;  %4449 = vmatpush1.bf16.msra.mxu1 %v12444_v24  ;;  %v9865_v12 = vld [vmem:[%s16019_s16] ss:$0 sm:$0xff] }
0x122d   :  { %4450 = vmatprep.subr.bf16.mxu1 %v12449_v8 }
0x122e   :  { %v14274_v60 = vsub.f32 %v4205_v52, %v4231_v54  ;;  %v14276_v15 = vsub.f32 %v4206_v47, %v4232_v39  ;;  %4254 = vadd.xlane.f32.xlu0 %v4245_v58  ;;  %4256 = vadd.xlane.f32.xlu1 %v4246_v7 }
0x122f   :  { %v4223_v5 = vpop.xlane.xlu0 %4222  ;;  %v4225_v50 = vpop.xlane.xlu1 %4224 }
0x1230   :  { %v4233_v14 = vmul.f32 0.0078125, %v4223_v5  ;;  %v4234_v55 = vmul.f32 0.0078125, %v4225_v50  ;;  %v4247_v53 = vmul.f32 %v14274_v60, %v14274_v60  ;;  %v4248_v23 = vmul.f32 %v14276_v15, %v14276_v15  ;;  %4451 = vmatpush1.bf16.msra.mxu1 %v12447_v63 }
0x1231   :  { %4452 = vmatprep.subr.bf16.mxu1 %v12452_v22 }
0x1232   :  { %v14282_v13 = vsub.f32 %v4207_v62, %v4233_v14  ;;  %v14284_v43 = vsub.f32 %v4208_v48, %v4234_v55  ;;  %4258 = vadd.xlane.f32.xlu0 %v4247_v53  ;;  %4260 = vadd.xlane.f32.xlu1 %v4248_v23  ;;  %v9866_v14 = vld [vmem:[%s16020_s17] ss:$0 sm:$0xff] }
0x1233   :  { %v4227_v26 = vpop.xlane.xlu0 %4226 }
0x1234   :  { %v4235_v44 = vmul.f32 0.0078125, %v4227_v26  ;;  %v4249_v51 = vmul.f32 %v14282_v13, %v14282_v13  ;;  %v4250_v45 = vmul.f32 %v14284_v43, %v14284_v43  ;;  %4453 = vmatpush1.bf16.msra.mxu1 %v12450_v61 }
0x1235   :  { %4454 = vmatprep.subr.bf16.mxu1 %v12455_v46 }
0x1236   :  { %v14296_v27 = vsub.f32 %v4209_v4, %v4235_v44  ;;  %4262 = vadd.xlane.f32.xlu0 %v4249_v51  ;;  %4264 = vadd.xlane.f32.xlu1 %v4250_v45 }
0x1238   :  { %v4251_v56 = vmul.f32 %v14296_v27, %v14296_v27  ;;  %4455 = vmatpush1.bf16.msra.mxu1 %v12453_v25 }
0x123a   :  { %4266 = vadd.xlane.f32.xlu0 %v4251_v56 }
0x12b3   :  { %v4253_v34 = vpop.xlane.xlu1 %4252 }
0x12b4   :  { %v4268_v38 = vmul.f32 0.0078125, %v4253_v34 }
0x12b6   :  { %v4276_v41 = vadd.f32 1e-05, %v4268_v38 }
0x12b7   :  { %v4255_v33 = vpop.xlane.xlu0 %4254  ;;  %v4257_v52 = vpop.xlane.xlu1 %4256 }
0x12b8   :  { %12760 = vrsqrt.f32 %v4276_v41  ;;  %v4269_v16 = vmul.f32 0.0078125, %v4255_v33  ;;  %v4270_v57 = vmul.f32 0.0078125, %v4257_v52  ;;  %v12458_v41 = vld [vmem:[%s16021_s20 + $0x70] sm:$0xff]   ;;  %v12460_v52 = vld [vmem:[%s16021_s20 + $0x68] sm:$0xff]  }
0x12b9   :  { %v12459_v33 = vld [vmem:[%s16021_s20 + $0x30] sm:$0xff]  }
0x12ba   :  { %v4277_v36 = vadd.f32 1e-05, %v4269_v16  ;;  %v4278_v47 = vadd.f32 1e-05, %v4270_v57  ;;  %v12461_v16 = vld [vmem:[%s16021_s20 + $0x28] sm:$0xff]   ;;  %v12462_v57 = vld [vmem:[%s16021_s20 + $0x60] sm:$0xff]  }
0x12bb   :  { %v4259_v31 = vpop.xlane.xlu0 %4258  ;;  %v4261_v1 = vpop.xlane.xlu1 %4260 }
0x12bc   :  { %12762 = vrsqrt.f32 %v4277_v36  ;;  %v4271_v62 = vmul.f32 0.0078125, %v4259_v31  ;;  %v4272_v4 = vmul.f32 0.0078125, %v4261_v1  ;;  %v12463_v36 = vld [vmem:[%s16021_s20 + $0x20] sm:$0xff]   ;;  %v12465_v31 = vld [vmem:[%s16021_s20 + $0x18] sm:$0xff]   ;;  %v12466_v1 = vld [vmem:[%s16021_s20 + $0x50] sm:$0xff]  }
0x12bd   :  { %12764 = vrsqrt.f32 %v4278_v47  ;;  %v12464_v47 = vld [vmem:[%s16021_s20 + $0x58] sm:$0xff]  }
0x12be   :  { %v4279_v48 = vadd.f32 1e-05, %v4271_v62  ;;  %v4280_v49 = vadd.f32 1e-05, %v4272_v4  ;;  %v12467_v62 = vld [vmem:[%s16021_s20 + $0x10] sm:$0xff]   ;;  %v12469_v4 = vld [vmem:[%s16021_s20 + $0x8] sm:$0xff]  }
0x12bf   :  { %v4263_v2 = vpop.xlane.xlu0 %4262  ;;  %v4265_v20 = vpop.xlane.xlu1 %4264 }
0x12c0   :  { %12766 = vrsqrt.f32 %v4279_v48  ;;  %v4273_v17 = vmul.f32 0.0078125, %v4263_v2  ;;  %v4274_v21 = vmul.f32 0.0078125, %v4265_v20  ;;  %v12468_v48 = vld [vmem:[%s16021_s20 + $0x48] sm:$0xff]   ;;  %v12470_v2 = vld [vmem:[%s16021_s20 + $0x40] sm:$0xff]  }
0x12c1   :  { %v4348_v20 = vld [vmem:[%s16022_s19] sm:$0x3] }
0x12c2   :  { %v4281_v10 = vadd.f32 1e-05, %v4273_v17  ;;  %v4282_v58 = vadd.f32 1e-05, %v4274_v21  ;;  %v12471_v17 = vld [vmem:[%s16021_s20] sm:$0xff]  }
0x12c3   :  { %v4267_v9 = vpop.xlane.xlu0 %4266 }
0x12c4   :  { %12768 = vrsqrt.f32 %v4281_v10  ;;  %v4275_v40 = vmul.f32 0.0078125, %v4267_v9 }
0x12c5   :  { %v12761_v11 = vpop.eup %12760  ;;  %12770 = vrsqrt.f32 %v4280_v49  ;;  %v14426_v49 = vshrl.u32 %v86_v29, 7 }
0x12c6   :  { %v4292_v19 = vmul.f32 %v12761_v11, %v14262_v18  ;;  %v4283_v54 = vadd.f32 1e-05, %v4275_v40 }
0x12c7   :  { %v4352_v10 = vsub.s32 0, %v14426_v49  ;;  %v16034_v9 = vsub.s32 1, %v14426_v49 }
0x12c8   :  { %v4306_v5 = vmul.f32 %v9865_v12, %v4292_v19  ;;  %12772 = vrsqrt.f32 %v4283_v54 }
0x12c9   :  { %v12763_v39 = vpop.eup %12762  ;;  %12774 = vrsqrt.f32 %v4282_v58  ;;  %v14435_v40 = vrot.slane %v4348_v20, %v4352_v10  ;;  %v14439_v11 = vrot.slane %v4348_v20, %v16034_v9 }
0x12ca   :  { %v4293_v7 = vmul.f32 %v12763_v39, %v14266_v42  ;;  %v12765_v50 = vpop.eup %12764  ;;  %v14344_v18 = vadd.f32 %v9866_v14, %v4306_v5 }
0x12cb   :  { %v4294_v26 = vmul.f32 %v12765_v50, %v14268_v59 }
0x12cc   :  { %v4307_v55 = vmul.f32 %v9865_v12, %v4293_v7 }
0x12cd   :  { %v12767_v53 = vpop.eup %12766  ;;  %v4308_v28 = vmul.f32 %v9865_v12, %v4294_v26 }
0x12ce   :  { %v14346_v23 = vadd.f32 %v9866_v14, %v4307_v55  ;;  %v4295_v44 = vmul.f32 %v12767_v53, %v14274_v60 }
0x12cf   :  { %v14356_v3 = vadd.f32 %v9866_v14, %v4308_v28 }
0x12d0   :  { %v4328_v42 = vpack.c.bf16 %v14346_v23, %v14344_v18  ;;  %v4309_v51 = vmul.f32 %v9865_v12, %v4295_v44 }
0x12d1   :  { %v12769_v45 = vpop.eup %12768 }
0x12d2   :  { %4473 = vmatmul.mubr.bf16.vlgmr.msra.gmra.mxu1 %v4328_v42  ;;  %v12771_v35 = vpop.eup %12770  ;;  %v14353_v56 = vadd.f32 %v9866_v14, %v4309_v51  ;;  %v4297_v30 = vmul.f32 %v12769_v45, %v14282_v13 }
0x12d3   :  { %4482 = vmatprep.mubr.bf16.mxu1 %v13040_v0  ;;  %v4296_v59 = vmul.f32 %v12771_v35, %v14276_v15 }
0x12d4   :  { %v4329_v60 = vpack.c.bf16 %v14353_v56, %v14356_v3  ;;  %v4311_v37 = vmul.f32 %v9865_v12, %v4297_v30 }
0x12d5   :  { %v12773_v6 = vpop.eup %12772  ;;  %v4310_v24 = vmul.f32 %v9865_v12, %v4296_v59 }
0x12d6   :  { %v12775_v32 = vpop.eup %12774  ;;  %v14362_v8 = vadd.f32 %v9866_v14, %v4311_v37  ;;  %v4299_v63 = vmul.f32 %v12773_v6, %v14296_v27  ;;  %v12457_v27 = vld [vmem:[%s16021_s20 + $0x38] sm:$0xff]  }
0x12d7   :  { %v14365_v22 = vadd.f32 %v9866_v14, %v4310_v24  ;;  %v4298_v13 = vmul.f32 %v12775_v32, %v14284_v43  ;;  %v12456_v43 = vld [vmem:[%s16021_s20 + $0x78] sm:$0xff]  }
0x12d8   :  { %v4313_v61 = vmul.f32 %v9865_v12, %v4299_v63  ;;  %10759 = vmatprep.subr.bf16.mxu0 %v12456_v43 }
0x12d9   :  { %v4330_v15 = vpack.c.bf16 %v14362_v8, %v14365_v22  ;;  %v4312_v46 = vmul.f32 %v9865_v12, %v4298_v13  ;;  %10760 = vmatpush3.bf16.msra.mxu0 %v12457_v27 }
0x12da   :  { %4483 = vmatmul.mubr.bf16.gmra.mxu1 %v4329_v60  ;;  %v14371_v25 = vadd.f32 %v9866_v14, %v4313_v61  ;;  %10761 = vmatprep.subr.bf16.mxu0 %v12458_v41 }
0x12db   :  { %4492 = vmatprep.mubr.bf16.mxu1 %v13040_v0  ;;  %v14373_v34 = vadd.f32 %v9866_v14, %v4312_v46 }
0x12dd   :  { %v4331_v38 = vpack.c.bf16 %v14371_v25, %v14373_v34  ;;  %10762 = vmatpush3.bf16.msra.mxu0 %v12459_v33 }
0x12de   :  { %10763 = vmatprep.subr.bf16.mxu0 %v12460_v52 }
0x12e1   :  { %10764 = vmatpush3.bf16.msra.mxu0 %v12461_v16 }
0x12e2   :  { %4493 = vmatmul.mubr.bf16.gmra.mxu1 %v4330_v15  ;;  %10765 = vmatprep.subr.bf16.mxu0 %v12462_v57 }
0x12e3   :  { %4502 = vmatprep.mubr.bf16.mxu1 %v13040_v0 }
0x12e5   :  { %10766 = vmatpush3.bf16.msra.mxu0 %v12463_v36 }
0x12e6   :  { %10767 = vmatprep.subr.bf16.mxu0 %v12464_v47 }
0x12e9   :  { %10768 = vmatpush3.bf16.msra.mxu0 %v12465_v31 }
0x12ea   :  { %4503 = vmatmul.mubr.bf16.gmra.mxu1 %v4331_v38  ;;  %10769 = vmatprep.subr.bf16.mxu0 %v12466_v1 }
0x12ed   :  { %10770 = vmatpush3.bf16.msra.mxu0 %v12467_v62 }
0x12ee   :  { %10771 = vmatprep.subr.bf16.mxu0 %v12468_v48 }
0x12f1   :  { %10772 = vmatpush3.bf16.msra.mxu0 %v12469_v4 }
0x12f2   :  { %10773 = vmatprep.subr.bf16.mxu0 %v12470_v2 }
0x12f5   :  { %10774 = vmatpush3.bf16.msra.mxu0 %v12471_v17 }
0x1392   :  { %v4474_v21 = vpop.f32.mrf.mxu1 }
0x1393   :  { %v14442_v29 = vadd.f32 %v4474_v21, %v14435_v40 }
0x1394   :  { %v4476_v19 = vpop.f32.mrf.mxu1 }
0x1395   :  { %v4529_v12 = vmul.f32 0.044715, %v14442_v29  ;;  %v14446_v54 = vadd.f32 %v4476_v19, %v14439_v11 }
0x1396   :  { %v4478_v39 = vpop.f32.mrf.mxu1 }
0x1397   :  { %v4545_v58 = vmul.f32 %v4529_v12, %v14442_v29  ;;  %v4530_v7 = vmul.f32 0.044715, %v14446_v54  ;;  %v14451_v5 = vadd.f32 %v4478_v39, %v14435_v40 }
0x1398   :  { %v4480_v50 = vpop.f32.mrf.mxu1 }
0x1399   :  { %v4561_v14 = vmul.f32 %v4545_v58, %v14442_v29  ;;  %v4546_v55 = vmul.f32 %v4530_v7, %v14446_v54  ;;  %v4531_v53 = vmul.f32 0.044715, %v14451_v5  ;;  %v14457_v26 = vadd.f32 %v4480_v50, %v14439_v11 }
0x139a   :  { %v4484_v44 = vpop.f32.mrf.mxu1 }
0x139b   :  { %v4577_v42 = vadd.f32 %v4561_v14, %v14442_v29  ;;  %v4562_v51 = vmul.f32 %v4546_v55, %v14446_v54  ;;  %v4547_v45 = vmul.f32 %v4531_v53, %v14451_v5  ;;  %v14463_v28 = vadd.f32 %v4484_v44, %v14435_v40 }
0x139c   :  { %v4532_v35 = vmul.f32 0.044715, %v14457_v26  ;;  %v4486_v30 = vpop.f32.mrf.mxu1 }
0x139d   :  { %v4593_v59 = vmul.f32 0.7978846, %v4577_v42  ;;  %v4563_v60 = vmul.f32 %v4547_v45, %v14451_v5  ;;  %v4533_v37 = vmul.f32 0.044715, %v14463_v28  ;;  %v14469_v6 = vadd.f32 %v4486_v30, %v14439_v11 }
0x139e   :  { %v4548_v32 = vmul.f32 %v4532_v35, %v14457_v26  ;;  %v4488_v24 = vpop.f32.mrf.mxu1  ;;  %v4578_v63 = vadd.f32 %v4562_v51, %v14446_v54 }
0x139f   :  { %v4579_v13 = vadd.f32 %v4563_v60, %v14451_v5  ;;  %v4549_v15 = vmul.f32 %v4533_v37, %v14463_v28  ;;  %v4534_v61 = vmul.f32 0.044715, %v14469_v6  ;;  %12776 = vtanh.f32 %v4593_v59 }
0x13a0   :  { %v4564_v46 = vmul.f32 %v4548_v32, %v14457_v26  ;;  %v14478_v38 = vadd.f32 %v4488_v24, %v14435_v40  ;;  %v4490_v43 = vpop.f32.mrf.mxu1  ;;  %v4594_v27 = vmul.f32 0.7978846, %v4578_v63 }
0x13a1   :  { %v4595_v41 = vmul.f32 0.7978846, %v4579_v13  ;;  %v4565_v33 = vmul.f32 %v4549_v15, %v14463_v28  ;;  %v4550_v52 = vmul.f32 %v4534_v61, %v14469_v6  ;;  %v14483_v16 = vadd.f32 %v4490_v43, %v14439_v11 }
0x13a2   :  { %v4535_v57 = vmul.f32 0.044715, %v14478_v38  ;;  %v4494_v36 = vpop.f32.mrf.mxu1  ;;  %v4580_v47 = vadd.f32 %v4564_v46, %v14457_v26  ;;  %12778 = vtanh.f32 %v4594_v27 }
0x13a3   :  { %12780 = vtanh.f32 %v4595_v41  ;;  %v4581_v31 = vadd.f32 %v4565_v33, %v14463_v28  ;;  %v4566_v1 = vmul.f32 %v4550_v52, %v14469_v6  ;;  %v4536_v62 = vmul.f32 0.044715, %v14483_v16 }
0x13a4   :  { %v4551_v48 = vmul.f32 %v4535_v57, %v14478_v38  ;;  %v14492_v4 = vadd.f32 %v4494_v36, %v14435_v40  ;;  %v4496_v2 = vpop.f32.mrf.mxu1  ;;  %v4596_v17 = vmul.f32 0.7978846, %v4580_v47  ;;  %v4513_v36 = vmul.f32 0.5, %v14442_v29 }
0x13a5   :  { %v4552_v20 = vmul.f32 %v4536_v62, %v14483_v16  ;;  %v14496_v21 = vadd.f32 %v4496_v2, %v14439_v11  ;;  %v4582_v19 = vadd.f32 %v4566_v1, %v14469_v6  ;;  %v4597_v7 = vmul.f32 0.7978846, %v4581_v31 }
0x13a6   :  { %v4567_v12 = vmul.f32 %v4551_v48, %v14478_v38  ;;  %v4537_v39 = vmul.f32 0.044715, %v14492_v4  ;;  %v4498_v58 = vpop.f32.mrf.mxu1  ;;  %12782 = vtanh.f32 %v4596_v17  ;;  %v4515_v47 = vmul.f32 0.5, %v14451_v5 }
0x13a7   :  { %v4568_v50 = vmul.f32 %v4552_v20, %v14483_v16  ;;  %v4538_v14 = vmul.f32 0.044715, %v14496_v21  ;;  %v14504_v55 = vadd.f32 %v4498_v58, %v14435_v40  ;;  %v4598_v51 = vmul.f32 0.7978846, %v4582_v19 }
0x13a8   :  { %v4583_v53 = vadd.f32 %v4567_v12, %v14478_v38  ;;  %v4553_v44 = vmul.f32 %v4537_v39, %v14492_v4  ;;  %v4500_v42 = vpop.f32.mrf.mxu1  ;;  %v4514_v1 = vmul.f32 0.5, %v14446_v54  ;;  %v4516_v5 = vmul.f32 0.5, %v14457_v26 }
0x13a9   :  { %v4554_v45 = vmul.f32 %v4538_v14, %v14496_v21  ;;  %v4539_v35 = vmul.f32 0.044715, %v14504_v55  ;;  %v14511_v30 = vadd.f32 %v4500_v42, %v14439_v11  ;;  %v4584_v59 = vadd.f32 %v4568_v50, %v14483_v16 }
0x13aa   :  { %v4599_v60 = vmul.f32 0.7978846, %v4583_v53  ;;  %v4569_v37 = vmul.f32 %v4553_v44, %v14492_v4  ;;  %v4504_v32 = vpop.f32.mrf.mxu1  ;;  %12784 = vtanh.f32 %v4598_v51 }
0x13ab   :  { %12786 = vtanh.f32 %v4597_v7  ;;  %v4555_v24 = vmul.f32 %v4539_v35, %v14504_v55  ;;  %v4540_v63 = vmul.f32 0.044715, %v14511_v30  ;;  %v14518_v13 = vadd.f32 %v4504_v32, %v14435_v40 }
0x13ac   :  { %12788 = vtanh.f32 %v4599_v60  ;;  %v4585_v15 = vadd.f32 %v4569_v37, %v14492_v4  ;;  %v4570_v61 = vmul.f32 %v4554_v45, %v14496_v21  ;;  %v4506_v46 = vpop.f32.mrf.mxu1  ;;  %v4600_v43 = vmul.f32 0.7978846, %v4584_v59  ;;  %v12777_v27 = vpop.eup %12776 }
0x13ad   :  { %v4571_v41 = vmul.f32 %v4555_v24, %v14504_v55  ;;  %v4556_v33 = vmul.f32 %v4540_v63, %v14511_v30  ;;  %v4541_v52 = vmul.f32 0.044715, %v14518_v13  ;;  %v14526_v57 = vadd.f32 %v4506_v46, %v14439_v11 }
0x13ae   :  { %v4508_v31 = vpop.f32.mrf.mxu1  ;;  %12790 = vtanh.f32 %v4600_v43  ;;  %v4601_v12 = vmul.f32 0.7978846, %v4585_v15  ;;  %v4586_v54 = vadd.f32 %v4570_v61, %v14496_v21  ;;  %v4625_v35 = vadd.f32 1.0, %v12777_v27 }
0x13af   :  { %v12779_v62 = vpop.eup %12778  ;;  %v4587_v48 = vadd.f32 %v4571_v41, %v14504_v55  ;;  %v4572_v2 = vmul.f32 %v4556_v33, %v14511_v30  ;;  %v4557_v17 = vmul.f32 %v4541_v52, %v14518_v13  ;;  %v4542_v20 = vmul.f32 0.044715, %v14526_v57 }
0x13b0   :  { %v12781_v19 = vpop.eup %12780  ;;  %v14536_v39 = vadd.f32 %v4508_v31, %v14435_v40  ;;  %v4510_v29 = vpop.f32.mrf.mxu1  ;;  %v4626_v44 = vadd.f32 1.0, %v12779_v62  ;;  %v4602_v37 = vmul.f32 0.7978846, %v4586_v54  ;;  %v4641_v33 = vmul.f32 %v4625_v35, %v4513_v36 }
0x13b1   :  { %v4603_v58 = vmul.f32 0.7978846, %v4587_v48  ;;  %v4573_v7 = vmul.f32 %v4557_v17, %v14518_v13  ;;  %v4558_v50 = vmul.f32 %v4542_v20, %v14526_v57  ;;  %v14543_v14 = vadd.f32 %v4510_v29, %v14439_v11 }
0x13b2   :  { %v4543_v53 = vmul.f32 0.044715, %v14536_v39  ;;  %v4627_v42 = vadd.f32 1.0, %v12781_v19  ;;  %v4588_v40 = vadd.f32 %v4572_v2, %v14511_v30  ;;  %v4642_v61 = vmul.f32 %v4626_v44, %v4514_v1 }
0x13b3   :  { %v12783_v51 = vpop.eup %12782  ;;  %12792 = vtanh.f32 %v4603_v58  ;;  %v4589_v26 = vadd.f32 %v4573_v7, %v14518_v13  ;;  %v4544_v45 = vmul.f32 0.044715, %v14543_v14  ;;  %v4574_v11 = vmul.f32 %v4558_v50, %v14526_v57 }
0x13b4   :  { %12794 = vtanh.f32 %v4601_v12  ;;  %v4559_v59 = vmul.f32 %v4543_v53, %v14536_v39  ;;  %v4628_v60 = vadd.f32 1.0, %v12783_v51  ;;  %v4643_v24 = vmul.f32 %v4627_v42, %v4515_v47 }
0x13b5   :  { %v4560_v32 = vmul.f32 %v4544_v45, %v14543_v14  ;;  %v4604_v63 = vmul.f32 0.7978846, %v4588_v40  ;;  %12796 = vtanh.f32 %v4602_v37  ;;  %v4605_v41 = vmul.f32 0.7978846, %v4589_v26 }
0x13b6   :  { %v4575_v15 = vmul.f32 %v4559_v59, %v14536_v39  ;;  %v4644_v46 = vmul.f32 %v4628_v60, %v4516_v5  ;;  %v4657_v2 = vpack.c.bf16 %v4643_v24, %v4641_v33  ;;  %v4590_v47 = vadd.f32 %v4574_v11, %v14526_v57 }
0x13b7   :  { %v12785_v43 = vpop.eup %12784  ;;  %v4576_v27 = vmul.f32 %v4560_v32, %v14543_v14  ;;  %12798 = vtanh.f32 %v4604_v63  ;;  %v4519_v19 = vmul.f32 0.5, %v14478_v38  ;;  %v4518_v58 = vmul.f32 0.5, %v14469_v6 }
0x13b8   :  { %v12787_v52 = vpop.eup %12786  ;;  %v4591_v31 = vadd.f32 %v4575_v15, %v14536_v39  ;;  %v4658_v62 = vpack.c.bf16 %v4644_v46, %v4642_v61  ;;  %v4630_v1 = vadd.f32 1.0, %v12785_v43  ;;  %12800 = vtanh.f32 %v4605_v41 }
0x13b9   :  { %v12789_v48 = vpop.eup %12788  ;;  %v4592_v17 = vadd.f32 %v4576_v27, %v14543_v14  ;;  %v4629_v36 = vadd.f32 1.0, %v12787_v52  ;;  %v4606_v5 = vmul.f32 0.7978846, %v4590_v47  ;;  %v4520_v7 = vmul.f32 0.5, %v14483_v16 }
0x13ba   :  { %v4607_v20 = vmul.f32 0.7978846, %v4591_v31  ;;  %4832 = vmatprep.mubr.bf16.mxu0 %v4658_v62  ;;  %v4631_v12 = vadd.f32 1.0, %v12789_v48  ;;  %v4517_v53 = vmul.f32 0.5, %v14463_v28  ;;  %v4646_v42 = vmul.f32 %v4630_v1, %v4518_v58 }
0x13bb   :  { %v12791_v29 = vpop.eup %12790  ;;  %4833 = vmatmul.mubr.bf16.vlgmr.msra.gmra.mxu0 %v4657_v2  ;;  %v4608_v54 = vmul.f32 0.7978846, %v4592_v17  ;;  %v4523_v16 = vmul.f32 0.5, %v14504_v55  ;;  %v4522_v28 = vmul.f32 0.5, %v14496_v21  ;;  %v4524_v32 = vmul.f32 0.5, %v14511_v30 }
0x13bc   :  { %12802 = vtanh.f32 %v4607_v20  ;;  %v4632_v50 = vadd.f32 1.0, %v12791_v29  ;;  %v4647_v44 = vmul.f32 %v4631_v12, %v4519_v19  ;;  %v4645_v38 = vmul.f32 %v4629_v36, %v4517_v53 }
0x13bd   :  { %12804 = vtanh.f32 %v4606_v5  ;;  %v4521_v63 = vmul.f32 0.5, %v14492_v4  ;;  %v4526_v21 = vmul.f32 0.5, %v14526_v57  ;;  %v4528_v30 = vmul.f32 0.5, %v14543_v14  ;;  %v9883_v57 = vld [vmem:[%s16023_s21] ss:$0 sm:$0xff] }
0x13be   :  { %v4648_v40 = vmul.f32 %v4632_v50, %v4520_v7  ;;  %12806 = vtanh.f32 %v4608_v54  ;;  %v4659_v35 = vpack.c.bf16 %v4647_v44, %v4645_v38  ;;  %v4527_v4 = vmul.f32 0.5, %v14536_v39 }
0x13bf   :  { %v4525_v1 = vmul.f32 0.5, %v14518_v13 }
0x13c0   :  { %v12793_v51 = vpop.eup %12792  ;;  %v4660_v26 = vpack.c.bf16 %v4648_v40, %v4646_v42 }
0x13c1   :  { %v12795_v45 = vpop.eup %12794  ;;  %v4635_v60 = vadd.f32 1.0, %v12793_v51 }
0x13c2   :  { %4840 = vmatprep.mubr.bf16.mxu0 %v4660_v26  ;;  %v12797_v59 = vpop.eup %12796  ;;  %v4633_v11 = vadd.f32 1.0, %v12795_v45 }
0x13c3   :  { %4841 = vmatmul.mubr.bf16.gmra.mxu0 %v4659_v35  ;;  %v4634_v6 = vadd.f32 1.0, %v12797_v59  ;;  %v4651_v15 = vmul.f32 %v4635_v60, %v4523_v16 }
0x13c4   :  { %v12799_v37 = vpop.eup %12798  ;;  %v4649_v27 = vmul.f32 %v4633_v11, %v4521_v63 }
0x13c5   :  { %v4636_v24 = vadd.f32 1.0, %v12799_v37  ;;  %v12801_v61 = vpop.eup %12800  ;;  %v4650_v46 = vmul.f32 %v4634_v6, %v4522_v28 }
0x13c6   :  { %v4661_v62 = vpack.c.bf16 %v4651_v15, %v4649_v27  ;;  %v4637_v47 = vadd.f32 1.0, %v12801_v61 }
0x13c7   :  { %v4652_v43 = vmul.f32 %v4636_v24, %v4524_v32 }
0x13c8   :  { %v4653_v29 = vmul.f32 %v4637_v47, %v4525_v1 }
0x13c9   :  { %v12803_v41 = vpop.eup %12802  ;;  %v4662_v52 = vpack.c.bf16 %v4652_v43, %v4650_v46 }
0x13ca   :  { %v12805_v33 = vpop.eup %12804  ;;  %v4639_v55 = vadd.f32 1.0, %v12803_v41 }
0x13cb   :  { %v12807_v31 = vpop.eup %12806  ;;  %v4638_v48 = vadd.f32 1.0, %v12805_v33  ;;  %4848 = vmatprep.mubr.bf16.mxu0 %v4662_v52 }
0x13cc   :  { %v4640_v2 = vadd.f32 1.0, %v12807_v31  ;;  %4849 = vmatmul.mubr.bf16.gmra.mxu0 %v4661_v62  ;;  %v4655_v19 = vmul.f32 %v4639_v55, %v4527_v4 }
0x13cd   :  { %v4654_v17 = vmul.f32 %v4638_v48, %v4526_v21 }
0x13ce   :  { %v4656_v20 = vmul.f32 %v4640_v2, %v4528_v30  ;;  %v4663_v36 = vpack.c.bf16 %v4655_v19, %v4653_v29 }
0x13d0   :  { %v4664_v12 = vpack.c.bf16 %v4656_v20, %v4654_v17 }
0x13d2   :  { %4856 = vmatprep.mubr.bf16.mxu0 %v4664_v12 }
0x13d4   :  { %4857 = vmatmul.mubr.bf16.gmra.mxu0 %v4663_v36 }
0x147b   :  { %v10775_v5 = vpop.f32.mrf.mxu0 }
0x147d   :  { %v10776_v14 = vpop.f32.mrf.mxu0 }
0x147e   :  { %v10777_v54 = vadd.f32 %v10776_v14, %v10775_v5 }
0x147f   :  { %v10778_v58 = vpop.f32.mrf.mxu0 }
0x1480   :  { %v4835_v39 = vadd.f32 %v10777_v54, %v9883_v57 }
0x1481   :  { %v10779_v7 = vpop.f32.mrf.mxu0 }
0x1482   :  { %v10780_v50 = vadd.f32 %v10779_v7, %v10778_v58  ;;  %v4865_v53 = vadd.f32 %v4835_v39, %v14344_v18 }
0x1483   :  { %v10781_v13 = vpop.f32.mrf.mxu0 }
0x1484   :  { %v4838_v44 = vadd.f32 %v10780_v50, %v9883_v57  ;;  %4875 = vadd.xlane.f32.xlu1 %v4865_v53 }
0x1485   :  { %v10782_v42 = vpop.f32.mrf.mxu0 }
0x1486   :  { %v10783_v40 = vadd.f32 %v10782_v42, %v10781_v13  ;;  %v4866_v38 = vadd.f32 %v4838_v44, %v14346_v23  ;;  %v12472_v42 = vld [vmem:[%s16049_s6 + $0x138] sm:$0xff]  }
0x1487   :  { %v10784_v51 = vpop.f32.mrf.mxu0  ;;  %11735 = vmatprep.subr.bf16.mxu1 %v12472_v42 }
0x1488   :  { %v4843_v26 = vadd.f32 %v10783_v40, %v9883_v57  ;;  %4877 = vadd.xlane.f32.xlu0 %v4866_v38  ;;  %v12473_v40 = vld [vmem:[%s16050_s28 + $0x138] sm:$0xff]   ;;  %11736 = vmatpush3.bf16.msra.mxu1 %v12472_v42 }
0x1489   :  { %v10785_v45 = vpop.f32.mrf.mxu0  ;;  %11759 = vmatprep.subr.bf16.mxu0 %v12473_v40 }
0x148a   :  { %v10786_v35 = vadd.f32 %v10785_v45, %v10784_v51  ;;  %v4867_v59 = vadd.f32 %v4843_v26, %v14356_v3  ;;  %11760 = vmatpush3.bf16.msra.mxu0 %v12473_v40  ;;  %v12474_v26 = vld [vmem:[%s16049_s6 + $0x130] sm:$0xff]  }
0x148b   :  { %v12475_v45 = vld [vmem:[%s16050_s28 + $0x130] sm:$0xff]   ;;  %11737 = vmatprep.subr.bf16.mxu1 %v12474_v26 }
0x148c   :  { %v4846_v60 = vadd.f32 %v10786_v35, %v9883_v57  ;;  %4879 = vadd.xlane.f32.xlu1 %v4867_v59  ;;  %v10787_v6 = vpop.f32.mrf.mxu0  ;;  %11738 = vmatpush3.bf16.msra.mxu1 %v12474_v26  ;;  %v12476_v35 = vld [vmem:[%s16049_s6 + $0x128] sm:$0xff]  }
0x148d   :  { %11761 = vmatprep.subr.bf16.mxu0 %v12475_v45  ;;  %11739 = vmatprep.subr.bf16.mxu1 %v12476_v35 }
0x148e   :  { %v4868_v37 = vadd.f32 %v4846_v60, %v14353_v56  ;;  %v10788_v18 = vpop.f32.mrf.mxu0  ;;  %11762 = vmatpush3.bf16.msra.mxu0 %v12475_v45  ;;  %v12478_v60 = vld [vmem:[%s16049_s6 + $0x120] sm:$0xff]  }
0x148f   :  { %v10789_v16 = vadd.f32 %v10788_v18, %v10787_v6  ;;  %v12479_v6 = vld [vmem:[%s16050_s28 + $0x120] sm:$0xff]   ;;  %v12481_v18 = vld [vmem:[%s16050_s28 + $0x118] sm:$0xff]  }
0x1490   :  { %4881 = vadd.xlane.f32.xlu0 %v4868_v37  ;;  %v10790_v11 = vpop.f32.mrf.mxu0  ;;  %11740 = vmatpush3.bf16.msra.mxu1 %v12476_v35 }
0x1491   :  { %v4851_v28 = vadd.f32 %v10789_v16, %v9883_v57  ;;  %11741 = vmatprep.subr.bf16.mxu1 %v12478_v60  ;;  %v12482_v16 = vld [vmem:[%s16049_s6 + $0x110] sm:$0xff]  }
0x1492   :  { %v10791_v32 = vpop.f32.mrf.mxu0 }
0x1493   :  { %v10792_v24 = vadd.f32 %v10791_v32, %v10790_v11  ;;  %v4869_v23 = vadd.f32 %v4851_v28, %v14365_v22  ;;  %v12483_v11 = vld [vmem:[%s16050_s28 + $0x110] sm:$0xff]   ;;  %v12484_v28 = vld [vmem:[%s16049_s6 + $0x108] sm:$0xff]  }
0x1494   :  { %v10793_v63 = vpop.f32.mrf.mxu0  ;;  %11742 = vmatpush3.bf16.msra.mxu1 %v12478_v60  ;;  %v12485_v32 = vld [vmem:[%s16050_s28 + $0x108] sm:$0xff]  }
0x1495   :  { %v4854_v15 = vadd.f32 %v10792_v24, %v9883_v57  ;;  %4883 = vadd.xlane.f32.xlu1 %v4869_v23  ;;  %v12486_v24 = vld [vmem:[%s16049_s6 + $0x100] sm:$0xff]  }
0x1496   :  { %v10794_v61 = vpop.f32.mrf.mxu0 }
0x1497   :  { %v10795_v46 = vadd.f32 %v10794_v61, %v10793_v63  ;;  %v4870_v3 = vadd.f32 %v4854_v15, %v14362_v8  ;;  %v14663_v63 = vld [vmem:[%s16051_s12 + $0x138] sm:$0xff]  }
0x1498   :  { %v10796_v43 = vpop.f32.mrf.mxu0 }
0x1499   :  { %v4859_v41 = vadd.f32 %v10795_v46, %v9883_v57  ;;  %4885 = vadd.xlane.f32.xlu0 %v4870_v3 }
0x149a   :  { %v10797_v56 = vpop.f32.mrf.mxu0 }
0x149b   :  { %v10798_v27 = vadd.f32 %v10797_v56, %v10796_v43  ;;  %v4871_v33 = vadd.f32 %v4859_v41, %v14373_v34 }
0x149d   :  { %v4862_v52 = vadd.f32 %v10798_v27, %v9883_v57  ;;  %4887 = vadd.xlane.f32.xlu1 %v4871_v33 }
0x149f   :  { %v4872_v31 = vadd.f32 %v4862_v52, %v14371_v25 }
0x14a1   :  { %4889 = vadd.xlane.f32.xlu0 %v4872_v31 }
0x150d   :  { %v4876_v22 = vpop.xlane.xlu1 %4875 }
0x150e   :  { %v4891_v62 = vmul.f32 0.0078125, %v4876_v22 }
0x1510   :  { %v14580_v48 = vsub.f32 %v4865_v53, %v4891_v62 }
0x1511   :  { %v4878_v55 = vpop.xlane.xlu0 %4877 }
0x1512   :  { %v4892_v21 = vmul.f32 0.0078125, %v4878_v55  ;;  %v4907_v8 = vmul.f32 %v14580_v48, %v14580_v48 }
0x1514   :  { %v14584_v30 = vsub.f32 %v4866_v38, %v4892_v21  ;;  %4915 = vadd.xlane.f32.xlu1 %v4907_v8  ;;  %v14669_v21 = vld [vmem:[%s16024_s22] ss:$0 sm:$0xff] }
0x1515   :  { %v4880_v2 = vpop.xlane.xlu1 %4879 }
0x1516   :  { %v4893_v4 = vmul.f32 0.0078125, %v4880_v2  ;;  %v4908_v34 = vmul.f32 %v14584_v30, %v14584_v30 }
0x1518   :  { %v14588_v47 = vsub.f32 %v4867_v59, %v4893_v4  ;;  %4917 = vadd.xlane.f32.xlu0 %v4908_v34  ;;  %v12477_v59 = vld [vmem:[%s16050_s28 + $0x128] sm:$0xff]  }
0x1519   :  { %v4882_v25 = vpop.xlane.xlu0 %4881  ;;  %11763 = vmatprep.subr.bf16.mxu0 %v12477_v59 }
0x151a   :  { %v4894_v17 = vmul.f32 0.0078125, %v4882_v25  ;;  %v4909_v20 = vmul.f32 %v14588_v47, %v14588_v47  ;;  %11764 = vmatpush3.bf16.msra.mxu0 %v12477_v59 }
0x151b   :  { %11765 = vmatprep.subr.bf16.mxu0 %v12479_v6 }
0x151c   :  { %v14592_v1 = vsub.f32 %v4868_v37, %v4894_v17  ;;  %4919 = vadd.xlane.f32.xlu1 %v4909_v20  ;;  %v12480_v37 = vld [vmem:[%s16049_s6 + $0x118] sm:$0xff]   ;;  %v9901_v20 = vld [vmem:[%s16025_s23] ss:$0 sm:$0xff] }
0x151d   :  { %11743 = vmatprep.subr.bf16.mxu1 %v12480_v37 }
0x151e   :  { %v4910_v19 = vmul.f32 %v14592_v1, %v14592_v1  ;;  %v4884_v12 = vpop.xlane.xlu1 %4883  ;;  %11766 = vmatpush3.bf16.msra.mxu0 %v12479_v6  ;;  %11744 = vmatpush3.bf16.msra.mxu1 %v12480_v37  ;;  %v12489_v6 = vld [vmem:[%s16051_s12 + $0x130] sm:$0xff]  }
0x151f   :  { %v4895_v29 = vmul.f32 0.0078125, %v4884_v12  ;;  %11767 = vmatprep.subr.bf16.mxu0 %v12481_v18  ;;  %11745 = vmatprep.subr.bf16.mxu1 %v12482_v16 }
0x1520   :  { %4921 = vadd.xlane.f32.xlu0 %v4910_v19 }
0x1521   :  { %v14596_v36 = vsub.f32 %v4869_v23, %v4895_v29  ;;  %v12487_v23 = vld [vmem:[%s16050_s28 + $0x100] sm:$0xff]  }
0x1522   :  { %v4886_v5 = vpop.xlane.xlu0 %4885  ;;  %11768 = vmatpush3.bf16.msra.mxu0 %v12481_v18  ;;  %11746 = vmatpush3.bf16.msra.mxu1 %v12482_v16 }
0x1523   :  { %v4896_v57 = vmul.f32 0.0078125, %v4886_v5  ;;  %v4911_v14 = vmul.f32 %v14596_v36, %v14596_v36  ;;  %11769 = vmatprep.subr.bf16.mxu0 %v12483_v11  ;;  %11747 = vmatprep.subr.bf16.mxu1 %v12484_v28 }
0x1525   :  { %v14600_v54 = vsub.f32 %v4870_v3, %v4896_v57  ;;  %4923 = vadd.xlane.f32.xlu1 %v4911_v14 }
0x1526   :  { %v4888_v58 = vpop.xlane.xlu1 %4887  ;;  %11770 = vmatpush3.bf16.msra.mxu0 %v12483_v11  ;;  %11748 = vmatpush3.bf16.msra.mxu1 %v12484_v28 }
0x1527   :  { %v4897_v39 = vmul.f32 0.0078125, %v4888_v58  ;;  %v4912_v7 = vmul.f32 %v14600_v54, %v14600_v54  ;;  %11771 = vmatprep.subr.bf16.mxu0 %v12485_v32  ;;  %11749 = vmatprep.subr.bf16.mxu1 %v12486_v24 }
0x1529   :  { %v14604_v50 = vsub.f32 %v4871_v33, %v4897_v39  ;;  %4925 = vadd.xlane.f32.xlu0 %v4912_v7 }
0x152a   :  { %v4890_v53 = vpop.xlane.xlu0 %4889  ;;  %11772 = vmatpush3.bf16.msra.mxu0 %v12485_v32  ;;  %11750 = vmatpush3.bf16.msra.mxu1 %v12486_v24 }
0x152b   :  { %v4898_v13 = vmul.f32 0.0078125, %v4890_v53  ;;  %v4913_v44 = vmul.f32 %v14604_v50, %v14604_v50  ;;  %11773 = vmatprep.subr.bf16.mxu0 %v12487_v23  ;;  %11783 = vmatprep.subr.bf16.mxu1 %v14663_v63 }
0x152d   :  { %v14614_v38 = vsub.f32 %v4872_v31, %v4898_v13  ;;  %4927 = vadd.xlane.f32.xlu1 %v4913_v44 }
0x152e   :  { %11774 = vmatpush3.bf16.msra.mxu0 %v12487_v23 }
0x152f   :  { %v4914_v51 = vmul.f32 %v14614_v38, %v14614_v38 }
0x1531   :  { %4929 = vadd.xlane.f32.xlu0 %v4914_v51 }
0x159d   :  { %v4916_v15 = vpop.xlane.xlu1 %4915 }
0x159e   :  { %v4931_v61 = vmul.f32 0.0078125, %v4916_v15 }
0x15a0   :  { %v4939_v46 = vadd.f32 1e-05, %v4931_v61 }
0x15a1   :  { %v4918_v3 = vpop.xlane.xlu0 %4917 }
0x15a2   :  { %12808 = vrsqrt.f32 %v4939_v46  ;;  %v4932_v43 = vmul.f32 0.0078125, %v4918_v3 }
0x15a4   :  { %v4940_v41 = vadd.f32 1e-05, %v4932_v43 }
0x15a5   :  { %v4920_v56 = vpop.xlane.xlu1 %4919 }
0x15a6   :  { %12810 = vrsqrt.f32 %v4940_v41  ;;  %v4933_v27 = vmul.f32 0.0078125, %v4920_v56 }
0x15a8   :  { %v4941_v33 = vadd.f32 1e-05, %v4933_v27  ;;  %v12494_v27 = vld [vmem:[%s16051_s12 + $0x108] sm:$0xff]  }
0x15a9   :  { %v4922_v52 = vpop.xlane.xlu0 %4921 }
0x15aa   :  { %12812 = vrsqrt.f32 %v4941_v33  ;;  %v4934_v31 = vmul.f32 0.0078125, %v4922_v52  ;;  %v12495_v33 = vld [vmem:[%s16051_s12 + $0x100] sm:$0xff]  }
0x15ac   :  { %v4942_v22 = vadd.f32 1e-05, %v4934_v31  ;;  %v14761_v31 = vld [vmem:[%s16012_s9 + $0x4] ss:$0 sm:$0xff] }
0x15ae   :  { %12814 = vrsqrt.f32 %v4942_v22  ;;  %v4924_v55 = vpop.xlane.xlu1 %4923 }
0x15af   :  { %v12809_v62 = vpop.eup %12808  ;;  %v4935_v2 = vmul.f32 0.0078125, %v4924_v55 }
0x15b0   :  { %v4955_v8 = vmul.f32 %v12809_v62, %v14580_v48 }
0x15b1   :  { %v4943_v4 = vadd.f32 1e-05, %v4935_v2 }
0x15b2   :  { %v4969_v25 = vmul.f32 %v14669_v21, %v4955_v8  ;;  %v4926_v17 = vpop.xlane.xlu0 %4925 }
0x15b3   :  { %v12811_v34 = vpop.eup %12810  ;;  %12816 = vrsqrt.f32 %v4943_v4  ;;  %v4936_v12 = vmul.f32 0.0078125, %v4926_v17 }
0x15b4   :  { %v4956_v19 = vmul.f32 %v12811_v34, %v14584_v30  ;;  %v14678_v14 = vadd.f32 %v9901_v20, %v4969_v25 }
0x15b5   :  { %v4944_v5 = vadd.f32 1e-05, %v4936_v12 }
0x15b6   :  { %v4970_v29 = vmul.f32 %v14669_v21, %v4956_v19  ;;  %v4928_v48 = vpop.xlane.xlu1 %4927  ;;  %v9945_v19 = vld [vmem:[%s16013_s11 + $0x4] ss:$0 sm:$0xff] }
0x15b7   :  { %v12813_v57 = vpop.eup %12812  ;;  %12818 = vrsqrt.f32 %v4944_v5  ;;  %v4937_v7 = vmul.f32 0.0078125, %v4928_v48 }
0x15b8   :  { %v14680_v58 = vadd.f32 %v9901_v20, %v4970_v29  ;;  %v4957_v39 = vmul.f32 %v12813_v57, %v14588_v47 }
0x15b9   :  { %v4945_v30 = vadd.f32 1e-05, %v4937_v7 }
0x15ba   :  { %v14685_v53 = vpack.c.bf16 %v14680_v58, %v14678_v14  ;;  %v4930_v44 = vpop.xlane.xlu0 %4929  ;;  %v4971_v42 = vmul.f32 %v14669_v21, %v4957_v39 }
0x15bb   :  { %v12815_v13 = vpop.eup %12814  ;;  %12820 = vrsqrt.f32 %v4945_v30  ;;  %v4938_v51 = vmul.f32 0.0078125, %v4930_v44 }
0x15bc   :  { %v4958_v40 = vmul.f32 %v12815_v13, %v14592_v1  ;;  %11751 = vmatprep.mubr.bf16.mxu1 %v14685_v53  ;;  %11775 = vmatprep.mubr.bf16.mxu0 %v14685_v53  ;;  %v14692_v45 = vadd.f32 %v9901_v20, %v4971_v42 }
0x15bd   :  { %v4946_v26 = vadd.f32 1e-05, %v4938_v51 }
0x15be   :  { %v4972_v47 = vmul.f32 %v14669_v21, %v4958_v40 }
0x15bf   :  { %12822 = vrsqrt.f32 %v4946_v26 }
0x15c0   :  { %v14694_v35 = vadd.f32 %v9901_v20, %v4972_v47  ;;  %v12817_v59 = vpop.eup %12816 }
0x15c1   :  { %v4959_v1 = vmul.f32 %v12817_v59, %v14596_v36  ;;  %v12490_v36 = vld [vmem:[%s16051_s12 + $0x128] sm:$0xff]  }
0x15c2   :  { %v14698_v60 = vpack.c.bf16 %v14694_v35, %v14692_v45 }
0x15c3   :  { %v4973_v18 = vmul.f32 %v14669_v21, %v4959_v1 }
0x15c4   :  { %11752 = vmatmul.mubr.bf16.vlgmr.msra.gmra.mxu1 %v14698_v60  ;;  %11776 = vmatmul.mubr.bf16.vlgmr.msra.gmra.mxu0 %v14698_v60  ;;  %v12819_v37 = vpop.eup %12818 }
0x15c5   :  { %11784 = vmatpush3.bf16.msra.mxu1 %v14663_v63  ;;  %v4960_v16 = vmul.f32 %v12819_v37, %v14600_v54  ;;  %v14713_v32 = vadd.f32 %v9901_v20, %v4973_v18  ;;  %v12491_v54 = vld [vmem:[%s16051_s12 + $0x120] sm:$0xff]  }
0x15c6   :  { %11785 = vmatprep.subr.bf16.mxu1 %v12489_v6 }
0x15c7   :  { %v4974_v11 = vmul.f32 %v14669_v21, %v4960_v16 }
0x15c8   :  { %v12821_v28 = vpop.eup %12820 }
0x15c9   :  { %11786 = vmatpush3.bf16.msra.mxu1 %v12489_v6  ;;  %v14715_v24 = vadd.f32 %v9901_v20, %v4974_v11  ;;  %v4961_v23 = vmul.f32 %v12821_v28, %v14604_v50  ;;  %v12492_v50 = vld [vmem:[%s16051_s12 + $0x118] sm:$0xff]   ;;  %v9971_v6 = vld [vmem:[%s16014_s13 + $0x4] ss:$0 sm:$0xff] }
0x15ca   :  { %11787 = vmatprep.subr.bf16.mxu1 %v12490_v36 }
0x15cb   :  { %v14723_v63 = vpack.c.bf16 %v14715_v24, %v14713_v32  ;;  %v4975_v61 = vmul.f32 %v14669_v21, %v4961_v23 }
0x15cc   :  { %v12823_v15 = vpop.eup %12822 }
0x15cd   :  { %11788 = vmatpush3.bf16.msra.mxu1 %v12490_v36  ;;  %v4962_v46 = vmul.f32 %v12823_v15, %v14614_v38  ;;  %11755 = vmatprep.mubr.bf16.mxu1 %v14723_v63  ;;  %v14733_v43 = vadd.f32 %v9901_v20, %v4975_v61  ;;  %v12493_v38 = vld [vmem:[%s16051_s12 + $0x110] sm:$0xff]   ;;  %v12496_v15 = vld [vmem:[%s16049_s6 + $0x178] sm:$0xff]  }
0x15ce   :  { %11779 = vmatprep.mubr.bf16.mxu0 %v14723_v63  ;;  %11789 = vmatprep.subr.bf16.mxu1 %v12491_v54 }
0x15cf   :  { %v4976_v3 = vmul.f32 %v14669_v21, %v4962_v46 }
0x15d1   :  { %11790 = vmatpush3.bf16.msra.mxu1 %v12491_v54  ;;  %v14735_v41 = vadd.f32 %v9901_v20, %v4976_v3  ;;  %v12497_v3 = vld [vmem:[%s16049_s6 + $0x170] sm:$0xff]  }
0x15d2   :  { %11791 = vmatprep.subr.bf16.mxu1 %v12492_v50 }
0x15d3   :  { %v14742_v56 = vpack.c.bf16 %v14735_v41, %v14733_v43 }
0x15d5   :  { %11792 = vmatpush3.bf16.msra.mxu1 %v12492_v50  ;;  %11780 = vmatmul.mubr.bf16.gmra.mxu0 %v14742_v56 }
0x15d6   :  { %11756 = vmatmul.mubr.bf16.gmra.mxu1 %v14742_v56  ;;  %11793 = vmatprep.subr.bf16.mxu1 %v12493_v38 }
0x15d7   :  { %11799 = vmatprep.mubr.bf16.mxu1 %v14685_v53 }
0x15d9   :  { %11794 = vmatpush3.bf16.msra.mxu1 %v12493_v38 }
0x15da   :  { %11795 = vmatprep.subr.bf16.mxu1 %v12494_v27 }
0x15dd   :  { %11796 = vmatpush3.bf16.msra.mxu1 %v12494_v27 }
0x15de   :  { %11797 = vmatprep.subr.bf16.mxu1 %v12495_v33 }
0x15e1   :  { %11798 = vmatpush3.bf16.msra.mxu1 %v12495_v33 }
0x15e4   :  { %11800 = vmatmul.mubr.bf16.vlgmr.msra.gmra.mxu1 %v14698_v60 }
0x15e5   :  { %11803 = vmatprep.mubr.bf16.mxu1 %v14723_v63 }
0x15ec   :  { %11804 = vmatmul.mubr.bf16.gmra.mxu1 %v14742_v56 }
0x1684   :  { %v14756_v52 = vpop.f32.mrf.mxu1  ;;  %v11777_v55 = vpop.f32.mrf.mxu0 }
0x1685   :  { %v5249_v59 = vadd.f32 %v11777_v55, %v9945_v19  ;;  %v5111_v38 = vadd.f32 %v14756_v52, %v14761_v31  ;;  %v12498_v52 = vld [vmem:[%s16049_s6 + $0x168] sm:$0xff]  }
0x1686   :  { %v5102_v22 = vpop.f32.mrf.mxu1  ;;  %v5240_v21 = vpop.f32.mrf.mxu0 }
0x1687   :  { %v5103_v62 = vadd.f32 %v14761_v31, %v5102_v22  ;;  %v5241_v28 = vadd.f32 %v9945_v19, %v5240_v21 }
0x1688   :  { %v14765_v8 = vpop.f32.mrf.mxu1  ;;  %v11778_v2 = vpop.f32.mrf.mxu0 }
0x1689   :  { %11823 = vmatprep.mubr.msk.f32.mxu0 %vm993_vm6, %v5103_v62  ;;  %v5252_v51 = vadd.f32 %v11778_v2, %v9945_v19  ;;  %v5114_v33 = vadd.f32 %v14765_v8, %v14761_v31  ;;  %v12499_v8 = vld [vmem:[%s16049_s6 + $0x160] sm:$0xff]  }
0x168a   :  { %v5105_v4 = vpop.f32.mrf.mxu1  ;;  %v5243_v34 = vpop.f32.mrf.mxu0 }
0x168b   :  { %v5244_v18 = vadd.f32 %v9945_v19, %v5243_v34  ;;  %v5106_v46 = vadd.f32 %v14761_v31, %v5105_v4  ;;  %v12500_v4 = vld [vmem:[%s16049_s6 + $0x158] sm:$0xff]   ;;  %v12501_v34 = vld [vmem:[%s16049_s6 + $0x150] sm:$0xff]  }
0x1695   :  { %v11781_v17 = vpop.f32.mrf.mxu0 }
0x1696   :  { %v14767_v25 = vpop.f32.mrf.mxu1  ;;  %v5265_v57 = vadd.f32 %v11781_v17, %v9945_v19  ;;  %v12504_v17 = vld [vmem:[%s16051_s12 + $0x178] sm:$0xff]  }
0x1697   :  { %v5256_v20 = vpop.f32.mrf.mxu0  ;;  %v5127_v21 = vadd.f32 %v14767_v25, %v14761_v31  ;;  %v12503_v25 = vld [vmem:[%s16049_s6 + $0x140] sm:$0xff]  }
0x1698   :  { %v14772_v12 = vpop.f32.mrf.mxu1  ;;  %v5257_v44 = vadd.f32 %v9945_v19, %v5256_v20  ;;  %v12505_v20 = vld [vmem:[%s16051_s12 + $0x170] sm:$0xff]  }
0x1699   :  { %v11782_v29 = vpop.f32.mrf.mxu0  ;;  %v5119_v22 = vadd.f32 %v14761_v31, %v14772_v12  ;;  %v12507_v12 = vld [vmem:[%s16051_s12 + $0x160] sm:$0xff]  }
0x169a   :  { %v5268_v5 = vadd.f32 %v11782_v29, %v9945_v19  ;;  %v14775_v48 = vpop.f32.mrf.mxu1  ;;  %v12508_v29 = vld [vmem:[%s16051_s12 + $0x158] sm:$0xff]  }
0x169b   :  { %v5259_v39 = vpop.f32.mrf.mxu0  ;;  %v5130_v2 = vadd.f32 %v14775_v48, %v14761_v31  ;;  %v12511_v48 = vld [vmem:[%s16051_s12 + $0x140] sm:$0xff]  }
0x169c   :  { %11807 = vmatprep.subr.msk.mxu0 %vm993_vm6, %v5268_v5  ;;  %v5260_v7 = vadd.f32 %v9945_v19, %v5259_v39  ;;  %v14779_v30 = vpop.f32.mrf.mxu1  ;;  %v12506_v19 = vld [vmem:[%s16051_s12 + $0x168] sm:$0xff]  }
0x169d   :  { %11808 = vmatpush3.xpose.msk.msra.mxu0 %vm993_vm6, %v5268_v5  ;;  %v5122_v55 = vadd.f32 %v14761_v31, %v14779_v30  ;;  %v12502_v31 = vld [vmem:[%s16049_s6 + $0x148] sm:$0xff]   ;;  %v12509_v5 = vld [vmem:[%s16051_s12 + $0x150] sm:$0xff]  }
0x169e   :  { %11809 = vmatprep.subr.msk.mxu0 %vm993_vm6, %v5265_v57 }
0x16a1   :  { %11810 = vmatpush3.xpose.msk.msra.mxu0 %vm993_vm6, %v5265_v57  ;;  %v12510_v57 = vld [vmem:[%s16051_s12 + $0x148] sm:$0xff]  }
0x16a2   :  { %11811 = vmatprep.subr.msk.mxu0 %vm993_vm6, %v5260_v7 }
0x16a4   :  { %v11801_v13 = vpop.f32.mrf.mxu1 }
0x16a5   :  { %11812 = vmatpush3.xpose.msk.msra.mxu0 %vm993_vm6, %v5260_v7  ;;  %v5387_v50 = vadd.f32 %v11801_v13, %v9971_v6  ;;  %v14876_v13 = vld [vmem:[%s16015_s2 + $0x8] sm:$0xff] }
0x16a6   :  { %v5378_v42 = vpop.f32.mrf.mxu1  ;;  %11813 = vmatprep.subr.msk.mxu0 %vm993_vm6, %v5257_v44 }
0x16a7   :  { %v5379_v62 = vadd.f32 %v9971_v6, %v5378_v42 }
0x16a8   :  { %v11802_v40 = vpop.f32.mrf.mxu1 }
0x16a9   :  { %11814 = vmatpush3.xpose.msk.msra.mxu0 %vm993_vm6, %v5257_v44  ;;  %v5390_v61 = vadd.f32 %v11802_v40, %v9971_v6 }
0x16aa   :  { %v5381_v47 = vpop.f32.mrf.mxu1  ;;  %11815 = vmatprep.subr.msk.mxu0 %vm993_vm6, %v5252_v51 }
0x16ab   :  { %v5382_v27 = vadd.f32 %v9971_v6, %v5381_v47 }
0x16ac   :  { %v11805_v26 = vpop.f32.mrf.mxu1 }
0x16ad   :  { %11816 = vmatpush3.xpose.msk.msra.mxu0 %vm993_vm6, %v5252_v51  ;;  %v5403_v11 = vadd.f32 %v11805_v26, %v9971_v6  ;;  %v14884_v51 = vld [vmem:[%s16015_s2] sm:$0xff] }
0x16ae   :  { %v5394_v1 = vpop.f32.mrf.mxu1  ;;  %11817 = vmatprep.subr.msk.mxu0 %vm993_vm6, %v5249_v59 }
0x16af   :  { %v5395_v54 = vadd.f32 %v9971_v6, %v5394_v1 }
0x16b0   :  { %v11806_v37 = vpop.f32.mrf.mxu1 }
0x16b1   :  { %v5406_v16 = vadd.f32 %v11806_v37, %v9971_v6  ;;  %11818 = vmatpush3.xpose.msk.msra.mxu0 %vm993_vm6, %v5249_v59 }
0x16b2   :  { %v5397_v36 = vpop.f32.mrf.mxu1  ;;  %11819 = vmatprep.subr.msk.mxu0 %vm993_vm6, %v5244_v18 }
0x16b3   :  { %11835 = vmatprep.subr.mxu1 %v5406_v16  ;;  %v5398_v23 = vadd.f32 %v9971_v6, %v5397_v36  ;;  %v14894_v6 = vld [vmem:[%s16015_s2 + $0x18] sm:$0xff] }
0x16b4   :  { %11836 = vmatpush3.msra.mxu1 %v5406_v16 }
0x16b5   :  { %11837 = vmatprep.subr.mxu1 %v5403_v11  ;;  %11820 = vmatpush3.xpose.msk.msra.mxu0 %vm993_vm6, %v5244_v18 }
0x16b6   :  { %11838 = vmatpush3.msra.mxu1 %v5403_v11  ;;  %11821 = vmatprep.subr.msk.mxu0 %vm993_vm6, %v5241_v28  ;;  %v14904_v11 = vld [vmem:[%s16015_s2 + $0x10] sm:$0xff] }
0x16b7   :  { %11839 = vmatprep.subr.mxu1 %v5398_v23 }
0x16b8   :  { %11840 = vmatpush3.msra.mxu1 %v5398_v23 }
0x16b9   :  { %11841 = vmatprep.subr.mxu1 %v5395_v54  ;;  %11822 = vmatpush3.xpose.msk.msra.mxu0 %vm993_vm6, %v5241_v28 }
0x16ba   :  { %11842 = vmatpush3.msra.mxu1 %v5395_v54  ;;  %11863 = vmatprep.subr.bf16.mxu0 %v12496_v15 }
0x16bb   :  { %11843 = vmatprep.subr.mxu1 %v5390_v61 }
0x16bc   :  { %11844 = vmatpush3.msra.mxu1 %v5390_v61  ;;  %11824 = vmatmul.mubr.msk.f32.vlgmr.msra.gmra.mxu0 %vm993_vm6, %v5106_v46  ;;  %v14914_v61 = vld [vmem:[%s16015_s2 + $0x28] sm:$0xff] }
0x16bd   :  { %11845 = vmatprep.subr.mxu1 %v5387_v50  ;;  %11826 = vmatprep.mubr.msk.f32.mxu0 %vm993_vm6, %v5111_v38 }
0x16be   :  { %11864 = vmatpush3.bf16.msra.mxu0 %v12496_v15  ;;  %11846 = vmatpush3.msra.mxu1 %v5387_v50 }
0x16bf   :  { %11865 = vmatprep.subr.bf16.mxu0 %v12497_v3  ;;  %11847 = vmatprep.subr.mxu1 %v5382_v27 }
0x16c0   :  { %11827 = vmatmul.mubr.msk.f32.gmra.mxu0 %vm993_vm6, %v5114_v33  ;;  %11848 = vmatpush3.msra.mxu1 %v5382_v27  ;;  %v14924_v27 = vld [vmem:[%s16015_s2 + $0x20] sm:$0xff] }
0x16c1   :  { %11829 = vmatprep.mubr.msk.f32.mxu0 %vm993_vm6, %v5119_v22  ;;  %11849 = vmatprep.subr.mxu1 %v5379_v62 }
0x16c2   :  { %11866 = vmatpush3.bf16.msra.mxu0 %v12497_v3  ;;  %11850 = vmatpush3.msra.mxu1 %v5379_v62 }
0x16c3   :  { %11867 = vmatprep.subr.bf16.mxu0 %v12498_v52 }
0x16c4   :  { %11830 = vmatmul.mubr.msk.f32.gmra.mxu0 %vm993_vm6, %v5122_v55  ;;  %v14934_v55 = vld [vmem:[%s16015_s2 + $0x38] sm:$0xff] }
0x16c5   :  { %11832 = vmatprep.mubr.msk.f32.mxu0 %vm993_vm6, %v5127_v21 }
0x16c6   :  { %11868 = vmatpush3.bf16.msra.mxu0 %v12498_v52 }
0x16c7   :  { %11869 = vmatprep.subr.bf16.mxu0 %v12499_v8 }
0x16c8   :  { %11833 = vmatmul.mubr.msk.f32.gmra.mxu0 %vm993_vm6, %v5130_v2 }
0x16c9   :  { %11879 = vmatprep.mubr.bf16.mxu0 %v14685_v53 }
0x16ca   :  { %11870 = vmatpush3.bf16.msra.mxu0 %v12499_v8 }
0x16cb   :  { %11871 = vmatprep.subr.bf16.mxu0 %v12500_v4 }
0x16ce   :  { %11872 = vmatpush3.bf16.msra.mxu0 %v12500_v4  ;;  %v14944_v4 = vld [vmem:[%s16015_s2 + $0x30] sm:$0xff] }
0x16cf   :  { %11873 = vmatprep.subr.bf16.mxu0 %v12501_v34 }
0x16d2   :  { %11874 = vmatpush3.bf16.msra.mxu0 %v12501_v34 }
0x16d3   :  { %11875 = vmatprep.subr.bf16.mxu0 %v12502_v31 }
0x16d6   :  { %11876 = vmatpush3.bf16.msra.mxu0 %v12502_v31 }
0x16d7   :  { %11877 = vmatprep.subr.bf16.mxu0 %v12503_v25 }
0x16da   :  { %11878 = vmatpush3.bf16.msra.mxu0 %v12503_v25 }
0x16db   :  { %11911 = vmatprep.subr.bf16.mxu0 %v12504_v17 }
0x16dd   :  { %11880 = vmatmul.mubr.bf16.vlgmr.msra.gmra.mxu0 %v14698_v60 }
0x16de   :  { %11883 = vmatprep.mubr.bf16.mxu0 %v14723_v63  ;;  %11912 = vmatpush3.bf16.msra.mxu0 %v12504_v17  ;;  %v14956_v17 = vld [vmem:[%s16012_s9 + $0x5] ss:$0 sm:$0xff] }
0x16df   :  { %11913 = vmatprep.subr.bf16.mxu0 %v12505_v20 }
0x16e2   :  { %11914 = vmatpush3.bf16.msra.mxu0 %v12505_v20 }
0x16e3   :  { %11915 = vmatprep.subr.bf16.mxu0 %v12506_v19 }
0x16e5   :  { %11884 = vmatmul.mubr.bf16.gmra.mxu0 %v14742_v56 }
0x16e6   :  { %11916 = vmatpush3.bf16.msra.mxu0 %v12506_v19  ;;  %11927 = vmatprep.mubr.bf16.mxu0 %v14685_v53 }
0x16e7   :  { %11917 = vmatprep.subr.bf16.mxu0 %v12507_v12 }
0x16ea   :  { %11918 = vmatpush3.bf16.msra.mxu0 %v12507_v12 }
0x16eb   :  { %11919 = vmatprep.subr.bf16.mxu0 %v12508_v29 }
0x16ee   :  { %11920 = vmatpush3.bf16.msra.mxu0 %v12508_v29 }
0x16ef   :  { %11921 = vmatprep.subr.bf16.mxu0 %v12509_v5 }
0x16f2   :  { %11922 = vmatpush3.bf16.msra.mxu0 %v12509_v5 }
0x16f3   :  { %11923 = vmatprep.subr.bf16.mxu0 %v12510_v57 }
0x16f6   :  { %11924 = vmatpush3.bf16.msra.mxu0 %v12510_v57 }
0x16f7   :  { %11925 = vmatprep.subr.bf16.mxu0 %v12511_v48 }
0x16fa   :  { %11926 = vmatpush3.bf16.msra.mxu0 %v12511_v48 }
0x16fd   :  { %11928 = vmatmul.mubr.bf16.vlgmr.msra.gmra.mxu0 %v14698_v60 }
0x16fe   :  { %11931 = vmatprep.mubr.bf16.mxu0 %v14723_v63 }
0x1705   :  { %11932 = vmatmul.mubr.bf16.gmra.mxu0 %v14742_v56 }
0x177c   :  { %v11825_v39 = vpop.f32.mrf.mxu0 }
0x177d   :  { %v5563_v7 = vmul.f32 0.17677669, %v11825_v39 }
0x177e   :  { %v5523_v30 = vpop.f32.mrf.mxu0 }
0x177f   :  { %v14879_v44 = vadd.f32 %v14876_v13, %v5563_v7  ;;  %v5562_v42 = vmul.f32 0.17677669, %v5523_v30 }
0x1780   :  { %v11828_v40 = vpop.f32.mrf.mxu0 }
0x1781   :  { %v14887_v47 = vadd.f32 %v14884_v51, %v5562_v42  ;;  %v5565_v26 = vmul.f32 0.17677669, %v11828_v40  ;;  %v5581_v59 = vsel %vm248_vm4, %v14879_v44, -inf }
0x1782   :  { %5582 = vmax.xlane.f32.xlu0 %v5581_v59  ;;  %v5533_v1 = vpop.f32.mrf.mxu0 }
0x1783   :  { %v14897_v37 = vadd.f32 %v14894_v6, %v5565_v26  ;;  %v5564_v18 = vmul.f32 0.17677669, %v5533_v1  ;;  %v5578_v16 = vsel %vm248_vm4, %v14887_v47, -inf }
0x1784   :  { %5579 = vmax.xlane.f32.xlu1 %v5578_v16  ;;  %v11831_v36 = vpop.f32.mrf.mxu0 }
0x1785   :  { %v14907_v28 = vadd.f32 %v14904_v11, %v5564_v18  ;;  %v5567_v23 = vmul.f32 0.17677669, %v11831_v36  ;;  %v5587_v54 = vsel %vm248_vm4, %v14897_v37, -inf }
0x1786   :  { %5588 = vmax.xlane.f32.xlu0 %v5587_v54  ;;  %v5543_v15 = vpop.f32.mrf.mxu0 }
0x1787   :  { %v14917_v46 = vadd.f32 %v14914_v61, %v5567_v23  ;;  %v5566_v50 = vmul.f32 0.17677669, %v5543_v15  ;;  %v5584_v3 = vsel %vm248_vm4, %v14907_v28, -inf }
0x1788   :  { %5585 = vmax.xlane.f32.xlu1 %v5584_v3  ;;  %v11834_v38 = vpop.f32.mrf.mxu0 }
0x1789   :  { %v14927_v33 = vadd.f32 %v14924_v27, %v5566_v50  ;;  %v5569_v22 = vmul.f32 0.17677669, %v11834_v38  ;;  %v5593_v62 = vsel %vm248_vm4, %v14917_v46, -inf  ;;  %v10077_v50 = vld [vmem:[%s16014_s13 + $0x5] ss:$0 sm:$0xff] }
0x178a   :  { %5594 = vmax.xlane.f32.xlu0 %v5593_v62  ;;  %v5553_v52 = vpop.f32.mrf.mxu0 }
0x178b   :  { %v14937_v21 = vadd.f32 %v14934_v55, %v5569_v22  ;;  %v5568_v8 = vmul.f32 0.17677669, %v5553_v52  ;;  %v5590_v2 = vsel %vm248_vm4, %v14927_v33, -inf }
0x178c   :  { %5591 = vmax.xlane.f32.xlu1 %v5590_v2 }
0x178d   :  { %v14947_v34 = vadd.f32 %v14944_v4, %v5568_v8  ;;  %v5599_v31 = vsel %vm248_vm4, %v14937_v21, -inf }
0x178e   :  { %5600 = vmax.xlane.f32.xlu0 %v5599_v31 }
0x178f   :  { %v5596_v25 = vsel %vm248_vm4, %v14947_v34, -inf }
0x1790   :  { %5597 = vmax.xlane.f32.xlu1 %v5596_v25 }
0x179d   :  { %v11881_v20 = vpop.f32.mrf.mxu0 }
0x179e   :  { %v14959_v19 = vadd.f32 %v11881_v20, %v14956_v17 }
0x179f   :  { %v14961_v12 = vpop.f32.mrf.mxu0 }
0x17a1   :  { %v11882_v29 = vpop.f32.mrf.mxu0 }
0x17a2   :  { %v14964_v5 = vadd.f32 %v11882_v29, %v14956_v17 }
0x17a3   :  { %v5914_v57 = vpop.f32.mrf.mxu0 }
0x17a4   :  { %v14967_v48 = vadd.f32 %v14956_v17, %v5914_v57 }
0x17a5   :  { %v11885_v39 = vpop.f32.mrf.mxu0 }
0x17a6   :  { %v14970_v7 = vadd.f32 %v11885_v39, %v14956_v17 }
0x17a7   :  { %v5927_v30 = vpop.f32.mrf.mxu0 }
0x17a8   :  { %v14973_v42 = vadd.f32 %v14956_v17, %v5927_v30 }
0x17a9   :  { %v11886_v40 = vpop.f32.mrf.mxu0 }
0x17aa   :  { %v14976_v26 = vadd.f32 %v11886_v40, %v14956_v17 }
0x17ab   :  { %v5930_v59 = vpop.f32.mrf.mxu0 }
0x17ac   :  { %v14979_v1 = vadd.f32 %v14956_v17, %v5930_v59 }
0x17bd   :  { %v11929_v18 = vpop.f32.mrf.mxu0 }
0x17be   :  { %v6196_v31 = vadd.f32 %v11929_v18, %v10077_v50 }
0x17bf   :  { %v6187_v16 = vpop.f32.mrf.mxu0 }
0x17c0   :  { %v6188_v20 = vadd.f32 %v10077_v50, %v6187_v16 }
0x17c1   :  { %v11930_v36 = vpop.f32.mrf.mxu0 }
0x17c2   :  { %v6199_v2 = vadd.f32 %v11930_v36, %v10077_v50 }
0x17c3   :  { %v6190_v23 = vpop.f32.mrf.mxu0 }
0x17c4   :  { %v6191_v25 = vadd.f32 %v10077_v50, %v6190_v23 }
0x17c5   :  { %v11933_v54 = vpop.f32.mrf.mxu0 }
0x17c6   :  { %v6212_v62 = vadd.f32 %v11933_v54, %v10077_v50 }
0x17c7   :  { %v6203_v15 = vpop.f32.mrf.mxu0 }
0x17c8   :  { %v6204_v8 = vadd.f32 %v10077_v50, %v6203_v15 }
0x17c9   :  { %v11934_v3 = vpop.f32.mrf.mxu0 }
0x17ca   :  { %v6215_v38 = vadd.f32 %v11934_v3, %v10077_v50 }
0x17cb   :  { %v6206_v22 = vpop.f32.mrf.mxu0 }
0x17cc   :  { %11963 = vmatprep.subr.mxu0 %v6215_v38  ;;  %v6207_v52 = vadd.f32 %v10077_v50, %v6206_v22 }
0x17cd   :  { %11964 = vmatpush3.msra.mxu0 %v6215_v38 }
0x17ce   :  { %11965 = vmatprep.subr.mxu0 %v6212_v62 }
0x17cf   :  { %11966 = vmatpush3.msra.mxu0 %v6212_v62 }
0x17d0   :  { %11967 = vmatprep.subr.mxu0 %v6207_v52 }
0x17d1   :  { %11968 = vmatpush3.msra.mxu0 %v6207_v52 }
0x17d2   :  { %11969 = vmatprep.subr.mxu0 %v6204_v8 }
0x17d3   :  { %11970 = vmatpush3.msra.mxu0 %v6204_v8 }
0x17d4   :  { %11971 = vmatprep.subr.mxu0 %v6199_v2 }
0x17d5   :  { %11972 = vmatpush3.msra.mxu0 %v6199_v2 }
0x17d6   :  { %11973 = vmatprep.subr.mxu0 %v6196_v31 }
0x17d7   :  { %11974 = vmatpush3.msra.mxu0 %v6196_v31 }
0x17d8   :  { %11975 = vmatprep.subr.mxu0 %v6191_v25 }
0x17d9   :  { %11976 = vmatpush3.msra.mxu0 %v6191_v25 }
0x17da   :  { %11977 = vmatprep.subr.mxu0 %v6188_v20 }
0x17db   :  { %11978 = vmatpush3.msra.mxu0 %v6188_v20 }
0x180b   :  { %v5583_v29 = vpop.xlane.xlu0 %5582 }
0x180c   :  { %v5603_v57 = vsub.f32 %v14879_v44, %v5583_v29 }
0x180d   :  { %v5580_v39 = vpop.xlane.xlu1 %5579 }
0x180e   :  { %v5612_v30 = vmul.f32 1.442695, %v5603_v57  ;;  %v5602_v40 = vsub.f32 %v14887_v47, %v5580_v39 }
0x180f   :  { %v5589_v59 = vpop.xlane.xlu0 %5588 }
0x1810   :  { %12824 = vpow2.f32 %v5612_v30  ;;  %v5610_v18 = vmul.f32 1.442695, %v5602_v40  ;;  %v5605_v36 = vsub.f32 %v14897_v37, %v5589_v59 }
0x1811   :  { %v5586_v23 = vpop.xlane.xlu1 %5585 }
0x1812   :  { %12826 = vpow2.f32 %v5610_v18  ;;  %v5616_v54 = vmul.f32 1.442695, %v5605_v36  ;;  %v5604_v16 = vsub.f32 %v14907_v28, %v5586_v23 }
0x1813   :  { %v5595_v15 = vpop.xlane.xlu0 %5594 }
0x1814   :  { %12828 = vpow2.f32 %v5616_v54  ;;  %v5614_v50 = vmul.f32 1.442695, %v5604_v16  ;;  %v5607_v3 = vsub.f32 %v14917_v46, %v5595_v15  ;;  %v12512_v54 = vld [vmem:[%s16050_s28 + $0x178] sm:$0xff]  }
0x1815   :  { %v5592_v44 = vpop.xlane.xlu1 %5591  ;;  %11887 = vmatprep.subr.bf16.mxu1 %v12512_v54 }
0x1816   :  { %12830 = vpow2.f32 %v5614_v50  ;;  %v5620_v38 = vmul.f32 1.442695, %v5607_v3  ;;  %v5606_v47 = vsub.f32 %v14927_v33, %v5592_v44 }
0x1817   :  { %v5601_v22 = vpop.xlane.xlu0 %5600 }
0x1818   :  { %12832 = vpow2.f32 %v5620_v38  ;;  %v5618_v62 = vmul.f32 1.442695, %v5606_v47  ;;  %v5609_v37 = vsub.f32 %v14937_v21, %v5601_v22 }
0x1819   :  { %v5598_v52 = vpop.xlane.xlu1 %5597 }
0x181a   :  { %12834 = vpow2.f32 %v5618_v62  ;;  %v5624_v8 = vmul.f32 1.442695, %v5609_v37  ;;  %v5608_v28 = vsub.f32 %v14947_v34, %v5598_v52 }
0x181c   :  { %12836 = vpow2.f32 %v5624_v8  ;;  %v5622_v2 = vmul.f32 1.442695, %v5608_v28  ;;  %v12513_v28 = vld [vmem:[%s16050_s28 + $0x170] sm:$0xff]  }
0x181d   :  { %v12825_v31 = vpop.eup %12824 }
0x181e   :  { %12838 = vpow2.f32 %v5622_v2  ;;  %v5629_v46 = vsel %vm248_vm4, %v12825_v31, 0.0 }
0x181f   :  { %v12827_v25 = vpop.eup %12826  ;;  %5630 = vadd.xlane.f32.xlu0 %v5629_v46 }
0x1820   :  { %v5626_v33 = vsel %vm248_vm4, %v12827_v25, 0.0 }
0x1821   :  { %v12829_v20 = vpop.eup %12828  ;;  %5627 = vadd.xlane.f32.xlu1 %v5626_v33 }
0x1822   :  { %v5635_v29 = vsel %vm248_vm4, %v12829_v20, 0.0 }
0x1823   :  { %v12831_v21 = vpop.eup %12830  ;;  %5636 = vadd.xlane.f32.xlu0 %v5635_v29 }
0x1824   :  { %v5632_v57 = vsel %vm248_vm4, %v12831_v21, 0.0 }
0x1825   :  { %v12833_v39 = vpop.eup %12832  ;;  %5633 = vadd.xlane.f32.xlu1 %v5632_v57  ;;  %v12514_v57 = vld [vmem:[%s16050_s28 + $0x168] sm:$0xff]  }
0x1826   :  { %v5641_v34 = vsel %vm248_vm4, %v12833_v39, 0.0 }
0x1827   :  { %v12835_v30 = vpop.eup %12834  ;;  %5642 = vadd.xlane.f32.xlu0 %v5641_v34 }
0x1828   :  { %v5638_v40 = vsel %vm248_vm4, %v12835_v30, 0.0 }
0x1829   :  { %v12837_v59 = vpop.eup %12836  ;;  %5639 = vadd.xlane.f32.xlu1 %v5638_v40 }
0x182a   :  { %v5647_v18 = vsel %vm248_vm4, %v12837_v59, 0.0 }
0x182b   :  { %v12839_v36 = vpop.eup %12838  ;;  %5648 = vadd.xlane.f32.xlu0 %v5647_v18 }
0x182c   :  { %v5644_v23 = vsel %vm248_vm4, %v12839_v36, 0.0 }
0x182d   :  { %5645 = vadd.xlane.f32.xlu1 %v5644_v23 }
0x18a8   :  { %v5631_v16 = vpop.xlane.xlu0 %5630 }
0x18a9   :  { %12840 = vrcp.f32 %v5631_v16  ;;  %v5912_v16 = vadd.f32 %v14956_v17, %v14961_v12 }
0x18aa   :  { %v5628_v15 = vpop.xlane.xlu1 %5627 }
0x18ab   :  { %12842 = vrcp.f32 %v5628_v15 }
0x18ac   :  { %v5637_v50 = vpop.xlane.xlu0 %5636 }
0x18ad   :  { %12844 = vrcp.f32 %v5637_v50 }
0x18ae   :  { %v5634_v3 = vpop.xlane.xlu1 %5633 }
0x18af   :  { %12846 = vrcp.f32 %v5634_v3 }
0x18b0   :  { %v5643_v44 = vpop.xlane.xlu0 %5642 }
0x18b1   :  { %12848 = vrcp.f32 %v5643_v44 }
0x18b2   :  { %v5640_v38 = vpop.xlane.xlu1 %5639 }
0x18b3   :  { %12850 = vrcp.f32 %v5640_v38 }
0x18b4   :  { %v5649_v47 = vpop.xlane.xlu0 %5648 }
0x18b5   :  { %12852 = vrcp.f32 %v5649_v47 }
0x18b6   :  { %v5646_v22 = vpop.xlane.xlu1 %5645  ;;  %v12841_v62 = vpop.eup %12840 }
0x18b7   :  { %12854 = vrcp.f32 %v5646_v22  ;;  %v5659_v8 = vmul.f32 %v12841_v62, %v12825_v31 }
0x18b8   :  { %v12843_v37 = vpop.eup %12842 }
0x18b9   :  { %v5658_v52 = vmul.f32 %v12843_v37, %v12827_v25 }
0x18ba   :  { %v12845_v2 = vpop.eup %12844 }
0x18bb   :  { %11851 = vmatprep.mubr.msk.f32.mxu1 %vm248_vm4, %v5658_v52  ;;  %v5661_v29 = vmul.f32 %v12845_v2, %v12829_v20 }
0x18bc   :  { %v12847_v46 = vpop.eup %12846  ;;  %11852 = vmatmul.mubr.msk.f32.vlgmr.msra.gmra.mxu1 %vm248_vm4, %v5659_v8 }
0x18bd   :  { %11888 = vmatpush3.bf16.msra.mxu1 %v12512_v54  ;;  %v5660_v33 = vmul.f32 %v12847_v46, %v12831_v21  ;;  %v12515_v21 = vld [vmem:[%s16050_s28 + $0x160] sm:$0xff]  }
0x18be   :  { %11889 = vmatprep.subr.bf16.mxu1 %v12513_v28  ;;  %v12849_v25 = vpop.eup %12848 }
0x18bf   :  { %11854 = vmatprep.mubr.msk.f32.mxu1 %vm248_vm4, %v5660_v33  ;;  %v5663_v40 = vmul.f32 %v12849_v25, %v12833_v39  ;;  %v12517_v39 = vld [vmem:[%s16050_s28 + $0x150] sm:$0xff]  }
0x18c0   :  { %v12851_v31 = vpop.eup %12850  ;;  %11855 = vmatmul.mubr.msk.f32.gmra.mxu1 %vm248_vm4, %v5661_v29 }
0x18c1   :  { %11890 = vmatpush3.bf16.msra.mxu1 %v12513_v28  ;;  %v5662_v34 = vmul.f32 %v12851_v31, %v12835_v30  ;;  %v12516_v30 = vld [vmem:[%s16050_s28 + $0x158] sm:$0xff]  }
0x18c2   :  { %11891 = vmatprep.subr.bf16.mxu1 %v12514_v57  ;;  %v12853_v18 = vpop.eup %12852 }
0x18c3   :  { %11857 = vmatprep.mubr.msk.f32.mxu1 %vm248_vm4, %v5662_v34  ;;  %v5665_v54 = vmul.f32 %v12853_v18, %v12837_v59  ;;  %v12518_v59 = vld [vmem:[%s16050_s28 + $0x148] sm:$0xff]  }
0x18c4   :  { %v12855_v20 = vpop.eup %12854  ;;  %11858 = vmatmul.mubr.msk.f32.gmra.mxu1 %vm248_vm4, %v5663_v40 }
0x18c5   :  { %11892 = vmatpush3.bf16.msra.mxu1 %v12514_v57  ;;  %v5664_v23 = vmul.f32 %v12855_v20, %v12839_v36  ;;  %v12519_v36 = vld [vmem:[%s16050_s28 + $0x140] sm:$0xff]  }
0x18c6   :  { %11893 = vmatprep.subr.bf16.mxu1 %v12515_v21  ;;  %v10051_v57 = vld [vmem:[%s16013_s11 + $0x5] ss:$0 sm:$0xff] }
0x18c7   :  { %11860 = vmatprep.mubr.msk.f32.mxu1 %vm248_vm4, %v5664_v23 }
0x18c8   :  { %11861 = vmatmul.mubr.msk.f32.gmra.mxu1 %vm248_vm4, %v5665_v54 }
0x18c9   :  { %11894 = vmatpush3.bf16.msra.mxu1 %v12515_v21  ;;  %11903 = vmatprep.mubr.bf16.mxu1 %v14685_v53 }
0x18ca   :  { %11895 = vmatprep.subr.bf16.mxu1 %v12516_v30 }
0x18cd   :  { %11896 = vmatpush3.bf16.msra.mxu1 %v12516_v30 }
0x18ce   :  { %11897 = vmatprep.subr.bf16.mxu1 %v12517_v39 }
0x18d1   :  { %11898 = vmatpush3.bf16.msra.mxu1 %v12517_v39 }
0x18d2   :  { %11899 = vmatprep.subr.bf16.mxu1 %v12518_v59 }
0x18d5   :  { %11900 = vmatpush3.bf16.msra.mxu1 %v12518_v59 }
0x18d6   :  { %11901 = vmatprep.subr.bf16.mxu1 %v12519_v36 }
0x18d9   :  { %11902 = vmatpush3.bf16.msra.mxu1 %v12519_v36 }
0x18dc   :  { %11904 = vmatmul.mubr.bf16.vlgmr.msra.gmra.mxu1 %v14698_v60 }
0x18dd   :  { %11907 = vmatprep.mubr.bf16.mxu1 %v14723_v63 }
0x18e4   :  { %11908 = vmatmul.mubr.bf16.gmra.mxu1 %v14742_v56 }
0x18e5   :  { %11951 = vmatprep.mubr.msk.f32.mxu1 %vm993_vm6, %v5912_v16 }
0x197c   :  { %v15039_v15 = vpop.f32.mrf.mxu1 }
0x197e   :  { %v15041_v50 = vpop.f32.mrf.mxu1 }
0x197f   :  { %v5795_v3 = vpack.c.bf16 %v15039_v15, %v15041_v50  ;;  %v12524_v15 = vld [vmem:[%s16050_s28 + $0x1a8] sm:$0xff]   ;;  %v12525_v50 = vld [vmem:[%s16050_s28 + $0x1a0] sm:$0xff]  }
0x1980   :  { %v15045_v44 = vpop.f32.mrf.mxu1 }
0x1982   :  { %v15047_v38 = vpop.f32.mrf.mxu1 }
0x1983   :  { %v5796_v47 = vpack.c.bf16 %v15045_v44, %v15047_v38  ;;  %v12527_v44 = vld [vmem:[%s16050_s28 + $0x190] sm:$0xff]   ;;  %v12528_v38 = vld [vmem:[%s16050_s28 + $0x188] sm:$0xff]  }
0x1984   :  { %v15051_v22 = vpop.f32.mrf.mxu1 }
0x1986   :  { %v15053_v17 = vpop.f32.mrf.mxu1 }
0x1987   :  { %v5797_v12 = vpack.c.bf16 %v15051_v22, %v15053_v17  ;;  %v12531_v22 = vld [vmem:[%s16016_s14 + $0x50] sm:$0xff]   ;;  %v12532_v17 = vld [vmem:[%s16049_s6 + $0x1b8] sm:$0xff]  }
0x1988   :  { %v15057_v62 = vpop.f32.mrf.mxu1 }
0x198a   :  { %v15059_v37 = vpop.f32.mrf.mxu1 }
0x198b   :  { %v5798_v52 = vpack.c.bf16 %v15057_v62, %v15059_v37 }
0x199c   :  { %v11905_v8 = vpop.f32.mrf.mxu1 }
0x199d   :  { %v6058_v23 = vadd.f32 %v11905_v8, %v10051_v57 }
0x199e   :  { %v6049_v28 = vpop.f32.mrf.mxu1 }
0x199f   :  { %v6050_v30 = vadd.f32 %v10051_v57, %v6049_v28 }
0x19a0   :  { %v11906_v2 = vpop.f32.mrf.mxu1 }
0x19a1   :  { %v6061_v20 = vadd.f32 %v11906_v2, %v10051_v57 }
0x19a2   :  { %v6052_v46 = vpop.f32.mrf.mxu1 }
0x19a3   :  { %v6053_v54 = vadd.f32 %v10051_v57, %v6052_v46 }
0x19a4   :  { %v11909_v33 = vpop.f32.mrf.mxu1 }
0x19a5   :  { %v6074_v34 = vadd.f32 %v11909_v33, %v10051_v57 }
0x19a6   :  { %v6065_v29 = vpop.f32.mrf.mxu1 }
0x19a7   :  { %v6066_v18 = vadd.f32 %v10051_v57, %v6065_v29 }
0x19a8   :  { %v11910_v25 = vpop.f32.mrf.mxu1 }
0x19a9   :  { %v6077_v31 = vadd.f32 %v11910_v25, %v10051_v57 }
0x19aa   :  { %v6068_v40 = vpop.f32.mrf.mxu1 }
0x19ab   :  { %11935 = vmatprep.subr.msk.mxu1 %vm993_vm6, %v6077_v31  ;;  %v6069_v21 = vadd.f32 %v10051_v57, %v6068_v40 }
0x19ac   :  { %11936 = vmatpush3.xpose.msk.msra.mxu1 %vm993_vm6, %v6077_v31 }
0x19ad   :  { %11937 = vmatprep.subr.msk.mxu1 %vm993_vm6, %v6074_v34 }
0x19b0   :  { %11938 = vmatpush3.xpose.msk.msra.mxu1 %vm993_vm6, %v6074_v34 }
0x19b1   :  { %11939 = vmatprep.subr.msk.mxu1 %vm993_vm6, %v6069_v21 }
0x19b4   :  { %11940 = vmatpush3.xpose.msk.msra.mxu1 %vm993_vm6, %v6069_v21 }
0x19b5   :  { %11941 = vmatprep.subr.msk.mxu1 %vm993_vm6, %v6066_v18 }
0x19b8   :  { %11942 = vmatpush3.xpose.msk.msra.mxu1 %vm993_vm6, %v6066_v18 }
0x19b9   :  { %11943 = vmatprep.subr.msk.mxu1 %vm993_vm6, %v6061_v20 }
0x19bc   :  { %11944 = vmatpush3.xpose.msk.msra.mxu1 %vm993_vm6, %v6061_v20 }
0x19bd   :  { %11945 = vmatprep.subr.msk.mxu1 %vm993_vm6, %v6058_v23 }
0x19c0   :  { %11946 = vmatpush3.xpose.msk.msra.mxu1 %vm993_vm6, %v6058_v23 }
0x19c1   :  { %11947 = vmatprep.subr.msk.mxu1 %vm993_vm6, %v6053_v54 }
0x19c4   :  { %11948 = vmatpush3.xpose.msk.msra.mxu1 %vm993_vm6, %v6053_v54 }
0x19c5   :  { %11949 = vmatprep.subr.msk.mxu1 %vm993_vm6, %v6050_v30 }
0x19c8   :  { %11950 = vmatpush3.xpose.msk.msra.mxu1 %vm993_vm6, %v6050_v30 }
0x19cb   :  { %11952 = vmatmul.mubr.msk.f32.vlgmr.msra.gmra.mxu1 %vm993_vm6, %v14967_v48 }
0x19cc   :  { %11954 = vmatprep.mubr.msk.f32.mxu1 %vm993_vm6, %v14959_v19 }
0x19cf   :  { %11955 = vmatmul.mubr.msk.f32.gmra.mxu1 %vm993_vm6, %v14964_v5 }
0x19d0   :  { %11957 = vmatprep.mubr.msk.f32.mxu1 %vm993_vm6, %v14973_v42 }
0x19d3   :  { %11958 = vmatmul.mubr.msk.f32.gmra.mxu1 %vm993_vm6, %v14979_v1 }
0x19d4   :  { %11960 = vmatprep.mubr.msk.f32.mxu1 %vm993_vm6, %v14970_v7 }
0x19d7   :  { %11961 = vmatmul.mubr.msk.f32.gmra.mxu1 %vm993_vm6, %v14976_v26 }
0x1a8b   :  { %v11953_v39 = vpop.f32.mrf.mxu1 }
0x1a8c   :  { %v6372_v48 = vmul.f32 0.17677669, %v11953_v39 }
0x1a8d   :  { %v6332_v59 = vpop.f32.mrf.mxu1 }
0x1a8e   :  { %v6380_v19 = vadd.f32 %v14876_v13, %v6372_v48  ;;  %v6371_v36 = vmul.f32 0.17677669, %v6332_v59 }
0x1a8f   :  { %v11956_v16 = vpop.f32.mrf.mxu1 }
0x1a90   :  { %v6379_v5 = vadd.f32 %v14884_v51, %v6371_v36  ;;  %v6374_v8 = vmul.f32 0.17677669, %v11956_v16  ;;  %v6390_v42 = vsel %vm248_vm4, %v6380_v19, -inf }
0x1a91   :  { %6391 = vmax.xlane.f32.xlu0 %v6390_v42  ;;  %v6342_v1 = vpop.f32.mrf.mxu1 }
0x1a92   :  { %v6382_v28 = vadd.f32 %v14894_v6, %v6374_v8  ;;  %v6373_v7 = vmul.f32 0.17677669, %v6342_v1  ;;  %v6387_v2 = vsel %vm248_vm4, %v6379_v5, -inf }
0x1a93   :  { %6388 = vmax.xlane.f32.xlu1 %v6387_v2  ;;  %v11959_v26 = vpop.f32.mrf.mxu1 }
0x1a94   :  { %v6381_v46 = vadd.f32 %v14904_v11, %v6373_v7  ;;  %v6376_v33 = vmul.f32 0.17677669, %v11959_v26  ;;  %v6396_v13 = vsel %vm248_vm4, %v6382_v28, -inf }
0x1a95   :  { %6397 = vmax.xlane.f32.xlu0 %v6396_v13  ;;  %v6352_v29 = vpop.f32.mrf.mxu1 }
0x1a96   :  { %v6384_v51 = vadd.f32 %v14914_v61, %v6376_v33  ;;  %v6375_v57 = vmul.f32 0.17677669, %v6352_v29  ;;  %v6393_v25 = vsel %vm248_vm4, %v6381_v46, -inf }
0x1a97   :  { %6394 = vmax.xlane.f32.xlu1 %v6393_v25  ;;  %v11962_v31 = vpop.f32.mrf.mxu1 }
0x1a98   :  { %v6383_v6 = vadd.f32 %v14924_v27, %v6375_v57  ;;  %v6378_v34 = vmul.f32 0.17677669, %v11962_v31  ;;  %v6402_v40 = vsel %vm248_vm4, %v6384_v51, -inf }
0x1a99   :  { %6403 = vmax.xlane.f32.xlu0 %v6402_v40  ;;  %v6362_v21 = vpop.f32.mrf.mxu1 }
0x1a9a   :  { %v6386_v11 = vadd.f32 %v14934_v55, %v6378_v34  ;;  %v6377_v18 = vmul.f32 0.17677669, %v6362_v21  ;;  %v6399_v20 = vsel %vm248_vm4, %v6383_v6, -inf }
0x1a9b   :  { %6400 = vmax.xlane.f32.xlu1 %v6399_v20 }
0x1a9c   :  { %v6385_v61 = vadd.f32 %v14944_v4, %v6377_v18  ;;  %v6408_v23 = vsel %vm248_vm4, %v6386_v11, -inf }
0x1a9d   :  { %6409 = vmax.xlane.f32.xlu0 %v6408_v23 }
0x1a9e   :  { %v6405_v54 = vsel %vm248_vm4, %v6385_v61, -inf }
0x1a9f   :  { %6406 = vmax.xlane.f32.xlu1 %v6405_v54 }
0x1b1a   :  { %v6392_v27 = vpop.xlane.xlu0 %6391 }
0x1b1b   :  { %v6412_v30 = vsub.f32 %v6380_v19, %v6392_v27 }
0x1b1c   :  { %v6389_v39 = vpop.xlane.xlu1 %6388 }
0x1b1d   :  { %v6421_v48 = vmul.f32 1.442695, %v6412_v30  ;;  %v6411_v59 = vsub.f32 %v6379_v5, %v6389_v39 }
0x1b1e   :  { %v6398_v36 = vpop.xlane.xlu0 %6397 }
0x1b1f   :  { %12856 = vpow2.f32 %v6421_v48  ;;  %v6419_v55 = vmul.f32 1.442695, %v6411_v59  ;;  %v6414_v16 = vsub.f32 %v6382_v28, %v6398_v36  ;;  %v12520_v59 = vld [vmem:[%s16016_s14 + $0x48] sm:$0xff]   ;;  %v12530_v36 = vld [vmem:[%s16016_s14 + $0x58] sm:$0xff]  }
0x1b20   :  { %v6395_v8 = vpop.xlane.xlu1 %6394  ;;  %12003 = vmatprep.subr.bf16.mxu0 %v12520_v59  ;;  %11991 = vmatprep.subr.bf16.mxu1 %v12530_v36 }
0x1b21   :  { %12858 = vpow2.f32 %v6419_v55  ;;  %v6425_v42 = vmul.f32 1.442695, %v6414_v16  ;;  %v6413_v1 = vsub.f32 %v6381_v46, %v6395_v8  ;;  %11992 = vmatpush3.bf16.msra.mxu1 %v12530_v36 }
0x1b22   :  { %v6404_v4 = vpop.xlane.xlu0 %6403  ;;  %11993 = vmatprep.subr.bf16.mxu1 %v12531_v22 }
0x1b23   :  { %12860 = vpow2.f32 %v6425_v42  ;;  %v6423_v7 = vmul.f32 1.442695, %v6413_v1  ;;  %v6416_v2 = vsub.f32 %v6384_v51, %v6404_v4 }
0x1b24   :  { %v6401_v26 = vpop.xlane.xlu1 %6400 }
0x1b25   :  { %12862 = vpow2.f32 %v6423_v7  ;;  %v6429_v33 = vmul.f32 1.442695, %v6416_v2  ;;  %v6415_v13 = vsub.f32 %v6383_v6, %v6401_v26  ;;  %11994 = vmatpush3.bf16.msra.mxu1 %v12531_v22 }
0x1b26   :  { %v6410_v19 = vpop.xlane.xlu0 %6409  ;;  %12015 = vmatprep.subr.bf16.mxu1 %v12532_v17 }
0x1b27   :  { %12864 = vpow2.f32 %v6429_v33  ;;  %v6427_v29 = vmul.f32 1.442695, %v6415_v13  ;;  %v6418_v5 = vsub.f32 %v6386_v11, %v6410_v19 }
0x1b28   :  { %v6407_v57 = vpop.xlane.xlu1 %6406 }
0x1b29   :  { %12866 = vpow2.f32 %v6427_v29  ;;  %v6433_v25 = vmul.f32 1.442695, %v6418_v5  ;;  %v6417_v28 = vsub.f32 %v6385_v61, %v6407_v57  ;;  %v12521_v29 = vld [vmem:[%s16016_s14 + $0x40] sm:$0xff]  }
0x1b2b   :  { %12868 = vpow2.f32 %v6433_v25  ;;  %v6431_v31 = vmul.f32 1.442695, %v6417_v28 }
0x1b2c   :  { %v12857_v34 = vpop.eup %12856 }
0x1b2d   :  { %12870 = vpow2.f32 %v6431_v31  ;;  %v6438_v46 = vsel %vm248_vm4, %v12857_v34, 0.0  ;;  %v12522_v31 = vld [vmem:[%s16050_s28 + $0x1b8] sm:$0xff]  }
0x1b2e   :  { %v12859_v40 = vpop.eup %12858  ;;  %6439 = vadd.xlane.f32.xlu0 %v6438_v46 }
0x1b2f   :  { %v6435_v51 = vsel %vm248_vm4, %v12859_v40, 0.0 }
0x1b30   :  { %v12861_v21 = vpop.eup %12860  ;;  %6436 = vadd.xlane.f32.xlu1 %v6435_v51 }
0x1b31   :  { %v6444_v6 = vsel %vm248_vm4, %v12861_v21, 0.0 }
0x1b32   :  { %v12863_v18 = vpop.eup %12862  ;;  %6445 = vadd.xlane.f32.xlu0 %v6444_v6 }
0x1b33   :  { %v6441_v11 = vsel %vm248_vm4, %v12863_v18, 0.0 }
0x1b34   :  { %v12865_v20 = vpop.eup %12864  ;;  %6442 = vadd.xlane.f32.xlu1 %v6441_v11 }
0x1b35   :  { %v6450_v61 = vsel %vm248_vm4, %v12865_v20, 0.0 }
0x1b36   :  { %v12867_v23 = vpop.eup %12866  ;;  %6451 = vadd.xlane.f32.xlu0 %v6450_v61 }
0x1b37   :  { %v6447_v54 = vsel %vm248_vm4, %v12867_v23, 0.0 }
0x1b38   :  { %v12869_v27 = vpop.eup %12868  ;;  %6448 = vadd.xlane.f32.xlu1 %v6447_v54  ;;  %v12533_v54 = vld [vmem:[%s16049_s6 + $0x1b0] sm:$0xff]  }
0x1b39   :  { %v6456_v30 = vsel %vm248_vm4, %v12869_v27, 0.0 }
0x1b3a   :  { %v12871_v39 = vpop.eup %12870  ;;  %6457 = vadd.xlane.f32.xlu0 %v6456_v30 }
0x1b3b   :  { %v6453_v48 = vsel %vm248_vm4, %v12871_v39, 0.0 }
0x1b3c   :  { %6454 = vadd.xlane.f32.xlu1 %v6453_v48  ;;  %v12534_v48 = vld [vmem:[%s16049_s6 + $0x1a8] sm:$0xff]  }
0x1bb7   :  { %v6440_v55 = vpop.xlane.xlu0 %6439 }
0x1bb8   :  { %12872 = vrcp.f32 %v6440_v55 }
0x1bb9   :  { %v6437_v16 = vpop.xlane.xlu1 %6436 }
0x1bba   :  { %12874 = vrcp.f32 %v6437_v16  ;;  %v12535_v16 = vld [vmem:[%s16049_s6 + $0x1a0] sm:$0xff]  }
0x1bbb   :  { %v6446_v8 = vpop.xlane.xlu0 %6445 }
0x1bbc   :  { %12876 = vrcp.f32 %v6446_v8 }
0x1bbd   :  { %v6443_v42 = vpop.xlane.xlu1 %6442 }
0x1bbe   :  { %12878 = vrcp.f32 %v6443_v42  ;;  %v12536_v42 = vld [vmem:[%s16049_s6 + $0x198] sm:$0xff]  }
0x1bbf   :  { %v6452_v1 = vpop.xlane.xlu0 %6451 }
0x1bc0   :  { %12880 = vrcp.f32 %v6452_v1 }
0x1bc1   :  { %v6449_v4 = vpop.xlane.xlu1 %6448 }
0x1bc2   :  { %12882 = vrcp.f32 %v6449_v4  ;;  %v12537_v4 = vld [vmem:[%s16049_s6 + $0x190] sm:$0xff]  }
0x1bc3   :  { %v6458_v7 = vpop.xlane.xlu0 %6457 }
0x1bc4   :  { %12884 = vrcp.f32 %v6458_v7 }
0x1bc5   :  { %v6455_v2 = vpop.xlane.xlu1 %6454  ;;  %v12873_v26 = vpop.eup %12872 }
0x1bc6   :  { %12886 = vrcp.f32 %v6455_v2  ;;  %v6468_v19 = vmul.f32 %v12873_v26, %v12857_v34  ;;  %v12538_v2 = vld [vmem:[%s16049_s6 + $0x188] sm:$0xff]  }
0x1bc7   :  { %v12875_v33 = vpop.eup %12874 }
0x1bc8   :  { %v6467_v13 = vmul.f32 %v12875_v33, %v12859_v40  ;;  %v12539_v33 = vld [vmem:[%s16049_s6 + $0x180] sm:$0xff]  }
0x1bc9   :  { %v12877_v5 = vpop.eup %12876 }
0x1bca   :  { %11979 = vmatprep.mubr.msk.f32.mxu0 %vm248_vm4, %v6467_v13  ;;  %v6470_v28 = vmul.f32 %v12877_v5, %v12861_v21  ;;  %v12541_v5 = vld [vmem:[%s16051_s12 + $0x1b0] sm:$0xff]  }
0x1bcb   :  { %v12879_v57 = vpop.eup %12878  ;;  %11980 = vmatmul.mubr.msk.f32.vlgmr.msra.gmra.mxu0 %vm248_vm4, %v6468_v19  ;;  %v12540_v19 = vld [vmem:[%s16051_s12 + $0x1b8] sm:$0xff]  }
0x1bcc   :  { %v6469_v25 = vmul.f32 %v12879_v57, %v12863_v18  ;;  %12004 = vmatpush3.bf16.msra.mxu0 %v12520_v59 }
0x1bcd   :  { %12005 = vmatprep.subr.bf16.mxu0 %v12521_v29  ;;  %v12881_v46 = vpop.eup %12880 }
0x1bce   :  { %11982 = vmatprep.mubr.msk.f32.mxu0 %vm248_vm4, %v6469_v25  ;;  %v6472_v51 = vmul.f32 %v12881_v46, %v12865_v20  ;;  %v12523_v20 = vld [vmem:[%s16050_s28 + $0x1b0] sm:$0xff]   ;;  %v12542_v25 = vld [vmem:[%s16051_s12 + $0x1a8] sm:$0xff]  }
0x1bcf   :  { %v12883_v34 = vpop.eup %12882  ;;  %11983 = vmatmul.mubr.msk.f32.gmra.mxu0 %vm248_vm4, %v6470_v28 }
0x1bd0   :  { %v6471_v40 = vmul.f32 %v12883_v34, %v12867_v23  ;;  %12006 = vmatpush3.bf16.msra.mxu0 %v12521_v29 }
0x1bd1   :  { %12039 = vmatprep.subr.bf16.mxu0 %v12522_v31  ;;  %v12885_v6 = vpop.eup %12884 }
0x1bd2   :  { %11985 = vmatprep.mubr.msk.f32.mxu0 %vm248_vm4, %v6471_v40  ;;  %v6474_v11 = vmul.f32 %v12885_v6, %v12869_v27  ;;  %v12544_v40 = vld [vmem:[%s16051_s12 + $0x198] sm:$0xff]  }
0x1bd3   :  { %v12887_v18 = vpop.eup %12886  ;;  %11986 = vmatmul.mubr.msk.f32.gmra.mxu0 %vm248_vm4, %v6472_v51 }
0x1bd4   :  { %v6473_v21 = vmul.f32 %v12887_v18, %v12871_v39  ;;  %v12545_v18 = vld [vmem:[%s16051_s12 + $0x190] sm:$0xff]  }
0x1bd6   :  { %11988 = vmatprep.mubr.msk.f32.mxu0 %vm248_vm4, %v6473_v21 }
0x1bd7   :  { %11989 = vmatmul.mubr.msk.f32.gmra.mxu0 %vm248_vm4, %v6474_v11 }
0x1bd8   :  { %12007 = vmatprep.mubr.msk.bf16.mxu0 %vm993_vm6, %v5795_v3  ;;  %v12526_v3 = vld [vmem:[%s16050_s28 + $0x198] sm:$0xff]  }
0x1bdb   :  { %12008 = vmatmul.mubr.msk.bf16.vlgmr.msra.gmra.mxu0 %vm993_vm6, %v5796_v47  ;;  %v12529_v47 = vld [vmem:[%s16050_s28 + $0x180] sm:$0xff]  }
0x1bdc   :  { %12040 = vmatpush3.bf16.msra.mxu0 %v12522_v31  ;;  %12011 = vmatprep.mubr.msk.bf16.mxu0 %vm993_vm6, %v5797_v12  ;;  %v12543_v31 = vld [vmem:[%s16051_s12 + $0x1a0] sm:$0xff]  }
0x1bdd   :  { %12041 = vmatprep.subr.bf16.mxu0 %v12523_v20 }
0x1be0   :  { %12042 = vmatpush3.bf16.msra.mxu0 %v12523_v20  ;;  %v12546_v20 = vld [vmem:[%s16051_s12 + $0x188] sm:$0xff]  }
0x1be1   :  { %12043 = vmatprep.subr.bf16.mxu0 %v12524_v15 }
0x1be3   :  { %12012 = vmatmul.mubr.msk.bf16.gmra.mxu0 %vm993_vm6, %v5798_v52 }
0x1be4   :  { %12044 = vmatpush3.bf16.msra.mxu0 %v12524_v15  ;;  %12055 = vmatprep.mubr.bf16.mxu0 %v14685_v53  ;;  %v10169_v15 = vld [vmem:[%s16013_s11 + $0x6] ss:$0 sm:$0xff] }
0x1be5   :  { %12045 = vmatprep.subr.bf16.mxu0 %v12525_v50 }
0x1be8   :  { %12046 = vmatpush3.bf16.msra.mxu0 %v12525_v50 }
0x1be9   :  { %12047 = vmatprep.subr.bf16.mxu0 %v12526_v3 }
0x1bec   :  { %12048 = vmatpush3.bf16.msra.mxu0 %v12526_v3 }
0x1bed   :  { %12049 = vmatprep.subr.bf16.mxu0 %v12527_v44 }
0x1bf0   :  { %12050 = vmatpush3.bf16.msra.mxu0 %v12527_v44 }
0x1bf1   :  { %12051 = vmatprep.subr.bf16.mxu0 %v12528_v38 }
0x1bf4   :  { %12052 = vmatpush3.bf16.msra.mxu0 %v12528_v38  ;;  %v12547_v38 = vld [vmem:[%s16051_s12 + $0x180] sm:$0xff]  }
0x1bf5   :  { %12053 = vmatprep.subr.bf16.mxu0 %v12529_v47 }
0x1bf8   :  { %12054 = vmatpush3.bf16.msra.mxu0 %v12529_v47 }
0x1bfb   :  { %12056 = vmatmul.mubr.bf16.vlgmr.msra.gmra.mxu0 %v14698_v60 }
0x1bfc   :  { %12059 = vmatprep.mubr.bf16.mxu0 %v14723_v63 }
0x1c03   :  { %12060 = vmatmul.mubr.bf16.gmra.mxu0 %v14742_v56 }
0x1c8b   :  { %v11981_v12 = vpop.f32.mrf.mxu0 }
0x1c8d   :  { %v6565_v62 = vpop.f32.mrf.mxu0 }
0x1c8e   :  { %v6604_v37 = vpack.c.bf16 %v11981_v12, %v6565_v62 }
0x1c8f   :  { %v11984_v52 = vpop.f32.mrf.mxu0 }
0x1c90   :  { %11995 = vmatprep.mubr.msk.bf16.mxu1 %vm993_vm6, %v6604_v37 }
0x1c91   :  { %v6575_v61 = vpop.f32.mrf.mxu0 }
0x1c92   :  { %v6605_v23 = vpack.c.bf16 %v11984_v52, %v6575_v61 }
0x1c93   :  { %v11987_v27 = vpop.f32.mrf.mxu0 }
0x1c94   :  { %11996 = vmatmul.mubr.msk.bf16.vlgmr.msra.gmra.mxu1 %vm993_vm6, %v6605_v23 }
0x1c95   :  { %12016 = vmatpush3.bf16.msra.mxu1 %v12532_v17  ;;  %v6585_v30 = vpop.f32.mrf.mxu0 }
0x1c96   :  { %v6606_v39 = vpack.c.bf16 %v11987_v27, %v6585_v30  ;;  %12017 = vmatprep.subr.bf16.mxu1 %v12533_v54 }
0x1c97   :  { %v11990_v59 = vpop.f32.mrf.mxu0 }
0x1c98   :  { %11999 = vmatprep.mubr.msk.bf16.mxu1 %vm993_vm6, %v6606_v39 }
0x1c99   :  { %12018 = vmatpush3.bf16.msra.mxu1 %v12533_v54  ;;  %v6595_v36 = vpop.f32.mrf.mxu0 }
0x1c9a   :  { %v6607_v55 = vpack.c.bf16 %v11990_v59, %v6595_v36  ;;  %12019 = vmatprep.subr.bf16.mxu1 %v12534_v48 }
0x1c9b   :  { %v15200_v8 = vpop.f32.mrf.mxu0 }
0x1c9c   :  { %12000 = vmatmul.mubr.msk.bf16.gmra.mxu1 %vm993_vm6, %v6607_v55  ;;  %v10143_v55 = vld [vmem:[%s16012_s9 + $0x6] ss:$0 sm:$0xff] }
0x1c9d   :  { %12020 = vmatpush3.bf16.msra.mxu1 %v12534_v48  ;;  %12031 = vmatprep.mubr.bf16.mxu1 %v14685_v53  ;;  %v15206_v1 = vpop.f32.mrf.mxu0 }
0x1c9e   :  { %12021 = vmatprep.subr.bf16.mxu1 %v12535_v16 }
0x1c9f   :  { %v15211_v7 = vpop.f32.mrf.mxu0 }
0x1ca1   :  { %12022 = vmatpush3.bf16.msra.mxu1 %v12535_v16  ;;  %v15216_v26 = vpop.f32.mrf.mxu0 }
0x1ca2   :  { %12023 = vmatprep.subr.bf16.mxu1 %v12536_v42 }
0x1ca3   :  { %v15221_v13 = vpop.f32.mrf.mxu0 }
0x1ca5   :  { %12024 = vmatpush3.bf16.msra.mxu1 %v12536_v42  ;;  %v15226_v29 = vpop.f32.mrf.mxu0 }
0x1ca6   :  { %12025 = vmatprep.subr.bf16.mxu1 %v12537_v4 }
0x1ca7   :  { %v15232_v57 = vpop.f32.mrf.mxu0 }
0x1ca9   :  { %12026 = vmatpush3.bf16.msra.mxu1 %v12537_v4  ;;  %v15238_v28 = vpop.f32.mrf.mxu0 }
0x1caa   :  { %12027 = vmatprep.subr.bf16.mxu1 %v12538_v2 }
0x1cad   :  { %12028 = vmatpush3.bf16.msra.mxu1 %v12538_v2 }
0x1cae   :  { %12029 = vmatprep.subr.bf16.mxu1 %v12539_v33 }
0x1cb1   :  { %12030 = vmatpush3.bf16.msra.mxu1 %v12539_v33 }
0x1cb2   :  { %12063 = vmatprep.subr.bf16.mxu1 %v12540_v19 }
0x1cb4   :  { %12032 = vmatmul.mubr.bf16.vlgmr.msra.gmra.mxu1 %v14698_v60 }
0x1cb5   :  { %12035 = vmatprep.mubr.bf16.mxu1 %v14723_v63  ;;  %12064 = vmatpush3.bf16.msra.mxu1 %v12540_v19 }
0x1cb6   :  { %12065 = vmatprep.subr.bf16.mxu1 %v12541_v5 }
0x1cb9   :  { %12066 = vmatpush3.bf16.msra.mxu1 %v12541_v5 }
0x1cba   :  { %12067 = vmatprep.subr.bf16.mxu1 %v12542_v25 }
0x1cbb   :  { %v12057_v46 = vpop.f32.mrf.mxu0 }
0x1cbc   :  { %12036 = vmatmul.mubr.bf16.gmra.mxu1 %v14742_v56  ;;  %v7045_v62 = vadd.f32 %v12057_v46, %v10169_v15 }
0x1cbd   :  { %v7036_v34 = vpop.f32.mrf.mxu0  ;;  %12068 = vmatpush3.bf16.msra.mxu1 %v12542_v25  ;;  %12079 = vmatprep.mubr.bf16.mxu1 %v14685_v53 }
0x1cbe   :  { %12069 = vmatprep.subr.bf16.mxu1 %v12543_v31  ;;  %v7037_v52 = vadd.f32 %v10169_v15, %v7036_v34 }
0x1cbf   :  { %v12058_v51 = vpop.f32.mrf.mxu0 }
0x1cc0   :  { %v7048_v12 = vadd.f32 %v12058_v51, %v10169_v15 }
0x1cc1   :  { %v7039_v6 = vpop.f32.mrf.mxu0  ;;  %12070 = vmatpush3.bf16.msra.mxu1 %v12543_v31 }
0x1cc2   :  { %12071 = vmatprep.subr.bf16.mxu1 %v12544_v40  ;;  %v7040_v37 = vadd.f32 %v10169_v15, %v7039_v6 }
0x1cc3   :  { %v12061_v21 = vpop.f32.mrf.mxu0 }
0x1cc4   :  { %v7061_v44 = vadd.f32 %v12061_v21, %v10169_v15 }
0x1cc5   :  { %v7052_v11 = vpop.f32.mrf.mxu0  ;;  %12072 = vmatpush3.bf16.msra.mxu1 %v12544_v40 }
0x1cc6   :  { %12073 = vmatprep.subr.bf16.mxu1 %v12545_v18  ;;  %v7053_v17 = vadd.f32 %v10169_v15, %v7052_v11 }
0x1cc7   :  { %v12062_v50 = vpop.f32.mrf.mxu0 }
0x1cc8   :  { %v7064_v3 = vadd.f32 %v12062_v50, %v10169_v15 }
0x1cc9   :  { %12074 = vmatpush3.bf16.msra.mxu1 %v12545_v18  ;;  %v7055_v47 = vpop.f32.mrf.mxu0 }
0x1cca   :  { %12087 = vmatprep.subr.msk.mxu0 %vm993_vm6, %v7064_v3  ;;  %12075 = vmatprep.subr.bf16.mxu1 %v12546_v20  ;;  %v7056_v22 = vadd.f32 %v10169_v15, %v7055_v47 }
0x1ccb   :  { %12088 = vmatpush3.xpose.msk.msra.mxu0 %vm993_vm6, %v7064_v3 }
0x1ccc   :  { %12089 = vmatprep.subr.msk.mxu0 %vm993_vm6, %v7061_v44 }
0x1ccd   :  { %12076 = vmatpush3.bf16.msra.mxu1 %v12546_v20 }
0x1cce   :  { %12077 = vmatprep.subr.bf16.mxu1 %v12547_v38 }
0x1ccf   :  { %12090 = vmatpush3.xpose.msk.msra.mxu0 %vm993_vm6, %v7061_v44  ;;  %v10195_v44 = vld [vmem:[%s16014_s13 + $0x6] ss:$0 sm:$0xff] }
0x1cd0   :  { %12091 = vmatprep.subr.msk.mxu0 %vm993_vm6, %v7056_v22 }
0x1cd1   :  { %12078 = vmatpush3.bf16.msra.mxu1 %v12547_v38 }
0x1cd3   :  { %12092 = vmatpush3.xpose.msk.msra.mxu0 %vm993_vm6, %v7056_v22 }
0x1cd4   :  { %12080 = vmatmul.mubr.bf16.vlgmr.msra.gmra.mxu1 %v14698_v60  ;;  %12093 = vmatprep.subr.msk.mxu0 %vm993_vm6, %v7053_v17 }
0x1cd5   :  { %12083 = vmatprep.mubr.bf16.mxu1 %v14723_v63 }
0x1cd7   :  { %12094 = vmatpush3.xpose.msk.msra.mxu0 %vm993_vm6, %v7053_v17 }
0x1cd8   :  { %12095 = vmatprep.subr.msk.mxu0 %vm993_vm6, %v7048_v12 }
0x1cdb   :  { %12096 = vmatpush3.xpose.msk.msra.mxu0 %vm993_vm6, %v7048_v12 }
0x1cdc   :  { %12084 = vmatmul.mubr.bf16.gmra.mxu1 %v14742_v56  ;;  %12097 = vmatprep.subr.msk.mxu0 %vm993_vm6, %v7045_v62 }
0x1cdf   :  { %12098 = vmatpush3.xpose.msk.msra.mxu0 %vm993_vm6, %v7045_v62 }
0x1ce0   :  { %12099 = vmatprep.subr.msk.mxu0 %vm993_vm6, %v7040_v37 }
0x1ce3   :  { %12100 = vmatpush3.xpose.msk.msra.mxu0 %vm993_vm6, %v7040_v37 }
0x1ce4   :  { %12101 = vmatprep.subr.msk.mxu0 %vm993_vm6, %v7037_v52 }
0x1ce7   :  { %12102 = vmatpush3.xpose.msk.msra.mxu0 %vm993_vm6, %v7037_v52 }
0x1d54   :  { %v15279_v61 = vpop.f32.mrf.mxu1 }
0x1d56   :  { %v15281_v23 = vpop.f32.mrf.mxu1 }
0x1d58   :  { %v15283_v54 = vpop.f32.mrf.mxu1 }
0x1d5a   :  { %v15285_v27 = vpop.f32.mrf.mxu1 }
0x1d5c   :  { %v15287_v30 = vpop.f32.mrf.mxu1 }
0x1d5e   :  { %v15289_v39 = vpop.f32.mrf.mxu1 }
0x1d60   :  { %v15291_v48 = vpop.f32.mrf.mxu1 }
0x1d62   :  { %v15293_v59 = vpop.f32.mrf.mxu1 }
0x1d74   :  { %v12033_v36 = vpop.f32.mrf.mxu1 }
0x1d75   :  { %v6907_v19 = vadd.f32 %v12033_v36, %v10143_v55 }
0x1d76   :  { %v6898_v16 = vpop.f32.mrf.mxu1 }
0x1d77   :  { %v6899_v42 = vadd.f32 %v10143_v55, %v6898_v16 }
0x1d78   :  { %v12034_v4 = vpop.f32.mrf.mxu1 }
0x1d79   :  { %12103 = vmatprep.mubr.msk.f32.mxu0 %vm993_vm6, %v6899_v42  ;;  %v6910_v31 = vadd.f32 %v12034_v4, %v10143_v55 }
0x1d7a   :  { %v6901_v2 = vpop.f32.mrf.mxu1 }
0x1d7b   :  { %v6902_v33 = vadd.f32 %v10143_v55, %v6901_v2  ;;  %v15312_v2 = vld [vmem:[%s16015_s2 + $0x8] sm:$0xff] }
0x1d7c   :  { %v12037_v5 = vpop.f32.mrf.mxu1 }
0x1d7d   :  { %12104 = vmatmul.mubr.msk.f32.vlgmr.msra.gmra.mxu0 %vm993_vm6, %v6902_v33  ;;  %v6923_v6 = vadd.f32 %v12037_v5, %v10143_v55 }
0x1d7e   :  { %v6914_v25 = vpop.f32.mrf.mxu1  ;;  %12106 = vmatprep.mubr.msk.f32.mxu0 %vm993_vm6, %v6907_v19 }
0x1d7f   :  { %v6915_v46 = vadd.f32 %v10143_v55, %v6914_v25  ;;  %v15318_v25 = vld [vmem:[%s16015_s2] sm:$0xff] }
0x1d80   :  { %v12038_v34 = vpop.f32.mrf.mxu1 }
0x1d81   :  { %12107 = vmatmul.mubr.msk.f32.gmra.mxu0 %vm993_vm6, %v6910_v31  ;;  %v6926_v18 = vadd.f32 %v12038_v34, %v10143_v55 }
0x1d82   :  { %v6917_v40 = vpop.f32.mrf.mxu1  ;;  %12109 = vmatprep.mubr.msk.f32.mxu0 %vm993_vm6, %v6915_v46 }
0x1d83   :  { %v6918_v51 = vadd.f32 %v10143_v55, %v6917_v40 }
0x1d85   :  { %12110 = vmatmul.mubr.msk.f32.gmra.mxu0 %vm993_vm6, %v6918_v51  ;;  %v15325_v51 = vld [vmem:[%s16015_s2 + $0x18] sm:$0xff] }
0x1d86   :  { %12112 = vmatprep.mubr.msk.f32.mxu0 %vm993_vm6, %v6923_v6 }
0x1d89   :  { %12113 = vmatmul.mubr.msk.f32.gmra.mxu0 %vm993_vm6, %v6926_v18 }
0x1d94   :  { %v12081_v21 = vpop.f32.mrf.mxu1 }
0x1d95   :  { %v7183_v52 = vadd.f32 %v12081_v21, %v10195_v44 }
0x1d96   :  { %v7174_v11 = vpop.f32.mrf.mxu1 }
0x1d97   :  { %v7175_v55 = vadd.f32 %v10195_v44, %v7174_v11 }
0x1d98   :  { %v12082_v20 = vpop.f32.mrf.mxu1 }
0x1d99   :  { %v7186_v37 = vadd.f32 %v12082_v20, %v10195_v44  ;;  %v15332_v20 = vld [vmem:[%s16015_s2 + $0x10] sm:$0xff] }
0x1d9a   :  { %v7177_v15 = vpop.f32.mrf.mxu1 }
0x1d9b   :  { %v7178_v36 = vadd.f32 %v10195_v44, %v7177_v15 }
0x1d9c   :  { %v12085_v50 = vpop.f32.mrf.mxu1 }
0x1d9d   :  { %v7199_v17 = vadd.f32 %v12085_v50, %v10195_v44 }
0x1d9e   :  { %v7190_v3 = vpop.f32.mrf.mxu1 }
0x1d9f   :  { %v7191_v62 = vadd.f32 %v10195_v44, %v7190_v3 }
0x1da0   :  { %v12086_v38 = vpop.f32.mrf.mxu1 }
0x1da1   :  { %v7202_v47 = vadd.f32 %v12086_v38, %v10195_v44  ;;  %v15339_v38 = vld [vmem:[%s16015_s2 + $0x28] sm:$0xff] }
0x1da2   :  { %v7193_v22 = vpop.f32.mrf.mxu1 }
0x1da3   :  { %12115 = vmatprep.subr.mxu1 %v7202_v47  ;;  %v7194_v12 = vadd.f32 %v10195_v44, %v7193_v22 }
0x1da4   :  { %12116 = vmatpush3.msra.mxu1 %v7202_v47 }
0x1da5   :  { %12117 = vmatprep.subr.mxu1 %v7199_v17 }
0x1da6   :  { %12118 = vmatpush3.msra.mxu1 %v7199_v17 }
0x1da7   :  { %12119 = vmatprep.subr.mxu1 %v7194_v12 }
0x1da8   :  { %12120 = vmatpush3.msra.mxu1 %v7194_v12 }
0x1da9   :  { %12121 = vmatprep.subr.mxu1 %v7191_v62 }
0x1daa   :  { %12122 = vmatpush3.msra.mxu1 %v7191_v62  ;;  %v15346_v62 = vld [vmem:[%s16015_s2 + $0x20] sm:$0xff] }
0x1dab   :  { %12123 = vmatprep.subr.mxu1 %v7186_v37 }
0x1dac   :  { %12124 = vmatpush3.msra.mxu1 %v7186_v37 }
0x1dad   :  { %12125 = vmatprep.subr.mxu1 %v7183_v52 }
0x1dae   :  { %12126 = vmatpush3.msra.mxu1 %v7183_v52 }
0x1daf   :  { %12127 = vmatprep.subr.mxu1 %v7178_v36 }
0x1db0   :  { %12128 = vmatpush3.msra.mxu1 %v7178_v36 }
0x1db1   :  { %12129 = vmatprep.subr.mxu1 %v7175_v55 }
0x1db2   :  { %12130 = vmatpush3.msra.mxu1 %v7175_v55 }
0x1e3d   :  { %v12105_v16 = vpop.f32.mrf.mxu0 }
0x1e3e   :  { %v7359_v42 = vmul.f32 0.17677669, %v12105_v16  ;;  %v15353_v16 = vld [vmem:[%s16015_s2 + $0x38] sm:$0xff] }
0x1e3f   :  { %v7319_v4 = vpop.f32.mrf.mxu0 }
0x1e40   :  { %v7367_v33 = vadd.f32 %v15312_v2, %v7359_v42  ;;  %v7358_v19 = vmul.f32 0.17677669, %v7319_v4 }
0x1e41   :  { %v12108_v5 = vpop.f32.mrf.mxu0 }
0x1e42   :  { %v7366_v31 = vadd.f32 %v15318_v25, %v7358_v19  ;;  %v7361_v46 = vmul.f32 0.17677669, %v12108_v5  ;;  %v7377_v34 = vsel %vm248_vm4, %v7367_v33, -inf  ;;  %v15360_v5 = vld [vmem:[%s16015_s2 + $0x30] sm:$0xff] }
0x1e43   :  { %7378 = vmax.xlane.f32.xlu0 %v7377_v34  ;;  %v7329_v40 = vpop.f32.mrf.mxu0 }
0x1e44   :  { %v7369_v6 = vadd.f32 %v15325_v51, %v7361_v46  ;;  %v7360_v18 = vmul.f32 0.17677669, %v7329_v40  ;;  %v7374_v21 = vsel %vm248_vm4, %v7366_v31, -inf }
0x1e45   :  { %7375 = vmax.xlane.f32.xlu1 %v7374_v21  ;;  %v12111_v11 = vpop.f32.mrf.mxu0 }
0x1e46   :  { %v7368_v15 = vadd.f32 %v15332_v20, %v7360_v18  ;;  %v7363_v50 = vmul.f32 0.17677669, %v12111_v11  ;;  %v7383_v3 = vsel %vm248_vm4, %v7369_v6, -inf }
0x1e47   :  { %7384 = vmax.xlane.f32.xlu0 %v7383_v3  ;;  %v7339_v44 = vpop.f32.mrf.mxu0 }
0x1e48   :  { %v7371_v47 = vadd.f32 %v15339_v38, %v7363_v50  ;;  %v7362_v22 = vmul.f32 0.17677669, %v7339_v44  ;;  %v7380_v17 = vsel %vm248_vm4, %v7368_v15, -inf }
0x1e49   :  { %7381 = vmax.xlane.f32.xlu1 %v7380_v17  ;;  %v12114_v12 = vpop.f32.mrf.mxu0 }
0x1e4a   :  { %v7370_v37 = vadd.f32 %v15346_v62, %v7362_v22  ;;  %v7365_v52 = vmul.f32 0.17677669, %v12114_v12  ;;  %v7389_v36 = vsel %vm248_vm4, %v7371_v47, -inf }
0x1e4b   :  { %7390 = vmax.xlane.f32.xlu0 %v7389_v36  ;;  %v7349_v55 = vpop.f32.mrf.mxu0 }
0x1e4c   :  { %v7373_v42 = vadd.f32 %v15353_v16, %v7365_v52  ;;  %v7364_v4 = vmul.f32 0.17677669, %v7349_v55  ;;  %v7386_v19 = vsel %vm248_vm4, %v7370_v37, -inf }
0x1e4d   :  { %7387 = vmax.xlane.f32.xlu1 %v7386_v19 }
0x1e4e   :  { %v7372_v46 = vadd.f32 %v15360_v5, %v7364_v4  ;;  %v7395_v34 = vsel %vm248_vm4, %v7373_v42, -inf }
0x1e4f   :  { %7396 = vmax.xlane.f32.xlu0 %v7395_v34 }
0x1e50   :  { %v7392_v40 = vsel %vm248_vm4, %v7372_v46, -inf }
0x1e51   :  { %7393 = vmax.xlane.f32.xlu1 %v7392_v40 }
0x1ecc   :  { %v7379_v18 = vpop.xlane.xlu0 %7378 }
0x1ecd   :  { %v7399_v21 = vsub.f32 %v7367_v33, %v7379_v18 }
0x1ece   :  { %v7376_v11 = vpop.xlane.xlu1 %7375 }
0x1ecf   :  { %v7408_v50 = vmul.f32 1.442695, %v7399_v21  ;;  %v7398_v3 = vsub.f32 %v7366_v31, %v7376_v11 }
0x1ed0   :  { %v7385_v44 = vpop.xlane.xlu0 %7384 }
0x1ed1   :  { %12888 = vpow2.f32 %v7408_v50  ;;  %v7406_v22 = vmul.f32 1.442695, %v7398_v3  ;;  %v7401_v17 = vsub.f32 %v7369_v6, %v7385_v44 }
0x1ed2   :  { %v7382_v12 = vpop.xlane.xlu1 %7381 }
0x1ed3   :  { %12890 = vpow2.f32 %v7406_v22  ;;  %v7412_v52 = vmul.f32 1.442695, %v7401_v17  ;;  %v7400_v36 = vsub.f32 %v7368_v15, %v7382_v12 }
0x1ed4   :  { %v7391_v55 = vpop.xlane.xlu0 %7390 }
0x1ed5   :  { %12892 = vpow2.f32 %v7412_v52  ;;  %v7410_v4 = vmul.f32 1.442695, %v7400_v36  ;;  %v7403_v19 = vsub.f32 %v7371_v47, %v7391_v55 }
0x1ed6   :  { %v7388_v34 = vpop.xlane.xlu1 %7387 }
0x1ed7   :  { %12894 = vpow2.f32 %v7410_v4  ;;  %v7416_v40 = vmul.f32 1.442695, %v7403_v19  ;;  %v7402_v9 = vsub.f32 %v7370_v37, %v7388_v34  ;;  %v12548_v34 = vld [vmem:[%s16049_s6 + $0x1f8] sm:$0xff]  }
0x1ed8   :  { %v7397_v33 = vpop.xlane.xlu0 %7396  ;;  %12155 = vmatprep.subr.bf16.mxu1 %v12548_v34 }
0x1ed9   :  { %12896 = vpow2.f32 %v7416_v40  ;;  %v7414_v18 = vmul.f32 1.442695, %v7402_v9  ;;  %v7405_v31 = vsub.f32 %v7373_v42, %v7397_v33  ;;  %v12564_v40 = vld [vmem:[%s16016_s14 + $0x68] sm:$0xff]  }
0x1eda   :  { %v7394_v21 = vpop.xlane.xlu1 %7393  ;;  %12143 = vmatprep.subr.bf16.mxu0 %v12564_v40 }
0x1edb   :  { %12898 = vpow2.f32 %v7414_v18  ;;  %v7420_v11 = vmul.f32 1.442695, %v7405_v31  ;;  %v7404_v6 = vsub.f32 %v7372_v46, %v7394_v21  ;;  %12144 = vmatpush3.bf16.msra.mxu0 %v12564_v40 }
0x1edd   :  { %12900 = vpow2.f32 %v7420_v11  ;;  %v7418_v50 = vmul.f32 1.442695, %v7404_v6 }
0x1ede   :  { %v12889_v3 = vpop.eup %12888 }
0x1edf   :  { %12902 = vpow2.f32 %v7418_v50  ;;  %v7425_v15 = vsel %vm248_vm4, %v12889_v3, 0.0 }
0x1ee0   :  { %v12891_v44 = vpop.eup %12890  ;;  %7426 = vadd.xlane.f32.xlu0 %v7425_v15 }
0x1ee1   :  { %v7422_v47 = vsel %vm248_vm4, %v12891_v44, 0.0 }
0x1ee2   :  { %v12893_v22 = vpop.eup %12892  ;;  %7423 = vadd.xlane.f32.xlu1 %v7422_v47 }
0x1ee3   :  { %v7431_v37 = vsel %vm248_vm4, %v12893_v22, 0.0 }
0x1ee4   :  { %v12895_v9 = vpop.eup %12894  ;;  %7432 = vadd.xlane.f32.xlu0 %v7431_v37 }
0x1ee5   :  { %v7428_v42 = vsel %vm248_vm4, %v12895_v9, 0.0 }
0x1ee6   :  { %v12897_v17 = vpop.eup %12896  ;;  %7429 = vadd.xlane.f32.xlu1 %v7428_v42 }
0x1ee7   :  { %v7437_v46 = vsel %vm248_vm4, %v12897_v17, 0.0 }
0x1ee8   :  { %v12899_v12 = vpop.eup %12898  ;;  %7438 = vadd.xlane.f32.xlu0 %v7437_v46 }
0x1ee9   :  { %v7434_v52 = vsel %vm248_vm4, %v12899_v12, 0.0 }
0x1eea   :  { %v12901_v36 = vpop.eup %12900  ;;  %7435 = vadd.xlane.f32.xlu1 %v7434_v52  ;;  %v12549_v52 = vld [vmem:[%s16049_s6 + $0x1f0] sm:$0xff]  }
0x1eeb   :  { %v7443_v55 = vsel %vm248_vm4, %v12901_v36, 0.0 }
0x1eec   :  { %v12903_v4 = vpop.eup %12902  ;;  %7444 = vadd.xlane.f32.xlu0 %v7443_v55 }
0x1eed   :  { %v7440_v19 = vsel %vm248_vm4, %v12903_v4, 0.0 }
0x1eee   :  { %7441 = vadd.xlane.f32.xlu1 %v7440_v19 }
0x1f69   :  { %v7427_v33 = vpop.xlane.xlu0 %7426 }
0x1f6a   :  { %12904 = vrcp.f32 %v7427_v33 }
0x1f6b   :  { %v7424_v18 = vpop.xlane.xlu1 %7423 }
0x1f6c   :  { %12906 = vrcp.f32 %v7424_v18  ;;  %v12550_v18 = vld [vmem:[%s16049_s6 + $0x1e8] sm:$0xff]  }
0x1f6d   :  { %v7433_v31 = vpop.xlane.xlu0 %7432 }
0x1f6e   :  { %12908 = vrcp.f32 %v7433_v31 }
0x1f6f   :  { %v7430_v21 = vpop.xlane.xlu1 %7429 }
0x1f70   :  { %12910 = vrcp.f32 %v7430_v21 }
0x1f71   :  { %v7439_v11 = vpop.xlane.xlu0 %7438 }
0x1f72   :  { %12912 = vrcp.f32 %v7439_v11 }
0x1f73   :  { %v7436_v6 = vpop.xlane.xlu1 %7435 }
0x1f74   :  { %12914 = vrcp.f32 %v7436_v6 }
0x1f75   :  { %v7445_v50 = vpop.xlane.xlu0 %7444 }
0x1f76   :  { %12916 = vrcp.f32 %v7445_v50  ;;  %v12556_v50 = vld [vmem:[%s16051_s12 + $0x1f8] sm:$0xff]  }
0x1f77   :  { %v7442_v15 = vpop.xlane.xlu1 %7441  ;;  %v12905_v47 = vpop.eup %12904 }
0x1f78   :  { %12918 = vrcp.f32 %v7442_v15  ;;  %v7455_v46 = vmul.f32 %v12905_v47, %v12889_v3  ;;  %v12557_v15 = vld [vmem:[%s16051_s12 + $0x1f0] sm:$0xff]   ;;  %v12558_v47 = vld [vmem:[%s16051_s12 + $0x1e8] sm:$0xff]  }
0x1f79   :  { %v12907_v37 = vpop.eup %12906 }
0x1f7a   :  { %v7454_v42 = vmul.f32 %v12907_v37, %v12891_v44  ;;  %v12559_v37 = vld [vmem:[%s16051_s12 + $0x1e0] sm:$0xff]  }
0x1f7b   :  { %v12909_v55 = vpop.eup %12908 }
0x1f7c   :  { %12131 = vmatprep.mubr.msk.f32.mxu1 %vm248_vm4, %v7454_v42  ;;  %v7457_v33 = vmul.f32 %v12909_v55, %v12893_v22  ;;  %v12560_v42 = vld [vmem:[%s16051_s12 + $0x1d8] sm:$0xff]   ;;  %v12563_v55 = vld [vmem:[%s16051_s12 + $0x1c0] sm:$0xff]  }
0x1f7d   :  { %v12911_v19 = vpop.eup %12910  ;;  %12132 = vmatmul.mubr.msk.f32.vlgmr.msra.gmra.mxu1 %vm248_vm4, %v7455_v46  ;;  %v12561_v46 = vld [vmem:[%s16051_s12 + $0x1d0] sm:$0xff]  }
0x1f7e   :  { %12156 = vmatpush3.bf16.msra.mxu1 %v12548_v34  ;;  %v7456_v40 = vmul.f32 %v12911_v19, %v12895_v9  ;;  %v12551_v9 = vld [vmem:[%s16049_s6 + $0x1e0] sm:$0xff]  }
0x1f7f   :  { %12157 = vmatprep.subr.bf16.mxu1 %v12549_v52  ;;  %v12913_v44 = vpop.eup %12912  ;;  %v12565_v19 = vld [vmem:[%s16016_s14 + $0x60] sm:$0xff]  }
0x1f80   :  { %12134 = vmatprep.mubr.msk.f32.mxu1 %vm248_vm4, %v7456_v40  ;;  %v7459_v21 = vmul.f32 %v12913_v44, %v12897_v17  ;;  %v12553_v17 = vld [vmem:[%s16049_s6 + $0x1d0] sm:$0xff]   ;;  %12145 = vmatprep.subr.bf16.mxu0 %v12565_v19  ;;  %v12566_v40 = vld [vmem:[%s16050_s28 + $0x1f8] sm:$0xff]  }
0x1f81   :  { %v12915_v3 = vpop.eup %12914  ;;  %12135 = vmatmul.mubr.msk.f32.gmra.mxu1 %vm248_vm4, %v7457_v33  ;;  %12146 = vmatpush3.bf16.msra.mxu0 %v12565_v19 }
0x1f82   :  { %12158 = vmatpush3.bf16.msra.mxu1 %v12549_v52  ;;  %v7458_v31 = vmul.f32 %v12915_v3, %v12899_v12  ;;  %v12552_v12 = vld [vmem:[%s16049_s6 + $0x1d8] sm:$0xff]   ;;  %v12562_v52 = vld [vmem:[%s16051_s12 + $0x1c8] sm:$0xff]   ;;  %12179 = vmatprep.subr.bf16.mxu0 %v12566_v40 }
0x1f83   :  { %12159 = vmatprep.subr.bf16.mxu1 %v12550_v18  ;;  %v12917_v34 = vpop.eup %12916 }
0x1f84   :  { %12137 = vmatprep.mubr.msk.f32.mxu1 %vm248_vm4, %v7458_v31  ;;  %v7461_v6 = vmul.f32 %v12917_v34, %v12901_v36  ;;  %v12554_v36 = vld [vmem:[%s16049_s6 + $0x1c8] sm:$0xff]  }
0x1f85   :  { %v12919_v22 = vpop.eup %12918  ;;  %12138 = vmatmul.mubr.msk.f32.gmra.mxu1 %vm248_vm4, %v7459_v21 }
0x1f86   :  { %12160 = vmatpush3.bf16.msra.mxu1 %v12550_v18  ;;  %v7460_v11 = vmul.f32 %v12919_v22, %v12903_v4  ;;  %v12555_v4 = vld [vmem:[%s16049_s6 + $0x1c0] sm:$0xff]  }
0x1f87   :  { %12161 = vmatprep.subr.bf16.mxu1 %v12551_v9 }
0x1f88   :  { %12140 = vmatprep.mubr.msk.f32.mxu1 %vm248_vm4, %v7460_v11 }
0x1f89   :  { %12141 = vmatmul.mubr.msk.f32.gmra.mxu1 %vm248_vm4, %v7461_v6  ;;  %v12568_v6 = vld [vmem:[%s16050_s28 + $0x1e8] sm:$0xff]  }
0x1f8a   :  { %12162 = vmatpush3.bf16.msra.mxu1 %v12551_v9  ;;  %12171 = vmatprep.mubr.bf16.mxu1 %v14685_v53  ;;  %v12567_v9 = vld [vmem:[%s16050_s28 + $0x1f0] sm:$0xff]  }
0x1f8b   :  { %12163 = vmatprep.subr.bf16.mxu1 %v12552_v12 }
0x1f8e   :  { %12164 = vmatpush3.bf16.msra.mxu1 %v12552_v12 }
0x1f8f   :  { %12165 = vmatprep.subr.bf16.mxu1 %v12553_v17 }
0x1f92   :  { %12166 = vmatpush3.bf16.msra.mxu1 %v12553_v17 }
0x1f93   :  { %12167 = vmatprep.subr.bf16.mxu1 %v12554_v36 }
0x1f96   :  { %12168 = vmatpush3.bf16.msra.mxu1 %v12554_v36 }
0x1f97   :  { %12169 = vmatprep.subr.bf16.mxu1 %v12555_v4 }
0x1f9a   :  { %12170 = vmatpush3.bf16.msra.mxu1 %v12555_v4  ;;  %v12569_v4 = vld [vmem:[%s16050_s28 + $0x1e0] sm:$0xff]  }
0x1f9b   :  { %12203 = vmatprep.subr.bf16.mxu1 %v12556_v50 }
0x1f9d   :  { %12172 = vmatmul.mubr.bf16.vlgmr.msra.gmra.mxu1 %v14698_v60 }
0x1f9e   :  { %12175 = vmatprep.mubr.bf16.mxu1 %v14723_v63  ;;  %12204 = vmatpush3.bf16.msra.mxu1 %v12556_v50  ;;  %v12570_v50 = vld [vmem:[%s16050_s28 + $0x1d8] sm:$0xff]  }
0x1f9f   :  { %12205 = vmatprep.subr.bf16.mxu1 %v12557_v15 }
0x1fa2   :  { %12206 = vmatpush3.bf16.msra.mxu1 %v12557_v15  ;;  %v12571_v15 = vld [vmem:[%s16050_s28 + $0x1d0] sm:$0xff]  }
0x1fa3   :  { %12207 = vmatprep.subr.bf16.mxu1 %v12558_v47 }
0x1fa5   :  { %12176 = vmatmul.mubr.bf16.gmra.mxu1 %v14742_v56 }
0x1fa6   :  { %12208 = vmatpush3.bf16.msra.mxu1 %v12558_v47  ;;  %12219 = vmatprep.mubr.bf16.mxu1 %v14685_v53  ;;  %v12572_v47 = vld [vmem:[%s16050_s28 + $0x1c8] sm:$0xff]  }
0x1fa7   :  { %12209 = vmatprep.subr.bf16.mxu1 %v12559_v37 }
0x1faa   :  { %12210 = vmatpush3.bf16.msra.mxu1 %v12559_v37  ;;  %v12573_v37 = vld [vmem:[%s16050_s28 + $0x1c0] sm:$0xff]  }
0x1fab   :  { %12211 = vmatprep.subr.bf16.mxu1 %v12560_v42 }
0x1fae   :  { %12212 = vmatpush3.bf16.msra.mxu1 %v12560_v42 }
0x1faf   :  { %12213 = vmatprep.subr.bf16.mxu1 %v12561_v46 }
0x1fb2   :  { %12214 = vmatpush3.bf16.msra.mxu1 %v12561_v46 }
0x1fb3   :  { %12215 = vmatprep.subr.bf16.mxu1 %v12562_v52 }
0x1fb6   :  { %12216 = vmatpush3.bf16.msra.mxu1 %v12562_v52 }
0x1fb7   :  { %12217 = vmatprep.subr.bf16.mxu1 %v12563_v55 }
0x1fba   :  { %12218 = vmatpush3.bf16.msra.mxu1 %v12563_v55 }
0x1fbd   :  { %12220 = vmatmul.mubr.bf16.vlgmr.msra.gmra.mxu1 %v14698_v60 }
0x1fbe   :  { %12223 = vmatprep.mubr.bf16.mxu1 %v14723_v63 }
0x1fc5   :  { %12224 = vmatmul.mubr.bf16.gmra.mxu1 %v14742_v56 }
0x203d   :  { %v12133_v33 = vpop.f32.mrf.mxu1 }
0x203f   :  { %v7552_v18 = vpop.f32.mrf.mxu1 }
0x2040   :  { %v7591_v44 = vpack.c.bf16 %v12133_v33, %v7552_v18 }
0x2041   :  { %v12136_v3 = vpop.f32.mrf.mxu1 }
0x2042   :  { %12147 = vmatprep.mubr.msk.bf16.mxu0 %vm993_vm6, %v7591_v44 }
0x2043   :  { %v7562_v31 = vpop.f32.mrf.mxu1 }
0x2044   :  { %v7592_v21 = vpack.c.bf16 %v12136_v3, %v7562_v31 }
0x2045   :  { %v12139_v34 = vpop.f32.mrf.mxu1 }
0x2046   :  { %12148 = vmatmul.mubr.msk.bf16.vlgmr.msra.gmra.mxu0 %vm993_vm6, %v7592_v21 }
0x2047   :  { %12180 = vmatpush3.bf16.msra.mxu0 %v12566_v40  ;;  %v7572_v22 = vpop.f32.mrf.mxu1 }
0x2048   :  { %v7593_v11 = vpack.c.bf16 %v12139_v34, %v7572_v22  ;;  %12181 = vmatprep.subr.bf16.mxu0 %v12567_v9 }
0x2049   :  { %v12142_v12 = vpop.f32.mrf.mxu1 }
0x204a   :  { %12151 = vmatprep.mubr.msk.bf16.mxu0 %vm993_vm6, %v7593_v11 }
0x204b   :  { %12182 = vmatpush3.bf16.msra.mxu0 %v12567_v9  ;;  %v7582_v17 = vpop.f32.mrf.mxu1 }
0x204c   :  { %v7594_v36 = vpack.c.bf16 %v12142_v12, %v7582_v17  ;;  %12183 = vmatprep.subr.bf16.mxu0 %v12568_v6 }
0x204e   :  { %12152 = vmatmul.mubr.msk.bf16.gmra.mxu0 %vm993_vm6, %v7594_v36 }
0x204f   :  { %12184 = vmatpush3.bf16.msra.mxu0 %v12568_v6  ;;  %12195 = vmatprep.mubr.bf16.mxu0 %v14685_v53  ;;  %v10255_v53 = vld [vmem:[%s16012_s9 + $0x7] ss:$0 sm:$0xff] }
0x2050   :  { %12185 = vmatprep.subr.bf16.mxu0 %v12569_v4 }
0x2053   :  { %12186 = vmatpush3.bf16.msra.mxu0 %v12569_v4 }
0x2054   :  { %12187 = vmatprep.subr.bf16.mxu0 %v12570_v50 }
0x2057   :  { %12188 = vmatpush3.bf16.msra.mxu0 %v12570_v50 }
0x2058   :  { %12189 = vmatprep.subr.bf16.mxu0 %v12571_v15 }
0x205b   :  { %12190 = vmatpush3.bf16.msra.mxu0 %v12571_v15 }
0x205c   :  { %12191 = vmatprep.subr.bf16.mxu0 %v12572_v47 }
0x205d   :  { %v12173_v42 = vpop.f32.mrf.mxu1 }
0x205e   :  { %v15475_v46 = vadd.f32 %v12173_v42, %v10255_v53 }
0x205f   :  { %v7804_v52 = vpop.f32.mrf.mxu1  ;;  %12192 = vmatpush3.bf16.msra.mxu0 %v12572_v47 }
0x2060   :  { %12193 = vmatprep.subr.bf16.mxu0 %v12573_v37  ;;  %v7805_v11 = vadd.f32 %v10255_v53, %v7804_v52 }
0x2061   :  { %v12174_v55 = vpop.f32.mrf.mxu1 }
0x2062   :  { %v15477_v19 = vadd.f32 %v12174_v55, %v10255_v53 }
0x2063   :  { %v7807_v40 = vpop.f32.mrf.mxu1  ;;  %12194 = vmatpush3.bf16.msra.mxu0 %v12573_v37 }
0x2064   :  { %v15479_v33 = vadd.f32 %v10255_v53, %v7807_v40 }
0x2065   :  { %v12177_v18 = vpop.f32.mrf.mxu1 }
0x2066   :  { %v15481_v44 = vadd.f32 %v12177_v18, %v10255_v53  ;;  %12196 = vmatmul.mubr.bf16.vlgmr.msra.gmra.mxu0 %v14698_v60  ;;  %v6769_v18 = vadd.f32 %v15200_v8, %v15279_v61  ;;  %v6785_v8 = vadd.f32 %v15221_v13, %v15287_v30 }
0x2067   :  { %v7820_v3 = vpop.f32.mrf.mxu1  ;;  %12199 = vmatprep.mubr.bf16.mxu0 %v14723_v63  ;;  %v10307_v63 = vld [vmem:[%s16014_s13 + $0x7] ss:$0 sm:$0xff] }
0x2068   :  { %v15485_v31 = vadd.f32 %v10255_v53, %v7820_v3 }
0x2069   :  { %v12178_v21 = vpop.f32.mrf.mxu1 }
0x206a   :  { %v15487_v9 = vadd.f32 %v12178_v21, %v10255_v53  ;;  %v6761_v21 = vadd.f32 %v15206_v1, %v15281_v23  ;;  %v6777_v23 = vadd.f32 %v15226_v29, %v15289_v39 }
0x206b   :  { %v7823_v34 = vpop.f32.mrf.mxu1 }
0x206c   :  { %v15489_v22 = vadd.f32 %v10255_v53, %v7823_v34 }
0x206e   :  { %12200 = vmatmul.mubr.bf16.gmra.mxu0 %v14742_v56 }
0x206f   :  { %12243 = vmatprep.mubr.msk.f32.mxu0 %vm993_vm6, %v7805_v11 }
0x207d   :  { %v12221_v6 = vpop.f32.mrf.mxu1 }
0x207e   :  { %v8089_v52 = vadd.f32 %v12221_v6, %v10307_v63  ;;  %v6772_v6 = vadd.f32 %v15211_v7, %v15283_v54  ;;  %v6788_v54 = vadd.f32 %v15232_v57, %v15291_v48  ;;  %v10281_v57 = vld [vmem:[%s16013_s11 + $0x7] ss:$0 sm:$0xff] }
0x207f   :  { %v8080_v12 = vpop.f32.mrf.mxu1 }
0x2080   :  { %v8081_v40 = vadd.f32 %v10307_v63, %v8080_v12 }
0x2081   :  { %v12222_v17 = vpop.f32.mrf.mxu1 }
0x2082   :  { %v8092_v42 = vadd.f32 %v12222_v17, %v10307_v63 }
0x2083   :  { %v8083_v60 = vpop.f32.mrf.mxu1 }
0x2084   :  { %v8084_v55 = vadd.f32 %v10307_v63, %v8083_v60  ;;  %v6764_v60 = vadd.f32 %v15216_v26, %v15285_v27  ;;  %v6780_v27 = vadd.f32 %v15238_v28, %v15293_v59 }
0x2085   :  { %v12225_v36 = vpop.f32.mrf.mxu1 }
0x2086   :  { %v8105_v37 = vadd.f32 %v12225_v36, %v10307_v63 }
0x2087   :  { %v8096_v4 = vpop.f32.mrf.mxu1 }
0x2088   :  { %v8097_v56 = vadd.f32 %v10307_v63, %v8096_v4 }
0x2089   :  { %v12226_v50 = vpop.f32.mrf.mxu1 }
0x208a   :  { %v8108_v15 = vadd.f32 %v12226_v50, %v10307_v63 }
0x208b   :  { %v8099_v47 = vpop.f32.mrf.mxu1 }
0x208c   :  { %12255 = vmatprep.subr.mxu1 %v8108_v15  ;;  %v8100_v53 = vadd.f32 %v10307_v63, %v8099_v47 }
0x208d   :  { %12256 = vmatpush3.msra.mxu1 %v8108_v15 }
0x208e   :  { %12257 = vmatprep.subr.mxu1 %v8105_v37 }
0x208f   :  { %12258 = vmatpush3.msra.mxu1 %v8105_v37 }
0x2090   :  { %12259 = vmatprep.subr.mxu1 %v8100_v53 }
0x2091   :  { %12260 = vmatpush3.msra.mxu1 %v8100_v53 }
0x2092   :  { %12261 = vmatprep.subr.mxu1 %v8097_v56 }
0x2093   :  { %12262 = vmatpush3.msra.mxu1 %v8097_v56 }
0x2094   :  { %12263 = vmatprep.subr.mxu1 %v8092_v42 }
0x2095   :  { %12264 = vmatpush3.msra.mxu1 %v8092_v42 }
0x2096   :  { %12265 = vmatprep.subr.mxu1 %v8089_v52 }
0x2097   :  { %12266 = vmatpush3.msra.mxu1 %v8089_v52 }
0x2098   :  { %12267 = vmatprep.subr.mxu1 %v8084_v55 }
0x2099   :  { %12268 = vmatpush3.msra.mxu1 %v8084_v55 }
0x209a   :  { %12269 = vmatprep.subr.mxu1 %v8081_v40 }
0x209b   :  { %12270 = vmatpush3.msra.mxu1 %v8081_v40 }
0x2106   :  { %v12149_v3 = vpop.f32.mrf.mxu0 }
0x2107   :  { %v15500_v34 = vadd.f32 %v12149_v3, %v6769_v18 }
0x2108   :  { %v7658_v11 = vpop.f32.mrf.mxu0 }
0x2109   :  { %v15504_v17 = vadd.f32 %v7658_v11, %v6761_v21 }
0x210a   :  { %v12150_v12 = vpop.f32.mrf.mxu0 }
0x210b   :  { %v15508_v36 = vadd.f32 %v12150_v12, %v6772_v6 }
0x210c   :  { %v7661_v4 = vpop.f32.mrf.mxu0 }
0x210d   :  { %v15512_v61 = vadd.f32 %v7661_v4, %v6764_v60 }
0x210e   :  { %v12153_v1 = vpop.f32.mrf.mxu0 }
0x210f   :  { %v15516_v63 = vadd.f32 %v12153_v1, %v6785_v8 }
0x2110   :  { %v7674_v7 = vpop.f32.mrf.mxu0 }
0x2111   :  { %v15520_v50 = vadd.f32 %v7674_v7, %v6777_v23 }
0x2112   :  { %v12154_v26 = vpop.f32.mrf.mxu0 }
0x2113   :  { %v15524_v15 = vadd.f32 %v12154_v26, %v6788_v54 }
0x2114   :  { %v7677_v13 = vpop.f32.mrf.mxu0 }
0x2115   :  { %v15526_v30 = vadd.f32 %v7677_v13, %v6780_v27 }
0x2126   :  { %v12197_v47 = vpop.f32.mrf.mxu0 }
0x2127   :  { %v7951_v18 = vadd.f32 %v12197_v47, %v10281_v57 }
0x2128   :  { %v7942_v37 = vpop.f32.mrf.mxu0 }
0x2129   :  { %v7943_v21 = vadd.f32 %v10281_v57, %v7942_v37 }
0x212a   :  { %v12198_v29 = vpop.f32.mrf.mxu0 }
0x212b   :  { %v7954_v40 = vadd.f32 %v12198_v29, %v10281_v57 }
0x212c   :  { %v7945_v39 = vpop.f32.mrf.mxu0 }
0x212d   :  { %v7946_v3 = vadd.f32 %v10281_v57, %v7945_v39 }
0x212e   :  { %v12201_v53 = vpop.f32.mrf.mxu0 }
0x212f   :  { %v7967_v52 = vadd.f32 %v12201_v53, %v10281_v57 }
0x2130   :  { %v7958_v56 = vpop.f32.mrf.mxu0 }
0x2131   :  { %v7959_v55 = vadd.f32 %v10281_v57, %v7958_v56 }
0x2132   :  { %v12202_v48 = vpop.f32.mrf.mxu0 }
0x2133   :  { %v7970_v42 = vadd.f32 %v12202_v48, %v10281_v57 }
0x2134   :  { %v7961_v28 = vpop.f32.mrf.mxu0 }
0x2135   :  { %12227 = vmatprep.subr.msk.mxu0 %vm993_vm6, %v7970_v42  ;;  %v7962_v59 = vadd.f32 %v10281_v57, %v7961_v28 }
0x2136   :  { %12228 = vmatpush3.xpose.msk.msra.mxu0 %vm993_vm6, %v7970_v42 }
0x2137   :  { %12229 = vmatprep.subr.msk.mxu0 %vm993_vm6, %v7967_v52 }
0x213a   :  { %12230 = vmatpush3.xpose.msk.msra.mxu0 %vm993_vm6, %v7967_v52 }
0x213b   :  { %12231 = vmatprep.subr.msk.mxu0 %vm993_vm6, %v7962_v59 }
0x213e   :  { %12232 = vmatpush3.xpose.msk.msra.mxu0 %vm993_vm6, %v7962_v59 }
0x213f   :  { %12233 = vmatprep.subr.msk.mxu0 %vm993_vm6, %v7959_v55 }
0x2142   :  { %12234 = vmatpush3.xpose.msk.msra.mxu0 %vm993_vm6, %v7959_v55 }
0x2143   :  { %12235 = vmatprep.subr.msk.mxu0 %vm993_vm6, %v7954_v40 }
0x2146   :  { %12236 = vmatpush3.xpose.msk.msra.mxu0 %vm993_vm6, %v7954_v40 }
0x2147   :  { %12237 = vmatprep.subr.msk.mxu0 %vm993_vm6, %v7951_v18 }
0x214a   :  { %12238 = vmatpush3.xpose.msk.msra.mxu0 %vm993_vm6, %v7951_v18 }
0x214b   :  { %12239 = vmatprep.subr.msk.mxu0 %vm993_vm6, %v7946_v3 }
0x214e   :  { %12240 = vmatpush3.xpose.msk.msra.mxu0 %vm993_vm6, %v7946_v3 }
0x214f   :  { %12241 = vmatprep.subr.msk.mxu0 %vm993_vm6, %v7943_v21 }
0x2152   :  { %12242 = vmatpush3.xpose.msk.msra.mxu0 %vm993_vm6, %v7943_v21 }
0x2155   :  { %12244 = vmatmul.mubr.msk.f32.vlgmr.msra.gmra.mxu0 %vm993_vm6, %v15479_v33 }
0x2156   :  { %12246 = vmatprep.mubr.msk.f32.mxu0 %vm993_vm6, %v15475_v46 }
0x2159   :  { %12247 = vmatmul.mubr.msk.f32.gmra.mxu0 %vm993_vm6, %v15477_v19 }
0x215a   :  { %12249 = vmatprep.mubr.msk.f32.mxu0 %vm993_vm6, %v15485_v31 }
0x215d   :  { %12250 = vmatmul.mubr.msk.f32.gmra.mxu0 %vm993_vm6, %v15489_v22 }
0x215e   :  { %12252 = vmatprep.mubr.msk.f32.mxu0 %vm993_vm6, %v15481_v44 }
0x2161   :  { %12253 = vmatmul.mubr.msk.f32.gmra.mxu0 %vm993_vm6, %v15487_v9 }
0x2215   :  { %v12245_v11 = vpop.f32.mrf.mxu0 }
0x2216   :  { %v8265_v33 = vmul.f32 0.17677669, %v12245_v11 }
0x2217   :  { %v8225_v6 = vpop.f32.mrf.mxu0 }
0x2218   :  { %v8273_v46 = vadd.f32 %v15312_v2, %v8265_v33  ;;  %v8264_v12 = vmul.f32 0.17677669, %v8225_v6 }
0x2219   :  { %v12248_v60 = vpop.f32.mrf.mxu0 }
0x221a   :  { %v8272_v19 = vadd.f32 %v15318_v25, %v8264_v12  ;;  %v8267_v4 = vmul.f32 0.17677669, %v12248_v60  ;;  %v8283_v31 = vsel %vm248_vm4, %v8273_v46, -inf }
0x221b   :  { %8284 = vmax.xlane.f32.xlu0 %v8283_v31  ;;  %v8235_v22 = vpop.f32.mrf.mxu0 }
0x221c   :  { %v8275_v8 = vadd.f32 %v15325_v51, %v8267_v4  ;;  %v8266_v44 = vmul.f32 0.17677669, %v8235_v22  ;;  %v8280_v1 = vsel %vm248_vm4, %v8272_v19, -inf }
0x221d   :  { %8281 = vmax.xlane.f32.xlu1 %v8280_v1  ;;  %v12251_v9 = vpop.f32.mrf.mxu0 }
0x221e   :  { %v8274_v23 = vadd.f32 %v15332_v20, %v8266_v44  ;;  %v8269_v7 = vmul.f32 0.17677669, %v12251_v9  ;;  %v8289_v2 = vsel %vm248_vm4, %v8275_v8, -inf }
0x221f   :  { %8290 = vmax.xlane.f32.xlu0 %v8289_v2  ;;  %v8245_v54 = vpop.f32.mrf.mxu0 }
0x2220   :  { %v8277_v25 = vadd.f32 %v15339_v38, %v8269_v7  ;;  %v8268_v26 = vmul.f32 0.17677669, %v8245_v54  ;;  %v8286_v27 = vsel %vm248_vm4, %v8274_v23, -inf }
0x2221   :  { %8287 = vmax.xlane.f32.xlu1 %v8286_v27  ;;  %v12254_v13 = vpop.f32.mrf.mxu0 }
0x2222   :  { %v8276_v51 = vadd.f32 %v15346_v62, %v8268_v26  ;;  %v8271_v47 = vmul.f32 0.17677669, %v12254_v13  ;;  %v8295_v37 = vsel %vm248_vm4, %v8277_v25, -inf }
0x2223   :  { %8296 = vmax.xlane.f32.xlu0 %v8295_v37  ;;  %v8255_v29 = vpop.f32.mrf.mxu0 }
0x2224   :  { %v8279_v20 = vadd.f32 %v15353_v16, %v8271_v47  ;;  %v8270_v39 = vmul.f32 0.17677669, %v8255_v29  ;;  %v8292_v53 = vsel %vm248_vm4, %v8276_v51, -inf }
0x2225   :  { %8293 = vmax.xlane.f32.xlu1 %v8292_v53 }
0x2226   :  { %v8278_v38 = vadd.f32 %v15360_v5, %v8270_v39  ;;  %v8301_v56 = vsel %vm248_vm4, %v8279_v20, -inf  ;;  %v12574_v39 = vld [vmem:[%s16016_s14 + $0x78] sm:$0xff]  }
0x2227   :  { %8302 = vmax.xlane.f32.xlu0 %v8301_v56  ;;  %12283 = vmatprep.subr.bf16.mxu0 %v12574_v39 }
0x2228   :  { %v8298_v57 = vsel %vm248_vm4, %v8278_v38, -inf  ;;  %12284 = vmatpush3.bf16.msra.mxu0 %v12574_v39 }
0x2229   :  { %8299 = vmax.xlane.f32.xlu1 %v8298_v57 }
0x22a4   :  { %v8285_v62 = vpop.xlane.xlu0 %8284 }
0x22a5   :  { %v8305_v48 = vsub.f32 %v8273_v46, %v8285_v62 }
0x22a6   :  { %v8282_v42 = vpop.xlane.xlu1 %8281 }
0x22a7   :  { %v8314_v52 = vmul.f32 1.442695, %v8305_v48  ;;  %v8304_v28 = vsub.f32 %v8272_v19, %v8282_v42 }
0x22a8   :  { %v8291_v59 = vpop.xlane.xlu0 %8290 }
0x22a9   :  { %12920 = vpow2.f32 %v8314_v52  ;;  %v8312_v16 = vmul.f32 1.442695, %v8304_v28  ;;  %v8307_v55 = vsub.f32 %v8275_v8, %v8291_v59 }
0x22aa   :  { %v8288_v40 = vpop.xlane.xlu1 %8287 }
0x22ab   :  { %12922 = vpow2.f32 %v8312_v16  ;;  %v8318_v18 = vmul.f32 1.442695, %v8307_v55  ;;  %v8306_v3 = vsub.f32 %v8274_v23, %v8288_v40 }
0x22ac   :  { %v8297_v5 = vpop.xlane.xlu0 %8296 }
0x22ad   :  { %12924 = vpow2.f32 %v8318_v18  ;;  %v8316_v21 = vmul.f32 1.442695, %v8306_v3  ;;  %v8309_v11 = vsub.f32 %v8277_v25, %v8297_v5 }
0x22ae   :  { %v8294_v33 = vpop.xlane.xlu1 %8293 }
0x22af   :  { %12926 = vpow2.f32 %v8316_v21  ;;  %v8322_v6 = vmul.f32 1.442695, %v8309_v11  ;;  %v8308_v12 = vsub.f32 %v8276_v51, %v8294_v33 }
0x22b0   :  { %v8303_v46 = vpop.xlane.xlu0 %8302 }
0x22b1   :  { %12928 = vpow2.f32 %v8322_v6  ;;  %v8320_v60 = vmul.f32 1.442695, %v8308_v12  ;;  %v8311_v19 = vsub.f32 %v8279_v20, %v8303_v46 }
0x22b2   :  { %v8300_v4 = vpop.xlane.xlu1 %8299 }
0x22b3   :  { %12930 = vpow2.f32 %v8320_v60  ;;  %v8326_v31 = vmul.f32 1.442695, %v8311_v19  ;;  %v8310_v22 = vsub.f32 %v8278_v38, %v8300_v4  ;;  %v12575_v4 = vld [vmem:[%s16016_s14 + $0x70] sm:$0xff]  }
0x22b4   :  { %12285 = vmatprep.subr.bf16.mxu0 %v12575_v4 }
0x22b5   :  { %12932 = vpow2.f32 %v8326_v31  ;;  %v8324_v8 = vmul.f32 1.442695, %v8310_v22  ;;  %12286 = vmatpush3.bf16.msra.mxu0 %v12575_v4 }
0x22b6   :  { %v12921_v44 = vpop.eup %12920 }
0x22b7   :  { %12934 = vpow2.f32 %v8324_v8  ;;  %v8331_v1 = vsel %vm248_vm4, %v12921_v44, 0.0 }
0x22b8   :  { %v12923_v9 = vpop.eup %12922  ;;  %8332 = vadd.xlane.f32.xlu0 %v8331_v1 }
0x22b9   :  { %v8328_v23 = vsel %vm248_vm4, %v12923_v9, 0.0 }
0x22ba   :  { %v12925_v7 = vpop.eup %12924  ;;  %8329 = vadd.xlane.f32.xlu1 %v8328_v23 }
0x22bb   :  { %v8337_v2 = vsel %vm248_vm4, %v12925_v7, 0.0 }
0x22bc   :  { %v12927_v54 = vpop.eup %12926  ;;  %8338 = vadd.xlane.f32.xlu0 %v8337_v2 }
0x22bd   :  { %v8334_v25 = vsel %vm248_vm4, %v12927_v54, 0.0 }
0x22be   :  { %v12929_v26 = vpop.eup %12928  ;;  %8335 = vadd.xlane.f32.xlu1 %v8334_v25 }
0x22bf   :  { %v8343_v27 = vsel %vm248_vm4, %v12929_v26, 0.0 }
0x22c0   :  { %v12931_v13 = vpop.eup %12930  ;;  %8344 = vadd.xlane.f32.xlu0 %v8343_v27 }
0x22c1   :  { %v8340_v51 = vsel %vm248_vm4, %v12931_v13, 0.0 }
0x22c2   :  { %v12933_v47 = vpop.eup %12932  ;;  %8341 = vadd.xlane.f32.xlu1 %v8340_v51 }
0x22c3   :  { %v8349_v37 = vsel %vm248_vm4, %v12933_v47, 0.0 }
0x22c4   :  { %v12935_v29 = vpop.eup %12934  ;;  %8350 = vadd.xlane.f32.xlu0 %v8349_v37  ;;  %v10351_v37 = vld [vmem:[%s16017_s15 + $0x1] ss:$0 sm:$0xff] }
0x22c5   :  { %v8346_v20 = vsel %vm248_vm4, %v12935_v29, 0.0 }
0x22c6   :  { %8347 = vadd.xlane.f32.xlu1 %v8346_v20 }
0x2341   :  { %v8333_v53 = vpop.xlane.xlu0 %8332 }
0x2342   :  { %12936 = vrcp.f32 %v8333_v53 }
0x2343   :  { %v8330_v38 = vpop.xlane.xlu1 %8329 }
0x2344   :  { %12938 = vrcp.f32 %v8330_v38 }
0x2345   :  { %v8339_v56 = vpop.xlane.xlu0 %8338 }
0x2346   :  { %12940 = vrcp.f32 %v8339_v56 }
0x2347   :  { %v8336_v57 = vpop.xlane.xlu1 %8335 }
0x2348   :  { %12942 = vrcp.f32 %v8336_v57 }
0x2349   :  { %v8345_v62 = vpop.xlane.xlu0 %8344 }
0x234a   :  { %12944 = vrcp.f32 %v8345_v62 }
0x234b   :  { %v8342_v48 = vpop.xlane.xlu1 %8341 }
0x234c   :  { %12946 = vrcp.f32 %v8342_v48 }
0x234d   :  { %v8351_v42 = vpop.xlane.xlu0 %8350 }
0x234e   :  { %12948 = vrcp.f32 %v8351_v42 }
0x234f   :  { %v8348_v52 = vpop.xlane.xlu1 %8347  ;;  %v12937_v28 = vpop.eup %12936 }
0x2350   :  { %12950 = vrcp.f32 %v8348_v52  ;;  %v8361_v55 = vmul.f32 %v12937_v28, %v12921_v44 }
0x2351   :  { %v12939_v59 = vpop.eup %12938 }
0x2352   :  { %v8360_v16 = vmul.f32 %v12939_v59, %v12923_v9 }
0x2353   :  { %v12941_v40 = vpop.eup %12940 }
0x2354   :  { %12271 = vmatprep.mubr.msk.f32.mxu1 %vm248_vm4, %v8360_v16  ;;  %v8363_v5 = vmul.f32 %v12941_v40, %v12925_v7 }
0x2355   :  { %v12943_v18 = vpop.eup %12942  ;;  %12272 = vmatmul.mubr.msk.f32.vlgmr.msra.gmra.mxu1 %vm248_vm4, %v8361_v55 }
0x2356   :  { %v8362_v3 = vmul.f32 %v12943_v18, %v12927_v54 }
0x2357   :  { %v12945_v21 = vpop.eup %12944 }
0x2358   :  { %12274 = vmatprep.mubr.msk.f32.mxu1 %vm248_vm4, %v8362_v3  ;;  %v8365_v6 = vmul.f32 %v12945_v21, %v12929_v26 }
0x2359   :  { %v12947_v11 = vpop.eup %12946  ;;  %12275 = vmatmul.mubr.msk.f32.gmra.mxu1 %vm248_vm4, %v8363_v5 }
0x235a   :  { %v8364_v33 = vmul.f32 %v12947_v11, %v12931_v13 }
0x235b   :  { %v12949_v12 = vpop.eup %12948 }
0x235c   :  { %12277 = vmatprep.mubr.msk.f32.mxu1 %vm248_vm4, %v8364_v33  ;;  %v8367_v19 = vmul.f32 %v12949_v12, %v12933_v47 }
0x235d   :  { %v12951_v46 = vpop.eup %12950  ;;  %12278 = vmatmul.mubr.msk.f32.gmra.mxu1 %vm248_vm4, %v8365_v6 }
0x235e   :  { %v8366_v60 = vmul.f32 %v12951_v46, %v12935_v29 }
0x2360   :  { %12280 = vmatprep.mubr.msk.f32.mxu1 %vm248_vm4, %v8366_v60 }
0x2361   :  { %12281 = vmatmul.mubr.msk.f32.gmra.mxu1 %vm248_vm4, %v8367_v19 }
0x2362   :  { %8893 = vmatprep.mubr.bf16.mxu1 %v13040_v0 }
0x2415   :  { %v12273_v31 = vpop.f32.mrf.mxu1 }
0x2417   :  { %v8458_v22 = vpop.f32.mrf.mxu1 }
0x2418   :  { %v8497_v8 = vpack.c.bf16 %v12273_v31, %v8458_v22 }
0x2419   :  { %v12276_v44 = vpop.f32.mrf.mxu1 }
0x241a   :  { %12287 = vmatprep.mubr.msk.bf16.mxu0 %vm993_vm6, %v8497_v8 }
0x241b   :  { %v8468_v1 = vpop.f32.mrf.mxu1 }
0x241c   :  { %v8498_v9 = vpack.c.bf16 %v12276_v44, %v8468_v1 }
0x241d   :  { %v12279_v23 = vpop.f32.mrf.mxu1 }
0x241e   :  { %12288 = vmatmul.mubr.msk.bf16.vlgmr.msra.gmra.mxu0 %vm993_vm6, %v8498_v9 }
0x241f   :  { %v8478_v7 = vpop.f32.mrf.mxu1 }
0x2420   :  { %v8499_v2 = vpack.c.bf16 %v12279_v23, %v8478_v7 }
0x2421   :  { %v12282_v54 = vpop.f32.mrf.mxu1 }
0x2422   :  { %12291 = vmatprep.mubr.msk.bf16.mxu0 %vm993_vm6, %v8499_v2 }
0x2423   :  { %v8488_v25 = vpop.f32.mrf.mxu1 }
0x2424   :  { %v8500_v26 = vpack.c.bf16 %v12282_v54, %v8488_v25 }
0x2426   :  { %12292 = vmatmul.mubr.msk.bf16.gmra.mxu0 %vm993_vm6, %v8500_v26 }
0x24de   :  { %v12289_v27 = vpop.f32.mrf.mxu0 }
0x24df   :  { %v8597_v51 = vadd.f32 %v12289_v27, %v15500_v34 }
0x24e0   :  { %v8564_v13 = vpop.f32.mrf.mxu0 }
0x24e1   :  { %v8595_v47 = vadd.f32 %v8564_v13, %v15504_v17  ;;  %v8613_v38 = vadd.f32 %v10351_v37, %v8597_v51 }
0x24e2   :  { %v12290_v29 = vpop.f32.mrf.mxu0 }
0x24e3   :  { %v8611_v20 = vadd.f32 %v10351_v37, %v8595_v47  ;;  %v8598_v39 = vadd.f32 %v12290_v29, %v15508_v36  ;;  %v8621_v28 = vadd.f32 %v8613_v38, %v14692_v45  ;;  %v12582_v38 = vld [vmem:[%s16018_s18 + $0xd0] ss:$8 sps:$4 sm:$0xff]  }
0x24e4   :  { %v8567_v53 = vpop.f32.mrf.mxu0 }
0x24e5   :  { %v8596_v56 = vadd.f32 %v8567_v53, %v15512_v61  ;;  %v8619_v57 = vadd.f32 %v8611_v20, %v14678_v14  ;;  %v8614_v34 = vadd.f32 %v10351_v37, %v8598_v39  ;;  %v12581_v20 = vld [vmem:[%s16018_s18 + $0xe4] ss:$8 sps:$4 sm:$0xff]   ;;  %v12579_v39 = vld [vmem:[%s16018_s18 + $0xe0] ss:$8 sps:$4 sm:$0xff]   ;;  %v12584_v53 = vld [vmem:[%s16018_s18 + $0xd4] ss:$8 sps:$4 sm:$0xff]  }
0x24e6   :  { %v12293_v62 = vpop.f32.mrf.mxu0 }
0x24e7   :  { %v8612_v48 = vadd.f32 %v10351_v37, %v8596_v56  ;;  %8631 = vadd.xlane.f32.xlu1 %v8619_v57  ;;  %v8601_v17 = vadd.f32 %v12293_v62, %v15516_v63  ;;  %v8622_v14 = vadd.f32 %v8614_v34, %v14694_v35  ;;  %v12576_v35 = vld [vmem:[%s16018_s18 + $0xf0] ss:$8 sps:$4 sm:$0xff]   ;;  %v12587_v56 = vld [vmem:[%s16018_s18 + $0xc4] ss:$8 sps:$4 sm:$0xff]   ;;  %v12590_v62 = vld [vmem:[%s16018_s18 + $0xb4] ss:$8 sps:$4 sm:$0xff]  }
0x24e8   :  { %v8580_v42 = vpop.f32.mrf.mxu0  ;;  %v12593_v34 = vld [vmem:[%s16018_s18 + $0xa4] ss:$8 sps:$4 sm:$0xff]  }
0x24e9   :  { %v8599_v52 = vadd.f32 %v8580_v42, %v15520_v50  ;;  %v8620_v59 = vadd.f32 %v8612_v48, %v14680_v58  ;;  %v8617_v55 = vadd.f32 %v10351_v37, %v8601_v17  ;;  %v12588_v48 = vld [vmem:[%s16018_s18 + $0xb0] ss:$8 sps:$4 sm:$0xff]   ;;  %v12591_v42 = vld [vmem:[%s16018_s18 + $0xa0] ss:$8 sps:$4 sm:$0xff]   ;;  %v12596_v17 = vld [vmem:[%s16018_s18 + $0x94] ss:$8 sps:$4 sm:$0xff]  }
0x24ea   :  { %v12294_v36 = vpop.f32.mrf.mxu0 }
0x24eb   :  { %v8615_v16 = vadd.f32 %v10351_v37, %v8599_v52  ;;  %8635 = vadd.xlane.f32.xlu1 %v8621_v28  ;;  %8633 = vadd.xlane.f32.xlu0 %v8620_v59  ;;  %v8602_v40 = vadd.f32 %v12294_v36, %v15524_v15  ;;  %v8625_v50 = vadd.f32 %v8617_v55, %v14733_v43  ;;  %v12594_v52 = vld [vmem:[%s16018_s18 + $0x90] ss:$8 sps:$4 sm:$0xff]  }
0x24ec   :  { %v8583_v61 = vpop.f32.mrf.mxu0 }
0x24ed   :  { %v8600_v18 = vadd.f32 %v8583_v61, %v15526_v30  ;;  %v8623_v63 = vadd.f32 %v8615_v16, %v14713_v32  ;;  %v8618_v45 = vadd.f32 %v10351_v37, %v8602_v40  ;;  %v12578_v32 = vld [vmem:[%s16018_s18 + $0xf4] ss:$8 sps:$4 sm:$0xff]  }
0x24ee   :  { %8861 = vmatprep.subr.bf16.mxu1 %v12578_v32 }
0x24ef   :  { %v8616_v3 = vadd.f32 %v10351_v37, %v8600_v18  ;;  %8637 = vadd.xlane.f32.xlu0 %v8622_v14  ;;  %8639 = vadd.xlane.f32.xlu1 %v8623_v63  ;;  %v8626_v5 = vadd.f32 %v8618_v45, %v14735_v41 }
0x24f0   :  { %8862 = vmatpush1.bf16.msra.mxu1 %v12576_v35 }
0x24f1   :  { %v8624_v58 = vadd.f32 %v8616_v3, %v14715_v24  ;;  %8863 = vmatprep.subr.bf16.mxu1 %v12581_v20 }
0x24f3   :  { %8641 = vadd.xlane.f32.xlu0 %v8624_v58  ;;  %8643 = vadd.xlane.f32.xlu1 %v8625_v50 }
0x24f4   :  { %8864 = vmatpush1.bf16.msra.mxu1 %v12579_v39 }
0x24f5   :  { %8865 = vmatprep.subr.bf16.mxu1 %v12584_v53 }
0x24f7   :  { %8645 = vadd.xlane.f32.xlu0 %v8626_v5 }
0x24f8   :  { %8866 = vmatpush1.bf16.msra.mxu1 %v12582_v38 }
0x24f9   :  { %8867 = vmatprep.subr.bf16.mxu1 %v12587_v56 }
0x2570   :  { %v8632_v15 = vpop.xlane.xlu1 %8631 }
0x2571   :  { %v8647_v30 = vmul.f32 0.0078125, %v8632_v15 }
0x2573   :  { %v15629_v24 = vsub.f32 %v8619_v57, %v8647_v30  ;;  %v12585_v57 = vld [vmem:[%s16018_s18 + $0xc0] ss:$8 sps:$4 sm:$0xff]  }
0x2574   :  { %v8634_v43 = vpop.xlane.xlu0 %8633  ;;  %v8636_v21 = vpop.xlane.xlu1 %8635  ;;  %8868 = vmatpush1.bf16.msra.mxu1 %v12585_v57 }
0x2575   :  { %v8648_v11 = vmul.f32 0.0078125, %v8634_v43  ;;  %v8649_v33 = vmul.f32 0.0078125, %v8636_v21  ;;  %v8663_v41 = vmul.f32 %v15629_v24, %v15629_v24  ;;  %8869 = vmatprep.subr.bf16.mxu1 %v12590_v62 }
0x2577   :  { %v15633_v6 = vsub.f32 %v8620_v59, %v8648_v11  ;;  %v15635_v12 = vsub.f32 %v8621_v28, %v8649_v33  ;;  %8671 = vadd.xlane.f32.xlu1 %v8663_v41  ;;  %v12599_v28 = vld [vmem:[%s16018_s18 + $0x84] ss:$8 sps:$4 sm:$0xff]   ;;  %v12597_v59 = vld [vmem:[%s16018_s18 + $0x80] ss:$8 sps:$4 sm:$0xff]  }
0x2578   :  { %v8638_v46 = vpop.xlane.xlu0 %8637  ;;  %v8640_v60 = vpop.xlane.xlu1 %8639  ;;  %8870 = vmatpush1.bf16.msra.mxu1 %v12588_v48 }
0x2579   :  { %v8650_v19 = vmul.f32 0.0078125, %v8638_v46  ;;  %v8651_v4 = vmul.f32 0.0078125, %v8640_v60  ;;  %v8664_v31 = vmul.f32 %v15633_v6, %v15633_v6  ;;  %v8665_v22 = vmul.f32 %v15635_v12, %v15635_v12  ;;  %8871 = vmatprep.subr.bf16.mxu1 %v12593_v34 }
0x257b   :  { %v15641_v8 = vsub.f32 %v8622_v14, %v8650_v19  ;;  %v15643_v44 = vsub.f32 %v8623_v63, %v8651_v4  ;;  %8673 = vadd.xlane.f32.xlu0 %v8664_v31  ;;  %8675 = vadd.xlane.f32.xlu1 %v8665_v22  ;;  %v10354_v19 = vld [vmem:[%s16019_s16 + $0x1] ss:$0 sm:$0xff] }
0x257c   :  { %v8642_v1 = vpop.xlane.xlu0 %8641  ;;  %v8644_v9 = vpop.xlane.xlu1 %8643  ;;  %8872 = vmatpush1.bf16.msra.mxu1 %v12591_v42 }
0x257d   :  { %v8652_v23 = vmul.f32 0.0078125, %v8642_v1  ;;  %v8653_v7 = vmul.f32 0.0078125, %v8644_v9  ;;  %v8666_v2 = vmul.f32 %v15641_v8, %v15641_v8  ;;  %v8667_v54 = vmul.f32 %v15643_v44, %v15643_v44  ;;  %8873 = vmatprep.subr.bf16.mxu1 %v12596_v17 }
0x257f   :  { %v15649_v25 = vsub.f32 %v8624_v58, %v8652_v23  ;;  %v15651_v26 = vsub.f32 %v8625_v50, %v8653_v7  ;;  %8677 = vadd.xlane.f32.xlu0 %v8666_v2  ;;  %8679 = vadd.xlane.f32.xlu1 %v8667_v54  ;;  %v10355_v7 = vld [vmem:[%s16020_s17 + $0x1] ss:$0 sm:$0xff] }
0x2580   :  { %v8646_v27 = vpop.xlane.xlu0 %8645  ;;  %8874 = vmatpush1.bf16.msra.mxu1 %v12594_v52 }
0x2581   :  { %v8654_v13 = vmul.f32 0.0078125, %v8646_v27  ;;  %v8668_v51 = vmul.f32 %v15649_v25, %v15649_v25  ;;  %v8669_v47 = vmul.f32 %v15651_v26, %v15651_v26  ;;  %8875 = vmatprep.subr.bf16.mxu1 %v12599_v28 }
0x2583   :  { %v15657_v37 = vsub.f32 %v8626_v5, %v8654_v13  ;;  %8681 = vadd.xlane.f32.xlu0 %v8668_v51  ;;  %8683 = vadd.xlane.f32.xlu1 %v8669_v47 }
0x2584   :  { %8876 = vmatpush1.bf16.msra.mxu1 %v12597_v59 }
0x2585   :  { %v8670_v29 = vmul.f32 %v15657_v37, %v15657_v37 }
0x2587   :  { %8685 = vadd.xlane.f32.xlu0 %v8670_v29 }
0x2600   :  { %v8672_v36 = vpop.xlane.xlu1 %8671 }
0x2601   :  { %v8687_v16 = vmul.f32 0.0078125, %v8672_v36 }
0x2603   :  { %v8695_v61 = vadd.f32 1e-05, %v8687_v16 }
0x2604   :  { %v8674_v14 = vpop.xlane.xlu0 %8673  ;;  %v8676_v55 = vpop.xlane.xlu1 %8675 }
0x2605   :  { %12952 = vrsqrt.f32 %v8695_v61  ;;  %v8688_v40 = vmul.f32 0.0078125, %v8674_v14  ;;  %v8689_v18 = vmul.f32 0.0078125, %v8676_v55  ;;  %v12603_v14 = vld [vmem:[%s16021_s20 + $0xb0] sm:$0xff]   ;;  %v12604_v55 = vld [vmem:[%s16021_s20 + $0xe8] sm:$0xff]  }
0x2607   :  { %v8696_v63 = vadd.f32 1e-05, %v8688_v40  ;;  %v8697_v3 = vadd.f32 1e-05, %v8689_v18  ;;  %v12605_v40 = vld [vmem:[%s16021_s20 + $0xa8] sm:$0xff]   ;;  %v12606_v18 = vld [vmem:[%s16021_s20 + $0xe0] sm:$0xff]  }
0x2608   :  { %v8678_v45 = vpop.xlane.xlu0 %8677  ;;  %v8680_v58 = vpop.xlane.xlu1 %8679 }
0x2609   :  { %12954 = vrsqrt.f32 %v8696_v63  ;;  %v8690_v50 = vmul.f32 0.0078125, %v8678_v45  ;;  %v8691_v35 = vmul.f32 0.0078125, %v8680_v58  ;;  %v12607_v63 = vld [vmem:[%s16021_s20 + $0xa0] sm:$0xff]   ;;  %v12609_v45 = vld [vmem:[%s16021_s20 + $0x98] sm:$0xff]   ;;  %v12610_v58 = vld [vmem:[%s16021_s20 + $0xd0] sm:$0xff]  }
0x260a   :  { %12956 = vrsqrt.f32 %v8697_v3  ;;  %v12608_v3 = vld [vmem:[%s16021_s20 + $0xd8] sm:$0xff]  }
0x260b   :  { %v8698_v5 = vadd.f32 1e-05, %v8690_v50  ;;  %v8699_v30 = vadd.f32 1e-05, %v8691_v35  ;;  %v12611_v50 = vld [vmem:[%s16021_s20 + $0x90] sm:$0xff]   ;;  %v12613_v35 = vld [vmem:[%s16021_s20 + $0x88] sm:$0xff]  }
0x260c   :  { %v8682_v32 = vpop.xlane.xlu0 %8681  ;;  %v8684_v21 = vpop.xlane.xlu1 %8683 }
0x260d   :  { %12958 = vrsqrt.f32 %v8698_v5  ;;  %v8692_v15 = vmul.f32 0.0078125, %v8682_v32  ;;  %v8693_v46 = vmul.f32 0.0078125, %v8684_v21  ;;  %v12612_v5 = vld [vmem:[%s16021_s20 + $0xc8] sm:$0xff]   ;;  %v12614_v32 = vld [vmem:[%s16021_s20 + $0xc0] sm:$0xff]   ;;  %v16053_v21 = vsub.s32 1, %v14426_v49 }
0x260f   :  { %v8700_v43 = vadd.f32 1e-05, %v8692_v15  ;;  %v8701_v22 = vadd.f32 1e-05, %v8693_v46  ;;  %v12615_v15 = vld [vmem:[%s16021_s20 + $0x80] sm:$0xff]  }
0x2610   :  { %v8686_v11 = vpop.xlane.xlu0 %8685 }
0x2611   :  { %12960 = vrsqrt.f32 %v8700_v43  ;;  %v8694_v33 = vmul.f32 0.0078125, %v8686_v11 }
0x2612   :  { %v12953_v41 = vpop.eup %12952  ;;  %12962 = vrsqrt.f32 %v8699_v30  ;;  %v10372_v30 = vld [vmem:[%s16022_s19 + $0x2] sm:$0x3] }
0x2613   :  { %v8711_v60 = vmul.f32 %v12953_v41, %v15629_v24  ;;  %v8702_v4 = vadd.f32 1e-05, %v8694_v33  ;;  %v15797_v43 = vrot.slane %v10372_v30, %v4352_v10  ;;  %v15801_v11 = vrot.slane %v10372_v30, %v16053_v21 }
0x2615   :  { %v8725_v1 = vmul.f32 %v10354_v19, %v8711_v60  ;;  %12964 = vrsqrt.f32 %v8702_v4 }
0x2616   :  { %v12955_v31 = vpop.eup %12954  ;;  %12966 = vrsqrt.f32 %v8701_v22 }
0x2617   :  { %v8712_v9 = vmul.f32 %v12955_v31, %v15633_v6  ;;  %v12957_v23 = vpop.eup %12956  ;;  %v15711_v24 = vadd.f32 %v10355_v7, %v8725_v1 }
0x2618   :  { %v8713_v13 = vmul.f32 %v12957_v23, %v15635_v12 }
0x2619   :  { %v8726_v2 = vmul.f32 %v10354_v19, %v8712_v9 }
0x261a   :  { %v12959_v54 = vpop.eup %12958  ;;  %v8727_v20 = vmul.f32 %v10354_v19, %v8713_v13 }
0x261b   :  { %v15713_v27 = vadd.f32 %v10355_v7, %v8726_v2  ;;  %v8714_v51 = vmul.f32 %v12959_v54, %v15641_v8 }
0x261c   :  { %v15723_v56 = vadd.f32 %v10355_v7, %v8727_v20 }
0x261d   :  { %v8747_v6 = vpack.c.bf16 %v15713_v27, %v15711_v24  ;;  %v8728_v47 = vmul.f32 %v10354_v19, %v8714_v51 }
0x261e   :  { %v12961_v29 = vpop.eup %12960 }
0x261f   :  { %8894 = vmatmul.mubr.bf16.vlgmr.msra.gmra.mxu1 %v8747_v6  ;;  %v12963_v39 = vpop.eup %12962  ;;  %v15720_v53 = vadd.f32 %v10355_v7, %v8728_v47  ;;  %v8716_v38 = vmul.f32 %v12961_v29, %v15649_v25 }
0x2620   :  { %8903 = vmatprep.mubr.bf16.mxu1 %v13040_v0  ;;  %v8715_v12 = vmul.f32 %v12963_v39, %v15643_v44 }
0x2621   :  { %v8748_v8 = vpack.c.bf16 %v15720_v53, %v15723_v56  ;;  %v8730_v57 = vmul.f32 %v10354_v19, %v8716_v38 }
0x2622   :  { %v12965_v62 = vpop.eup %12964  ;;  %v8729_v34 = vmul.f32 %v10354_v19, %v8715_v12 }
0x2623   :  { %v12967_v48 = vpop.eup %12966  ;;  %v15729_v42 = vadd.f32 %v10355_v7, %v8730_v57  ;;  %v8718_v17 = vmul.f32 %v12965_v62, %v15657_v37  ;;  %v12601_v37 = vld [vmem:[%s16021_s20 + $0xb8] sm:$0xff]  }
0x2624   :  { %v15732_v52 = vadd.f32 %v10355_v7, %v8729_v34  ;;  %v8717_v25 = vmul.f32 %v12967_v48, %v15651_v26  ;;  %v12600_v26 = vld [vmem:[%s16021_s20 + $0xf8] sm:$0xff]  }
0x2625   :  { %v8732_v28 = vmul.f32 %v10354_v19, %v8718_v17  ;;  %11095 = vmatprep.subr.bf16.mxu0 %v12600_v26 }
0x2626   :  { %v8749_v44 = vpack.c.bf16 %v15729_v42, %v15732_v52  ;;  %v8731_v59 = vmul.f32 %v10354_v19, %v8717_v25  ;;  %11096 = vmatpush3.bf16.msra.mxu0 %v12601_v37 }
0x2627   :  { %8904 = vmatmul.mubr.bf16.gmra.mxu1 %v8748_v8  ;;  %v15738_v36 = vadd.f32 %v10355_v7, %v8732_v28 }
0x2628   :  { %8913 = vmatprep.mubr.bf16.mxu1 %v13040_v0  ;;  %v15740_v16 = vadd.f32 %v10355_v7, %v8731_v59 }
0x262a   :  { %v8750_v61 = vpack.c.bf16 %v15738_v36, %v15740_v16 }
0x262f   :  { %8914 = vmatmul.mubr.bf16.gmra.mxu1 %v8749_v44 }
0x2630   :  { %8923 = vmatprep.mubr.bf16.mxu1 %v13040_v0  ;;  %v12602_v0 = vld [vmem:[%s16021_s20 + $0xf0] sm:$0xff]  }
0x2631   :  { %11097 = vmatprep.subr.bf16.mxu0 %v12602_v0 }
0x2632   :  { %11098 = vmatpush3.bf16.msra.mxu0 %v12603_v14 }
0x2633   :  { %11099 = vmatprep.subr.bf16.mxu0 %v12604_v55 }
0x2636   :  { %11100 = vmatpush3.bf16.msra.mxu0 %v12605_v40 }
0x2637   :  { %8924 = vmatmul.mubr.bf16.gmra.mxu1 %v8750_v61  ;;  %11101 = vmatprep.subr.bf16.mxu0 %v12606_v18 }
0x263a   :  { %11102 = vmatpush3.bf16.msra.mxu0 %v12607_v63 }
0x263b   :  { %11103 = vmatprep.subr.bf16.mxu0 %v12608_v3 }
0x263e   :  { %11104 = vmatpush3.bf16.msra.mxu0 %v12609_v45 }
0x263f   :  { %11105 = vmatprep.subr.bf16.mxu0 %v12610_v58 }
0x2642   :  { %11106 = vmatpush3.bf16.msra.mxu0 %v12611_v50 }
0x2643   :  { %11107 = vmatprep.subr.bf16.mxu0 %v12612_v5 }
0x2646   :  { %11108 = vmatpush3.bf16.msra.mxu0 %v12613_v35 }
0x2647   :  { %11109 = vmatprep.subr.bf16.mxu0 %v12614_v32 }
0x264a   :  { %11110 = vmatpush3.bf16.msra.mxu0 %v12615_v15 }
0x26df   :  { %v8895_v33 = vpop.f32.mrf.mxu1 }
0x26e0   :  { %v15804_v41 = vadd.f32 %v8895_v33, %v15797_v43 }
0x26e1   :  { %v8897_v46 = vpop.f32.mrf.mxu1 }
0x26e2   :  { %v8950_v60 = vmul.f32 0.044715, %v15804_v41  ;;  %v15808_v19 = vadd.f32 %v8897_v46, %v15801_v11 }
0x26e3   :  { %v8899_v4 = vpop.f32.mrf.mxu1 }
0x26e4   :  { %v8966_v31 = vmul.f32 %v8950_v60, %v15804_v41  ;;  %v8951_v10 = vmul.f32 0.044715, %v15808_v19  ;;  %v15813_v22 = vadd.f32 %v8899_v4, %v15797_v43 }
0x26e5   :  { %v8901_v49 = vpop.f32.mrf.mxu1 }
0x26e6   :  { %v8982_v1 = vmul.f32 %v8966_v31, %v15804_v41  ;;  %v8967_v9 = vmul.f32 %v8951_v10, %v15808_v19  ;;  %v8952_v23 = vmul.f32 0.044715, %v15813_v22  ;;  %v15819_v7 = vadd.f32 %v8901_v49, %v15801_v11 }
0x26e7   :  { %v8905_v2 = vpop.f32.mrf.mxu1 }
0x26e8   :  { %v8998_v54 = vadd.f32 %v8982_v1, %v15804_v41  ;;  %v8983_v13 = vmul.f32 %v8967_v9, %v15808_v19  ;;  %v8968_v51 = vmul.f32 %v8952_v23, %v15813_v22  ;;  %v15825_v6 = vadd.f32 %v8905_v2, %v15797_v43 }
0x26e9   :  { %v8953_v47 = vmul.f32 0.044715, %v15819_v7  ;;  %v8907_v29 = vpop.f32.mrf.mxu1 }
0x26ea   :  { %v9014_v20 = vmul.f32 0.7978846, %v8998_v54  ;;  %v8984_v39 = vmul.f32 %v8968_v51, %v15813_v22  ;;  %v8954_v38 = vmul.f32 0.044715, %v15825_v6  ;;  %v15831_v12 = vadd.f32 %v8907_v29, %v15801_v11 }
0x26eb   :  { %v8969_v8 = vmul.f32 %v8953_v47, %v15819_v7  ;;  %v8909_v57 = vpop.f32.mrf.mxu1  ;;  %v8999_v62 = vadd.f32 %v8983_v13, %v15808_v19 }
0x26ec   :  { %v9000_v48 = vadd.f32 %v8984_v39, %v15813_v22  ;;  %v8970_v34 = vmul.f32 %v8954_v38, %v15825_v6  ;;  %v8955_v17 = vmul.f32 0.044715, %v15831_v12  ;;  %12968 = vtanh.f32 %v9014_v20 }
0x26ed   :  { %v8985_v25 = vmul.f32 %v8969_v8, %v15819_v7  ;;  %v15840_v44 = vadd.f32 %v8909_v57, %v15797_v43  ;;  %v8911_v28 = vpop.f32.mrf.mxu1  ;;  %v9015_v59 = vmul.f32 0.7978846, %v8999_v62 }
0x26ee   :  { %v9016_v61 = vmul.f32 0.7978846, %v9000_v48  ;;  %v8986_v26 = vmul.f32 %v8970_v34, %v15825_v6  ;;  %v8971_v37 = vmul.f32 %v8955_v17, %v15831_v12  ;;  %v15845_v0 = vadd.f32 %v8911_v28, %v15801_v11 }
0x26ef   :  { %v8956_v14 = vmul.f32 0.044715, %v15840_v44  ;;  %v8915_v55 = vpop.f32.mrf.mxu1  ;;  %v9001_v40 = vadd.f32 %v8985_v25, %v15819_v7  ;;  %12970 = vtanh.f32 %v9015_v59  ;;  %v8934_v17 = vmul.f32 0.5, %v15804_v41 }
0x26f0   :  { %12972 = vtanh.f32 %v9016_v61  ;;  %v9002_v18 = vadd.f32 %v8986_v26, %v15825_v6  ;;  %v8987_v63 = vmul.f32 %v8971_v37, %v15831_v12  ;;  %v8957_v3 = vmul.f32 0.044715, %v15845_v0 }
0x26f1   :  { %v8972_v45 = vmul.f32 %v8956_v14, %v15840_v44  ;;  %v15854_v58 = vadd.f32 %v8915_v55, %v15797_v43  ;;  %v8917_v50 = vpop.f32.mrf.mxu1  ;;  %v9017_v5 = vmul.f32 0.7978846, %v9001_v40  ;;  %v8936_v61 = vmul.f32 0.5, %v15813_v22 }
0x26f2   :  { %v8973_v35 = vmul.f32 %v8957_v3, %v15845_v0  ;;  %v15858_v32 = vadd.f32 %v8917_v50, %v15801_v11  ;;  %v9003_v15 = vadd.f32 %v8987_v63, %v15831_v12  ;;  %v9018_v46 = vmul.f32 0.7978846, %v9002_v18 }
0x26f3   :  { %v8988_v30 = vmul.f32 %v8972_v45, %v15840_v44  ;;  %v8958_v21 = vmul.f32 0.044715, %v15854_v58  ;;  %v8919_v33 = vpop.f32.mrf.mxu1  ;;  %12974 = vtanh.f32 %v9017_v5  ;;  %v8935_v14 = vmul.f32 0.5, %v15808_v19 }
0x26f4   :  { %v8989_v60 = vmul.f32 %v8973_v35, %v15845_v0  ;;  %v8959_v4 = vmul.f32 0.044715, %v15858_v32  ;;  %v15866_v31 = vadd.f32 %v8919_v33, %v15797_v43  ;;  %v9019_v9 = vmul.f32 0.7978846, %v9003_v15 }
0x26f5   :  { %v9004_v10 = vadd.f32 %v8988_v30, %v15840_v44  ;;  %v8974_v49 = vmul.f32 %v8958_v21, %v15854_v58  ;;  %v8921_v1 = vpop.f32.mrf.mxu1 }
0x26f6   :  { %v8975_v23 = vmul.f32 %v8959_v4, %v15858_v32  ;;  %v8960_v2 = vmul.f32 0.044715, %v15866_v31  ;;  %v15873_v54 = vadd.f32 %v8921_v1, %v15801_v11  ;;  %v9005_v13 = vadd.f32 %v8989_v60, %v15845_v0 }
0x26f7   :  { %v9020_v51 = vmul.f32 0.7978846, %v9004_v10  ;;  %v8990_v47 = vmul.f32 %v8974_v49, %v15854_v58  ;;  %v8925_v29 = vpop.f32.mrf.mxu1  ;;  %12976 = vtanh.f32 %v9019_v9  ;;  %v8937_v60 = vmul.f32 0.5, %v15819_v7 }
0x26f8   :  { %12978 = vtanh.f32 %v9018_v46  ;;  %v8976_v20 = vmul.f32 %v8960_v2, %v15866_v31  ;;  %v8961_v39 = vmul.f32 0.044715, %v15873_v54  ;;  %v15880_v38 = vadd.f32 %v8925_v29, %v15797_v43 }
0x26f9   :  { %12980 = vtanh.f32 %v9020_v51  ;;  %v9006_v8 = vadd.f32 %v8990_v47, %v15854_v58  ;;  %v8991_v57 = vmul.f32 %v8975_v23, %v15858_v32  ;;  %v8927_v62 = vpop.f32.mrf.mxu1  ;;  %v9021_v48 = vmul.f32 0.7978846, %v9005_v13  ;;  %v12969_v34 = vpop.eup %12968 }
0x26fa   :  { %v8992_v25 = vmul.f32 %v8976_v20, %v15866_v31  ;;  %v8977_v28 = vmul.f32 %v8961_v39, %v15873_v54  ;;  %v8962_v59 = vmul.f32 0.044715, %v15880_v38  ;;  %v15890_v26 = vadd.f32 %v8927_v62, %v15801_v11 }
0x26fb   :  { %v8929_v37 = vpop.f32.mrf.mxu1  ;;  %12982 = vtanh.f32 %v9021_v48  ;;  %v9022_v40 = vmul.f32 0.7978846, %v9006_v8  ;;  %v9007_v35 = vadd.f32 %v8991_v57, %v15858_v32  ;;  %v9046_v10 = vadd.f32 1.0, %v12969_v34 }
0x26fc   :  { %v12971_v55 = vpop.eup %12970  ;;  %v9008_v18 = vadd.f32 %v8992_v25, %v15866_v31  ;;  %v8993_v41 = vmul.f32 %v8977_v28, %v15873_v54  ;;  %v8978_v63 = vmul.f32 %v8962_v59, %v15880_v38  ;;  %v8963_v45 = vmul.f32 0.044715, %v15890_v26 }
0x26fd   :  { %v12973_v3 = vpop.eup %12972  ;;  %v15898_v22 = vadd.f32 %v8929_v37, %v15797_v43  ;;  %v8931_v50 = vpop.f32.mrf.mxu1  ;;  %v9047_v5 = vadd.f32 1.0, %v12971_v55  ;;  %v9023_v23 = vmul.f32 0.7978846, %v9007_v35  ;;  %v9062_v8 = vmul.f32 %v9046_v10, %v8934_v17 }
0x26fe   :  { %v9048_v19 = vadd.f32 1.0, %v12973_v3  ;;  %v9024_v15 = vmul.f32 0.7978846, %v9008_v18  ;;  %v8994_v30 = vmul.f32 %v8978_v63, %v15880_v38  ;;  %v15903_v21 = vadd.f32 %v8931_v50, %v15801_v11 }
0x26ff   :  { %v8979_v33 = vmul.f32 %v8963_v45, %v15890_v26  ;;  %v8964_v46 = vmul.f32 0.044715, %v15898_v22  ;;  %v9009_v43 = vadd.f32 %v8993_v41, %v15873_v54  ;;  %v9063_v7 = vmul.f32 %v9047_v5, %v8935_v14 }
0x2700   :  { %v12975_v4 = vpop.eup %12974  ;;  %12984 = vtanh.f32 %v9024_v15  ;;  %v9010_v49 = vadd.f32 %v8994_v30, %v15880_v38  ;;  %v8965_v1 = vmul.f32 0.044715, %v15903_v21  ;;  %v9064_v2 = vmul.f32 %v9048_v19, %v8936_v61 }
0x2701   :  { %12986 = vtanh.f32 %v9022_v40  ;;  %v8980_v9 = vmul.f32 %v8964_v46, %v15898_v22  ;;  %v9049_v11 = vadd.f32 1.0, %v12975_v4  ;;  %v8995_v13 = vmul.f32 %v8979_v33, %v15890_v26 }
0x2702   :  { %v8981_v51 = vmul.f32 %v8965_v1, %v15903_v21  ;;  %v9025_v20 = vmul.f32 0.7978846, %v9009_v43  ;;  %12988 = vtanh.f32 %v9023_v23  ;;  %v9026_v57 = vmul.f32 0.7978846, %v9010_v49 }
0x2703   :  { %v8996_v47 = vmul.f32 %v8980_v9, %v15898_v22  ;;  %v9065_v29 = vmul.f32 %v9049_v11, %v8937_v60  ;;  %v9078_v59 = vpack.c.bf16 %v9064_v2, %v9062_v8  ;;  %v9011_v61 = vadd.f32 %v8995_v13, %v15890_v26 }
0x2704   :  { %v12977_v39 = vpop.eup %12976  ;;  %v8997_v62 = vmul.f32 %v8981_v51, %v15903_v21  ;;  %12990 = vtanh.f32 %v9025_v20  ;;  %v8940_v40 = vmul.f32 0.5, %v15840_v44  ;;  %v8939_v45 = vmul.f32 0.5, %v15831_v12 }
0x2705   :  { %v12979_v48 = vpop.eup %12978  ;;  %v9012_v34 = vadd.f32 %v8996_v47, %v15898_v22  ;;  %v9079_v25 = vpack.c.bf16 %v9065_v29, %v9063_v7  ;;  %v9051_v55 = vadd.f32 1.0, %v12977_v39  ;;  %12992 = vtanh.f32 %v9026_v57 }
0x2706   :  { %v12981_v28 = vpop.eup %12980  ;;  %v9013_v37 = vadd.f32 %v8997_v62, %v15903_v21  ;;  %v9050_v41 = vadd.f32 1.0, %v12979_v48  ;;  %v9027_v63 = vmul.f32 0.7978846, %v9011_v61  ;;  %v8941_v50 = vmul.f32 0.5, %v15845_v0 }
0x2707   :  { %v9028_v14 = vmul.f32 0.7978846, %v9012_v34  ;;  %9255 = vmatprep.mubr.bf16.mxu0 %v9079_v25  ;;  %v9052_v17 = vadd.f32 1.0, %v12981_v28  ;;  %v8938_v35 = vmul.f32 0.5, %v15825_v6  ;;  %v9067_v15 = vmul.f32 %v9051_v55, %v8939_v45 }
0x2708   :  { %v12983_v18 = vpop.eup %12982  ;;  %9256 = vmatmul.mubr.bf16.vlgmr.msra.gmra.mxu0 %v9078_v59  ;;  %v9029_v3 = vmul.f32 0.7978846, %v9013_v37  ;;  %v8944_v0 = vmul.f32 0.5, %v15866_v31  ;;  %v8943_v6 = vmul.f32 0.5, %v15858_v32  ;;  %v8945_v9 = vmul.f32 0.5, %v15873_v54 }
0x2709   :  { %12994 = vtanh.f32 %v9028_v14  ;;  %v9053_v5 = vadd.f32 1.0, %v12983_v18  ;;  %v9068_v19 = vmul.f32 %v9052_v17, %v8940_v40  ;;  %v9066_v44 = vmul.f32 %v9050_v41, %v8938_v35 }
0x270a   :  { %12996 = vtanh.f32 %v9027_v63  ;;  %v8942_v23 = vmul.f32 0.5, %v15854_v58  ;;  %v8947_v32 = vmul.f32 0.5, %v15890_v26  ;;  %v8949_v54 = vmul.f32 0.5, %v15903_v21  ;;  %v10422_v26 = vld [vmem:[%s16023_s21 + $0x1] ss:$0 sm:$0xff] }
0x270b   :  { %v9069_v30 = vmul.f32 %v9053_v5, %v8941_v50  ;;  %12998 = vtanh.f32 %v9029_v3  ;;  %v9080_v43 = vpack.c.bf16 %v9068_v19, %v9066_v44  ;;  %v8948_v58 = vmul.f32 0.5, %v15898_v22 }
0x270c   :  { %v8946_v59 = vmul.f32 0.5, %v15880_v38 }
0x270d   :  { %v12985_v33 = vpop.eup %12984  ;;  %v9081_v46 = vpack.c.bf16 %v9069_v30, %v9067_v15 }
0x270e   :  { %v12987_v60 = vpop.eup %12986  ;;  %v9056_v10 = vadd.f32 1.0, %v12985_v33 }
0x270f   :  { %9263 = vmatprep.mubr.bf16.mxu0 %v9081_v46  ;;  %v12989_v4 = vpop.eup %12988  ;;  %v9054_v1 = vadd.f32 1.0, %v12987_v60 }
0x2710   :  { %9264 = vmatmul.mubr.bf16.gmra.mxu0 %v9080_v43  ;;  %v9055_v12 = vadd.f32 1.0, %v12989_v4  ;;  %v9072_v2 = vmul.f32 %v9056_v10, %v8944_v0 }
0x2711   :  { %v12991_v49 = vpop.eup %12990  ;;  %v9070_v29 = vmul.f32 %v9054_v1, %v8942_v23 }
0x2712   :  { %v9057_v11 = vadd.f32 1.0, %v12991_v49  ;;  %v12993_v13 = vpop.eup %12992  ;;  %v9071_v51 = vmul.f32 %v9055_v12, %v8943_v6 }
0x2713   :  { %v9082_v57 = vpack.c.bf16 %v9072_v2, %v9070_v29  ;;  %v9058_v34 = vadd.f32 1.0, %v12993_v13 }
0x2714   :  { %v9073_v7 = vmul.f32 %v9057_v11, %v8945_v9 }
0x2715   :  { %v9074_v14 = vmul.f32 %v9058_v34, %v8946_v59 }
0x2716   :  { %v12995_v47 = vpop.eup %12994  ;;  %v9083_v39 = vpack.c.bf16 %v9073_v7, %v9071_v51 }
0x2717   :  { %v12997_v20 = vpop.eup %12996  ;;  %v9060_v31 = vadd.f32 1.0, %v12995_v47 }
0x2718   :  { %v12999_v8 = vpop.eup %12998  ;;  %v9059_v62 = vadd.f32 1.0, %v12997_v20  ;;  %9271 = vmatprep.mubr.bf16.mxu0 %v9083_v39 }
0x2719   :  { %v9061_v48 = vadd.f32 1.0, %v12999_v8  ;;  %9272 = vmatmul.mubr.bf16.gmra.mxu0 %v9082_v57  ;;  %v9076_v61 = vmul.f32 %v9060_v31, %v8948_v58 }
0x271a   :  { %v9075_v25 = vmul.f32 %v9059_v62, %v8947_v32 }
0x271b   :  { %v9077_v28 = vmul.f32 %v9061_v48, %v8949_v54  ;;  %v9084_v55 = vpack.c.bf16 %v9076_v61, %v9074_v14 }
0x271d   :  { %v9085_v37 = vpack.c.bf16 %v9077_v28, %v9075_v25 }
0x271f   :  { %9279 = vmatprep.mubr.bf16.mxu0 %v9085_v37 }
0x2721   :  { %9280 = vmatmul.mubr.bf16.gmra.mxu0 %v9084_v55 }
0x27c8   :  { %v11111_v40 = vpop.f32.mrf.mxu0 }
0x27ca   :  { %v11112_v21 = vpop.f32.mrf.mxu0 }
0x27cb   :  { %v11113_v17 = vadd.f32 %v11112_v21, %v11111_v40 }
0x27cc   :  { %v11114_v18 = vpop.f32.mrf.mxu0 }
0x27cd   :  { %v9258_v22 = vadd.f32 %v11113_v17, %v10422_v26 }
0x27ce   :  { %v11115_v41 = vpop.f32.mrf.mxu0 }
0x27cf   :  { %v11116_v63 = vadd.f32 %v11115_v41, %v11114_v18  ;;  %v9288_v3 = vadd.f32 %v9258_v22, %v15711_v24 }
0x27d0   :  { %v11117_v38 = vpop.f32.mrf.mxu0 }
0x27d1   :  { %v9261_v45 = vadd.f32 %v11116_v63, %v10422_v26  ;;  %9300 = vadd.xlane.f32.xlu1 %v9288_v3 }
0x27d2   :  { %v11118_v50 = vpop.f32.mrf.mxu0 }
0x27d3   :  { %v11119_v5 = vadd.f32 %v11118_v50, %v11117_v38  ;;  %v9289_v35 = vadd.f32 %v9261_v45, %v15713_v27 }
0x27d4   :  { %v11120_v19 = vpop.f32.mrf.mxu0 }
0x27d5   :  { %v9266_v15 = vadd.f32 %v11119_v5, %v10422_v26  ;;  %9302 = vadd.xlane.f32.xlu0 %v9289_v35 }
0x27d6   :  { %v11121_v30 = vpop.f32.mrf.mxu0 }
0x27d7   :  { %v11122_v44 = vadd.f32 %v11121_v30, %v11120_v19  ;;  %v9290_v33 = vadd.f32 %v9266_v15, %v15723_v56 }
0x27d9   :  { %v9269_v46 = vadd.f32 %v11122_v44, %v10422_v26  ;;  %9304 = vadd.xlane.f32.xlu1 %v9290_v33  ;;  %v11123_v60 = vpop.f32.mrf.mxu0 }
0x27db   :  { %v9291_v43 = vadd.f32 %v9269_v46, %v15720_v53  ;;  %v11124_v24 = vpop.f32.mrf.mxu0 }
0x27dc   :  { %v11125_v4 = vadd.f32 %v11124_v24, %v11123_v60  ;;  %v10441_v24 = vld [vmem:[%s16024_s22 + $0x1] ss:$0 sm:$0xff] }
0x27dd   :  { %9306 = vadd.xlane.f32.xlu0 %v9291_v43  ;;  %v11126_v10 = vpop.f32.mrf.mxu0 }
0x27de   :  { %v9274_v12 = vadd.f32 %v11125_v4, %v10422_v26 }
0x27df   :  { %v11127_v49 = vpop.f32.mrf.mxu0 }
0x27e0   :  { %v11128_v0 = vadd.f32 %v11127_v49, %v11126_v10  ;;  %v9292_v27 = vadd.f32 %v9274_v12, %v15732_v52  ;;  %v10442_v49 = vld [vmem:[%s16025_s23 + $0x1] ss:$0 sm:$0xff] }
0x27e1   :  { %v11129_v1 = vpop.f32.mrf.mxu0 }
0x27e2   :  { %v9277_v6 = vadd.f32 %v11128_v0, %v10422_v26  ;;  %9308 = vadd.xlane.f32.xlu1 %v9292_v27 }
0x27e3   :  { %v11130_v9 = vpop.f32.mrf.mxu0 }
0x27e4   :  { %v11131_v11 = vadd.f32 %v11130_v9, %v11129_v1  ;;  %v9293_v56 = vadd.f32 %v9277_v6, %v15729_v42 }
0x27e5   :  { %v11132_v23 = vpop.f32.mrf.mxu0 }
0x27e6   :  { %v9282_v2 = vadd.f32 %v11131_v11, %v10422_v26  ;;  %9310 = vadd.xlane.f32.xlu0 %v9293_v56 }
0x27e7   :  { %v11133_v53 = vpop.f32.mrf.mxu0 }
0x27e8   :  { %v11134_v13 = vadd.f32 %v11133_v53, %v11132_v23  ;;  %v9294_v51 = vadd.f32 %v9282_v2, %v15740_v16 }
0x27ea   :  { %v9285_v7 = vadd.f32 %v11134_v13, %v10422_v26  ;;  %9312 = vadd.xlane.f32.xlu1 %v9294_v51 }
0x27ec   :  { %v9295_v47 = vadd.f32 %v9285_v7, %v15738_v36 }
0x27ee   :  { %9314 = vadd.xlane.f32.xlu0 %v9295_v47 }
0x285a   :  { %v9301_v52 = vpop.xlane.xlu1 %9300 }
0x285b   :  { %v9316_v29 = vmul.f32 0.0078125, %v9301_v52 }
0x285d   :  { %v9324_v20 = vsub.f32 %v9288_v3, %v9316_v29 }
0x285e   :  { %v9303_v39 = vpop.xlane.xlu0 %9302 }
0x285f   :  { %v9317_v8 = vmul.f32 0.0078125, %v9303_v39  ;;  %v9332_v57 = vmul.f32 %v9324_v20, %v9324_v20 }
0x2861   :  { %v9325_v62 = vsub.f32 %v9289_v35, %v9317_v8  ;;  %9340 = vadd.xlane.f32.xlu1 %v9332_v57 }
0x2862   :  { %v9305_v42 = vpop.xlane.xlu1 %9304 }
0x2863   :  { %v9318_v31 = vmul.f32 0.0078125, %v9305_v42  ;;  %v9333_v32 = vmul.f32 %v9325_v62, %v9325_v62 }
0x2865   :  { %v15942_v54 = vsub.f32 %v9290_v33, %v9318_v31  ;;  %9342 = vadd.xlane.f32.xlu0 %v9333_v32 }
0x2866   :  { %v9307_v16 = vpop.xlane.xlu0 %9306 }
0x2867   :  { %v9319_v48 = vmul.f32 0.0078125, %v9307_v16  ;;  %v9334_v36 = vmul.f32 %v15942_v54, %v15942_v54 }
0x2869   :  { %v15946_v58 = vsub.f32 %v9291_v43, %v9319_v48  ;;  %9344 = vadd.xlane.f32.xlu1 %v9334_v36 }
0x286b   :  { %v9335_v34 = vmul.f32 %v15946_v58, %v15946_v58  ;;  %v9309_v25 = vpop.xlane.xlu1 %9308 }
0x286c   :  { %v9320_v28 = vmul.f32 0.0078125, %v9309_v25 }
0x286d   :  { %9346 = vadd.xlane.f32.xlu0 %v9335_v34 }
0x286e   :  { %v15950_v59 = vsub.f32 %v9292_v27, %v9320_v28 }
0x286f   :  { %v9311_v61 = vpop.xlane.xlu0 %9310 }
0x2870   :  { %v9321_v37 = vmul.f32 0.0078125, %v9311_v61  ;;  %v9336_v14 = vmul.f32 %v15950_v59, %v15950_v59 }
0x2872   :  { %v15954_v55 = vsub.f32 %v9293_v56, %v9321_v37  ;;  %9348 = vadd.xlane.f32.xlu1 %v9336_v14 }
0x2873   :  { %v9313_v40 = vpop.xlane.xlu1 %9312 }
0x2874   :  { %v9322_v26 = vmul.f32 0.0078125, %v9313_v40  ;;  %v9337_v21 = vmul.f32 %v15954_v55, %v15954_v55 }
0x2876   :  { %v15958_v17 = vsub.f32 %v9294_v51, %v9322_v26  ;;  %9350 = vadd.xlane.f32.xlu0 %v9337_v21 }
0x2877   :  { %v9315_v18 = vpop.xlane.xlu0 %9314 }
0x2878   :  { %v9323_v22 = vmul.f32 0.0078125, %v9315_v18  ;;  %v9338_v41 = vmul.f32 %v15958_v17, %v15958_v17 }
0x287a   :  { %v15962_v63 = vsub.f32 %v9295_v47, %v9323_v22  ;;  %9352 = vadd.xlane.f32.xlu1 %v9338_v41 }
0x287c   :  { %v9339_v3 = vmul.f32 %v15962_v63, %v15962_v63 }
0x287e   :  { %9354 = vadd.xlane.f32.xlu0 %v9339_v3 }
0x28ea   :  { %v9341_v38 = vpop.xlane.xlu1 %9340 }
0x28eb   :  { %v9356_v45 = vmul.f32 0.0078125, %v9341_v38 }
0x28ed   :  { %v9364_v50 = vadd.f32 1e-05, %v9356_v45 }
0x28ee   :  { %v9343_v5 = vpop.xlane.xlu0 %9342 }
0x28ef   :  { %13000 = vrsqrt.f32 %v9364_v50  ;;  %v9357_v35 = vmul.f32 0.0078125, %v9343_v5 }
0x28f1   :  { %v9365_v19 = vadd.f32 1e-05, %v9357_v35 }
0x28f2   :  { %v9345_v15 = vpop.xlane.xlu1 %9344 }
0x28f3   :  { %13002 = vrsqrt.f32 %v9365_v19  ;;  %v9358_v30 = vmul.f32 0.0078125, %v9345_v15 }
0x28f5   :  { %v9366_v44 = vadd.f32 1e-05, %v9358_v30 }
0x28f6   :  { %v9347_v33 = vpop.xlane.xlu0 %9346 }
0x28f7   :  { %13004 = vrsqrt.f32 %v9366_v44  ;;  %v9359_v46 = vmul.f32 0.0078125, %v9347_v33 }
0x28f9   :  { %v9367_v60 = vadd.f32 1e-05, %v9359_v46 }
0x28fb   :  { %13006 = vrsqrt.f32 %v9367_v60  ;;  %v9349_v4 = vpop.xlane.xlu1 %9348 }
0x28fc   :  { %v13001_v43 = vpop.eup %13000  ;;  %v9360_v12 = vmul.f32 0.0078125, %v9349_v4 }
0x28fd   :  { %v9380_v10 = vmul.f32 %v13001_v43, %v9324_v20 }
0x28fe   :  { %v9368_v27 = vadd.f32 1e-05, %v9360_v12 }
0x28ff   :  { %v9394_v0 = vmul.f32 %v10441_v24, %v9380_v10  ;;  %v9351_v6 = vpop.xlane.xlu0 %9350 }
0x2900   :  { %v13003_v1 = vpop.eup %13002  ;;  %13008 = vrsqrt.f32 %v9368_v27  ;;  %v9361_v56 = vmul.f32 0.0078125, %v9351_v6 }
0x2901   :  { %v9408_v9 = vadd.f32 %v10442_v49, %v9394_v0  ;;  %v9381_v11 = vmul.f32 %v13003_v1, %v9325_v62 }
0x2902   :  { %v9369_v2 = vadd.f32 1e-05, %v9361_v56 }
0x2903   :  { %9416 = vst [vmem:[%s16026_s24] sm:$0xff] %v9408_v9  ;;  %v9395_v23 = vmul.f32 %v10441_v24, %v9381_v11  ;;  %v9353_v13 = vpop.xlane.xlu1 %9352 }
0x2904   :  { %v13005_v53 = vpop.eup %13004  ;;  %13010 = vrsqrt.f32 %v9369_v2  ;;  %v9362_v47 = vmul.f32 0.0078125, %v9353_v13 }
0x2905   :  { %v9409_v51 = vadd.f32 %v10442_v49, %v9395_v23  ;;  %v9382_v7 = vmul.f32 %v13005_v53, %v15942_v54 }
0x2906   :  { %v9370_v29 = vadd.f32 1e-05, %v9362_v47 }
0x2907   :  { %9417 = vst [vmem:[%s16026_s24 + $0x8] sm:$0xff] %v9409_v51  ;;  %v9396_v52 = vmul.f32 %v10441_v24, %v9382_v7  ;;  %v9355_v39 = vpop.xlane.xlu0 %9354 }
0x2908   :  { %v13007_v20 = vpop.eup %13006  ;;  %13012 = vrsqrt.f32 %v9370_v29  ;;  %v9363_v62 = vmul.f32 0.0078125, %v9355_v39 }
0x2909   :  { %v9410_v8 = vadd.f32 %v10442_v49, %v9396_v52  ;;  %v9383_v57 = vmul.f32 %v13007_v20, %v15946_v58 }
0x290a   :  { %v9371_v31 = vadd.f32 1e-05, %v9363_v62 }
0x290b   :  { %9418 = vst [vmem:[%s16026_s24 + $0x10] sm:$0xff] %v9410_v8  ;;  %v9397_v42 = vmul.f32 %v10441_v24, %v9383_v57 }
0x290c   :  { %13014 = vrsqrt.f32 %v9371_v31 }
0x290d   :  { %v9411_v32 = vadd.f32 %v10442_v49, %v9397_v42  ;;  %v13009_v54 = vpop.eup %13008 }
0x290e   :  { %v9384_v16 = vmul.f32 %v13009_v54, %v15950_v59 }
0x290f   :  { %9419 = vst [vmem:[%s16026_s24 + $0x18] sm:$0xff] %v9411_v32 }
0x2910   :  { %v9398_v48 = vmul.f32 %v10441_v24, %v9384_v16 }
0x2911   :  { %v13011_v36 = vpop.eup %13010 }
0x2912   :  { %v9412_v58 = vadd.f32 %v10442_v49, %v9398_v48  ;;  %v9385_v34 = vmul.f32 %v13011_v36, %v15954_v55 }
0x2914   :  { %9420 = vst [vmem:[%s16026_s24 + $0x20] sm:$0xff] %v9412_v58  ;;  %v9399_v25 = vmul.f32 %v10441_v24, %v9385_v34 }
0x2915   :  { %v13013_v28 = vpop.eup %13012 }
0x2916   :  { %v9413_v61 = vadd.f32 %v10442_v49, %v9399_v25  ;;  %v9386_v37 = vmul.f32 %v13013_v28, %v15958_v17 }
0x2918   :  { %9421 = vst [vmem:[%s16026_s24 + $0x28] sm:$0xff] %v9413_v61  ;;  %v9400_v14 = vmul.f32 %v10441_v24, %v9386_v37 }
0x2919   :  { %v13015_v59 = vpop.eup %13014 }
0x291a   :  { %v9414_v40 = vadd.f32 %v10442_v49, %v9400_v14  ;;  %v9387_v26 = vmul.f32 %v13015_v59, %v15962_v63 }
0x291c   :  { %9422 = vst [vmem:[%s16026_s24 + $0x30] sm:$0xff] %v9414_v40  ;;  %v9401_v55 = vmul.f32 %v10441_v24, %v9387_v26 }
0x291e   :  { %v9415_v21 = vadd.f32 %v10442_v49, %v9401_v55 }
0x2920   :  { %9423 = vst [vmem:[%s16026_s24 + $0x38] sm:$0xff] %v9415_v21 }

</bundles_post_ra>
